<compile_context>
chip_gen: v7x
topology: tpu7x:2x2x1
jax: 0.10.0
libtpu: 0.0.40
codegen_flags: <defaults>
</compile_context>

<pallas_src>
import jax
import jax.numpy as jnp
from jax import lax
from jax.experimental import pallas as pl
from jax.experimental.pallas import tpu as pltpu


# ----------------------------------------------------------------------------
# Fused decoder kernel (embedding, 3-layer GRU, attention, pointer-generator)
# ----------------------------------------------------------------------------
def decoder_kernel(
    sou_ref, sou_col_ref, tar_ref, tar_col_ref, hid_ref, enc_ref, emb_ref,
    wih0_ref, whh0_ref, bih0_ref, bhh0_ref,
    wih1_ref, whh1_ref, bih1_ref, bhh1_ref,
    wih2_ref, whh2_ref, bih2_ref, bhh2_ref,
    wenc_ref, wdec_ref, v_ref,
    woutw_ref, woutd_ref, bout_ref,
    wgw_ref, wgd_ref, bg_ref,
    out_ref, atten_ref,
    gi_r_s, gi_z_s, gi_n_s, y_s, dec_s, wctx_s, copy_s,
):
    B, S = sou_ref.shape
    _, T = tar_ref.shape
    E = wdec_ref.shape[0]
    V = emb_ref.shape[0]

    f32 = jnp.float32

    # ---- embedding via one-hot matmul (emb row 0 == 0 -> padding_idx) -------
    ids_tb = tar_col_ref[...]                                     # (T*B, 1) i32
    oh_tar = (lax.broadcasted_iota(jnp.int32, (T * B, V), 1) == ids_tb).astype(f32)
    x0 = jnp.dot(oh_tar, emb_ref[...], preferred_element_type=f32)  # (T*B, Dw)

    # ---- packed-sequence lengths (clamped to >= 1 like the PyTorch code) ----
    lengths = jnp.sum((tar_ref[...] > 0).astype(f32), axis=-1, keepdims=True)  # (B,1)
    lengths = jnp.maximum(lengths, 1.0)

    # ---- 3-layer GRU; input projections hoisted out of the recurrence -------
    def run_layer(layer_in, h_init, wih_ref, whh_ref, bih_ref, bhh_ref, write_fn):
        # one matmul per gate for ALL timesteps (M = T*B)
        gi_r_s[...] = jnp.dot(layer_in, wih_ref[0], preferred_element_type=f32) + bih_ref[0]
        gi_z_s[...] = jnp.dot(layer_in, wih_ref[1], preferred_element_type=f32) + bih_ref[1]
        gi_n_s[...] = jnp.dot(layer_in, wih_ref[2], preferred_element_type=f32) + bih_ref[2]
        whh_r, whh_z, whh_n = whh_ref[0], whh_ref[1], whh_ref[2]
        bhh_r, bhh_z, bhh_n = bhh_ref[0], bhh_ref[1], bhh_ref[2]

        def step(t, h):
            row = pl.multiple_of(t * B, B)
            gi_r = gi_r_s[pl.ds(row, B), :]
            gi_z = gi_z_s[pl.ds(row, B), :]
            gi_n = gi_n_s[pl.ds(row, B), :]
            gh_r = jnp.dot(h, whh_r, preferred_element_type=f32) + bhh_r
            gh_z = jnp.dot(h, whh_z, preferred_element_type=f32) + bhh_z
            gh_n = jnp.dot(h, whh_n, preferred_element_type=f32) + bhh_n
            r = jax.nn.sigmoid(gi_r + gh_r)
            z = jax.nn.sigmoid(gi_z + gh_z)
            n = jnp.tanh(gi_n + r * gh_n)
            h_new = (1.0 - z) * n + z * h
            write_fn(t, h_new)
            return h_new

        return lax.fori_loop(0, T, step, h_init, unroll=True)

    def write_time_major(t, h_new):
        # inter-layer activations stay time-major (rows t*B + b)
        y_s[pl.ds(pl.multiple_of(t * B, B), B), :] = h_new

    def write_final(t, h_new):
        # final layer: apply pad_packed zeroing and store batch-major (b*T + t)
        mask_t = (lengths > t.astype(f32)).astype(f32)             # (B, 1)
        masked = h_new * mask_t                                    # (B, E)
        for b in range(B):
            dec_s[pl.ds(b * T + t, 1), :] = masked[b:b + 1, :]

    _ = run_layer(x0, hid_ref[0], wih0_ref, whh0_ref, bih0_ref, bhh0_ref, write_time_major)
    _ = run_layer(y_s[...], hid_ref[1], wih1_ref, whh1_ref, bih1_ref, bhh1_ref, write_time_major)
    _ = run_layer(y_s[...], hid_ref[2], wih2_ref, whh2_ref, bih2_ref, bhh2_ref, write_final)

    # ---- attention + pointer-generator (batch folded into matmul M) ---------
    dec_all = dec_s[...]                                           # (B*T, E), masked
    enc_all = enc_ref[...].reshape(B * S, 2 * E)                   # (B*S, 2E)
    ee_all = jnp.dot(enc_all, wenc_ref[...], preferred_element_type=f32)   # (B*S, E)
    dd_all = jnp.dot(dec_all, wdec_ref[...], preferred_element_type=f32)   # (B*T, E)

    # copy-distribution one-hot built in-kernel (no HBM materialisation)
    oh_src = (lax.broadcasted_iota(jnp.int32, (B * S, V), 1)
              == sou_col_ref[...]).astype(f32)                      # (B*S, V)

    v_row = v_ref[...]                                              # (1, E)

    for b in range(B):                                              # B == 2
        dd_b = dd_all[b * T:(b + 1) * T, :]                         # (T, E)
        ee_b = ee_all[b * S:(b + 1) * S, :]                         # (S, E)
        energy = jnp.tanh(ee_b[None, :, :] + dd_b[:, None, :])      # (T, S, E)
        # TODO(synk): the E-reduction could use the MXU ((T*S,E)@(E,1)) but the
        # (T*S,1)->(T,S) result relayout is not worth it at S=8; keep VPU/XLU.
        att_b = jnp.sum(energy * v_row[None, :, :], axis=-1)        # (T, S)

        mask_b = jnp.where(sou_ref[pl.ds(b, 1), :] == 0, -1e30, 0.0)  # (1, S)
        att_b = att_b + mask_b
        m = jnp.max(att_b, axis=-1, keepdims=True)
        p = jnp.exp(att_b - m)
        atten_b = p * pl.reciprocal(jnp.sum(p, axis=-1, keepdims=True), approx=True)
        atten_ref[b] = atten_b.astype(atten_ref.dtype)

        enc_b = enc_ref[b]                                          # (S, 2E)
        wctx_s[pl.ds(b * T, T), :] = jnp.dot(atten_b, enc_b,
                                             preferred_element_type=f32)     # (T, 2E)
        copy_s[pl.ds(b * T, T), :] = jnp.dot(atten_b, oh_src[b * S:(b + 1) * S, :],
                                             preferred_element_type=f32)     # (T, V)

    wctx_all = wctx_s[...]                                          # (B*T, 2E)
    copy_all = copy_s[...]                                          # (B*T, V)

    gen_logits = (jnp.dot(wctx_all, woutw_ref[...], preferred_element_type=f32)
                  + jnp.dot(dec_all, woutd_ref[...], preferred_element_type=f32)
                  + bout_ref[...])                                  # (B*T, V)
    gm = jnp.max(gen_logits, axis=-1, keepdims=True)
    gp = jnp.exp(gen_logits - gm)
    gen_all = gp * pl.reciprocal(jnp.sum(gp, axis=-1, keepdims=True), approx=True)

    # pointer gate as a matmul (no cross-lane reductions)
    gate_logit = (jnp.dot(wctx_all, wgw_ref[...], preferred_element_type=f32)
                  + jnp.dot(dec_all, wgd_ref[...], preferred_element_type=f32)
                  + bg_ref[...])                                    # (B*T, 1)
    gate = jax.nn.sigmoid(gate_logit)

    out_all = (1.0 - gate) * gen_all + gate * copy_all              # (B*T, V)
    for b in range(B):
        out_ref[b] = out_all[b * T:(b + 1) * T, :].astype(out_ref.dtype)


# ----------------------------------------------------------------------------
# Parameter init (deterministic, synthetic).  GRU weights are stored stacked
# per gate [r, z, n] and pre-transposed (in_dim, out_dim): no in-kernel
# transposes or lane-slices needed.
# ----------------------------------------------------------------------------
def init_params(key, vocab_size, word_dim, emb_dim, pad_token_id=0):
    E = emb_dim
    keys = iter(jax.random.split(key, 40))

    def nrm(shape, scale=0.1):
        return scale * jax.random.normal(next(keys), shape, dtype=jnp.float32)

    p = {}
    emb = nrm((vocab_size, word_dim))
    p['emb'] = emb.at[pad_token_id].set(0.0)                 # padding_idx row = 0

    in_dims = [word_dim, E, E]
    for l in range(3):
        p[f'wih{l}'] = nrm((3, in_dims[l], E))               # [r, z, n] input weights^T
        p[f'whh{l}'] = nrm((3, E, E))                        # [r, z, n] hidden weights^T
        p[f'bih{l}'] = nrm((3, 1, E))
        p[f'bhh{l}'] = nrm((3, 1, E))

    p['w_enc_t'] = nrm((2 * E, E))                           # fc_encoder.weight.T
    p['w_dec_t'] = nrm((E, E))                               # fc_decoder.weight.T
    p['v'] = nrm((1, E))                                     # v.weight
    p['w_out_w_t'] = nrm((2 * E, vocab_size))                # fc_out.weight[:, :2E].T
    p['w_out_d_t'] = nrm((E, vocab_size))                    # fc_out.weight[:, 2E:].T
    p['b_out'] = nrm((1, vocab_size))
    p['w_gate_w_t'] = nrm((2 * E, 1))                        # fc_gate.weight[:, :2E].T
    p['w_gate_d_t'] = nrm((E, 1))                            # fc_gate.weight[:, 2E:].T
    p['b_gate'] = nrm((1, 1))
    return p


# ----------------------------------------------------------------------------
# Forward pass wrapper: two tiny int32 reshapes of glue + one fused pallas_call
# ----------------------------------------------------------------------------
def decoder_forward(params, sou, tar, hidden, encoder_outputs,
                    *, vocab_size, sou_len, tar_len):
    B = sou.shape[0]
    E = params['w_dec_t'].shape[0]
    S, T, V = sou_len, tar_len, vocab_size

    sou = sou.astype(jnp.int32)
    tar = tar.astype(jnp.int32)
    sou_col = sou.reshape(B * S, 1)                              # ids in b*S + s order
    tar_col_tb = jnp.transpose(tar, (1, 0)).reshape(T * B, 1)    # ids in t*B + b order

    out, atten = pl.pallas_call(
        decoder_kernel,
        out_shape=(
            jax.ShapeDtypeStruct((B, T, V), jnp.float32),
            jax.ShapeDtypeStruct((B, T, S), jnp.float32),
        ),
        scratch_shapes=[
            pltpu.VMEM((T * B, E), jnp.float32),       # gi_r (per-layer, reused)
            pltpu.VMEM((T * B, E), jnp.float32),       # gi_z
            pltpu.VMEM((T * B, E), jnp.float32),       # gi_n
            pltpu.VMEM((T * B, E), jnp.float32),       # inter-layer output (time-major)
            pltpu.VMEM((B * T, E), jnp.float32),       # final decoder output (batch-major)
            pltpu.VMEM((B * T, 2 * E), jnp.float32),   # weighted context
            pltpu.VMEM((B * T, V), jnp.float32),       # copy distribution
        ],
        # TODO(synk): at realistic vocab sizes (10k-50k) add a V grid axis for the
        # output head / one-hot and set vmem_limit_bytes (v7x has 64 MiB VMEM).
    )(sou, sou_col, tar, tar_col_tb, hidden, encoder_outputs, params['emb'],
      params['wih0'], params['whh0'], params['bih0'], params['bhh0'],
      params['wih1'], params['whh1'], params['bih1'], params['bhh1'],
      params['wih2'], params['whh2'], params['bih2'], params['bhh2'],
      params['w_enc_t'], params['w_dec_t'], params['v'],
      params['w_out_w_t'], params['w_out_d_t'], params['b_out'],
      params['w_gate_w_t'], params['w_gate_d_t'], params['b_gate'])
    return out, atten


# ----------------------------------------------------------------------------
# Pure-JAX reference (same math, HIGHEST precision) for a correctness check.
# ----------------------------------------------------------------------------
def reference_forward(params, sou, tar, hidden, encoder_outputs,
                      *, vocab_size, sou_len, tar_len):
    HI = lax.Precision.HIGHEST
    E = params['w_dec_t'].shape[0]
    T, V = tar_len, vocab_size

    tar_emb = params['emb'][tar]                                 # (B, T, Dw)
    lengths = jnp.sum(tar > 0, axis=-1)
    lengths = jnp.maximum(lengths, 1)

    def cell(x_t, h, wih, whh, bih, bhh):
        gi_r = jnp.dot(x_t, wih[0], precision=HI) + bih[0]
        gi_z = jnp.dot(x_t, wih[1], precision=HI) + bih[1]
        gi_n = jnp.dot(x_t, wih[2], precision=HI) + bih[2]
        gh_r = jnp.dot(h, whh[0], precision=HI) + bhh[0]
        gh_z = jnp.dot(h, whh[1], precision=HI) + bhh[1]
        gh_n = jnp.dot(h, whh[2], precision=HI) + bhh[2]
        r = jax.nn.sigmoid(gi_r + gh_r)
        z = jax.nn.sigmoid(gi_z + gh_z)
        n = jnp.tanh(gi_n + r * gh_n)
        return (1.0 - z) * n + z * h

    def step(carry, x_t):
        h0, h1, h2 = carry
        h0 = cell(x_t, h0, params['wih0'], params['whh0'], params['bih0'], params['bhh0'])
        h1 = cell(h0, h1, params['wih1'], params['whh1'], params['bih1'], params['bhh1'])
        h2 = cell(h1, h2, params['wih2'], params['whh2'], params['bih2'], params['bhh2'])
        return (h0, h1, h2), h2

    xs = jnp.transpose(tar_emb, (1, 0, 2))
    _, outs = lax.scan(step, (hidden[0], hidden[1], hidden[2]), xs)
    dec = jnp.transpose(outs, (1, 0, 2))                          # (B, T, E)
    lenmask = (jnp.arange(T)[None, :] < lengths[:, None]).astype(jnp.float32)
    dec = dec * lenmask[:, :, None]

    ee = jnp.einsum('bsf,fe->bse', encoder_outputs, params['w_enc_t'], precision=HI)
    dd = jnp.einsum('bte,ef->btf', dec, params['w_dec_t'], precision=HI)
    energy = jnp.tanh(ee[:, None, :, :] + dd[:, :, None, :])
    att = jnp.sum(energy * params['v'][0][None, None, None, :], axis=-1)
    att = att + jnp.where(sou == 0, -1e30, 0.0)[:, None, :]
    atten = jax.nn.softmax(att, axis=-1)

    weighted = jnp.einsum('bts,bsf->btf', atten, encoder_outputs, precision=HI)
    gen_logits = (jnp.einsum('btf,fv->btv', weighted, params['w_out_w_t'], precision=HI)
                  + jnp.einsum('bte,ev->btv', dec, params['w_out_d_t'], precision=HI)
                  + params['b_out'][0])
    output_gen = jax.nn.softmax(gen_logits, axis=-1)
    one_hot = jax.nn.one_hot(sou, V, dtype=jnp.float32)
    output_copy = jnp.einsum('bts,bsv->btv', atten, one_hot, precision=HI)
    gate_logit = (jnp.einsum('btf,fo->bto', weighted, params['w_gate_w_t'], precision=HI)
                  + jnp.einsum('bte,eo->bto', dec, params['w_gate_d_t'], precision=HI)
                  + params['b_gate'][0])
    gate = jax.nn.sigmoid(gate_logit)
    out = (1.0 - gate) * output_gen + gate * output_copy
    return out, atten


if __name__ == "__main__":
    B = 2
    SOU_LEN = 8
    TAR_LEN = 8
    WORD_DIM = 16       # args.word_embedding_dim
    EMB_DIM = 32        # args.embedding_dim
    VOCAB = 128         # args.vocab_size
    PAD = 0

    key = jax.random.PRNGKey(0)
    kp, k1, k2, k3, k4 = jax.random.split(key, 5)

    params = init_params(kp, VOCAB, WORD_DIM, EMB_DIM, pad_token_id=PAD)

    sou = jax.random.randint(k1, (B, SOU_LEN), 1, VOCAB, dtype=jnp.int32)
    sou = sou.at[0, 6:].set(0).at[1, 4:].set(0)            # source padding
    tar = jax.random.randint(k2, (B, TAR_LEN), 1, VOCAB, dtype=jnp.int32)
    tar = tar.at[0, 5:].set(0).at[1, 7:].set(0)            # target padding
    hidden = 0.1 * jax.random.normal(k3, (3, B, EMB_DIM), dtype=jnp.float32)
    encoder_outputs = jax.random.normal(k4, (B, SOU_LEN, 2 * EMB_DIM), dtype=jnp.float32)

    out, atten = decoder_forward(params, sou, tar, hidden, encoder_outputs,
                                 vocab_size=VOCAB, sou_len=SOU_LEN, tar_len=TAR_LEN)
    jax.block_until_ready((out, atten))

    ref_out, ref_atten = reference_forward(params, sou, tar, hidden, encoder_outputs,
                                           vocab_size=VOCAB, sou_len=SOU_LEN, tar_len=TAR_LEN)
    jax.block_until_ready((ref_out, ref_atten))

    assert out.shape == (B, TAR_LEN, VOCAB) and atten.shape == (B, TAR_LEN, SOU_LEN)
    assert bool(jnp.all(jnp.isfinite(out))) and bool(jnp.all(jnp.isfinite(atten)))
    assert bool(jnp.allclose(atten, ref_atten, atol=2e-3, rtol=2e-2)), "attention mismatch"
    assert bool(jnp.allclose(out, ref_out, atol=2e-3, rtol=2e-2)), "output mismatch"

    print("KERNEL_OK")
</pallas_src>

<mosaic_0001>
module attributes {stable_mosaic.version = 11 : i64} {
  func.func @decoder_kernel(%arg0: memref<2x8xi32, #tpu.memory_space<vmem>>, %arg1: memref<16x1xi32, #tpu.memory_space<vmem>>, %arg2: memref<2x8xi32, #tpu.memory_space<vmem>>, %arg3: memref<16x1xi32, #tpu.memory_space<vmem>>, %arg4: memref<3x2x32xf32, #tpu.memory_space<vmem>>, %arg5: memref<2x8x64xf32, #tpu.memory_space<vmem>>, %arg6: memref<128x16xf32, #tpu.memory_space<vmem>>, %arg7: memref<3x16x32xf32, #tpu.memory_space<vmem>>, %arg8: memref<3x32x32xf32, #tpu.memory_space<vmem>>, %arg9: memref<3x1x32xf32, #tpu.memory_space<vmem>>, %arg10: memref<3x1x32xf32, #tpu.memory_space<vmem>>, %arg11: memref<3x32x32xf32, #tpu.memory_space<vmem>>, %arg12: memref<3x32x32xf32, #tpu.memory_space<vmem>>, %arg13: memref<3x1x32xf32, #tpu.memory_space<vmem>>, %arg14: memref<3x1x32xf32, #tpu.memory_space<vmem>>, %arg15: memref<3x32x32xf32, #tpu.memory_space<vmem>>, %arg16: memref<3x32x32xf32, #tpu.memory_space<vmem>>, %arg17: memref<3x1x32xf32, #tpu.memory_space<vmem>>, %arg18: memref<3x1x32xf32, #tpu.memory_space<vmem>>, %arg19: memref<64x32xf32, #tpu.memory_space<vmem>>, %arg20: memref<32x32xf32, #tpu.memory_space<vmem>>, %arg21: memref<1x32xf32, #tpu.memory_space<vmem>>, %arg22: memref<64x128xf32, #tpu.memory_space<vmem>>, %arg23: memref<32x128xf32, #tpu.memory_space<vmem>>, %arg24: memref<1x128xf32, #tpu.memory_space<vmem>>, %arg25: memref<64x1xf32, #tpu.memory_space<vmem>>, %arg26: memref<32x1xf32, #tpu.memory_space<vmem>>, %arg27: memref<1x1xf32, #tpu.memory_space<vmem>>, %arg28: memref<2x8x128xf32, #tpu.memory_space<vmem>>, %arg29: memref<2x8x8xf32, #tpu.memory_space<vmem>>, %arg30: memref<16x32xf32, #tpu.memory_space<vmem>>, %arg31: memref<16x32xf32, #tpu.memory_space<vmem>>, %arg32: memref<16x32xf32, #tpu.memory_space<vmem>>, %arg33: memref<16x32xf32, #tpu.memory_space<vmem>>, %arg34: memref<16x32xf32, #tpu.memory_space<vmem>>, %arg35: memref<16x64xf32, #tpu.memory_space<vmem>>, %arg36: memref<16x128xf32, #tpu.memory_space<vmem>>) attributes {dimension_semantics = [], scalar_prefetch = 0 : i64, scratch_operands = 7 : i64, tpu.core_type = #tpu.core_type<tc>} {
    %c0 = arith.constant 0 : index
    %c0_0 = arith.constant 0 : index
    %0 = vector.load %arg3[%c0, %c0_0] : memref<16x1xi32, #tpu.memory_space<vmem>>, vector<16x1xi32>
    %1 = tpu.iota {dimensions = array<i32: 1>} : vector<16x128xi32>
    %2 = vector.broadcast %0 : vector<16x1xi32> to vector<16x128xi32>
    %3 = arith.cmpi eq, %1, %2 : vector<16x128xi32>
    %4 = arith.extui %3 : vector<16x128xi1> to vector<16x128xi32>
    %5 = arith.sitofp %4 : vector<16x128xi32> to vector<16x128xf32>
    %c0_1 = arith.constant 0 : index
    %c0_2 = arith.constant 0 : index
    %6 = vector.load %arg6[%c0_1, %c0_2] : memref<128x16xf32, #tpu.memory_space<vmem>>, vector<128x16xf32>
    %cst = arith.constant dense<0.000000e+00> : vector<16x16xf32>
    %7 = tpu.matmul %5, %6, %cst {dimension_numbers = #tpu.dot_dimension_numbers<[1], [0], [0], [1], [0, 0, 1, 1], [], []>} : vector<16x128xf32>, vector<128x16xf32>, vector<16x16xf32> -> vector<16x16xf32>
    %c0_3 = arith.constant 0 : index
    %c0_4 = arith.constant 0 : index
    %8 = vector.load %arg2[%c0_3, %c0_4] : memref<2x8xi32, #tpu.memory_space<vmem>>, vector<2x8xi32>
    %c0_i32 = arith.constant 0 : i32
    %9 = vector.broadcast %c0_i32 : i32 to vector<2x8xi32>
    %10 = arith.cmpi sgt, %8, %9 : vector<2x8xi32>
    %11 = arith.extui %10 : vector<2x8xi1> to vector<2x8xi32>
    %12 = arith.sitofp %11 : vector<2x8xi32> to vector<2x8xf32>
    %cst_5 = arith.constant dense<0.000000e+00> : vector<2xf32>
    %13 = vector.multi_reduction <add>, %12, %cst_5 [1] : vector<2x8xf32> to vector<2xf32>
    %14 = vector.shape_cast %13 : vector<2xf32> to vector<2x1xf32>
    %cst_6 = arith.constant 1.000000e+00 : f32
    %15 = vector.broadcast %cst_6 : f32 to vector<2x1xf32>
    %16 = arith.maximumf %14, %15 : vector<2x1xf32>
    %c0_7 = arith.constant 0 : index
    %c0_8 = arith.constant 0 : index
    %c0_9 = arith.constant 0 : index
    %17 = vector.load %arg4[%c0_7, %c0_8, %c0_9] : memref<3x2x32xf32, #tpu.memory_space<vmem>>, vector<1x2x32xf32>
    %18 = vector.shape_cast %17 : vector<1x2x32xf32> to vector<2x32xf32>
    %c0_10 = arith.constant 0 : index
    %c0_11 = arith.constant 0 : index
    %c0_12 = arith.constant 0 : index
    %19 = vector.load %arg7[%c0_10, %c0_11, %c0_12] : memref<3x16x32xf32, #tpu.memory_space<vmem>>, vector<1x16x32xf32>
    %20 = vector.shape_cast %19 : vector<1x16x32xf32> to vector<16x32xf32>
    %cst_13 = arith.constant dense<0.000000e+00> : vector<16x32xf32>
    %21 = tpu.matmul %7, %20, %cst_13 {dimension_numbers = #tpu.dot_dimension_numbers<[1], [0], [0], [1], [0, 0, 1, 1], [], []>} : vector<16x16xf32>, vector<16x32xf32>, vector<16x32xf32> -> vector<16x32xf32>
    %c0_14 = arith.constant 0 : index
    %c0_15 = arith.constant 0 : index
    %c0_16 = arith.constant 0 : index
    %22 = vector.load %arg9[%c0_14, %c0_15, %c0_16] : memref<3x1x32xf32, #tpu.memory_space<vmem>>, vector<1x1x32xf32>
    %23 = vector.shape_cast %22 : vector<1x1x32xf32> to vector<1x32xf32>
    %24 = vector.broadcast %23 : vector<1x32xf32> to vector<16x32xf32>
    %25 = arith.addf %21, %24 : vector<16x32xf32>
    %c0_17 = arith.constant 0 : index
    %c0_18 = arith.constant 0 : index
    %26 = vector.load %arg30[%c0_17, %c0_18] : memref<16x32xf32, #tpu.memory_space<vmem>>, vector<16x32xf32>
    tpu.vector_store %arg30[%c0_17, %c0_18], %25 {strides = array<i32>} : memref<16x32xf32, #tpu.memory_space<vmem>>, vector<16x32xf32>,
    %c1 = arith.constant 1 : index
    %c0_19 = arith.constant 0 : index
    %c0_20 = arith.constant 0 : index
    %27 = vector.load %arg7[%c1, %c0_19, %c0_20] : memref<3x16x32xf32, #tpu.memory_space<vmem>>, vector<1x16x32xf32>
    %28 = vector.shape_cast %27 : vector<1x16x32xf32> to vector<16x32xf32>
    %cst_21 = arith.constant dense<0.000000e+00> : vector<16x32xf32>
    %29 = tpu.matmul %7, %28, %cst_21 {dimension_numbers = #tpu.dot_dimension_numbers<[1], [0], [0], [1], [0, 0, 1, 1], [], []>} : vector<16x16xf32>, vector<16x32xf32>, vector<16x32xf32> -> vector<16x32xf32>
    %c1_22 = arith.constant 1 : index
    %c0_23 = arith.constant 0 : index
    %c0_24 = arith.constant 0 : index
    %30 = vector.load %arg9[%c1_22, %c0_23, %c0_24] : memref<3x1x32xf32, #tpu.memory_space<vmem>>, vector<1x1x32xf32>
    %31 = vector.shape_cast %30 : vector<1x1x32xf32> to vector<1x32xf32>
    %32 = vector.broadcast %31 : vector<1x32xf32> to vector<16x32xf32>
    %33 = arith.addf %29, %32 : vector<16x32xf32>
    %c0_25 = arith.constant 0 : index
    %c0_26 = arith.constant 0 : index
    %34 = vector.load %arg31[%c0_25, %c0_26] : memref<16x32xf32, #tpu.memory_space<vmem>>, vector<16x32xf32>
    tpu.vector_store %arg31[%c0_25, %c0_26], %33 {strides = array<i32>} : memref<16x32xf32, #tpu.memory_space<vmem>>, vector<16x32xf32>,
    %c2 = arith.constant 2 : index
    %c0_27 = arith.constant 0 : index
    %c0_28 = arith.constant 0 : index
    %35 = vector.load %arg7[%c2, %c0_27, %c0_28] : memref<3x16x32xf32, #tpu.memory_space<vmem>>, vector<1x16x32xf32>
    %36 = vector.shape_cast %35 : vector<1x16x32xf32> to vector<16x32xf32>
    %cst_29 = arith.constant dense<0.000000e+00> : vector<16x32xf32>
    %37 = tpu.matmul %7, %36, %cst_29 {dimension_numbers = #tpu.dot_dimension_numbers<[1], [0], [0], [1], [0, 0, 1, 1], [], []>} : vector<16x16xf32>, vector<16x32xf32>, vector<16x32xf32> -> vector<16x32xf32>
    %c2_30 = arith.constant 2 : index
    %c0_31 = arith.constant 0 : index
    %c0_32 = arith.constant 0 : index
    %38 = vector.load %arg9[%c2_30, %c0_31, %c0_32] : memref<3x1x32xf32, #tpu.memory_space<vmem>>, vector<1x1x32xf32>
    %39 = vector.shape_cast %38 : vector<1x1x32xf32> to vector<1x32xf32>
    %40 = vector.broadcast %39 : vector<1x32xf32> to vector<16x32xf32>
    %41 = arith.addf %37, %40 : vector<16x32xf32>
    %c0_33 = arith.constant 0 : index
    %c0_34 = arith.constant 0 : index
    %42 = vector.load %arg32[%c0_33, %c0_34] : memref<16x32xf32, #tpu.memory_space<vmem>>, vector<16x32xf32>
    tpu.vector_store %arg32[%c0_33, %c0_34], %41 {strides = array<i32>} : memref<16x32xf32, #tpu.memory_space<vmem>>, vector<16x32xf32>,
    %c0_35 = arith.constant 0 : index
    %c0_36 = arith.constant 0 : index
    %c0_37 = arith.constant 0 : index
    %43 = vector.load %arg8[%c0_35, %c0_36, %c0_37] : memref<3x32x32xf32, #tpu.memory_space<vmem>>, vector<1x32x32xf32>
    %44 = vector.shape_cast %43 : vector<1x32x32xf32> to vector<32x32xf32>
    %c1_38 = arith.constant 1 : index
    %c0_39 = arith.constant 0 : index
    %c0_40 = arith.constant 0 : index
    %45 = vector.load %arg8[%c1_38, %c0_39, %c0_40] : memref<3x32x32xf32, #tpu.memory_space<vmem>>, vector<1x32x32xf32>
    %46 = vector.shape_cast %45 : vector<1x32x32xf32> to vector<32x32xf32>
    %c2_41 = arith.constant 2 : index
    %c0_42 = arith.constant 0 : index
    %c0_43 = arith.constant 0 : index
    %47 = vector.load %arg8[%c2_41, %c0_42, %c0_43] : memref<3x32x32xf32, #tpu.memory_space<vmem>>, vector<1x32x32xf32>
    %48 = vector.shape_cast %47 : vector<1x32x32xf32> to vector<32x32xf32>
    %c0_44 = arith.constant 0 : index
    %c0_45 = arith.constant 0 : index
    %c0_46 = arith.constant 0 : index
    %49 = vector.load %arg10[%c0_44, %c0_45, %c0_46] : memref<3x1x32xf32, #tpu.memory_space<vmem>>, vector<1x1x32xf32>
    %50 = vector.shape_cast %49 : vector<1x1x32xf32> to vector<1x32xf32>
    %c1_47 = arith.constant 1 : index
    %c0_48 = arith.constant 0 : index
    %c0_49 = arith.constant 0 : index
    %51 = vector.load %arg10[%c1_47, %c0_48, %c0_49] : memref<3x1x32xf32, #tpu.memory_space<vmem>>, vector<1x1x32xf32>
    %52 = vector.shape_cast %51 : vector<1x1x32xf32> to vector<1x32xf32>
    %c2_50 = arith.constant 2 : index
    %c0_51 = arith.constant 0 : index
    %c0_52 = arith.constant 0 : index
    %53 = vector.load %arg10[%c2_50, %c0_51, %c0_52] : memref<3x1x32xf32, #tpu.memory_space<vmem>>, vector<1x1x32xf32>
    %54 = vector.shape_cast %53 : vector<1x1x32xf32> to vector<1x32xf32>
    %c0_i32_53 = arith.constant 0 : i32
    %c2_i32 = arith.constant 2 : i32
    %55 = arith.muli %c0_i32_53, %c2_i32 : i32
    %56 = tpu.assume_multiple %55, 2 : i32
    %57 = arith.index_cast %56 : i32 to index
    %c0_54 = arith.constant 0 : index
    %58 = vector.load %arg30[%57, %c0_54] : memref<16x32xf32, #tpu.memory_space<vmem>>, vector<2x32xf32>
    %59 = arith.index_cast %56 : i32 to index
    %c0_55 = arith.constant 0 : index
    %60 = vector.load %arg31[%59, %c0_55] : memref<16x32xf32, #tpu.memory_space<vmem>>, vector<2x32xf32>
    %61 = arith.index_cast %56 : i32 to index
    %c0_56 = arith.constant 0 : index
    %62 = vector.load %arg32[%61, %c0_56] : memref<16x32xf32, #tpu.memory_space<vmem>>, vector<2x32xf32>
    %cst_57 = arith.constant dense<0.000000e+00> : vector<2x32xf32>
    %63 = tpu.matmul %18, %44, %cst_57 {dimension_numbers = #tpu.dot_dimension_numbers<[1], [0], [0], [1], [0, 0, 1, 1], [], []>} : vector<2x32xf32>, vector<32x32xf32>, vector<2x32xf32> -> vector<2x32xf32>
    %64 = vector.broadcast %50 : vector<1x32xf32> to vector<2x32xf32>
    %65 = arith.addf %63, %64 : vector<2x32xf32>
    %cst_58 = arith.constant dense<0.000000e+00> : vector<2x32xf32>
    %66 = tpu.matmul %18, %46, %cst_58 {dimension_numbers = #tpu.dot_dimension_numbers<[1], [0], [0], [1], [0, 0, 1, 1], [], []>} : vector<2x32xf32>, vector<32x32xf32>, vector<2x32xf32> -> vector<2x32xf32>
    %67 = vector.broadcast %52 : vector<1x32xf32> to vector<2x32xf32>
    %68 = arith.addf %66, %67 : vector<2x32xf32>
    %cst_59 = arith.constant dense<0.000000e+00> : vector<2x32xf32>
    %69 = tpu.matmul %18, %48, %cst_59 {dimension_numbers = #tpu.dot_dimension_numbers<[1], [0], [0], [1], [0, 0, 1, 1], [], []>} : vector<2x32xf32>, vector<32x32xf32>, vector<2x32xf32> -> vector<2x32xf32>
    %70 = vector.broadcast %54 : vector<1x32xf32> to vector<2x32xf32>
    %71 = arith.addf %69, %70 : vector<2x32xf32>
    %72 = arith.addf %58, %65 : vector<2x32xf32>
    %73 = arith.negf %72 : vector<2x32xf32>
    %74 = math.exp %73 : vector<2x32xf32>
    %cst_60 = arith.constant 1.000000e+00 : f32
    %75 = vector.broadcast %cst_60 : f32 to vector<2x32xf32>
    %76 = arith.addf %75, %74 : vector<2x32xf32>
    %77 = arith.divf %75, %76 : vector<2x32xf32>
    %78 = arith.addf %60, %68 : vector<2x32xf32>
    %79 = arith.negf %78 : vector<2x32xf32>
    %80 = math.exp %79 : vector<2x32xf32>
    %cst_61 = arith.constant 1.000000e+00 : f32
    %81 = vector.broadcast %cst_61 : f32 to vector<2x32xf32>
    %82 = arith.addf %81, %80 : vector<2x32xf32>
    %83 = arith.divf %81, %82 : vector<2x32xf32>
    %84 = arith.mulf %77, %71 : vector<2x32xf32>
    %85 = arith.addf %62, %84 : vector<2x32xf32>
    %86 = math.tanh %85 : vector<2x32xf32>
    %cst_62 = arith.constant 1.000000e+00 : f32
    %87 = vector.broadcast %cst_62 : f32 to vector<2x32xf32>
    %88 = arith.subf %87, %83 : vector<2x32xf32>
    %89 = arith.mulf %88, %86 : vector<2x32xf32>
    %90 = arith.mulf %83, %18 : vector<2x32xf32>
    %91 = arith.addf %89, %90 : vector<2x32xf32>
    %c2_i32_63 = arith.constant 2 : i32
    %92 = arith.muli %c0_i32_53, %c2_i32_63 : i32
    %93 = tpu.assume_multiple %92, 2 : i32
    %94 = arith.index_cast %93 : i32 to index
    %c0_64 = arith.constant 0 : index
    %95 = vector.load %arg33[%94, %c0_64] : memref<16x32xf32, #tpu.memory_space<vmem>>, vector<2x32xf32>
    tpu.vector_store %arg33[%94, %c0_64], %91 {strides = array<i32>} : memref<16x32xf32, #tpu.memory_space<vmem>>, vector<2x32xf32>,
    %c1_i32 = arith.constant 1 : i32
    %c2_i32_65 = arith.constant 2 : i32
    %96 = arith.muli %c1_i32, %c2_i32_65 : i32
    %97 = tpu.assume_multiple %96, 2 : i32
    %98 = arith.index_cast %97 : i32 to index
    %c0_66 = arith.constant 0 : index
    %99 = vector.load %arg30[%98, %c0_66] : memref<16x32xf32, #tpu.memory_space<vmem>>, vector<2x32xf32>
    %100 = arith.index_cast %97 : i32 to index
    %c0_67 = arith.constant 0 : index
    %101 = vector.load %arg31[%100, %c0_67] : memref<16x32xf32, #tpu.memory_space<vmem>>, vector<2x32xf32>
    %102 = arith.index_cast %97 : i32 to index
    %c0_68 = arith.constant 0 : index
    %103 = vector.load %arg32[%102, %c0_68] : memref<16x32xf32, #tpu.memory_space<vmem>>, vector<2x32xf32>
    %cst_69 = arith.constant dense<0.000000e+00> : vector<2x32xf32>
    %104 = tpu.matmul %91, %44, %cst_69 {dimension_numbers = #tpu.dot_dimension_numbers<[1], [0], [0], [1], [0, 0, 1, 1], [], []>} : vector<2x32xf32>, vector<32x32xf32>, vector<2x32xf32> -> vector<2x32xf32>
    %105 = vector.broadcast %50 : vector<1x32xf32> to vector<2x32xf32>
    %106 = arith.addf %104, %105 : vector<2x32xf32>
    %cst_70 = arith.constant dense<0.000000e+00> : vector<2x32xf32>
    %107 = tpu.matmul %91, %46, %cst_70 {dimension_numbers = #tpu.dot_dimension_numbers<[1], [0], [0], [1], [0, 0, 1, 1], [], []>} : vector<2x32xf32>, vector<32x32xf32>, vector<2x32xf32> -> vector<2x32xf32>
    %108 = vector.broadcast %52 : vector<1x32xf32> to vector<2x32xf32>
    %109 = arith.addf %107, %108 : vector<2x32xf32>
    %cst_71 = arith.constant dense<0.000000e+00> : vector<2x32xf32>
    %110 = tpu.matmul %91, %48, %cst_71 {dimension_numbers = #tpu.dot_dimension_numbers<[1], [0], [0], [1], [0, 0, 1, 1], [], []>} : vector<2x32xf32>, vector<32x32xf32>, vector<2x32xf32> -> vector<2x32xf32>
    %111 = vector.broadcast %54 : vector<1x32xf32> to vector<2x32xf32>
    %112 = arith.addf %110, %111 : vector<2x32xf32>
    %113 = arith.addf %99, %106 : vector<2x32xf32>
    %114 = arith.negf %113 : vector<2x32xf32>
    %115 = math.exp %114 : vector<2x32xf32>
    %cst_72 = arith.constant 1.000000e+00 : f32
    %116 = vector.broadcast %cst_72 : f32 to vector<2x32xf32>
    %117 = arith.addf %116, %115 : vector<2x32xf32>
    %118 = arith.divf %116, %117 : vector<2x32xf32>
    %119 = arith.addf %101, %109 : vector<2x32xf32>
    %120 = arith.negf %119 : vector<2x32xf32>
    %121 = math.exp %120 : vector<2x32xf32>
    %cst_73 = arith.constant 1.000000e+00 : f32
    %122 = vector.broadcast %cst_73 : f32 to vector<2x32xf32>
    %123 = arith.addf %122, %121 : vector<2x32xf32>
    %124 = arith.divf %122, %123 : vector<2x32xf32>
    %125 = arith.mulf %118, %112 : vector<2x32xf32>
    %126 = arith.addf %103, %125 : vector<2x32xf32>
    %127 = math.tanh %126 : vector<2x32xf32>
    %cst_74 = arith.constant 1.000000e+00 : f32
    %128 = vector.broadcast %cst_74 : f32 to vector<2x32xf32>
    %129 = arith.subf %128, %124 : vector<2x32xf32>
    %130 = arith.mulf %129, %127 : vector<2x32xf32>
    %131 = arith.mulf %124, %91 : vector<2x32xf32>
    %132 = arith.addf %130, %131 : vector<2x32xf32>
    %c2_i32_75 = arith.constant 2 : i32
    %133 = arith.muli %c1_i32, %c2_i32_75 : i32
    %134 = tpu.assume_multiple %133, 2 : i32
    %135 = arith.index_cast %134 : i32 to index
    %c0_76 = arith.constant 0 : index
    %136 = vector.load %arg33[%135, %c0_76] : memref<16x32xf32, #tpu.memory_space<vmem>>, vector<2x32xf32>
    tpu.vector_store %arg33[%135, %c0_76], %132 {strides = array<i32>} : memref<16x32xf32, #tpu.memory_space<vmem>>, vector<2x32xf32>,
    %c2_i32_77 = arith.constant 2 : i32
    %c2_i32_78 = arith.constant 2 : i32
    %137 = arith.muli %c2_i32_77, %c2_i32_78 : i32
    %138 = tpu.assume_multiple %137, 2 : i32
    %139 = arith.index_cast %138 : i32 to index
    %c0_79 = arith.constant 0 : index
    %140 = vector.load %arg30[%139, %c0_79] : memref<16x32xf32, #tpu.memory_space<vmem>>, vector<2x32xf32>
    %141 = arith.index_cast %138 : i32 to index
    %c0_80 = arith.constant 0 : index
    %142 = vector.load %arg31[%141, %c0_80] : memref<16x32xf32, #tpu.memory_space<vmem>>, vector<2x32xf32>
    %143 = arith.index_cast %138 : i32 to index
    %c0_81 = arith.constant 0 : index
    %144 = vector.load %arg32[%143, %c0_81] : memref<16x32xf32, #tpu.memory_space<vmem>>, vector<2x32xf32>
    %cst_82 = arith.constant dense<0.000000e+00> : vector<2x32xf32>
    %145 = tpu.matmul %132, %44, %cst_82 {dimension_numbers = #tpu.dot_dimension_numbers<[1], [0], [0], [1], [0, 0, 1, 1], [], []>} : vector<2x32xf32>, vector<32x32xf32>, vector<2x32xf32> -> vector<2x32xf32>
    %146 = vector.broadcast %50 : vector<1x32xf32> to vector<2x32xf32>
    %147 = arith.addf %145, %146 : vector<2x32xf32>
    %cst_83 = arith.constant dense<0.000000e+00> : vector<2x32xf32>
    %148 = tpu.matmul %132, %46, %cst_83 {dimension_numbers = #tpu.dot_dimension_numbers<[1], [0], [0], [1], [0, 0, 1, 1], [], []>} : vector<2x32xf32>, vector<32x32xf32>, vector<2x32xf32> -> vector<2x32xf32>
    %149 = vector.broadcast %52 : vector<1x32xf32> to vector<2x32xf32>
    %150 = arith.addf %148, %149 : vector<2x32xf32>
    %cst_84 = arith.constant dense<0.000000e+00> : vector<2x32xf32>
    %151 = tpu.matmul %132, %48, %cst_84 {dimension_numbers = #tpu.dot_dimension_numbers<[1], [0], [0], [1], [0, 0, 1, 1], [], []>} : vector<2x32xf32>, vector<32x32xf32>, vector<2x32xf32> -> vector<2x32xf32>
    %152 = vector.broadcast %54 : vector<1x32xf32> to vector<2x32xf32>
    %153 = arith.addf %151, %152 : vector<2x32xf32>
    %154 = arith.addf %140, %147 : vector<2x32xf32>
    %155 = arith.negf %154 : vector<2x32xf32>
    %156 = math.exp %155 : vector<2x32xf32>
    %cst_85 = arith.constant 1.000000e+00 : f32
    %157 = vector.broadcast %cst_85 : f32 to vector<2x32xf32>
    %158 = arith.addf %157, %156 : vector<2x32xf32>
    %159 = arith.divf %157, %158 : vector<2x32xf32>
    %160 = arith.addf %142, %150 : vector<2x32xf32>
    %161 = arith.negf %160 : vector<2x32xf32>
    %162 = math.exp %161 : vector<2x32xf32>
    %cst_86 = arith.constant 1.000000e+00 : f32
    %163 = vector.broadcast %cst_86 : f32 to vector<2x32xf32>
    %164 = arith.addf %163, %162 : vector<2x32xf32>
    %165 = arith.divf %163, %164 : vector<2x32xf32>
    %166 = arith.mulf %159, %153 : vector<2x32xf32>
    %167 = arith.addf %144, %166 : vector<2x32xf32>
    %168 = math.tanh %167 : vector<2x32xf32>
    %cst_87 = arith.constant 1.000000e+00 : f32
    %169 = vector.broadcast %cst_87 : f32 to vector<2x32xf32>
    %170 = arith.subf %169, %165 : vector<2x32xf32>
    %171 = arith.mulf %170, %168 : vector<2x32xf32>
    %172 = arith.mulf %165, %132 : vector<2x32xf32>
    %173 = arith.addf %171, %172 : vector<2x32xf32>
    %c2_i32_88 = arith.constant 2 : i32
    %174 = arith.muli %c2_i32_77, %c2_i32_88 : i32
    %175 = tpu.assume_multiple %174, 2 : i32
    %176 = arith.index_cast %175 : i32 to index
    %c0_89 = arith.constant 0 : index
    %177 = vector.load %arg33[%176, %c0_89] : memref<16x32xf32, #tpu.memory_space<vmem>>, vector<2x32xf32>
    tpu.vector_store %arg33[%176, %c0_89], %173 {strides = array<i32>} : memref<16x32xf32, #tpu.memory_space<vmem>>, vector<2x32xf32>,
    %c3_i32 = arith.constant 3 : i32
    %c2_i32_90 = arith.constant 2 : i32
    %178 = arith.muli %c3_i32, %c2_i32_90 : i32
    %179 = tpu.assume_multiple %178, 2 : i32
    %180 = arith.index_cast %179 : i32 to index
    %c0_91 = arith.constant 0 : index
    %181 = vector.load %arg30[%180, %c0_91] : memref<16x32xf32, #tpu.memory_space<vmem>>, vector<2x32xf32>
    %182 = arith.index_cast %179 : i32 to index
    %c0_92 = arith.constant 0 : index
    %183 = vector.load %arg31[%182, %c0_92] : memref<16x32xf32, #tpu.memory_space<vmem>>, vector<2x32xf32>
    %184 = arith.index_cast %179 : i32 to index
    %c0_93 = arith.constant 0 : index
    %185 = vector.load %arg32[%184, %c0_93] : memref<16x32xf32, #tpu.memory_space<vmem>>, vector<2x32xf32>
    %cst_94 = arith.constant dense<0.000000e+00> : vector<2x32xf32>
    %186 = tpu.matmul %173, %44, %cst_94 {dimension_numbers = #tpu.dot_dimension_numbers<[1], [0], [0], [1], [0, 0, 1, 1], [], []>} : vector<2x32xf32>, vector<32x32xf32>, vector<2x32xf32> -> vector<2x32xf32>
    %187 = vector.broadcast %50 : vector<1x32xf32> to vector<2x32xf32>
    %188 = arith.addf %186, %187 : vector<2x32xf32>
    %cst_95 = arith.constant dense<0.000000e+00> : vector<2x32xf32>
    %189 = tpu.matmul %173, %46, %cst_95 {dimension_numbers = #tpu.dot_dimension_numbers<[1], [0], [0], [1], [0, 0, 1, 1], [], []>} : vector<2x32xf32>, vector<32x32xf32>, vector<2x32xf32> -> vector<2x32xf32>
    %190 = vector.broadcast %52 : vector<1x32xf32> to vector<2x32xf32>
    %191 = arith.addf %189, %190 : vector<2x32xf32>
    %cst_96 = arith.constant dense<0.000000e+00> : vector<2x32xf32>
    %192 = tpu.matmul %173, %48, %cst_96 {dimension_numbers = #tpu.dot_dimension_numbers<[1], [0], [0], [1], [0, 0, 1, 1], [], []>} : vector<2x32xf32>, vector<32x32xf32>, vector<2x32xf32> -> vector<2x32xf32>
    %193 = vector.broadcast %54 : vector<1x32xf32> to vector<2x32xf32>
    %194 = arith.addf %192, %193 : vector<2x32xf32>
    %195 = arith.addf %181, %188 : vector<2x32xf32>
    %196 = arith.negf %195 : vector<2x32xf32>
    %197 = math.exp %196 : vector<2x32xf32>
    %cst_97 = arith.constant 1.000000e+00 : f32
    %198 = vector.broadcast %cst_97 : f32 to vector<2x32xf32>
    %199 = arith.addf %198, %197 : vector<2x32xf32>
    %200 = arith.divf %198, %199 : vector<2x32xf32>
    %201 = arith.addf %183, %191 : vector<2x32xf32>
    %202 = arith.negf %201 : vector<2x32xf32>
    %203 = math.exp %202 : vector<2x32xf32>
    %cst_98 = arith.constant 1.000000e+00 : f32
    %204 = vector.broadcast %cst_98 : f32 to vector<2x32xf32>
    %205 = arith.addf %204, %203 : vector<2x32xf32>
    %206 = arith.divf %204, %205 : vector<2x32xf32>
    %207 = arith.mulf %200, %194 : vector<2x32xf32>
    %208 = arith.addf %185, %207 : vector<2x32xf32>
    %209 = math.tanh %208 : vector<2x32xf32>
    %cst_99 = arith.constant 1.000000e+00 : f32
    %210 = vector.broadcast %cst_99 : f32 to vector<2x32xf32>
    %211 = arith.subf %210, %206 : vector<2x32xf32>
    %212 = arith.mulf %211, %209 : vector<2x32xf32>
    %213 = arith.mulf %206, %173 : vector<2x32xf32>
    %214 = arith.addf %212, %213 : vector<2x32xf32>
    %c2_i32_100 = arith.constant 2 : i32
    %215 = arith.muli %c3_i32, %c2_i32_100 : i32
    %216 = tpu.assume_multiple %215, 2 : i32
    %217 = arith.index_cast %216 : i32 to index
    %c0_101 = arith.constant 0 : index
    %218 = vector.load %arg33[%217, %c0_101] : memref<16x32xf32, #tpu.memory_space<vmem>>, vector<2x32xf32>
    tpu.vector_store %arg33[%217, %c0_101], %214 {strides = array<i32>} : memref<16x32xf32, #tpu.memory_space<vmem>>, vector<2x32xf32>,
    %c4_i32 = arith.constant 4 : i32
    %c2_i32_102 = arith.constant 2 : i32
    %219 = arith.muli %c4_i32, %c2_i32_102 : i32
    %220 = tpu.assume_multiple %219, 2 : i32
    %221 = arith.index_cast %220 : i32 to index
    %c0_103 = arith.constant 0 : index
    %222 = vector.load %arg30[%221, %c0_103] : memref<16x32xf32, #tpu.memory_space<vmem>>, vector<2x32xf32>
    %223 = arith.index_cast %220 : i32 to index
    %c0_104 = arith.constant 0 : index
    %224 = vector.load %arg31[%223, %c0_104] : memref<16x32xf32, #tpu.memory_space<vmem>>, vector<2x32xf32>
    %225 = arith.index_cast %220 : i32 to index
    %c0_105 = arith.constant 0 : index
    %226 = vector.load %arg32[%225, %c0_105] : memref<16x32xf32, #tpu.memory_space<vmem>>, vector<2x32xf32>
    %cst_106 = arith.constant dense<0.000000e+00> : vector<2x32xf32>
    %227 = tpu.matmul %214, %44, %cst_106 {dimension_numbers = #tpu.dot_dimension_numbers<[1], [0], [0], [1], [0, 0, 1, 1], [], []>} : vector<2x32xf32>, vector<32x32xf32>, vector<2x32xf32> -> vector<2x32xf32>
    %228 = vector.broadcast %50 : vector<1x32xf32> to vector<2x32xf32>
    %229 = arith.addf %227, %228 : vector<2x32xf32>
    %cst_107 = arith.constant dense<0.000000e+00> : vector<2x32xf32>
    %230 = tpu.matmul %214, %46, %cst_107 {dimension_numbers = #tpu.dot_dimension_numbers<[1], [0], [0], [1], [0, 0, 1, 1], [], []>} : vector<2x32xf32>, vector<32x32xf32>, vector<2x32xf32> -> vector<2x32xf32>
    %231 = vector.broadcast %52 : vector<1x32xf32> to vector<2x32xf32>
    %232 = arith.addf %230, %231 : vector<2x32xf32>
    %cst_108 = arith.constant dense<0.000000e+00> : vector<2x32xf32>
    %233 = tpu.matmul %214, %48, %cst_108 {dimension_numbers = #tpu.dot_dimension_numbers<[1], [0], [0], [1], [0, 0, 1, 1], [], []>} : vector<2x32xf32>, vector<32x32xf32>, vector<2x32xf32> -> vector<2x32xf32>
    %234 = vector.broadcast %54 : vector<1x32xf32> to vector<2x32xf32>
    %235 = arith.addf %233, %234 : vector<2x32xf32>
    %236 = arith.addf %222, %229 : vector<2x32xf32>
    %237 = arith.negf %236 : vector<2x32xf32>
    %238 = math.exp %237 : vector<2x32xf32>
    %cst_109 = arith.constant 1.000000e+00 : f32
    %239 = vector.broadcast %cst_109 : f32 to vector<2x32xf32>
    %240 = arith.addf %239, %238 : vector<2x32xf32>
    %241 = arith.divf %239, %240 : vector<2x32xf32>
    %242 = arith.addf %224, %232 : vector<2x32xf32>
    %243 = arith.negf %242 : vector<2x32xf32>
    %244 = math.exp %243 : vector<2x32xf32>
    %cst_110 = arith.constant 1.000000e+00 : f32
    %245 = vector.broadcast %cst_110 : f32 to vector<2x32xf32>
    %246 = arith.addf %245, %244 : vector<2x32xf32>
    %247 = arith.divf %245, %246 : vector<2x32xf32>
    %248 = arith.mulf %241, %235 : vector<2x32xf32>
    %249 = arith.addf %226, %248 : vector<2x32xf32>
    %250 = math.tanh %249 : vector<2x32xf32>
    %cst_111 = arith.constant 1.000000e+00 : f32
    %251 = vector.broadcast %cst_111 : f32 to vector<2x32xf32>
    %252 = arith.subf %251, %247 : vector<2x32xf32>
    %253 = arith.mulf %252, %250 : vector<2x32xf32>
    %254 = arith.mulf %247, %214 : vector<2x32xf32>
    %255 = arith.addf %253, %254 : vector<2x32xf32>
    %c2_i32_112 = arith.constant 2 : i32
    %256 = arith.muli %c4_i32, %c2_i32_112 : i32
    %257 = tpu.assume_multiple %256, 2 : i32
    %258 = arith.index_cast %257 : i32 to index
    %c0_113 = arith.constant 0 : index
    %259 = vector.load %arg33[%258, %c0_113] : memref<16x32xf32, #tpu.memory_space<vmem>>, vector<2x32xf32>
    tpu.vector_store %arg33[%258, %c0_113], %255 {strides = array<i32>} : memref<16x32xf32, #tpu.memory_space<vmem>>, vector<2x32xf32>,
    %c5_i32 = arith.constant 5 : i32
    %c2_i32_114 = arith.constant 2 : i32
    %260 = arith.muli %c5_i32, %c2_i32_114 : i32
    %261 = tpu.assume_multiple %260, 2 : i32
    %262 = arith.index_cast %261 : i32 to index
    %c0_115 = arith.constant 0 : index
    %263 = vector.load %arg30[%262, %c0_115] : memref<16x32xf32, #tpu.memory_space<vmem>>, vector<2x32xf32>
    %264 = arith.index_cast %261 : i32 to index
    %c0_116 = arith.constant 0 : index
    %265 = vector.load %arg31[%264, %c0_116] : memref<16x32xf32, #tpu.memory_space<vmem>>, vector<2x32xf32>
    %266 = arith.index_cast %261 : i32 to index
    %c0_117 = arith.constant 0 : index
    %267 = vector.load %arg32[%266, %c0_117] : memref<16x32xf32, #tpu.memory_space<vmem>>, vector<2x32xf32>
    %cst_118 = arith.constant dense<0.000000e+00> : vector<2x32xf32>
    %268 = tpu.matmul %255, %44, %cst_118 {dimension_numbers = #tpu.dot_dimension_numbers<[1], [0], [0], [1], [0, 0, 1, 1], [], []>} : vector<2x32xf32>, vector<32x32xf32>, vector<2x32xf32> -> vector<2x32xf32>
    %269 = vector.broadcast %50 : vector<1x32xf32> to vector<2x32xf32>
    %270 = arith.addf %268, %269 : vector<2x32xf32>
    %cst_119 = arith.constant dense<0.000000e+00> : vector<2x32xf32>
    %271 = tpu.matmul %255, %46, %cst_119 {dimension_numbers = #tpu.dot_dimension_numbers<[1], [0], [0], [1], [0, 0, 1, 1], [], []>} : vector<2x32xf32>, vector<32x32xf32>, vector<2x32xf32> -> vector<2x32xf32>
    %272 = vector.broadcast %52 : vector<1x32xf32> to vector<2x32xf32>
    %273 = arith.addf %271, %272 : vector<2x32xf32>
    %cst_120 = arith.constant dense<0.000000e+00> : vector<2x32xf32>
    %274 = tpu.matmul %255, %48, %cst_120 {dimension_numbers = #tpu.dot_dimension_numbers<[1], [0], [0], [1], [0, 0, 1, 1], [], []>} : vector<2x32xf32>, vector<32x32xf32>, vector<2x32xf32> -> vector<2x32xf32>
    %275 = vector.broadcast %54 : vector<1x32xf32> to vector<2x32xf32>
    %276 = arith.addf %274, %275 : vector<2x32xf32>
    %277 = arith.addf %263, %270 : vector<2x32xf32>
    %278 = arith.negf %277 : vector<2x32xf32>
    %279 = math.exp %278 : vector<2x32xf32>
    %cst_121 = arith.constant 1.000000e+00 : f32
    %280 = vector.broadcast %cst_121 : f32 to vector<2x32xf32>
    %281 = arith.addf %280, %279 : vector<2x32xf32>
    %282 = arith.divf %280, %281 : vector<2x32xf32>
    %283 = arith.addf %265, %273 : vector<2x32xf32>
    %284 = arith.negf %283 : vector<2x32xf32>
    %285 = math.exp %284 : vector<2x32xf32>
    %cst_122 = arith.constant 1.000000e+00 : f32
    %286 = vector.broadcast %cst_122 : f32 to vector<2x32xf32>
    %287 = arith.addf %286, %285 : vector<2x32xf32>
    %288 = arith.divf %286, %287 : vector<2x32xf32>
    %289 = arith.mulf %282, %276 : vector<2x32xf32>
    %290 = arith.addf %267, %289 : vector<2x32xf32>
    %291 = math.tanh %290 : vector<2x32xf32>
    %cst_123 = arith.constant 1.000000e+00 : f32
    %292 = vector.broadcast %cst_123 : f32 to vector<2x32xf32>
    %293 = arith.subf %292, %288 : vector<2x32xf32>
    %294 = arith.mulf %293, %291 : vector<2x32xf32>
    %295 = arith.mulf %288, %255 : vector<2x32xf32>
    %296 = arith.addf %294, %295 : vector<2x32xf32>
    %c2_i32_124 = arith.constant 2 : i32
    %297 = arith.muli %c5_i32, %c2_i32_124 : i32
    %298 = tpu.assume_multiple %297, 2 : i32
    %299 = arith.index_cast %298 : i32 to index
    %c0_125 = arith.constant 0 : index
    %300 = vector.load %arg33[%299, %c0_125] : memref<16x32xf32, #tpu.memory_space<vmem>>, vector<2x32xf32>
    tpu.vector_store %arg33[%299, %c0_125], %296 {strides = array<i32>} : memref<16x32xf32, #tpu.memory_space<vmem>>, vector<2x32xf32>,
    %c6_i32 = arith.constant 6 : i32
    %c2_i32_126 = arith.constant 2 : i32
    %301 = arith.muli %c6_i32, %c2_i32_126 : i32
    %302 = tpu.assume_multiple %301, 2 : i32
    %303 = arith.index_cast %302 : i32 to index
    %c0_127 = arith.constant 0 : index
    %304 = vector.load %arg30[%303, %c0_127] : memref<16x32xf32, #tpu.memory_space<vmem>>, vector<2x32xf32>
    %305 = arith.index_cast %302 : i32 to index
    %c0_128 = arith.constant 0 : index
    %306 = vector.load %arg31[%305, %c0_128] : memref<16x32xf32, #tpu.memory_space<vmem>>, vector<2x32xf32>
    %307 = arith.index_cast %302 : i32 to index
    %c0_129 = arith.constant 0 : index
    %308 = vector.load %arg32[%307, %c0_129] : memref<16x32xf32, #tpu.memory_space<vmem>>, vector<2x32xf32>
    %cst_130 = arith.constant dense<0.000000e+00> : vector<2x32xf32>
    %309 = tpu.matmul %296, %44, %cst_130 {dimension_numbers = #tpu.dot_dimension_numbers<[1], [0], [0], [1], [0, 0, 1, 1], [], []>} : vector<2x32xf32>, vector<32x32xf32>, vector<2x32xf32> -> vector<2x32xf32>
    %310 = vector.broadcast %50 : vector<1x32xf32> to vector<2x32xf32>
    %311 = arith.addf %309, %310 : vector<2x32xf32>
    %cst_131 = arith.constant dense<0.000000e+00> : vector<2x32xf32>
    %312 = tpu.matmul %296, %46, %cst_131 {dimension_numbers = #tpu.dot_dimension_numbers<[1], [0], [0], [1], [0, 0, 1, 1], [], []>} : vector<2x32xf32>, vector<32x32xf32>, vector<2x32xf32> -> vector<2x32xf32>
    %313 = vector.broadcast %52 : vector<1x32xf32> to vector<2x32xf32>
    %314 = arith.addf %312, %313 : vector<2x32xf32>
    %cst_132 = arith.constant dense<0.000000e+00> : vector<2x32xf32>
    %315 = tpu.matmul %296, %48, %cst_132 {dimension_numbers = #tpu.dot_dimension_numbers<[1], [0], [0], [1], [0, 0, 1, 1], [], []>} : vector<2x32xf32>, vector<32x32xf32>, vector<2x32xf32> -> vector<2x32xf32>
    %316 = vector.broadcast %54 : vector<1x32xf32> to vector<2x32xf32>
    %317 = arith.addf %315, %316 : vector<2x32xf32>
    %318 = arith.addf %304, %311 : vector<2x32xf32>
    %319 = arith.negf %318 : vector<2x32xf32>
    %320 = math.exp %319 : vector<2x32xf32>
    %cst_133 = arith.constant 1.000000e+00 : f32
    %321 = vector.broadcast %cst_133 : f32 to vector<2x32xf32>
    %322 = arith.addf %321, %320 : vector<2x32xf32>
    %323 = arith.divf %321, %322 : vector<2x32xf32>
    %324 = arith.addf %306, %314 : vector<2x32xf32>
    %325 = arith.negf %324 : vector<2x32xf32>
    %326 = math.exp %325 : vector<2x32xf32>
    %cst_134 = arith.constant 1.000000e+00 : f32
    %327 = vector.broadcast %cst_134 : f32 to vector<2x32xf32>
    %328 = arith.addf %327, %326 : vector<2x32xf32>
    %329 = arith.divf %327, %328 : vector<2x32xf32>
    %330 = arith.mulf %323, %317 : vector<2x32xf32>
    %331 = arith.addf %308, %330 : vector<2x32xf32>
    %332 = math.tanh %331 : vector<2x32xf32>
    %cst_135 = arith.constant 1.000000e+00 : f32
    %333 = vector.broadcast %cst_135 : f32 to vector<2x32xf32>
    %334 = arith.subf %333, %329 : vector<2x32xf32>
    %335 = arith.mulf %334, %332 : vector<2x32xf32>
    %336 = arith.mulf %329, %296 : vector<2x32xf32>
    %337 = arith.addf %335, %336 : vector<2x32xf32>
    %c2_i32_136 = arith.constant 2 : i32
    %338 = arith.muli %c6_i32, %c2_i32_136 : i32
    %339 = tpu.assume_multiple %338, 2 : i32
    %340 = arith.index_cast %339 : i32 to index
    %c0_137 = arith.constant 0 : index
    %341 = vector.load %arg33[%340, %c0_137] : memref<16x32xf32, #tpu.memory_space<vmem>>, vector<2x32xf32>
    tpu.vector_store %arg33[%340, %c0_137], %337 {strides = array<i32>} : memref<16x32xf32, #tpu.memory_space<vmem>>, vector<2x32xf32>,
    %c7_i32 = arith.constant 7 : i32
    %c2_i32_138 = arith.constant 2 : i32
    %342 = arith.muli %c7_i32, %c2_i32_138 : i32
    %343 = tpu.assume_multiple %342, 2 : i32
    %344 = arith.index_cast %343 : i32 to index
    %c0_139 = arith.constant 0 : index
    %345 = vector.load %arg30[%344, %c0_139] : memref<16x32xf32, #tpu.memory_space<vmem>>, vector<2x32xf32>
    %346 = arith.index_cast %343 : i32 to index
    %c0_140 = arith.constant 0 : index
    %347 = vector.load %arg31[%346, %c0_140] : memref<16x32xf32, #tpu.memory_space<vmem>>, vector<2x32xf32>
    %348 = arith.index_cast %343 : i32 to index
    %c0_141 = arith.constant 0 : index
    %349 = vector.load %arg32[%348, %c0_141] : memref<16x32xf32, #tpu.memory_space<vmem>>, vector<2x32xf32>
    %cst_142 = arith.constant dense<0.000000e+00> : vector<2x32xf32>
    %350 = tpu.matmul %337, %44, %cst_142 {dimension_numbers = #tpu.dot_dimension_numbers<[1], [0], [0], [1], [0, 0, 1, 1], [], []>} : vector<2x32xf32>, vector<32x32xf32>, vector<2x32xf32> -> vector<2x32xf32>
    %351 = vector.broadcast %50 : vector<1x32xf32> to vector<2x32xf32>
    %352 = arith.addf %350, %351 : vector<2x32xf32>
    %cst_143 = arith.constant dense<0.000000e+00> : vector<2x32xf32>
    %353 = tpu.matmul %337, %46, %cst_143 {dimension_numbers = #tpu.dot_dimension_numbers<[1], [0], [0], [1], [0, 0, 1, 1], [], []>} : vector<2x32xf32>, vector<32x32xf32>, vector<2x32xf32> -> vector<2x32xf32>
    %354 = vector.broadcast %52 : vector<1x32xf32> to vector<2x32xf32>
    %355 = arith.addf %353, %354 : vector<2x32xf32>
    %cst_144 = arith.constant dense<0.000000e+00> : vector<2x32xf32>
    %356 = tpu.matmul %337, %48, %cst_144 {dimension_numbers = #tpu.dot_dimension_numbers<[1], [0], [0], [1], [0, 0, 1, 1], [], []>} : vector<2x32xf32>, vector<32x32xf32>, vector<2x32xf32> -> vector<2x32xf32>
    %357 = vector.broadcast %54 : vector<1x32xf32> to vector<2x32xf32>
    %358 = arith.addf %356, %357 : vector<2x32xf32>
    %359 = arith.addf %345, %352 : vector<2x32xf32>
    %360 = arith.negf %359 : vector<2x32xf32>
    %361 = math.exp %360 : vector<2x32xf32>
    %cst_145 = arith.constant 1.000000e+00 : f32
    %362 = vector.broadcast %cst_145 : f32 to vector<2x32xf32>
    %363 = arith.addf %362, %361 : vector<2x32xf32>
    %364 = arith.divf %362, %363 : vector<2x32xf32>
    %365 = arith.addf %347, %355 : vector<2x32xf32>
    %366 = arith.negf %365 : vector<2x32xf32>
    %367 = math.exp %366 : vector<2x32xf32>
    %cst_146 = arith.constant 1.000000e+00 : f32
    %368 = vector.broadcast %cst_146 : f32 to vector<2x32xf32>
    %369 = arith.addf %368, %367 : vector<2x32xf32>
    %370 = arith.divf %368, %369 : vector<2x32xf32>
    %371 = arith.mulf %364, %358 : vector<2x32xf32>
    %372 = arith.addf %349, %371 : vector<2x32xf32>
    %373 = math.tanh %372 : vector<2x32xf32>
    %cst_147 = arith.constant 1.000000e+00 : f32
    %374 = vector.broadcast %cst_147 : f32 to vector<2x32xf32>
    %375 = arith.subf %374, %370 : vector<2x32xf32>
    %376 = arith.mulf %375, %373 : vector<2x32xf32>
    %377 = arith.mulf %370, %337 : vector<2x32xf32>
    %378 = arith.addf %376, %377 : vector<2x32xf32>
    %c2_i32_148 = arith.constant 2 : i32
    %379 = arith.muli %c7_i32, %c2_i32_148 : i32
    %380 = tpu.assume_multiple %379, 2 : i32
    %381 = arith.index_cast %380 : i32 to index
    %c0_149 = arith.constant 0 : index
    %382 = vector.load %arg33[%381, %c0_149] : memref<16x32xf32, #tpu.memory_space<vmem>>, vector<2x32xf32>
    tpu.vector_store %arg33[%381, %c0_149], %378 {strides = array<i32>} : memref<16x32xf32, #tpu.memory_space<vmem>>, vector<2x32xf32>,
    %c8_i32 = arith.constant 8 : i32
    %c0_150 = arith.constant 0 : index
    %c0_151 = arith.constant 0 : index
    %383 = vector.load %arg33[%c0_150, %c0_151] : memref<16x32xf32, #tpu.memory_space<vmem>>, vector<16x32xf32>
    %c1_152 = arith.constant 1 : index
    %c0_153 = arith.constant 0 : index
    %c0_154 = arith.constant 0 : index
    %384 = vector.load %arg4[%c1_152, %c0_153, %c0_154] : memref<3x2x32xf32, #tpu.memory_space<vmem>>, vector<1x2x32xf32>
    %385 = vector.shape_cast %384 : vector<1x2x32xf32> to vector<2x32xf32>
    %c0_155 = arith.constant 0 : index
    %c0_156 = arith.constant 0 : index
    %c0_157 = arith.constant 0 : index
    %386 = vector.load %arg11[%c0_155, %c0_156, %c0_157] : memref<3x32x32xf32, #tpu.memory_space<vmem>>, vector<1x32x32xf32>
    %387 = vector.shape_cast %386 : vector<1x32x32xf32> to vector<32x32xf32>
    %cst_158 = arith.constant dense<0.000000e+00> : vector<16x32xf32>
    %388 = tpu.matmul %383, %387, %cst_158 {dimension_numbers = #tpu.dot_dimension_numbers<[1], [0], [0], [1], [0, 0, 1, 1], [], []>} : vector<16x32xf32>, vector<32x32xf32>, vector<16x32xf32> -> vector<16x32xf32>
    %c0_159 = arith.constant 0 : index
    %c0_160 = arith.constant 0 : index
    %c0_161 = arith.constant 0 : index
    %389 = vector.load %arg13[%c0_159, %c0_160, %c0_161] : memref<3x1x32xf32, #tpu.memory_space<vmem>>, vector<1x1x32xf32>
    %390 = vector.shape_cast %389 : vector<1x1x32xf32> to vector<1x32xf32>
    %391 = vector.broadcast %390 : vector<1x32xf32> to vector<16x32xf32>
    %392 = arith.addf %388, %391 : vector<16x32xf32>
    %c0_162 = arith.constant 0 : index
    %c0_163 = arith.constant 0 : index
    %393 = vector.load %arg30[%c0_162, %c0_163] : memref<16x32xf32, #tpu.memory_space<vmem>>, vector<16x32xf32>
    tpu.vector_store %arg30[%c0_162, %c0_163], %392 {strides = array<i32>} : memref<16x32xf32, #tpu.memory_space<vmem>>, vector<16x32xf32>,
    %c1_164 = arith.constant 1 : index
    %c0_165 = arith.constant 0 : index
    %c0_166 = arith.constant 0 : index
    %394 = vector.load %arg11[%c1_164, %c0_165, %c0_166] : memref<3x32x32xf32, #tpu.memory_space<vmem>>, vector<1x32x32xf32>
    %395 = vector.shape_cast %394 : vector<1x32x32xf32> to vector<32x32xf32>
    %cst_167 = arith.constant dense<0.000000e+00> : vector<16x32xf32>
    %396 = tpu.matmul %383, %395, %cst_167 {dimension_numbers = #tpu.dot_dimension_numbers<[1], [0], [0], [1], [0, 0, 1, 1], [], []>} : vector<16x32xf32>, vector<32x32xf32>, vector<16x32xf32> -> vector<16x32xf32>
    %c1_168 = arith.constant 1 : index
    %c0_169 = arith.constant 0 : index
    %c0_170 = arith.constant 0 : index
    %397 = vector.load %arg13[%c1_168, %c0_169, %c0_170] : memref<3x1x32xf32, #tpu.memory_space<vmem>>, vector<1x1x32xf32>
    %398 = vector.shape_cast %397 : vector<1x1x32xf32> to vector<1x32xf32>
    %399 = vector.broadcast %398 : vector<1x32xf32> to vector<16x32xf32>
    %400 = arith.addf %396, %399 : vector<16x32xf32>
    %c0_171 = arith.constant 0 : index
    %c0_172 = arith.constant 0 : index
    %401 = vector.load %arg31[%c0_171, %c0_172] : memref<16x32xf32, #tpu.memory_space<vmem>>, vector<16x32xf32>
    tpu.vector_store %arg31[%c0_171, %c0_172], %400 {strides = array<i32>} : memref<16x32xf32, #tpu.memory_space<vmem>>, vector<16x32xf32>,
    %c2_173 = arith.constant 2 : index
    %c0_174 = arith.constant 0 : index
    %c0_175 = arith.constant 0 : index
    %402 = vector.load %arg11[%c2_173, %c0_174, %c0_175] : memref<3x32x32xf32, #tpu.memory_space<vmem>>, vector<1x32x32xf32>
    %403 = vector.shape_cast %402 : vector<1x32x32xf32> to vector<32x32xf32>
    %cst_176 = arith.constant dense<0.000000e+00> : vector<16x32xf32>
    %404 = tpu.matmul %383, %403, %cst_176 {dimension_numbers = #tpu.dot_dimension_numbers<[1], [0], [0], [1], [0, 0, 1, 1], [], []>} : vector<16x32xf32>, vector<32x32xf32>, vector<16x32xf32> -> vector<16x32xf32>
    %c2_177 = arith.constant 2 : index
    %c0_178 = arith.constant 0 : index
    %c0_179 = arith.constant 0 : index
    %405 = vector.load %arg13[%c2_177, %c0_178, %c0_179] : memref<3x1x32xf32, #tpu.memory_space<vmem>>, vector<1x1x32xf32>
    %406 = vector.shape_cast %405 : vector<1x1x32xf32> to vector<1x32xf32>
    %407 = vector.broadcast %406 : vector<1x32xf32> to vector<16x32xf32>
    %408 = arith.addf %404, %407 : vector<16x32xf32>
    %c0_180 = arith.constant 0 : index
    %c0_181 = arith.constant 0 : index
    %409 = vector.load %arg32[%c0_180, %c0_181] : memref<16x32xf32, #tpu.memory_space<vmem>>, vector<16x32xf32>
    tpu.vector_store %arg32[%c0_180, %c0_181], %408 {strides = array<i32>} : memref<16x32xf32, #tpu.memory_space<vmem>>, vector<16x32xf32>,
    %c0_182 = arith.constant 0 : index
    %c0_183 = arith.constant 0 : index
    %c0_184 = arith.constant 0 : index
    %410 = vector.load %arg12[%c0_182, %c0_183, %c0_184] : memref<3x32x32xf32, #tpu.memory_space<vmem>>, vector<1x32x32xf32>
    %411 = vector.shape_cast %410 : vector<1x32x32xf32> to vector<32x32xf32>
    %c1_185 = arith.constant 1 : index
    %c0_186 = arith.constant 0 : index
    %c0_187 = arith.constant 0 : index
    %412 = vector.load %arg12[%c1_185, %c0_186, %c0_187] : memref<3x32x32xf32, #tpu.memory_space<vmem>>, vector<1x32x32xf32>
    %413 = vector.shape_cast %412 : vector<1x32x32xf32> to vector<32x32xf32>
    %c2_188 = arith.constant 2 : index
    %c0_189 = arith.constant 0 : index
    %c0_190 = arith.constant 0 : index
    %414 = vector.load %arg12[%c2_188, %c0_189, %c0_190] : memref<3x32x32xf32, #tpu.memory_space<vmem>>, vector<1x32x32xf32>
    %415 = vector.shape_cast %414 : vector<1x32x32xf32> to vector<32x32xf32>
    %c0_191 = arith.constant 0 : index
    %c0_192 = arith.constant 0 : index
    %c0_193 = arith.constant 0 : index
    %416 = vector.load %arg14[%c0_191, %c0_192, %c0_193] : memref<3x1x32xf32, #tpu.memory_space<vmem>>, vector<1x1x32xf32>
    %417 = vector.shape_cast %416 : vector<1x1x32xf32> to vector<1x32xf32>
    %c1_194 = arith.constant 1 : index
    %c0_195 = arith.constant 0 : index
    %c0_196 = arith.constant 0 : index
    %418 = vector.load %arg14[%c1_194, %c0_195, %c0_196] : memref<3x1x32xf32, #tpu.memory_space<vmem>>, vector<1x1x32xf32>
    %419 = vector.shape_cast %418 : vector<1x1x32xf32> to vector<1x32xf32>
    %c2_197 = arith.constant 2 : index
    %c0_198 = arith.constant 0 : index
    %c0_199 = arith.constant 0 : index
    %420 = vector.load %arg14[%c2_197, %c0_198, %c0_199] : memref<3x1x32xf32, #tpu.memory_space<vmem>>, vector<1x1x32xf32>
    %421 = vector.shape_cast %420 : vector<1x1x32xf32> to vector<1x32xf32>
    %c0_i32_200 = arith.constant 0 : i32
    %c2_i32_201 = arith.constant 2 : i32
    %422 = arith.muli %c0_i32_200, %c2_i32_201 : i32
    %423 = tpu.assume_multiple %422, 2 : i32
    %424 = arith.index_cast %423 : i32 to index
    %c0_202 = arith.constant 0 : index
    %425 = vector.load %arg30[%424, %c0_202] : memref<16x32xf32, #tpu.memory_space<vmem>>, vector<2x32xf32>
    %426 = arith.index_cast %423 : i32 to index
    %c0_203 = arith.constant 0 : index
    %427 = vector.load %arg31[%426, %c0_203] : memref<16x32xf32, #tpu.memory_space<vmem>>, vector<2x32xf32>
    %428 = arith.index_cast %423 : i32 to index
    %c0_204 = arith.constant 0 : index
    %429 = vector.load %arg32[%428, %c0_204] : memref<16x32xf32, #tpu.memory_space<vmem>>, vector<2x32xf32>
    %cst_205 = arith.constant dense<0.000000e+00> : vector<2x32xf32>
    %430 = tpu.matmul %385, %411, %cst_205 {dimension_numbers = #tpu.dot_dimension_numbers<[1], [0], [0], [1], [0, 0, 1, 1], [], []>} : vector<2x32xf32>, vector<32x32xf32>, vector<2x32xf32> -> vector<2x32xf32>
    %431 = vector.broadcast %417 : vector<1x32xf32> to vector<2x32xf32>
    %432 = arith.addf %430, %431 : vector<2x32xf32>
    %cst_206 = arith.constant dense<0.000000e+00> : vector<2x32xf32>
    %433 = tpu.matmul %385, %413, %cst_206 {dimension_numbers = #tpu.dot_dimension_numbers<[1], [0], [0], [1], [0, 0, 1, 1], [], []>} : vector<2x32xf32>, vector<32x32xf32>, vector<2x32xf32> -> vector<2x32xf32>
    %434 = vector.broadcast %419 : vector<1x32xf32> to vector<2x32xf32>
    %435 = arith.addf %433, %434 : vector<2x32xf32>
    %cst_207 = arith.constant dense<0.000000e+00> : vector<2x32xf32>
    %436 = tpu.matmul %385, %415, %cst_207 {dimension_numbers = #tpu.dot_dimension_numbers<[1], [0], [0], [1], [0, 0, 1, 1], [], []>} : vector<2x32xf32>, vector<32x32xf32>, vector<2x32xf32> -> vector<2x32xf32>
    %437 = vector.broadcast %421 : vector<1x32xf32> to vector<2x32xf32>
    %438 = arith.addf %436, %437 : vector<2x32xf32>
    %439 = arith.addf %425, %432 : vector<2x32xf32>
    %440 = arith.negf %439 : vector<2x32xf32>
    %441 = math.exp %440 : vector<2x32xf32>
    %cst_208 = arith.constant 1.000000e+00 : f32
    %442 = vector.broadcast %cst_208 : f32 to vector<2x32xf32>
    %443 = arith.addf %442, %441 : vector<2x32xf32>
    %444 = arith.divf %442, %443 : vector<2x32xf32>
    %445 = arith.addf %427, %435 : vector<2x32xf32>
    %446 = arith.negf %445 : vector<2x32xf32>
    %447 = math.exp %446 : vector<2x32xf32>
    %cst_209 = arith.constant 1.000000e+00 : f32
    %448 = vector.broadcast %cst_209 : f32 to vector<2x32xf32>
    %449 = arith.addf %448, %447 : vector<2x32xf32>
    %450 = arith.divf %448, %449 : vector<2x32xf32>
    %451 = arith.mulf %444, %438 : vector<2x32xf32>
    %452 = arith.addf %429, %451 : vector<2x32xf32>
    %453 = math.tanh %452 : vector<2x32xf32>
    %cst_210 = arith.constant 1.000000e+00 : f32
    %454 = vector.broadcast %cst_210 : f32 to vector<2x32xf32>
    %455 = arith.subf %454, %450 : vector<2x32xf32>
    %456 = arith.mulf %455, %453 : vector<2x32xf32>
    %457 = arith.mulf %450, %385 : vector<2x32xf32>
    %458 = arith.addf %456, %457 : vector<2x32xf32>
    %c2_i32_211 = arith.constant 2 : i32
    %459 = arith.muli %c0_i32_200, %c2_i32_211 : i32
    %460 = tpu.assume_multiple %459, 2 : i32
    %461 = arith.index_cast %460 : i32 to index
    %c0_212 = arith.constant 0 : index
    %462 = vector.load %arg33[%461, %c0_212] : memref<16x32xf32, #tpu.memory_space<vmem>>, vector<2x32xf32>
    tpu.vector_store %arg33[%461, %c0_212], %458 {strides = array<i32>} : memref<16x32xf32, #tpu.memory_space<vmem>>, vector<2x32xf32>,
    %c1_i32_213 = arith.constant 1 : i32
    %c2_i32_214 = arith.constant 2 : i32
    %463 = arith.muli %c1_i32_213, %c2_i32_214 : i32
    %464 = tpu.assume_multiple %463, 2 : i32
    %465 = arith.index_cast %464 : i32 to index
    %c0_215 = arith.constant 0 : index
    %466 = vector.load %arg30[%465, %c0_215] : memref<16x32xf32, #tpu.memory_space<vmem>>, vector<2x32xf32>
    %467 = arith.index_cast %464 : i32 to index
    %c0_216 = arith.constant 0 : index
    %468 = vector.load %arg31[%467, %c0_216] : memref<16x32xf32, #tpu.memory_space<vmem>>, vector<2x32xf32>
    %469 = arith.index_cast %464 : i32 to index
    %c0_217 = arith.constant 0 : index
    %470 = vector.load %arg32[%469, %c0_217] : memref<16x32xf32, #tpu.memory_space<vmem>>, vector<2x32xf32>
    %cst_218 = arith.constant dense<0.000000e+00> : vector<2x32xf32>
    %471 = tpu.matmul %458, %411, %cst_218 {dimension_numbers = #tpu.dot_dimension_numbers<[1], [0], [0], [1], [0, 0, 1, 1], [], []>} : vector<2x32xf32>, vector<32x32xf32>, vector<2x32xf32> -> vector<2x32xf32>
    %472 = vector.broadcast %417 : vector<1x32xf32> to vector<2x32xf32>
    %473 = arith.addf %471, %472 : vector<2x32xf32>
    %cst_219 = arith.constant dense<0.000000e+00> : vector<2x32xf32>
    %474 = tpu.matmul %458, %413, %cst_219 {dimension_numbers = #tpu.dot_dimension_numbers<[1], [0], [0], [1], [0, 0, 1, 1], [], []>} : vector<2x32xf32>, vector<32x32xf32>, vector<2x32xf32> -> vector<2x32xf32>
    %475 = vector.broadcast %419 : vector<1x32xf32> to vector<2x32xf32>
    %476 = arith.addf %474, %475 : vector<2x32xf32>
    %cst_220 = arith.constant dense<0.000000e+00> : vector<2x32xf32>
    %477 = tpu.matmul %458, %415, %cst_220 {dimension_numbers = #tpu.dot_dimension_numbers<[1], [0], [0], [1], [0, 0, 1, 1], [], []>} : vector<2x32xf32>, vector<32x32xf32>, vector<2x32xf32> -> vector<2x32xf32>
    %478 = vector.broadcast %421 : vector<1x32xf32> to vector<2x32xf32>
    %479 = arith.addf %477, %478 : vector<2x32xf32>
    %480 = arith.addf %466, %473 : vector<2x32xf32>
    %481 = arith.negf %480 : vector<2x32xf32>
    %482 = math.exp %481 : vector<2x32xf32>
    %cst_221 = arith.constant 1.000000e+00 : f32
    %483 = vector.broadcast %cst_221 : f32 to vector<2x32xf32>
    %484 = arith.addf %483, %482 : vector<2x32xf32>
    %485 = arith.divf %483, %484 : vector<2x32xf32>
    %486 = arith.addf %468, %476 : vector<2x32xf32>
    %487 = arith.negf %486 : vector<2x32xf32>
    %488 = math.exp %487 : vector<2x32xf32>
    %cst_222 = arith.constant 1.000000e+00 : f32
    %489 = vector.broadcast %cst_222 : f32 to vector<2x32xf32>
    %490 = arith.addf %489, %488 : vector<2x32xf32>
    %491 = arith.divf %489, %490 : vector<2x32xf32>
    %492 = arith.mulf %485, %479 : vector<2x32xf32>
    %493 = arith.addf %470, %492 : vector<2x32xf32>
    %494 = math.tanh %493 : vector<2x32xf32>
    %cst_223 = arith.constant 1.000000e+00 : f32
    %495 = vector.broadcast %cst_223 : f32 to vector<2x32xf32>
    %496 = arith.subf %495, %491 : vector<2x32xf32>
    %497 = arith.mulf %496, %494 : vector<2x32xf32>
    %498 = arith.mulf %491, %458 : vector<2x32xf32>
    %499 = arith.addf %497, %498 : vector<2x32xf32>
    %c2_i32_224 = arith.constant 2 : i32
    %500 = arith.muli %c1_i32_213, %c2_i32_224 : i32
    %501 = tpu.assume_multiple %500, 2 : i32
    %502 = arith.index_cast %501 : i32 to index
    %c0_225 = arith.constant 0 : index
    %503 = vector.load %arg33[%502, %c0_225] : memref<16x32xf32, #tpu.memory_space<vmem>>, vector<2x32xf32>
    tpu.vector_store %arg33[%502, %c0_225], %499 {strides = array<i32>} : memref<16x32xf32, #tpu.memory_space<vmem>>, vector<2x32xf32>,
    %c2_i32_226 = arith.constant 2 : i32
    %c2_i32_227 = arith.constant 2 : i32
    %504 = arith.muli %c2_i32_226, %c2_i32_227 : i32
    %505 = tpu.assume_multiple %504, 2 : i32
    %506 = arith.index_cast %505 : i32 to index
    %c0_228 = arith.constant 0 : index
    %507 = vector.load %arg30[%506, %c0_228] : memref<16x32xf32, #tpu.memory_space<vmem>>, vector<2x32xf32>
    %508 = arith.index_cast %505 : i32 to index
    %c0_229 = arith.constant 0 : index
    %509 = vector.load %arg31[%508, %c0_229] : memref<16x32xf32, #tpu.memory_space<vmem>>, vector<2x32xf32>
    %510 = arith.index_cast %505 : i32 to index
    %c0_230 = arith.constant 0 : index
    %511 = vector.load %arg32[%510, %c0_230] : memref<16x32xf32, #tpu.memory_space<vmem>>, vector<2x32xf32>
    %cst_231 = arith.constant dense<0.000000e+00> : vector<2x32xf32>
    %512 = tpu.matmul %499, %411, %cst_231 {dimension_numbers = #tpu.dot_dimension_numbers<[1], [0], [0], [1], [0, 0, 1, 1], [], []>} : vector<2x32xf32>, vector<32x32xf32>, vector<2x32xf32> -> vector<2x32xf32>
    %513 = vector.broadcast %417 : vector<1x32xf32> to vector<2x32xf32>
    %514 = arith.addf %512, %513 : vector<2x32xf32>
    %cst_232 = arith.constant dense<0.000000e+00> : vector<2x32xf32>
    %515 = tpu.matmul %499, %413, %cst_232 {dimension_numbers = #tpu.dot_dimension_numbers<[1], [0], [0], [1], [0, 0, 1, 1], [], []>} : vector<2x32xf32>, vector<32x32xf32>, vector<2x32xf32> -> vector<2x32xf32>
    %516 = vector.broadcast %419 : vector<1x32xf32> to vector<2x32xf32>
    %517 = arith.addf %515, %516 : vector<2x32xf32>
    %cst_233 = arith.constant dense<0.000000e+00> : vector<2x32xf32>
    %518 = tpu.matmul %499, %415, %cst_233 {dimension_numbers = #tpu.dot_dimension_numbers<[1], [0], [0], [1], [0, 0, 1, 1], [], []>} : vector<2x32xf32>, vector<32x32xf32>, vector<2x32xf32> -> vector<2x32xf32>
    %519 = vector.broadcast %421 : vector<1x32xf32> to vector<2x32xf32>
    %520 = arith.addf %518, %519 : vector<2x32xf32>
    %521 = arith.addf %507, %514 : vector<2x32xf32>
    %522 = arith.negf %521 : vector<2x32xf32>
    %523 = math.exp %522 : vector<2x32xf32>
    %cst_234 = arith.constant 1.000000e+00 : f32
    %524 = vector.broadcast %cst_234 : f32 to vector<2x32xf32>
    %525 = arith.addf %524, %523 : vector<2x32xf32>
    %526 = arith.divf %524, %525 : vector<2x32xf32>
    %527 = arith.addf %509, %517 : vector<2x32xf32>
    %528 = arith.negf %527 : vector<2x32xf32>
    %529 = math.exp %528 : vector<2x32xf32>
    %cst_235 = arith.constant 1.000000e+00 : f32
    %530 = vector.broadcast %cst_235 : f32 to vector<2x32xf32>
    %531 = arith.addf %530, %529 : vector<2x32xf32>
    %532 = arith.divf %530, %531 : vector<2x32xf32>
    %533 = arith.mulf %526, %520 : vector<2x32xf32>
    %534 = arith.addf %511, %533 : vector<2x32xf32>
    %535 = math.tanh %534 : vector<2x32xf32>
    %cst_236 = arith.constant 1.000000e+00 : f32
    %536 = vector.broadcast %cst_236 : f32 to vector<2x32xf32>
    %537 = arith.subf %536, %532 : vector<2x32xf32>
    %538 = arith.mulf %537, %535 : vector<2x32xf32>
    %539 = arith.mulf %532, %499 : vector<2x32xf32>
    %540 = arith.addf %538, %539 : vector<2x32xf32>
    %c2_i32_237 = arith.constant 2 : i32
    %541 = arith.muli %c2_i32_226, %c2_i32_237 : i32
    %542 = tpu.assume_multiple %541, 2 : i32
    %543 = arith.index_cast %542 : i32 to index
    %c0_238 = arith.constant 0 : index
    %544 = vector.load %arg33[%543, %c0_238] : memref<16x32xf32, #tpu.memory_space<vmem>>, vector<2x32xf32>
    tpu.vector_store %arg33[%543, %c0_238], %540 {strides = array<i32>} : memref<16x32xf32, #tpu.memory_space<vmem>>, vector<2x32xf32>,
    %c3_i32_239 = arith.constant 3 : i32
    %c2_i32_240 = arith.constant 2 : i32
    %545 = arith.muli %c3_i32_239, %c2_i32_240 : i32
    %546 = tpu.assume_multiple %545, 2 : i32
    %547 = arith.index_cast %546 : i32 to index
    %c0_241 = arith.constant 0 : index
    %548 = vector.load %arg30[%547, %c0_241] : memref<16x32xf32, #tpu.memory_space<vmem>>, vector<2x32xf32>
    %549 = arith.index_cast %546 : i32 to index
    %c0_242 = arith.constant 0 : index
    %550 = vector.load %arg31[%549, %c0_242] : memref<16x32xf32, #tpu.memory_space<vmem>>, vector<2x32xf32>
    %551 = arith.index_cast %546 : i32 to index
    %c0_243 = arith.constant 0 : index
    %552 = vector.load %arg32[%551, %c0_243] : memref<16x32xf32, #tpu.memory_space<vmem>>, vector<2x32xf32>
    %cst_244 = arith.constant dense<0.000000e+00> : vector<2x32xf32>
    %553 = tpu.matmul %540, %411, %cst_244 {dimension_numbers = #tpu.dot_dimension_numbers<[1], [0], [0], [1], [0, 0, 1, 1], [], []>} : vector<2x32xf32>, vector<32x32xf32>, vector<2x32xf32> -> vector<2x32xf32>
    %554 = vector.broadcast %417 : vector<1x32xf32> to vector<2x32xf32>
    %555 = arith.addf %553, %554 : vector<2x32xf32>
    %cst_245 = arith.constant dense<0.000000e+00> : vector<2x32xf32>
    %556 = tpu.matmul %540, %413, %cst_245 {dimension_numbers = #tpu.dot_dimension_numbers<[1], [0], [0], [1], [0, 0, 1, 1], [], []>} : vector<2x32xf32>, vector<32x32xf32>, vector<2x32xf32> -> vector<2x32xf32>
    %557 = vector.broadcast %419 : vector<1x32xf32> to vector<2x32xf32>
    %558 = arith.addf %556, %557 : vector<2x32xf32>
    %cst_246 = arith.constant dense<0.000000e+00> : vector<2x32xf32>
    %559 = tpu.matmul %540, %415, %cst_246 {dimension_numbers = #tpu.dot_dimension_numbers<[1], [0], [0], [1], [0, 0, 1, 1], [], []>} : vector<2x32xf32>, vector<32x32xf32>, vector<2x32xf32> -> vector<2x32xf32>
    %560 = vector.broadcast %421 : vector<1x32xf32> to vector<2x32xf32>
    %561 = arith.addf %559, %560 : vector<2x32xf32>
    %562 = arith.addf %548, %555 : vector<2x32xf32>
    %563 = arith.negf %562 : vector<2x32xf32>
    %564 = math.exp %563 : vector<2x32xf32>
    %cst_247 = arith.constant 1.000000e+00 : f32
    %565 = vector.broadcast %cst_247 : f32 to vector<2x32xf32>
    %566 = arith.addf %565, %564 : vector<2x32xf32>
    %567 = arith.divf %565, %566 : vector<2x32xf32>
    %568 = arith.addf %550, %558 : vector<2x32xf32>
    %569 = arith.negf %568 : vector<2x32xf32>
    %570 = math.exp %569 : vector<2x32xf32>
    %cst_248 = arith.constant 1.000000e+00 : f32
    %571 = vector.broadcast %cst_248 : f32 to vector<2x32xf32>
    %572 = arith.addf %571, %570 : vector<2x32xf32>
    %573 = arith.divf %571, %572 : vector<2x32xf32>
    %574 = arith.mulf %567, %561 : vector<2x32xf32>
    %575 = arith.addf %552, %574 : vector<2x32xf32>
    %576 = math.tanh %575 : vector<2x32xf32>
    %cst_249 = arith.constant 1.000000e+00 : f32
    %577 = vector.broadcast %cst_249 : f32 to vector<2x32xf32>
    %578 = arith.subf %577, %573 : vector<2x32xf32>
    %579 = arith.mulf %578, %576 : vector<2x32xf32>
    %580 = arith.mulf %573, %540 : vector<2x32xf32>
    %581 = arith.addf %579, %580 : vector<2x32xf32>
    %c2_i32_250 = arith.constant 2 : i32
    %582 = arith.muli %c3_i32_239, %c2_i32_250 : i32
    %583 = tpu.assume_multiple %582, 2 : i32
    %584 = arith.index_cast %583 : i32 to index
    %c0_251 = arith.constant 0 : index
    %585 = vector.load %arg33[%584, %c0_251] : memref<16x32xf32, #tpu.memory_space<vmem>>, vector<2x32xf32>
    tpu.vector_store %arg33[%584, %c0_251], %581 {strides = array<i32>} : memref<16x32xf32, #tpu.memory_space<vmem>>, vector<2x32xf32>,
    %c4_i32_252 = arith.constant 4 : i32
    %c2_i32_253 = arith.constant 2 : i32
    %586 = arith.muli %c4_i32_252, %c2_i32_253 : i32
    %587 = tpu.assume_multiple %586, 2 : i32
    %588 = arith.index_cast %587 : i32 to index
    %c0_254 = arith.constant 0 : index
    %589 = vector.load %arg30[%588, %c0_254] : memref<16x32xf32, #tpu.memory_space<vmem>>, vector<2x32xf32>
    %590 = arith.index_cast %587 : i32 to index
    %c0_255 = arith.constant 0 : index
    %591 = vector.load %arg31[%590, %c0_255] : memref<16x32xf32, #tpu.memory_space<vmem>>, vector<2x32xf32>
    %592 = arith.index_cast %587 : i32 to index
    %c0_256 = arith.constant 0 : index
    %593 = vector.load %arg32[%592, %c0_256] : memref<16x32xf32, #tpu.memory_space<vmem>>, vector<2x32xf32>
    %cst_257 = arith.constant dense<0.000000e+00> : vector<2x32xf32>
    %594 = tpu.matmul %581, %411, %cst_257 {dimension_numbers = #tpu.dot_dimension_numbers<[1], [0], [0], [1], [0, 0, 1, 1], [], []>} : vector<2x32xf32>, vector<32x32xf32>, vector<2x32xf32> -> vector<2x32xf32>
    %595 = vector.broadcast %417 : vector<1x32xf32> to vector<2x32xf32>
    %596 = arith.addf %594, %595 : vector<2x32xf32>
    %cst_258 = arith.constant dense<0.000000e+00> : vector<2x32xf32>
    %597 = tpu.matmul %581, %413, %cst_258 {dimension_numbers = #tpu.dot_dimension_numbers<[1], [0], [0], [1], [0, 0, 1, 1], [], []>} : vector<2x32xf32>, vector<32x32xf32>, vector<2x32xf32> -> vector<2x32xf32>
    %598 = vector.broadcast %419 : vector<1x32xf32> to vector<2x32xf32>
    %599 = arith.addf %597, %598 : vector<2x32xf32>
    %cst_259 = arith.constant dense<0.000000e+00> : vector<2x32xf32>
    %600 = tpu.matmul %581, %415, %cst_259 {dimension_numbers = #tpu.dot_dimension_numbers<[1], [0], [0], [1], [0, 0, 1, 1], [], []>} : vector<2x32xf32>, vector<32x32xf32>, vector<2x32xf32> -> vector<2x32xf32>
    %601 = vector.broadcast %421 : vector<1x32xf32> to vector<2x32xf32>
    %602 = arith.addf %600, %601 : vector<2x32xf32>
    %603 = arith.addf %589, %596 : vector<2x32xf32>
    %604 = arith.negf %603 : vector<2x32xf32>
    %605 = math.exp %604 : vector<2x32xf32>
    %cst_260 = arith.constant 1.000000e+00 : f32
    %606 = vector.broadcast %cst_260 : f32 to vector<2x32xf32>
    %607 = arith.addf %606, %605 : vector<2x32xf32>
    %608 = arith.divf %606, %607 : vector<2x32xf32>
    %609 = arith.addf %591, %599 : vector<2x32xf32>
    %610 = arith.negf %609 : vector<2x32xf32>
    %611 = math.exp %610 : vector<2x32xf32>
    %cst_261 = arith.constant 1.000000e+00 : f32
    %612 = vector.broadcast %cst_261 : f32 to vector<2x32xf32>
    %613 = arith.addf %612, %611 : vector<2x32xf32>
    %614 = arith.divf %612, %613 : vector<2x32xf32>
    %615 = arith.mulf %608, %602 : vector<2x32xf32>
    %616 = arith.addf %593, %615 : vector<2x32xf32>
    %617 = math.tanh %616 : vector<2x32xf32>
    %cst_262 = arith.constant 1.000000e+00 : f32
    %618 = vector.broadcast %cst_262 : f32 to vector<2x32xf32>
    %619 = arith.subf %618, %614 : vector<2x32xf32>
    %620 = arith.mulf %619, %617 : vector<2x32xf32>
    %621 = arith.mulf %614, %581 : vector<2x32xf32>
    %622 = arith.addf %620, %621 : vector<2x32xf32>
    %c2_i32_263 = arith.constant 2 : i32
    %623 = arith.muli %c4_i32_252, %c2_i32_263 : i32
    %624 = tpu.assume_multiple %623, 2 : i32
    %625 = arith.index_cast %624 : i32 to index
    %c0_264 = arith.constant 0 : index
    %626 = vector.load %arg33[%625, %c0_264] : memref<16x32xf32, #tpu.memory_space<vmem>>, vector<2x32xf32>
    tpu.vector_store %arg33[%625, %c0_264], %622 {strides = array<i32>} : memref<16x32xf32, #tpu.memory_space<vmem>>, vector<2x32xf32>,
    %c5_i32_265 = arith.constant 5 : i32
    %c2_i32_266 = arith.constant 2 : i32
    %627 = arith.muli %c5_i32_265, %c2_i32_266 : i32
    %628 = tpu.assume_multiple %627, 2 : i32
    %629 = arith.index_cast %628 : i32 to index
    %c0_267 = arith.constant 0 : index
    %630 = vector.load %arg30[%629, %c0_267] : memref<16x32xf32, #tpu.memory_space<vmem>>, vector<2x32xf32>
    %631 = arith.index_cast %628 : i32 to index
    %c0_268 = arith.constant 0 : index
    %632 = vector.load %arg31[%631, %c0_268] : memref<16x32xf32, #tpu.memory_space<vmem>>, vector<2x32xf32>
    %633 = arith.index_cast %628 : i32 to index
    %c0_269 = arith.constant 0 : index
    %634 = vector.load %arg32[%633, %c0_269] : memref<16x32xf32, #tpu.memory_space<vmem>>, vector<2x32xf32>
    %cst_270 = arith.constant dense<0.000000e+00> : vector<2x32xf32>
    %635 = tpu.matmul %622, %411, %cst_270 {dimension_numbers = #tpu.dot_dimension_numbers<[1], [0], [0], [1], [0, 0, 1, 1], [], []>} : vector<2x32xf32>, vector<32x32xf32>, vector<2x32xf32> -> vector<2x32xf32>
    %636 = vector.broadcast %417 : vector<1x32xf32> to vector<2x32xf32>
    %637 = arith.addf %635, %636 : vector<2x32xf32>
    %cst_271 = arith.constant dense<0.000000e+00> : vector<2x32xf32>
    %638 = tpu.matmul %622, %413, %cst_271 {dimension_numbers = #tpu.dot_dimension_numbers<[1], [0], [0], [1], [0, 0, 1, 1], [], []>} : vector<2x32xf32>, vector<32x32xf32>, vector<2x32xf32> -> vector<2x32xf32>
    %639 = vector.broadcast %419 : vector<1x32xf32> to vector<2x32xf32>
    %640 = arith.addf %638, %639 : vector<2x32xf32>
    %cst_272 = arith.constant dense<0.000000e+00> : vector<2x32xf32>
    %641 = tpu.matmul %622, %415, %cst_272 {dimension_numbers = #tpu.dot_dimension_numbers<[1], [0], [0], [1], [0, 0, 1, 1], [], []>} : vector<2x32xf32>, vector<32x32xf32>, vector<2x32xf32> -> vector<2x32xf32>
    %642 = vector.broadcast %421 : vector<1x32xf32> to vector<2x32xf32>
    %643 = arith.addf %641, %642 : vector<2x32xf32>
    %644 = arith.addf %630, %637 : vector<2x32xf32>
    %645 = arith.negf %644 : vector<2x32xf32>
    %646 = math.exp %645 : vector<2x32xf32>
    %cst_273 = arith.constant 1.000000e+00 : f32
    %647 = vector.broadcast %cst_273 : f32 to vector<2x32xf32>
    %648 = arith.addf %647, %646 : vector<2x32xf32>
    %649 = arith.divf %647, %648 : vector<2x32xf32>
    %650 = arith.addf %632, %640 : vector<2x32xf32>
    %651 = arith.negf %650 : vector<2x32xf32>
    %652 = math.exp %651 : vector<2x32xf32>
    %cst_274 = arith.constant 1.000000e+00 : f32
    %653 = vector.broadcast %cst_274 : f32 to vector<2x32xf32>
    %654 = arith.addf %653, %652 : vector<2x32xf32>
    %655 = arith.divf %653, %654 : vector<2x32xf32>
    %656 = arith.mulf %649, %643 : vector<2x32xf32>
    %657 = arith.addf %634, %656 : vector<2x32xf32>
    %658 = math.tanh %657 : vector<2x32xf32>
    %cst_275 = arith.constant 1.000000e+00 : f32
    %659 = vector.broadcast %cst_275 : f32 to vector<2x32xf32>
    %660 = arith.subf %659, %655 : vector<2x32xf32>
    %661 = arith.mulf %660, %658 : vector<2x32xf32>
    %662 = arith.mulf %655, %622 : vector<2x32xf32>
    %663 = arith.addf %661, %662 : vector<2x32xf32>
    %c2_i32_276 = arith.constant 2 : i32
    %664 = arith.muli %c5_i32_265, %c2_i32_276 : i32
    %665 = tpu.assume_multiple %664, 2 : i32
    %666 = arith.index_cast %665 : i32 to index
    %c0_277 = arith.constant 0 : index
    %667 = vector.load %arg33[%666, %c0_277] : memref<16x32xf32, #tpu.memory_space<vmem>>, vector<2x32xf32>
    tpu.vector_store %arg33[%666, %c0_277], %663 {strides = array<i32>} : memref<16x32xf32, #tpu.memory_space<vmem>>, vector<2x32xf32>,
    %c6_i32_278 = arith.constant 6 : i32
    %c2_i32_279 = arith.constant 2 : i32
    %668 = arith.muli %c6_i32_278, %c2_i32_279 : i32
    %669 = tpu.assume_multiple %668, 2 : i32
    %670 = arith.index_cast %669 : i32 to index
    %c0_280 = arith.constant 0 : index
    %671 = vector.load %arg30[%670, %c0_280] : memref<16x32xf32, #tpu.memory_space<vmem>>, vector<2x32xf32>
    %672 = arith.index_cast %669 : i32 to index
    %c0_281 = arith.constant 0 : index
    %673 = vector.load %arg31[%672, %c0_281] : memref<16x32xf32, #tpu.memory_space<vmem>>, vector<2x32xf32>
    %674 = arith.index_cast %669 : i32 to index
    %c0_282 = arith.constant 0 : index
    %675 = vector.load %arg32[%674, %c0_282] : memref<16x32xf32, #tpu.memory_space<vmem>>, vector<2x32xf32>
    %cst_283 = arith.constant dense<0.000000e+00> : vector<2x32xf32>
    %676 = tpu.matmul %663, %411, %cst_283 {dimension_numbers = #tpu.dot_dimension_numbers<[1], [0], [0], [1], [0, 0, 1, 1], [], []>} : vector<2x32xf32>, vector<32x32xf32>, vector<2x32xf32> -> vector<2x32xf32>
    %677 = vector.broadcast %417 : vector<1x32xf32> to vector<2x32xf32>
    %678 = arith.addf %676, %677 : vector<2x32xf32>
    %cst_284 = arith.constant dense<0.000000e+00> : vector<2x32xf32>
    %679 = tpu.matmul %663, %413, %cst_284 {dimension_numbers = #tpu.dot_dimension_numbers<[1], [0], [0], [1], [0, 0, 1, 1], [], []>} : vector<2x32xf32>, vector<32x32xf32>, vector<2x32xf32> -> vector<2x32xf32>
    %680 = vector.broadcast %419 : vector<1x32xf32> to vector<2x32xf32>
    %681 = arith.addf %679, %680 : vector<2x32xf32>
    %cst_285 = arith.constant dense<0.000000e+00> : vector<2x32xf32>
    %682 = tpu.matmul %663, %415, %cst_285 {dimension_numbers = #tpu.dot_dimension_numbers<[1], [0], [0], [1], [0, 0, 1, 1], [], []>} : vector<2x32xf32>, vector<32x32xf32>, vector<2x32xf32> -> vector<2x32xf32>
    %683 = vector.broadcast %421 : vector<1x32xf32> to vector<2x32xf32>
    %684 = arith.addf %682, %683 : vector<2x32xf32>
    %685 = arith.addf %671, %678 : vector<2x32xf32>
    %686 = arith.negf %685 : vector<2x32xf32>
    %687 = math.exp %686 : vector<2x32xf32>
    %cst_286 = arith.constant 1.000000e+00 : f32
    %688 = vector.broadcast %cst_286 : f32 to vector<2x32xf32>
    %689 = arith.addf %688, %687 : vector<2x32xf32>
    %690 = arith.divf %688, %689 : vector<2x32xf32>
    %691 = arith.addf %673, %681 : vector<2x32xf32>
    %692 = arith.negf %691 : vector<2x32xf32>
    %693 = math.exp %692 : vector<2x32xf32>
    %cst_287 = arith.constant 1.000000e+00 : f32
    %694 = vector.broadcast %cst_287 : f32 to vector<2x32xf32>
    %695 = arith.addf %694, %693 : vector<2x32xf32>
    %696 = arith.divf %694, %695 : vector<2x32xf32>
    %697 = arith.mulf %690, %684 : vector<2x32xf32>
    %698 = arith.addf %675, %697 : vector<2x32xf32>
    %699 = math.tanh %698 : vector<2x32xf32>
    %cst_288 = arith.constant 1.000000e+00 : f32
    %700 = vector.broadcast %cst_288 : f32 to vector<2x32xf32>
    %701 = arith.subf %700, %696 : vector<2x32xf32>
    %702 = arith.mulf %701, %699 : vector<2x32xf32>
    %703 = arith.mulf %696, %663 : vector<2x32xf32>
    %704 = arith.addf %702, %703 : vector<2x32xf32>
    %c2_i32_289 = arith.constant 2 : i32
    %705 = arith.muli %c6_i32_278, %c2_i32_289 : i32
    %706 = tpu.assume_multiple %705, 2 : i32
    %707 = arith.index_cast %706 : i32 to index
    %c0_290 = arith.constant 0 : index
    %708 = vector.load %arg33[%707, %c0_290] : memref<16x32xf32, #tpu.memory_space<vmem>>, vector<2x32xf32>
    tpu.vector_store %arg33[%707, %c0_290], %704 {strides = array<i32>} : memref<16x32xf32, #tpu.memory_space<vmem>>, vector<2x32xf32>,
    %c7_i32_291 = arith.constant 7 : i32
    %c2_i32_292 = arith.constant 2 : i32
    %709 = arith.muli %c7_i32_291, %c2_i32_292 : i32
    %710 = tpu.assume_multiple %709, 2 : i32
    %711 = arith.index_cast %710 : i32 to index
    %c0_293 = arith.constant 0 : index
    %712 = vector.load %arg30[%711, %c0_293] : memref<16x32xf32, #tpu.memory_space<vmem>>, vector<2x32xf32>
    %713 = arith.index_cast %710 : i32 to index
    %c0_294 = arith.constant 0 : index
    %714 = vector.load %arg31[%713, %c0_294] : memref<16x32xf32, #tpu.memory_space<vmem>>, vector<2x32xf32>
    %715 = arith.index_cast %710 : i32 to index
    %c0_295 = arith.constant 0 : index
    %716 = vector.load %arg32[%715, %c0_295] : memref<16x32xf32, #tpu.memory_space<vmem>>, vector<2x32xf32>
    %cst_296 = arith.constant dense<0.000000e+00> : vector<2x32xf32>
    %717 = tpu.matmul %704, %411, %cst_296 {dimension_numbers = #tpu.dot_dimension_numbers<[1], [0], [0], [1], [0, 0, 1, 1], [], []>} : vector<2x32xf32>, vector<32x32xf32>, vector<2x32xf32> -> vector<2x32xf32>
    %718 = vector.broadcast %417 : vector<1x32xf32> to vector<2x32xf32>
    %719 = arith.addf %717, %718 : vector<2x32xf32>
    %cst_297 = arith.constant dense<0.000000e+00> : vector<2x32xf32>
    %720 = tpu.matmul %704, %413, %cst_297 {dimension_numbers = #tpu.dot_dimension_numbers<[1], [0], [0], [1], [0, 0, 1, 1], [], []>} : vector<2x32xf32>, vector<32x32xf32>, vector<2x32xf32> -> vector<2x32xf32>
    %721 = vector.broadcast %419 : vector<1x32xf32> to vector<2x32xf32>
    %722 = arith.addf %720, %721 : vector<2x32xf32>
    %cst_298 = arith.constant dense<0.000000e+00> : vector<2x32xf32>
    %723 = tpu.matmul %704, %415, %cst_298 {dimension_numbers = #tpu.dot_dimension_numbers<[1], [0], [0], [1], [0, 0, 1, 1], [], []>} : vector<2x32xf32>, vector<32x32xf32>, vector<2x32xf32> -> vector<2x32xf32>
    %724 = vector.broadcast %421 : vector<1x32xf32> to vector<2x32xf32>
    %725 = arith.addf %723, %724 : vector<2x32xf32>
    %726 = arith.addf %712, %719 : vector<2x32xf32>
    %727 = arith.negf %726 : vector<2x32xf32>
    %728 = math.exp %727 : vector<2x32xf32>
    %cst_299 = arith.constant 1.000000e+00 : f32
    %729 = vector.broadcast %cst_299 : f32 to vector<2x32xf32>
    %730 = arith.addf %729, %728 : vector<2x32xf32>
    %731 = arith.divf %729, %730 : vector<2x32xf32>
    %732 = arith.addf %714, %722 : vector<2x32xf32>
    %733 = arith.negf %732 : vector<2x32xf32>
    %734 = math.exp %733 : vector<2x32xf32>
    %cst_300 = arith.constant 1.000000e+00 : f32
    %735 = vector.broadcast %cst_300 : f32 to vector<2x32xf32>
    %736 = arith.addf %735, %734 : vector<2x32xf32>
    %737 = arith.divf %735, %736 : vector<2x32xf32>
    %738 = arith.mulf %731, %725 : vector<2x32xf32>
    %739 = arith.addf %716, %738 : vector<2x32xf32>
    %740 = math.tanh %739 : vector<2x32xf32>
    %cst_301 = arith.constant 1.000000e+00 : f32
    %741 = vector.broadcast %cst_301 : f32 to vector<2x32xf32>
    %742 = arith.subf %741, %737 : vector<2x32xf32>
    %743 = arith.mulf %742, %740 : vector<2x32xf32>
    %744 = arith.mulf %737, %704 : vector<2x32xf32>
    %745 = arith.addf %743, %744 : vector<2x32xf32>
    %c2_i32_302 = arith.constant 2 : i32
    %746 = arith.muli %c7_i32_291, %c2_i32_302 : i32
    %747 = tpu.assume_multiple %746, 2 : i32
    %748 = arith.index_cast %747 : i32 to index
    %c0_303 = arith.constant 0 : index
    %749 = vector.load %arg33[%748, %c0_303] : memref<16x32xf32, #tpu.memory_space<vmem>>, vector<2x32xf32>
    tpu.vector_store %arg33[%748, %c0_303], %745 {strides = array<i32>} : memref<16x32xf32, #tpu.memory_space<vmem>>, vector<2x32xf32>,
    %c8_i32_304 = arith.constant 8 : i32
    %c0_305 = arith.constant 0 : index
    %c0_306 = arith.constant 0 : index
    %750 = vector.load %arg33[%c0_305, %c0_306] : memref<16x32xf32, #tpu.memory_space<vmem>>, vector<16x32xf32>
    %c2_307 = arith.constant 2 : index
    %c0_308 = arith.constant 0 : index
    %c0_309 = arith.constant 0 : index
    %751 = vector.load %arg4[%c2_307, %c0_308, %c0_309] : memref<3x2x32xf32, #tpu.memory_space<vmem>>, vector<1x2x32xf32>
    %752 = vector.shape_cast %751 : vector<1x2x32xf32> to vector<2x32xf32>
    %c0_310 = arith.constant 0 : index
    %c0_311 = arith.constant 0 : index
    %c0_312 = arith.constant 0 : index
    %753 = vector.load %arg15[%c0_310, %c0_311, %c0_312] : memref<3x32x32xf32, #tpu.memory_space<vmem>>, vector<1x32x32xf32>
    %754 = vector.shape_cast %753 : vector<1x32x32xf32> to vector<32x32xf32>
    %cst_313 = arith.constant dense<0.000000e+00> : vector<16x32xf32>
    %755 = tpu.matmul %750, %754, %cst_313 {dimension_numbers = #tpu.dot_dimension_numbers<[1], [0], [0], [1], [0, 0, 1, 1], [], []>} : vector<16x32xf32>, vector<32x32xf32>, vector<16x32xf32> -> vector<16x32xf32>
    %c0_314 = arith.constant 0 : index
    %c0_315 = arith.constant 0 : index
    %c0_316 = arith.constant 0 : index
    %756 = vector.load %arg17[%c0_314, %c0_315, %c0_316] : memref<3x1x32xf32, #tpu.memory_space<vmem>>, vector<1x1x32xf32>
    %757 = vector.shape_cast %756 : vector<1x1x32xf32> to vector<1x32xf32>
    %758 = vector.broadcast %757 : vector<1x32xf32> to vector<16x32xf32>
    %759 = arith.addf %755, %758 : vector<16x32xf32>
    %c0_317 = arith.constant 0 : index
    %c0_318 = arith.constant 0 : index
    %760 = vector.load %arg30[%c0_317, %c0_318] : memref<16x32xf32, #tpu.memory_space<vmem>>, vector<16x32xf32>
    tpu.vector_store %arg30[%c0_317, %c0_318], %759 {strides = array<i32>} : memref<16x32xf32, #tpu.memory_space<vmem>>, vector<16x32xf32>,
    %c1_319 = arith.constant 1 : index
    %c0_320 = arith.constant 0 : index
    %c0_321 = arith.constant 0 : index
    %761 = vector.load %arg15[%c1_319, %c0_320, %c0_321] : memref<3x32x32xf32, #tpu.memory_space<vmem>>, vector<1x32x32xf32>
    %762 = vector.shape_cast %761 : vector<1x32x32xf32> to vector<32x32xf32>
    %cst_322 = arith.constant dense<0.000000e+00> : vector<16x32xf32>
    %763 = tpu.matmul %750, %762, %cst_322 {dimension_numbers = #tpu.dot_dimension_numbers<[1], [0], [0], [1], [0, 0, 1, 1], [], []>} : vector<16x32xf32>, vector<32x32xf32>, vector<16x32xf32> -> vector<16x32xf32>
    %c1_323 = arith.constant 1 : index
    %c0_324 = arith.constant 0 : index
    %c0_325 = arith.constant 0 : index
    %764 = vector.load %arg17[%c1_323, %c0_324, %c0_325] : memref<3x1x32xf32, #tpu.memory_space<vmem>>, vector<1x1x32xf32>
    %765 = vector.shape_cast %764 : vector<1x1x32xf32> to vector<1x32xf32>
    %766 = vector.broadcast %765 : vector<1x32xf32> to vector<16x32xf32>
    %767 = arith.addf %763, %766 : vector<16x32xf32>
    %c0_326 = arith.constant 0 : index
    %c0_327 = arith.constant 0 : index
    %768 = vector.load %arg31[%c0_326, %c0_327] : memref<16x32xf32, #tpu.memory_space<vmem>>, vector<16x32xf32>
    tpu.vector_store %arg31[%c0_326, %c0_327], %767 {strides = array<i32>} : memref<16x32xf32, #tpu.memory_space<vmem>>, vector<16x32xf32>,
    %c2_328 = arith.constant 2 : index
    %c0_329 = arith.constant 0 : index
    %c0_330 = arith.constant 0 : index
    %769 = vector.load %arg15[%c2_328, %c0_329, %c0_330] : memref<3x32x32xf32, #tpu.memory_space<vmem>>, vector<1x32x32xf32>
    %770 = vector.shape_cast %769 : vector<1x32x32xf32> to vector<32x32xf32>
    %cst_331 = arith.constant dense<0.000000e+00> : vector<16x32xf32>
    %771 = tpu.matmul %750, %770, %cst_331 {dimension_numbers = #tpu.dot_dimension_numbers<[1], [0], [0], [1], [0, 0, 1, 1], [], []>} : vector<16x32xf32>, vector<32x32xf32>, vector<16x32xf32> -> vector<16x32xf32>
    %c2_332 = arith.constant 2 : index
    %c0_333 = arith.constant 0 : index
    %c0_334 = arith.constant 0 : index
    %772 = vector.load %arg17[%c2_332, %c0_333, %c0_334] : memref<3x1x32xf32, #tpu.memory_space<vmem>>, vector<1x1x32xf32>
    %773 = vector.shape_cast %772 : vector<1x1x32xf32> to vector<1x32xf32>
    %774 = vector.broadcast %773 : vector<1x32xf32> to vector<16x32xf32>
    %775 = arith.addf %771, %774 : vector<16x32xf32>
    %c0_335 = arith.constant 0 : index
    %c0_336 = arith.constant 0 : index
    %776 = vector.load %arg32[%c0_335, %c0_336] : memref<16x32xf32, #tpu.memory_space<vmem>>, vector<16x32xf32>
    tpu.vector_store %arg32[%c0_335, %c0_336], %775 {strides = array<i32>} : memref<16x32xf32, #tpu.memory_space<vmem>>, vector<16x32xf32>,
    %c0_337 = arith.constant 0 : index
    %c0_338 = arith.constant 0 : index
    %c0_339 = arith.constant 0 : index
    %777 = vector.load %arg16[%c0_337, %c0_338, %c0_339] : memref<3x32x32xf32, #tpu.memory_space<vmem>>, vector<1x32x32xf32>
    %778 = vector.shape_cast %777 : vector<1x32x32xf32> to vector<32x32xf32>
    %c1_340 = arith.constant 1 : index
    %c0_341 = arith.constant 0 : index
    %c0_342 = arith.constant 0 : index
    %779 = vector.load %arg16[%c1_340, %c0_341, %c0_342] : memref<3x32x32xf32, #tpu.memory_space<vmem>>, vector<1x32x32xf32>
    %780 = vector.shape_cast %779 : vector<1x32x32xf32> to vector<32x32xf32>
    %c2_343 = arith.constant 2 : index
    %c0_344 = arith.constant 0 : index
    %c0_345 = arith.constant 0 : index
    %781 = vector.load %arg16[%c2_343, %c0_344, %c0_345] : memref<3x32x32xf32, #tpu.memory_space<vmem>>, vector<1x32x32xf32>
    %782 = vector.shape_cast %781 : vector<1x32x32xf32> to vector<32x32xf32>
    %c0_346 = arith.constant 0 : index
    %c0_347 = arith.constant 0 : index
    %c0_348 = arith.constant 0 : index
    %783 = vector.load %arg18[%c0_346, %c0_347, %c0_348] : memref<3x1x32xf32, #tpu.memory_space<vmem>>, vector<1x1x32xf32>
    %784 = vector.shape_cast %783 : vector<1x1x32xf32> to vector<1x32xf32>
    %c1_349 = arith.constant 1 : index
    %c0_350 = arith.constant 0 : index
    %c0_351 = arith.constant 0 : index
    %785 = vector.load %arg18[%c1_349, %c0_350, %c0_351] : memref<3x1x32xf32, #tpu.memory_space<vmem>>, vector<1x1x32xf32>
    %786 = vector.shape_cast %785 : vector<1x1x32xf32> to vector<1x32xf32>
    %c2_352 = arith.constant 2 : index
    %c0_353 = arith.constant 0 : index
    %c0_354 = arith.constant 0 : index
    %787 = vector.load %arg18[%c2_352, %c0_353, %c0_354] : memref<3x1x32xf32, #tpu.memory_space<vmem>>, vector<1x1x32xf32>
    %788 = vector.shape_cast %787 : vector<1x1x32xf32> to vector<1x32xf32>
    %c0_i32_355 = arith.constant 0 : i32
    %c2_i32_356 = arith.constant 2 : i32
    %789 = arith.muli %c0_i32_355, %c2_i32_356 : i32
    %790 = tpu.assume_multiple %789, 2 : i32
    %791 = arith.index_cast %790 : i32 to index
    %c0_357 = arith.constant 0 : index
    %792 = vector.load %arg30[%791, %c0_357] : memref<16x32xf32, #tpu.memory_space<vmem>>, vector<2x32xf32>
    %793 = arith.index_cast %790 : i32 to index
    %c0_358 = arith.constant 0 : index
    %794 = vector.load %arg31[%793, %c0_358] : memref<16x32xf32, #tpu.memory_space<vmem>>, vector<2x32xf32>
    %795 = arith.index_cast %790 : i32 to index
    %c0_359 = arith.constant 0 : index
    %796 = vector.load %arg32[%795, %c0_359] : memref<16x32xf32, #tpu.memory_space<vmem>>, vector<2x32xf32>
    %cst_360 = arith.constant dense<0.000000e+00> : vector<2x32xf32>
    %797 = tpu.matmul %752, %778, %cst_360 {dimension_numbers = #tpu.dot_dimension_numbers<[1], [0], [0], [1], [0, 0, 1, 1], [], []>} : vector<2x32xf32>, vector<32x32xf32>, vector<2x32xf32> -> vector<2x32xf32>
    %798 = vector.broadcast %784 : vector<1x32xf32> to vector<2x32xf32>
    %799 = arith.addf %797, %798 : vector<2x32xf32>
    %cst_361 = arith.constant dense<0.000000e+00> : vector<2x32xf32>
    %800 = tpu.matmul %752, %780, %cst_361 {dimension_numbers = #tpu.dot_dimension_numbers<[1], [0], [0], [1], [0, 0, 1, 1], [], []>} : vector<2x32xf32>, vector<32x32xf32>, vector<2x32xf32> -> vector<2x32xf32>
    %801 = vector.broadcast %786 : vector<1x32xf32> to vector<2x32xf32>
    %802 = arith.addf %800, %801 : vector<2x32xf32>
    %cst_362 = arith.constant dense<0.000000e+00> : vector<2x32xf32>
    %803 = tpu.matmul %752, %782, %cst_362 {dimension_numbers = #tpu.dot_dimension_numbers<[1], [0], [0], [1], [0, 0, 1, 1], [], []>} : vector<2x32xf32>, vector<32x32xf32>, vector<2x32xf32> -> vector<2x32xf32>
    %804 = vector.broadcast %788 : vector<1x32xf32> to vector<2x32xf32>
    %805 = arith.addf %803, %804 : vector<2x32xf32>
    %806 = arith.addf %792, %799 : vector<2x32xf32>
    %807 = arith.negf %806 : vector<2x32xf32>
    %808 = math.exp %807 : vector<2x32xf32>
    %cst_363 = arith.constant 1.000000e+00 : f32
    %809 = vector.broadcast %cst_363 : f32 to vector<2x32xf32>
    %810 = arith.addf %809, %808 : vector<2x32xf32>
    %811 = arith.divf %809, %810 : vector<2x32xf32>
    %812 = arith.addf %794, %802 : vector<2x32xf32>
    %813 = arith.negf %812 : vector<2x32xf32>
    %814 = math.exp %813 : vector<2x32xf32>
    %cst_364 = arith.constant 1.000000e+00 : f32
    %815 = vector.broadcast %cst_364 : f32 to vector<2x32xf32>
    %816 = arith.addf %815, %814 : vector<2x32xf32>
    %817 = arith.divf %815, %816 : vector<2x32xf32>
    %818 = arith.mulf %811, %805 : vector<2x32xf32>
    %819 = arith.addf %796, %818 : vector<2x32xf32>
    %820 = math.tanh %819 : vector<2x32xf32>
    %cst_365 = arith.constant 1.000000e+00 : f32
    %821 = vector.broadcast %cst_365 : f32 to vector<2x32xf32>
    %822 = arith.subf %821, %817 : vector<2x32xf32>
    %823 = arith.mulf %822, %820 : vector<2x32xf32>
    %824 = arith.mulf %817, %752 : vector<2x32xf32>
    %825 = arith.addf %823, %824 : vector<2x32xf32>
    %826 = arith.sitofp %c0_i32_355 : i32 to f32
    %827 = vector.broadcast %826 : f32 to vector<2x1xf32>
    %828 = arith.cmpf ogt, %16, %827 : vector<2x1xf32>
    %829 = arith.extui %828 : vector<2x1xi1> to vector<2x1xi32>
    %830 = arith.sitofp %829 : vector<2x1xi32> to vector<2x1xf32>
    %831 = vector.broadcast %830 : vector<2x1xf32> to vector<2x32xf32>
    %832 = arith.mulf %825, %831 : vector<2x32xf32>
    %833 = vector.extract_strided_slice %832 {offsets = [0, 0], sizes = [1, 32], strides = [1, 1]} : vector<2x32xf32> to vector<1x32xf32>
    %c0_i32_366 = arith.constant 0 : i32
    %834 = arith.addi %c0_i32_366, %c0_i32_355 : i32
    %835 = arith.index_cast %834 : i32 to index
    %c0_367 = arith.constant 0 : index
    %836 = vector.load %arg34[%835, %c0_367] : memref<16x32xf32, #tpu.memory_space<vmem>>, vector<1x32xf32>
    tpu.vector_store %arg34[%835, %c0_367], %833 {strides = array<i32>} : memref<16x32xf32, #tpu.memory_space<vmem>>, vector<1x32xf32>,
    %837 = vector.extract_strided_slice %832 {offsets = [1, 0], sizes = [1, 32], strides = [1, 1]} : vector<2x32xf32> to vector<1x32xf32>
    %c8_i32_368 = arith.constant 8 : i32
    %838 = arith.addi %c8_i32_368, %c0_i32_355 : i32
    %839 = arith.index_cast %838 : i32 to index
    %c0_369 = arith.constant 0 : index
    %840 = vector.load %arg34[%839, %c0_369] : memref<16x32xf32, #tpu.memory_space<vmem>>, vector<1x32xf32>
    tpu.vector_store %arg34[%839, %c0_369], %837 {strides = array<i32>} : memref<16x32xf32, #tpu.memory_space<vmem>>, vector<1x32xf32>,
    %c1_i32_370 = arith.constant 1 : i32
    %c2_i32_371 = arith.constant 2 : i32
    %841 = arith.muli %c1_i32_370, %c2_i32_371 : i32
    %842 = tpu.assume_multiple %841, 2 : i32
    %843 = arith.index_cast %842 : i32 to index
    %c0_372 = arith.constant 0 : index
    %844 = vector.load %arg30[%843, %c0_372] : memref<16x32xf32, #tpu.memory_space<vmem>>, vector<2x32xf32>
    %845 = arith.index_cast %842 : i32 to index
    %c0_373 = arith.constant 0 : index
    %846 = vector.load %arg31[%845, %c0_373] : memref<16x32xf32, #tpu.memory_space<vmem>>, vector<2x32xf32>
    %847 = arith.index_cast %842 : i32 to index
    %c0_374 = arith.constant 0 : index
    %848 = vector.load %arg32[%847, %c0_374] : memref<16x32xf32, #tpu.memory_space<vmem>>, vector<2x32xf32>
    %cst_375 = arith.constant dense<0.000000e+00> : vector<2x32xf32>
    %849 = tpu.matmul %825, %778, %cst_375 {dimension_numbers = #tpu.dot_dimension_numbers<[1], [0], [0], [1], [0, 0, 1, 1], [], []>} : vector<2x32xf32>, vector<32x32xf32>, vector<2x32xf32> -> vector<2x32xf32>
    %850 = vector.broadcast %784 : vector<1x32xf32> to vector<2x32xf32>
    %851 = arith.addf %849, %850 : vector<2x32xf32>
    %cst_376 = arith.constant dense<0.000000e+00> : vector<2x32xf32>
    %852 = tpu.matmul %825, %780, %cst_376 {dimension_numbers = #tpu.dot_dimension_numbers<[1], [0], [0], [1], [0, 0, 1, 1], [], []>} : vector<2x32xf32>, vector<32x32xf32>, vector<2x32xf32> -> vector<2x32xf32>
    %853 = vector.broadcast %786 : vector<1x32xf32> to vector<2x32xf32>
    %854 = arith.addf %852, %853 : vector<2x32xf32>
    %cst_377 = arith.constant dense<0.000000e+00> : vector<2x32xf32>
    %855 = tpu.matmul %825, %782, %cst_377 {dimension_numbers = #tpu.dot_dimension_numbers<[1], [0], [0], [1], [0, 0, 1, 1], [], []>} : vector<2x32xf32>, vector<32x32xf32>, vector<2x32xf32> -> vector<2x32xf32>
    %856 = vector.broadcast %788 : vector<1x32xf32> to vector<2x32xf32>
    %857 = arith.addf %855, %856 : vector<2x32xf32>
    %858 = arith.addf %844, %851 : vector<2x32xf32>
    %859 = arith.negf %858 : vector<2x32xf32>
    %860 = math.exp %859 : vector<2x32xf32>
    %cst_378 = arith.constant 1.000000e+00 : f32
    %861 = vector.broadcast %cst_378 : f32 to vector<2x32xf32>
    %862 = arith.addf %861, %860 : vector<2x32xf32>
    %863 = arith.divf %861, %862 : vector<2x32xf32>
    %864 = arith.addf %846, %854 : vector<2x32xf32>
    %865 = arith.negf %864 : vector<2x32xf32>
    %866 = math.exp %865 : vector<2x32xf32>
    %cst_379 = arith.constant 1.000000e+00 : f32
    %867 = vector.broadcast %cst_379 : f32 to vector<2x32xf32>
    %868 = arith.addf %867, %866 : vector<2x32xf32>
    %869 = arith.divf %867, %868 : vector<2x32xf32>
    %870 = arith.mulf %863, %857 : vector<2x32xf32>
    %871 = arith.addf %848, %870 : vector<2x32xf32>
    %872 = math.tanh %871 : vector<2x32xf32>
    %cst_380 = arith.constant 1.000000e+00 : f32
    %873 = vector.broadcast %cst_380 : f32 to vector<2x32xf32>
    %874 = arith.subf %873, %869 : vector<2x32xf32>
    %875 = arith.mulf %874, %872 : vector<2x32xf32>
    %876 = arith.mulf %869, %825 : vector<2x32xf32>
    %877 = arith.addf %875, %876 : vector<2x32xf32>
    %878 = arith.sitofp %c1_i32_370 : i32 to f32
    %879 = vector.broadcast %878 : f32 to vector<2x1xf32>
    %880 = arith.cmpf ogt, %16, %879 : vector<2x1xf32>
    %881 = arith.extui %880 : vector<2x1xi1> to vector<2x1xi32>
    %882 = arith.sitofp %881 : vector<2x1xi32> to vector<2x1xf32>
    %883 = vector.broadcast %882 : vector<2x1xf32> to vector<2x32xf32>
    %884 = arith.mulf %877, %883 : vector<2x32xf32>
    %885 = vector.extract_strided_slice %884 {offsets = [0, 0], sizes = [1, 32], strides = [1, 1]} : vector<2x32xf32> to vector<1x32xf32>
    %c0_i32_381 = arith.constant 0 : i32
    %886 = arith.addi %c0_i32_381, %c1_i32_370 : i32
    %887 = arith.index_cast %886 : i32 to index
    %c0_382 = arith.constant 0 : index
    %888 = vector.load %arg34[%887, %c0_382] : memref<16x32xf32, #tpu.memory_space<vmem>>, vector<1x32xf32>
    tpu.vector_store %arg34[%887, %c0_382], %885 {strides = array<i32>} : memref<16x32xf32, #tpu.memory_space<vmem>>, vector<1x32xf32>,
    %889 = vector.extract_strided_slice %884 {offsets = [1, 0], sizes = [1, 32], strides = [1, 1]} : vector<2x32xf32> to vector<1x32xf32>
    %c8_i32_383 = arith.constant 8 : i32
    %890 = arith.addi %c8_i32_383, %c1_i32_370 : i32
    %891 = arith.index_cast %890 : i32 to index
    %c0_384 = arith.constant 0 : index
    %892 = vector.load %arg34[%891, %c0_384] : memref<16x32xf32, #tpu.memory_space<vmem>>, vector<1x32xf32>
    tpu.vector_store %arg34[%891, %c0_384], %889 {strides = array<i32>} : memref<16x32xf32, #tpu.memory_space<vmem>>, vector<1x32xf32>,
    %c2_i32_385 = arith.constant 2 : i32
    %c2_i32_386 = arith.constant 2 : i32
    %893 = arith.muli %c2_i32_385, %c2_i32_386 : i32
    %894 = tpu.assume_multiple %893, 2 : i32
    %895 = arith.index_cast %894 : i32 to index
    %c0_387 = arith.constant 0 : index
    %896 = vector.load %arg30[%895, %c0_387] : memref<16x32xf32, #tpu.memory_space<vmem>>, vector<2x32xf32>
    %897 = arith.index_cast %894 : i32 to index
    %c0_388 = arith.constant 0 : index
    %898 = vector.load %arg31[%897, %c0_388] : memref<16x32xf32, #tpu.memory_space<vmem>>, vector<2x32xf32>
    %899 = arith.index_cast %894 : i32 to index
    %c0_389 = arith.constant 0 : index
    %900 = vector.load %arg32[%899, %c0_389] : memref<16x32xf32, #tpu.memory_space<vmem>>, vector<2x32xf32>
    %cst_390 = arith.constant dense<0.000000e+00> : vector<2x32xf32>
    %901 = tpu.matmul %877, %778, %cst_390 {dimension_numbers = #tpu.dot_dimension_numbers<[1], [0], [0], [1], [0, 0, 1, 1], [], []>} : vector<2x32xf32>, vector<32x32xf32>, vector<2x32xf32> -> vector<2x32xf32>
    %902 = vector.broadcast %784 : vector<1x32xf32> to vector<2x32xf32>
    %903 = arith.addf %901, %902 : vector<2x32xf32>
    %cst_391 = arith.constant dense<0.000000e+00> : vector<2x32xf32>
    %904 = tpu.matmul %877, %780, %cst_391 {dimension_numbers = #tpu.dot_dimension_numbers<[1], [0], [0], [1], [0, 0, 1, 1], [], []>} : vector<2x32xf32>, vector<32x32xf32>, vector<2x32xf32> -> vector<2x32xf32>
    %905 = vector.broadcast %786 : vector<1x32xf32> to vector<2x32xf32>
    %906 = arith.addf %904, %905 : vector<2x32xf32>
    %cst_392 = arith.constant dense<0.000000e+00> : vector<2x32xf32>
    %907 = tpu.matmul %877, %782, %cst_392 {dimension_numbers = #tpu.dot_dimension_numbers<[1], [0], [0], [1], [0, 0, 1, 1], [], []>} : vector<2x32xf32>, vector<32x32xf32>, vector<2x32xf32> -> vector<2x32xf32>
    %908 = vector.broadcast %788 : vector<1x32xf32> to vector<2x32xf32>
    %909 = arith.addf %907, %908 : vector<2x32xf32>
    %910 = arith.addf %896, %903 : vector<2x32xf32>
    %911 = arith.negf %910 : vector<2x32xf32>
    %912 = math.exp %911 : vector<2x32xf32>
    %cst_393 = arith.constant 1.000000e+00 : f32
    %913 = vector.broadcast %cst_393 : f32 to vector<2x32xf32>
    %914 = arith.addf %913, %912 : vector<2x32xf32>
    %915 = arith.divf %913, %914 : vector<2x32xf32>
    %916 = arith.addf %898, %906 : vector<2x32xf32>
    %917 = arith.negf %916 : vector<2x32xf32>
    %918 = math.exp %917 : vector<2x32xf32>
    %cst_394 = arith.constant 1.000000e+00 : f32
    %919 = vector.broadcast %cst_394 : f32 to vector<2x32xf32>
    %920 = arith.addf %919, %918 : vector<2x32xf32>
    %921 = arith.divf %919, %920 : vector<2x32xf32>
    %922 = arith.mulf %915, %909 : vector<2x32xf32>
    %923 = arith.addf %900, %922 : vector<2x32xf32>
    %924 = math.tanh %923 : vector<2x32xf32>
    %cst_395 = arith.constant 1.000000e+00 : f32
    %925 = vector.broadcast %cst_395 : f32 to vector<2x32xf32>
    %926 = arith.subf %925, %921 : vector<2x32xf32>
    %927 = arith.mulf %926, %924 : vector<2x32xf32>
    %928 = arith.mulf %921, %877 : vector<2x32xf32>
    %929 = arith.addf %927, %928 : vector<2x32xf32>
    %930 = arith.sitofp %c2_i32_385 : i32 to f32
    %931 = vector.broadcast %930 : f32 to vector<2x1xf32>
    %932 = arith.cmpf ogt, %16, %931 : vector<2x1xf32>
    %933 = arith.extui %932 : vector<2x1xi1> to vector<2x1xi32>
    %934 = arith.sitofp %933 : vector<2x1xi32> to vector<2x1xf32>
    %935 = vector.broadcast %934 : vector<2x1xf32> to vector<2x32xf32>
    %936 = arith.mulf %929, %935 : vector<2x32xf32>
    %937 = vector.extract_strided_slice %936 {offsets = [0, 0], sizes = [1, 32], strides = [1, 1]} : vector<2x32xf32> to vector<1x32xf32>
    %c0_i32_396 = arith.constant 0 : i32
    %938 = arith.addi %c0_i32_396, %c2_i32_385 : i32
    %939 = arith.index_cast %938 : i32 to index
    %c0_397 = arith.constant 0 : index
    %940 = vector.load %arg34[%939, %c0_397] : memref<16x32xf32, #tpu.memory_space<vmem>>, vector<1x32xf32>
    tpu.vector_store %arg34[%939, %c0_397], %937 {strides = array<i32>} : memref<16x32xf32, #tpu.memory_space<vmem>>, vector<1x32xf32>,
    %941 = vector.extract_strided_slice %936 {offsets = [1, 0], sizes = [1, 32], strides = [1, 1]} : vector<2x32xf32> to vector<1x32xf32>
    %c8_i32_398 = arith.constant 8 : i32
    %942 = arith.addi %c8_i32_398, %c2_i32_385 : i32
    %943 = arith.index_cast %942 : i32 to index
    %c0_399 = arith.constant 0 : index
    %944 = vector.load %arg34[%943, %c0_399] : memref<16x32xf32, #tpu.memory_space<vmem>>, vector<1x32xf32>
    tpu.vector_store %arg34[%943, %c0_399], %941 {strides = array<i32>} : memref<16x32xf32, #tpu.memory_space<vmem>>, vector<1x32xf32>,
    %c3_i32_400 = arith.constant 3 : i32
    %c2_i32_401 = arith.constant 2 : i32
    %945 = arith.muli %c3_i32_400, %c2_i32_401 : i32
    %946 = tpu.assume_multiple %945, 2 : i32
    %947 = arith.index_cast %946 : i32 to index
    %c0_402 = arith.constant 0 : index
    %948 = vector.load %arg30[%947, %c0_402] : memref<16x32xf32, #tpu.memory_space<vmem>>, vector<2x32xf32>
    %949 = arith.index_cast %946 : i32 to index
    %c0_403 = arith.constant 0 : index
    %950 = vector.load %arg31[%949, %c0_403] : memref<16x32xf32, #tpu.memory_space<vmem>>, vector<2x32xf32>
    %951 = arith.index_cast %946 : i32 to index
    %c0_404 = arith.constant 0 : index
    %952 = vector.load %arg32[%951, %c0_404] : memref<16x32xf32, #tpu.memory_space<vmem>>, vector<2x32xf32>
    %cst_405 = arith.constant dense<0.000000e+00> : vector<2x32xf32>
    %953 = tpu.matmul %929, %778, %cst_405 {dimension_numbers = #tpu.dot_dimension_numbers<[1], [0], [0], [1], [0, 0, 1, 1], [], []>} : vector<2x32xf32>, vector<32x32xf32>, vector<2x32xf32> -> vector<2x32xf32>
    %954 = vector.broadcast %784 : vector<1x32xf32> to vector<2x32xf32>
    %955 = arith.addf %953, %954 : vector<2x32xf32>
    %cst_406 = arith.constant dense<0.000000e+00> : vector<2x32xf32>
    %956 = tpu.matmul %929, %780, %cst_406 {dimension_numbers = #tpu.dot_dimension_numbers<[1], [0], [0], [1], [0, 0, 1, 1], [], []>} : vector<2x32xf32>, vector<32x32xf32>, vector<2x32xf32> -> vector<2x32xf32>
    %957 = vector.broadcast %786 : vector<1x32xf32> to vector<2x32xf32>
    %958 = arith.addf %956, %957 : vector<2x32xf32>
    %cst_407 = arith.constant dense<0.000000e+00> : vector<2x32xf32>
    %959 = tpu.matmul %929, %782, %cst_407 {dimension_numbers = #tpu.dot_dimension_numbers<[1], [0], [0], [1], [0, 0, 1, 1], [], []>} : vector<2x32xf32>, vector<32x32xf32>, vector<2x32xf32> -> vector<2x32xf32>
    %960 = vector.broadcast %788 : vector<1x32xf32> to vector<2x32xf32>
    %961 = arith.addf %959, %960 : vector<2x32xf32>
    %962 = arith.addf %948, %955 : vector<2x32xf32>
    %963 = arith.negf %962 : vector<2x32xf32>
    %964 = math.exp %963 : vector<2x32xf32>
    %cst_408 = arith.constant 1.000000e+00 : f32
    %965 = vector.broadcast %cst_408 : f32 to vector<2x32xf32>
    %966 = arith.addf %965, %964 : vector<2x32xf32>
    %967 = arith.divf %965, %966 : vector<2x32xf32>
    %968 = arith.addf %950, %958 : vector<2x32xf32>
    %969 = arith.negf %968 : vector<2x32xf32>
    %970 = math.exp %969 : vector<2x32xf32>
    %cst_409 = arith.constant 1.000000e+00 : f32
    %971 = vector.broadcast %cst_409 : f32 to vector<2x32xf32>
    %972 = arith.addf %971, %970 : vector<2x32xf32>
    %973 = arith.divf %971, %972 : vector<2x32xf32>
    %974 = arith.mulf %967, %961 : vector<2x32xf32>
    %975 = arith.addf %952, %974 : vector<2x32xf32>
    %976 = math.tanh %975 : vector<2x32xf32>
    %cst_410 = arith.constant 1.000000e+00 : f32
    %977 = vector.broadcast %cst_410 : f32 to vector<2x32xf32>
    %978 = arith.subf %977, %973 : vector<2x32xf32>
    %979 = arith.mulf %978, %976 : vector<2x32xf32>
    %980 = arith.mulf %973, %929 : vector<2x32xf32>
    %981 = arith.addf %979, %980 : vector<2x32xf32>
    %982 = arith.sitofp %c3_i32_400 : i32 to f32
    %983 = vector.broadcast %982 : f32 to vector<2x1xf32>
    %984 = arith.cmpf ogt, %16, %983 : vector<2x1xf32>
    %985 = arith.extui %984 : vector<2x1xi1> to vector<2x1xi32>
    %986 = arith.sitofp %985 : vector<2x1xi32> to vector<2x1xf32>
    %987 = vector.broadcast %986 : vector<2x1xf32> to vector<2x32xf32>
    %988 = arith.mulf %981, %987 : vector<2x32xf32>
    %989 = vector.extract_strided_slice %988 {offsets = [0, 0], sizes = [1, 32], strides = [1, 1]} : vector<2x32xf32> to vector<1x32xf32>
    %c0_i32_411 = arith.constant 0 : i32
    %990 = arith.addi %c0_i32_411, %c3_i32_400 : i32
    %991 = arith.index_cast %990 : i32 to index
    %c0_412 = arith.constant 0 : index
    %992 = vector.load %arg34[%991, %c0_412] : memref<16x32xf32, #tpu.memory_space<vmem>>, vector<1x32xf32>
    tpu.vector_store %arg34[%991, %c0_412], %989 {strides = array<i32>} : memref<16x32xf32, #tpu.memory_space<vmem>>, vector<1x32xf32>,
    %993 = vector.extract_strided_slice %988 {offsets = [1, 0], sizes = [1, 32], strides = [1, 1]} : vector<2x32xf32> to vector<1x32xf32>
    %c8_i32_413 = arith.constant 8 : i32
    %994 = arith.addi %c8_i32_413, %c3_i32_400 : i32
    %995 = arith.index_cast %994 : i32 to index
    %c0_414 = arith.constant 0 : index
    %996 = vector.load %arg34[%995, %c0_414] : memref<16x32xf32, #tpu.memory_space<vmem>>, vector<1x32xf32>
    tpu.vector_store %arg34[%995, %c0_414], %993 {strides = array<i32>} : memref<16x32xf32, #tpu.memory_space<vmem>>, vector<1x32xf32>,
    %c4_i32_415 = arith.constant 4 : i32
    %c2_i32_416 = arith.constant 2 : i32
    %997 = arith.muli %c4_i32_415, %c2_i32_416 : i32
    %998 = tpu.assume_multiple %997, 2 : i32
    %999 = arith.index_cast %998 : i32 to index
    %c0_417 = arith.constant 0 : index
    %1000 = vector.load %arg30[%999, %c0_417] : memref<16x32xf32, #tpu.memory_space<vmem>>, vector<2x32xf32>
    %1001 = arith.index_cast %998 : i32 to index
    %c0_418 = arith.constant 0 : index
    %1002 = vector.load %arg31[%1001, %c0_418] : memref<16x32xf32, #tpu.memory_space<vmem>>, vector<2x32xf32>
    %1003 = arith.index_cast %998 : i32 to index
    %c0_419 = arith.constant 0 : index
    %1004 = vector.load %arg32[%1003, %c0_419] : memref<16x32xf32, #tpu.memory_space<vmem>>, vector<2x32xf32>
    %cst_420 = arith.constant dense<0.000000e+00> : vector<2x32xf32>
    %1005 = tpu.matmul %981, %778, %cst_420 {dimension_numbers = #tpu.dot_dimension_numbers<[1], [0], [0], [1], [0, 0, 1, 1], [], []>} : vector<2x32xf32>, vector<32x32xf32>, vector<2x32xf32> -> vector<2x32xf32>
    %1006 = vector.broadcast %784 : vector<1x32xf32> to vector<2x32xf32>
    %1007 = arith.addf %1005, %1006 : vector<2x32xf32>
    %cst_421 = arith.constant dense<0.000000e+00> : vector<2x32xf32>
    %1008 = tpu.matmul %981, %780, %cst_421 {dimension_numbers = #tpu.dot_dimension_numbers<[1], [0], [0], [1], [0, 0, 1, 1], [], []>} : vector<2x32xf32>, vector<32x32xf32>, vector<2x32xf32> -> vector<2x32xf32>
    %1009 = vector.broadcast %786 : vector<1x32xf32> to vector<2x32xf32>
    %1010 = arith.addf %1008, %1009 : vector<2x32xf32>
    %cst_422 = arith.constant dense<0.000000e+00> : vector<2x32xf32>
    %1011 = tpu.matmul %981, %782, %cst_422 {dimension_numbers = #tpu.dot_dimension_numbers<[1], [0], [0], [1], [0, 0, 1, 1], [], []>} : vector<2x32xf32>, vector<32x32xf32>, vector<2x32xf32> -> vector<2x32xf32>
    %1012 = vector.broadcast %788 : vector<1x32xf32> to vector<2x32xf32>
    %1013 = arith.addf %1011, %1012 : vector<2x32xf32>
    %1014 = arith.addf %1000, %1007 : vector<2x32xf32>
    %1015 = arith.negf %1014 : vector<2x32xf32>
    %1016 = math.exp %1015 : vector<2x32xf32>
    %cst_423 = arith.constant 1.000000e+00 : f32
    %1017 = vector.broadcast %cst_423 : f32 to vector<2x32xf32>
    %1018 = arith.addf %1017, %1016 : vector<2x32xf32>
    %1019 = arith.divf %1017, %1018 : vector<2x32xf32>
    %1020 = arith.addf %1002, %1010 : vector<2x32xf32>
    %1021 = arith.negf %1020 : vector<2x32xf32>
    %1022 = math.exp %1021 : vector<2x32xf32>
    %cst_424 = arith.constant 1.000000e+00 : f32
    %1023 = vector.broadcast %cst_424 : f32 to vector<2x32xf32>
    %1024 = arith.addf %1023, %1022 : vector<2x32xf32>
    %1025 = arith.divf %1023, %1024 : vector<2x32xf32>
    %1026 = arith.mulf %1019, %1013 : vector<2x32xf32>
    %1027 = arith.addf %1004, %1026 : vector<2x32xf32>
    %1028 = math.tanh %1027 : vector<2x32xf32>
    %cst_425 = arith.constant 1.000000e+00 : f32
    %1029 = vector.broadcast %cst_425 : f32 to vector<2x32xf32>
    %1030 = arith.subf %1029, %1025 : vector<2x32xf32>
    %1031 = arith.mulf %1030, %1028 : vector<2x32xf32>
    %1032 = arith.mulf %1025, %981 : vector<2x32xf32>
    %1033 = arith.addf %1031, %1032 : vector<2x32xf32>
    %1034 = arith.sitofp %c4_i32_415 : i32 to f32
    %1035 = vector.broadcast %1034 : f32 to vector<2x1xf32>
    %1036 = arith.cmpf ogt, %16, %1035 : vector<2x1xf32>
    %1037 = arith.extui %1036 : vector<2x1xi1> to vector<2x1xi32>
    %1038 = arith.sitofp %1037 : vector<2x1xi32> to vector<2x1xf32>
    %1039 = vector.broadcast %1038 : vector<2x1xf32> to vector<2x32xf32>
    %1040 = arith.mulf %1033, %1039 : vector<2x32xf32>
    %1041 = vector.extract_strided_slice %1040 {offsets = [0, 0], sizes = [1, 32], strides = [1, 1]} : vector<2x32xf32> to vector<1x32xf32>
    %c0_i32_426 = arith.constant 0 : i32
    %1042 = arith.addi %c0_i32_426, %c4_i32_415 : i32
    %1043 = arith.index_cast %1042 : i32 to index
    %c0_427 = arith.constant 0 : index
    %1044 = vector.load %arg34[%1043, %c0_427] : memref<16x32xf32, #tpu.memory_space<vmem>>, vector<1x32xf32>
    tpu.vector_store %arg34[%1043, %c0_427], %1041 {strides = array<i32>} : memref<16x32xf32, #tpu.memory_space<vmem>>, vector<1x32xf32>,
    %1045 = vector.extract_strided_slice %1040 {offsets = [1, 0], sizes = [1, 32], strides = [1, 1]} : vector<2x32xf32> to vector<1x32xf32>
    %c8_i32_428 = arith.constant 8 : i32
    %1046 = arith.addi %c8_i32_428, %c4_i32_415 : i32
    %1047 = arith.index_cast %1046 : i32 to index
    %c0_429 = arith.constant 0 : index
    %1048 = vector.load %arg34[%1047, %c0_429] : memref<16x32xf32, #tpu.memory_space<vmem>>, vector<1x32xf32>
    tpu.vector_store %arg34[%1047, %c0_429], %1045 {strides = array<i32>} : memref<16x32xf32, #tpu.memory_space<vmem>>, vector<1x32xf32>,
    %c5_i32_430 = arith.constant 5 : i32
    %c2_i32_431 = arith.constant 2 : i32
    %1049 = arith.muli %c5_i32_430, %c2_i32_431 : i32
    %1050 = tpu.assume_multiple %1049, 2 : i32
    %1051 = arith.index_cast %1050 : i32 to index
    %c0_432 = arith.constant 0 : index
    %1052 = vector.load %arg30[%1051, %c0_432] : memref<16x32xf32, #tpu.memory_space<vmem>>, vector<2x32xf32>
    %1053 = arith.index_cast %1050 : i32 to index
    %c0_433 = arith.constant 0 : index
    %1054 = vector.load %arg31[%1053, %c0_433] : memref<16x32xf32, #tpu.memory_space<vmem>>, vector<2x32xf32>
    %1055 = arith.index_cast %1050 : i32 to index
    %c0_434 = arith.constant 0 : index
    %1056 = vector.load %arg32[%1055, %c0_434] : memref<16x32xf32, #tpu.memory_space<vmem>>, vector<2x32xf32>
    %cst_435 = arith.constant dense<0.000000e+00> : vector<2x32xf32>
    %1057 = tpu.matmul %1033, %778, %cst_435 {dimension_numbers = #tpu.dot_dimension_numbers<[1], [0], [0], [1], [0, 0, 1, 1], [], []>} : vector<2x32xf32>, vector<32x32xf32>, vector<2x32xf32> -> vector<2x32xf32>
    %1058 = vector.broadcast %784 : vector<1x32xf32> to vector<2x32xf32>
    %1059 = arith.addf %1057, %1058 : vector<2x32xf32>
    %cst_436 = arith.constant dense<0.000000e+00> : vector<2x32xf32>
    %1060 = tpu.matmul %1033, %780, %cst_436 {dimension_numbers = #tpu.dot_dimension_numbers<[1], [0], [0], [1], [0, 0, 1, 1], [], []>} : vector<2x32xf32>, vector<32x32xf32>, vector<2x32xf32> -> vector<2x32xf32>
    %1061 = vector.broadcast %786 : vector<1x32xf32> to vector<2x32xf32>
    %1062 = arith.addf %1060, %1061 : vector<2x32xf32>
    %cst_437 = arith.constant dense<0.000000e+00> : vector<2x32xf32>
    %1063 = tpu.matmul %1033, %782, %cst_437 {dimension_numbers = #tpu.dot_dimension_numbers<[1], [0], [0], [1], [0, 0, 1, 1], [], []>} : vector<2x32xf32>, vector<32x32xf32>, vector<2x32xf32> -> vector<2x32xf32>
    %1064 = vector.broadcast %788 : vector<1x32xf32> to vector<2x32xf32>
    %1065 = arith.addf %1063, %1064 : vector<2x32xf32>
    %1066 = arith.addf %1052, %1059 : vector<2x32xf32>
    %1067 = arith.negf %1066 : vector<2x32xf32>
    %1068 = math.exp %1067 : vector<2x32xf32>
    %cst_438 = arith.constant 1.000000e+00 : f32
    %1069 = vector.broadcast %cst_438 : f32 to vector<2x32xf32>
    %1070 = arith.addf %1069, %1068 : vector<2x32xf32>
    %1071 = arith.divf %1069, %1070 : vector<2x32xf32>
    %1072 = arith.addf %1054, %1062 : vector<2x32xf32>
    %1073 = arith.negf %1072 : vector<2x32xf32>
    %1074 = math.exp %1073 : vector<2x32xf32>
    %cst_439 = arith.constant 1.000000e+00 : f32
    %1075 = vector.broadcast %cst_439 : f32 to vector<2x32xf32>
    %1076 = arith.addf %1075, %1074 : vector<2x32xf32>
    %1077 = arith.divf %1075, %1076 : vector<2x32xf32>
    %1078 = arith.mulf %1071, %1065 : vector<2x32xf32>
    %1079 = arith.addf %1056, %1078 : vector<2x32xf32>
    %1080 = math.tanh %1079 : vector<2x32xf32>
    %cst_440 = arith.constant 1.000000e+00 : f32
    %1081 = vector.broadcast %cst_440 : f32 to vector<2x32xf32>
    %1082 = arith.subf %1081, %1077 : vector<2x32xf32>
    %1083 = arith.mulf %1082, %1080 : vector<2x32xf32>
    %1084 = arith.mulf %1077, %1033 : vector<2x32xf32>
    %1085 = arith.addf %1083, %1084 : vector<2x32xf32>
    %1086 = arith.sitofp %c5_i32_430 : i32 to f32
    %1087 = vector.broadcast %1086 : f32 to vector<2x1xf32>
    %1088 = arith.cmpf ogt, %16, %1087 : vector<2x1xf32>
    %1089 = arith.extui %1088 : vector<2x1xi1> to vector<2x1xi32>
    %1090 = arith.sitofp %1089 : vector<2x1xi32> to vector<2x1xf32>
    %1091 = vector.broadcast %1090 : vector<2x1xf32> to vector<2x32xf32>
    %1092 = arith.mulf %1085, %1091 : vector<2x32xf32>
    %1093 = vector.extract_strided_slice %1092 {offsets = [0, 0], sizes = [1, 32], strides = [1, 1]} : vector<2x32xf32> to vector<1x32xf32>
    %c0_i32_441 = arith.constant 0 : i32
    %1094 = arith.addi %c0_i32_441, %c5_i32_430 : i32
    %1095 = arith.index_cast %1094 : i32 to index
    %c0_442 = arith.constant 0 : index
    %1096 = vector.load %arg34[%1095, %c0_442] : memref<16x32xf32, #tpu.memory_space<vmem>>, vector<1x32xf32>
    tpu.vector_store %arg34[%1095, %c0_442], %1093 {strides = array<i32>} : memref<16x32xf32, #tpu.memory_space<vmem>>, vector<1x32xf32>,
    %1097 = vector.extract_strided_slice %1092 {offsets = [1, 0], sizes = [1, 32], strides = [1, 1]} : vector<2x32xf32> to vector<1x32xf32>
    %c8_i32_443 = arith.constant 8 : i32
    %1098 = arith.addi %c8_i32_443, %c5_i32_430 : i32
    %1099 = arith.index_cast %1098 : i32 to index
    %c0_444 = arith.constant 0 : index
    %1100 = vector.load %arg34[%1099, %c0_444] : memref<16x32xf32, #tpu.memory_space<vmem>>, vector<1x32xf32>
    tpu.vector_store %arg34[%1099, %c0_444], %1097 {strides = array<i32>} : memref<16x32xf32, #tpu.memory_space<vmem>>, vector<1x32xf32>,
    %c6_i32_445 = arith.constant 6 : i32
    %c2_i32_446 = arith.constant 2 : i32
    %1101 = arith.muli %c6_i32_445, %c2_i32_446 : i32
    %1102 = tpu.assume_multiple %1101, 2 : i32
    %1103 = arith.index_cast %1102 : i32 to index
    %c0_447 = arith.constant 0 : index
    %1104 = vector.load %arg30[%1103, %c0_447] : memref<16x32xf32, #tpu.memory_space<vmem>>, vector<2x32xf32>
    %1105 = arith.index_cast %1102 : i32 to index
    %c0_448 = arith.constant 0 : index
    %1106 = vector.load %arg31[%1105, %c0_448] : memref<16x32xf32, #tpu.memory_space<vmem>>, vector<2x32xf32>
    %1107 = arith.index_cast %1102 : i32 to index
    %c0_449 = arith.constant 0 : index
    %1108 = vector.load %arg32[%1107, %c0_449] : memref<16x32xf32, #tpu.memory_space<vmem>>, vector<2x32xf32>
    %cst_450 = arith.constant dense<0.000000e+00> : vector<2x32xf32>
    %1109 = tpu.matmul %1085, %778, %cst_450 {dimension_numbers = #tpu.dot_dimension_numbers<[1], [0], [0], [1], [0, 0, 1, 1], [], []>} : vector<2x32xf32>, vector<32x32xf32>, vector<2x32xf32> -> vector<2x32xf32>
    %1110 = vector.broadcast %784 : vector<1x32xf32> to vector<2x32xf32>
    %1111 = arith.addf %1109, %1110 : vector<2x32xf32>
    %cst_451 = arith.constant dense<0.000000e+00> : vector<2x32xf32>
    %1112 = tpu.matmul %1085, %780, %cst_451 {dimension_numbers = #tpu.dot_dimension_numbers<[1], [0], [0], [1], [0, 0, 1, 1], [], []>} : vector<2x32xf32>, vector<32x32xf32>, vector<2x32xf32> -> vector<2x32xf32>
    %1113 = vector.broadcast %786 : vector<1x32xf32> to vector<2x32xf32>
    %1114 = arith.addf %1112, %1113 : vector<2x32xf32>
    %cst_452 = arith.constant dense<0.000000e+00> : vector<2x32xf32>
    %1115 = tpu.matmul %1085, %782, %cst_452 {dimension_numbers = #tpu.dot_dimension_numbers<[1], [0], [0], [1], [0, 0, 1, 1], [], []>} : vector<2x32xf32>, vector<32x32xf32>, vector<2x32xf32> -> vector<2x32xf32>
    %1116 = vector.broadcast %788 : vector<1x32xf32> to vector<2x32xf32>
    %1117 = arith.addf %1115, %1116 : vector<2x32xf32>
    %1118 = arith.addf %1104, %1111 : vector<2x32xf32>
    %1119 = arith.negf %1118 : vector<2x32xf32>
    %1120 = math.exp %1119 : vector<2x32xf32>
    %cst_453 = arith.constant 1.000000e+00 : f32
    %1121 = vector.broadcast %cst_453 : f32 to vector<2x32xf32>
    %1122 = arith.addf %1121, %1120 : vector<2x32xf32>
    %1123 = arith.divf %1121, %1122 : vector<2x32xf32>
    %1124 = arith.addf %1106, %1114 : vector<2x32xf32>
    %1125 = arith.negf %1124 : vector<2x32xf32>
    %1126 = math.exp %1125 : vector<2x32xf32>
    %cst_454 = arith.constant 1.000000e+00 : f32
    %1127 = vector.broadcast %cst_454 : f32 to vector<2x32xf32>
    %1128 = arith.addf %1127, %1126 : vector<2x32xf32>
    %1129 = arith.divf %1127, %1128 : vector<2x32xf32>
    %1130 = arith.mulf %1123, %1117 : vector<2x32xf32>
    %1131 = arith.addf %1108, %1130 : vector<2x32xf32>
    %1132 = math.tanh %1131 : vector<2x32xf32>
    %cst_455 = arith.constant 1.000000e+00 : f32
    %1133 = vector.broadcast %cst_455 : f32 to vector<2x32xf32>
    %1134 = arith.subf %1133, %1129 : vector<2x32xf32>
    %1135 = arith.mulf %1134, %1132 : vector<2x32xf32>
    %1136 = arith.mulf %1129, %1085 : vector<2x32xf32>
    %1137 = arith.addf %1135, %1136 : vector<2x32xf32>
    %1138 = arith.sitofp %c6_i32_445 : i32 to f32
    %1139 = vector.broadcast %1138 : f32 to vector<2x1xf32>
    %1140 = arith.cmpf ogt, %16, %1139 : vector<2x1xf32>
    %1141 = arith.extui %1140 : vector<2x1xi1> to vector<2x1xi32>
    %1142 = arith.sitofp %1141 : vector<2x1xi32> to vector<2x1xf32>
    %1143 = vector.broadcast %1142 : vector<2x1xf32> to vector<2x32xf32>
    %1144 = arith.mulf %1137, %1143 : vector<2x32xf32>
    %1145 = vector.extract_strided_slice %1144 {offsets = [0, 0], sizes = [1, 32], strides = [1, 1]} : vector<2x32xf32> to vector<1x32xf32>
    %c0_i32_456 = arith.constant 0 : i32
    %1146 = arith.addi %c0_i32_456, %c6_i32_445 : i32
    %1147 = arith.index_cast %1146 : i32 to index
    %c0_457 = arith.constant 0 : index
    %1148 = vector.load %arg34[%1147, %c0_457] : memref<16x32xf32, #tpu.memory_space<vmem>>, vector<1x32xf32>
    tpu.vector_store %arg34[%1147, %c0_457], %1145 {strides = array<i32>} : memref<16x32xf32, #tpu.memory_space<vmem>>, vector<1x32xf32>,
    %1149 = vector.extract_strided_slice %1144 {offsets = [1, 0], sizes = [1, 32], strides = [1, 1]} : vector<2x32xf32> to vector<1x32xf32>
    %c8_i32_458 = arith.constant 8 : i32
    %1150 = arith.addi %c8_i32_458, %c6_i32_445 : i32
    %1151 = arith.index_cast %1150 : i32 to index
    %c0_459 = arith.constant 0 : index
    %1152 = vector.load %arg34[%1151, %c0_459] : memref<16x32xf32, #tpu.memory_space<vmem>>, vector<1x32xf32>
    tpu.vector_store %arg34[%1151, %c0_459], %1149 {strides = array<i32>} : memref<16x32xf32, #tpu.memory_space<vmem>>, vector<1x32xf32>,
    %c7_i32_460 = arith.constant 7 : i32
    %c2_i32_461 = arith.constant 2 : i32
    %1153 = arith.muli %c7_i32_460, %c2_i32_461 : i32
    %1154 = tpu.assume_multiple %1153, 2 : i32
    %1155 = arith.index_cast %1154 : i32 to index
    %c0_462 = arith.constant 0 : index
    %1156 = vector.load %arg30[%1155, %c0_462] : memref<16x32xf32, #tpu.memory_space<vmem>>, vector<2x32xf32>
    %1157 = arith.index_cast %1154 : i32 to index
    %c0_463 = arith.constant 0 : index
    %1158 = vector.load %arg31[%1157, %c0_463] : memref<16x32xf32, #tpu.memory_space<vmem>>, vector<2x32xf32>
    %1159 = arith.index_cast %1154 : i32 to index
    %c0_464 = arith.constant 0 : index
    %1160 = vector.load %arg32[%1159, %c0_464] : memref<16x32xf32, #tpu.memory_space<vmem>>, vector<2x32xf32>
    %cst_465 = arith.constant dense<0.000000e+00> : vector<2x32xf32>
    %1161 = tpu.matmul %1137, %778, %cst_465 {dimension_numbers = #tpu.dot_dimension_numbers<[1], [0], [0], [1], [0, 0, 1, 1], [], []>} : vector<2x32xf32>, vector<32x32xf32>, vector<2x32xf32> -> vector<2x32xf32>
    %1162 = vector.broadcast %784 : vector<1x32xf32> to vector<2x32xf32>
    %1163 = arith.addf %1161, %1162 : vector<2x32xf32>
    %cst_466 = arith.constant dense<0.000000e+00> : vector<2x32xf32>
    %1164 = tpu.matmul %1137, %780, %cst_466 {dimension_numbers = #tpu.dot_dimension_numbers<[1], [0], [0], [1], [0, 0, 1, 1], [], []>} : vector<2x32xf32>, vector<32x32xf32>, vector<2x32xf32> -> vector<2x32xf32>
    %1165 = vector.broadcast %786 : vector<1x32xf32> to vector<2x32xf32>
    %1166 = arith.addf %1164, %1165 : vector<2x32xf32>
    %cst_467 = arith.constant dense<0.000000e+00> : vector<2x32xf32>
    %1167 = tpu.matmul %1137, %782, %cst_467 {dimension_numbers = #tpu.dot_dimension_numbers<[1], [0], [0], [1], [0, 0, 1, 1], [], []>} : vector<2x32xf32>, vector<32x32xf32>, vector<2x32xf32> -> vector<2x32xf32>
    %1168 = vector.broadcast %788 : vector<1x32xf32> to vector<2x32xf32>
    %1169 = arith.addf %1167, %1168 : vector<2x32xf32>
    %1170 = arith.addf %1156, %1163 : vector<2x32xf32>
    %1171 = arith.negf %1170 : vector<2x32xf32>
    %1172 = math.exp %1171 : vector<2x32xf32>
    %cst_468 = arith.constant 1.000000e+00 : f32
    %1173 = vector.broadcast %cst_468 : f32 to vector<2x32xf32>
    %1174 = arith.addf %1173, %1172 : vector<2x32xf32>
    %1175 = arith.divf %1173, %1174 : vector<2x32xf32>
    %1176 = arith.addf %1158, %1166 : vector<2x32xf32>
    %1177 = arith.negf %1176 : vector<2x32xf32>
    %1178 = math.exp %1177 : vector<2x32xf32>
    %cst_469 = arith.constant 1.000000e+00 : f32
    %1179 = vector.broadcast %cst_469 : f32 to vector<2x32xf32>
    %1180 = arith.addf %1179, %1178 : vector<2x32xf32>
    %1181 = arith.divf %1179, %1180 : vector<2x32xf32>
    %1182 = arith.mulf %1175, %1169 : vector<2x32xf32>
    %1183 = arith.addf %1160, %1182 : vector<2x32xf32>
    %1184 = math.tanh %1183 : vector<2x32xf32>
    %cst_470 = arith.constant 1.000000e+00 : f32
    %1185 = vector.broadcast %cst_470 : f32 to vector<2x32xf32>
    %1186 = arith.subf %1185, %1181 : vector<2x32xf32>
    %1187 = arith.mulf %1186, %1184 : vector<2x32xf32>
    %1188 = arith.mulf %1181, %1137 : vector<2x32xf32>
    %1189 = arith.addf %1187, %1188 : vector<2x32xf32>
    %1190 = arith.sitofp %c7_i32_460 : i32 to f32
    %1191 = vector.broadcast %1190 : f32 to vector<2x1xf32>
    %1192 = arith.cmpf ogt, %16, %1191 : vector<2x1xf32>
    %1193 = arith.extui %1192 : vector<2x1xi1> to vector<2x1xi32>
    %1194 = arith.sitofp %1193 : vector<2x1xi32> to vector<2x1xf32>
    %1195 = vector.broadcast %1194 : vector<2x1xf32> to vector<2x32xf32>
    %1196 = arith.mulf %1189, %1195 : vector<2x32xf32>
    %1197 = vector.extract_strided_slice %1196 {offsets = [0, 0], sizes = [1, 32], strides = [1, 1]} : vector<2x32xf32> to vector<1x32xf32>
    %c0_i32_471 = arith.constant 0 : i32
    %1198 = arith.addi %c0_i32_471, %c7_i32_460 : i32
    %1199 = arith.index_cast %1198 : i32 to index
    %c0_472 = arith.constant 0 : index
    %1200 = vector.load %arg34[%1199, %c0_472] : memref<16x32xf32, #tpu.memory_space<vmem>>, vector<1x32xf32>
    tpu.vector_store %arg34[%1199, %c0_472], %1197 {strides = array<i32>} : memref<16x32xf32, #tpu.memory_space<vmem>>, vector<1x32xf32>,
    %1201 = vector.extract_strided_slice %1196 {offsets = [1, 0], sizes = [1, 32], strides = [1, 1]} : vector<2x32xf32> to vector<1x32xf32>
    %c8_i32_473 = arith.constant 8 : i32
    %1202 = arith.addi %c8_i32_473, %c7_i32_460 : i32
    %1203 = arith.index_cast %1202 : i32 to index
    %c0_474 = arith.constant 0 : index
    %1204 = vector.load %arg34[%1203, %c0_474] : memref<16x32xf32, #tpu.memory_space<vmem>>, vector<1x32xf32>
    tpu.vector_store %arg34[%1203, %c0_474], %1201 {strides = array<i32>} : memref<16x32xf32, #tpu.memory_space<vmem>>, vector<1x32xf32>,
    %c8_i32_475 = arith.constant 8 : i32
    %c0_476 = arith.constant 0 : index
    %c0_477 = arith.constant 0 : index
    %1205 = vector.load %arg34[%c0_476, %c0_477] : memref<16x32xf32, #tpu.memory_space<vmem>>, vector<16x32xf32>
    %c0_478 = arith.constant 0 : index
    %c0_479 = arith.constant 0 : index
    %c0_480 = arith.constant 0 : index
    %1206 = vector.load %arg5[%c0_478, %c0_479, %c0_480] : memref<2x8x64xf32, #tpu.memory_space<vmem>>, vector<2x8x64xf32>
    %1207 = vector.shape_cast %1206 : vector<2x8x64xf32> to vector<16x64xf32>
    %c0_481 = arith.constant 0 : index
    %c0_482 = arith.constant 0 : index
    %1208 = vector.load %arg19[%c0_481, %c0_482] : memref<64x32xf32, #tpu.memory_space<vmem>>, vector<64x32xf32>
    %cst_483 = arith.constant dense<0.000000e+00> : vector<16x32xf32>
    %1209 = tpu.matmul %1207, %1208, %cst_483 {dimension_numbers = #tpu.dot_dimension_numbers<[1], [0], [0], [1], [0, 0, 1, 1], [], []>} : vector<16x64xf32>, vector<64x32xf32>, vector<16x32xf32> -> vector<16x32xf32>
    %c0_484 = arith.constant 0 : index
    %c0_485 = arith.constant 0 : index
    %1210 = vector.load %arg20[%c0_484, %c0_485] : memref<32x32xf32, #tpu.memory_space<vmem>>, vector<32x32xf32>
    %cst_486 = arith.constant dense<0.000000e+00> : vector<16x32xf32>
    %1211 = tpu.matmul %1205, %1210, %cst_486 {dimension_numbers = #tpu.dot_dimension_numbers<[1], [0], [0], [1], [0, 0, 1, 1], [], []>} : vector<16x32xf32>, vector<32x32xf32>, vector<16x32xf32> -> vector<16x32xf32>
    %1212 = tpu.iota {dimensions = array<i32: 1>} : vector<16x128xi32>
    %c0_487 = arith.constant 0 : index
    %c0_488 = arith.constant 0 : index
    %1213 = vector.load %arg1[%c0_487, %c0_488] : memref<16x1xi32, #tpu.memory_space<vmem>>, vector<16x1xi32>
    %1214 = vector.broadcast %1213 : vector<16x1xi32> to vector<16x128xi32>
    %1215 = arith.cmpi eq, %1212, %1214 : vector<16x128xi32>
    %1216 = arith.extui %1215 : vector<16x128xi1> to vector<16x128xi32>
    %1217 = arith.sitofp %1216 : vector<16x128xi32> to vector<16x128xf32>
    %c0_489 = arith.constant 0 : index
    %c0_490 = arith.constant 0 : index
    %1218 = vector.load %arg21[%c0_489, %c0_490] : memref<1x32xf32, #tpu.memory_space<vmem>>, vector<1x32xf32>
    %1219 = vector.extract_strided_slice %1211 {offsets = [0, 0], sizes = [8, 32], strides = [1, 1]} : vector<16x32xf32> to vector<8x32xf32>
    %1220 = vector.extract_strided_slice %1209 {offsets = [0, 0], sizes = [8, 32], strides = [1, 1]} : vector<16x32xf32> to vector<8x32xf32>
    %1221 = vector.shape_cast %1220 : vector<8x32xf32> to vector<1x8x32xf32>
    %1222 = vector.shape_cast %1219 : vector<8x32xf32> to vector<8x1x32xf32>
    %1223 = vector.broadcast %1221 : vector<1x8x32xf32> to vector<8x8x32xf32>
    %1224 = vector.broadcast %1222 : vector<8x1x32xf32> to vector<8x8x32xf32>
    %1225 = arith.addf %1223, %1224 : vector<8x8x32xf32>
    %1226 = math.tanh %1225 : vector<8x8x32xf32>
    %1227 = vector.shape_cast %1218 : vector<1x32xf32> to vector<1x1x32xf32>
    %1228 = vector.broadcast %1227 : vector<1x1x32xf32> to vector<8x8x32xf32>
    %1229 = arith.mulf %1226, %1228 : vector<8x8x32xf32>
    %cst_491 = arith.constant dense<0.000000e+00> : vector<8x8xf32>
    %1230 = vector.multi_reduction <add>, %1229, %cst_491 [2] : vector<8x8x32xf32> to vector<8x8xf32>
    %c0_492 = arith.constant 0 : index
    %c0_493 = arith.constant 0 : index
    %1231 = vector.load %arg0[%c0_492, %c0_493] : memref<2x8xi32, #tpu.memory_space<vmem>>, vector<1x8xi32>
    %c0_i32_494 = arith.constant 0 : i32
    %1232 = vector.broadcast %c0_i32_494 : i32 to vector<1x8xi32>
    %1233 = arith.cmpi eq, %1231, %1232 : vector<1x8xi32>
    %cst_495 = arith.constant -1.000000e+30 : f32
    %cst_496 = arith.constant 0.000000e+00 : f32
    %1234 = vector.broadcast %cst_495 : f32 to vector<1x8xf32>
    %1235 = vector.broadcast %cst_496 : f32 to vector<1x8xf32>
    %1236 = arith.select %1233, %1234, %1235 : vector<1x8xi1>, vector<1x8xf32>
    %1237 = vector.broadcast %1236 : vector<1x8xf32> to vector<8x8xf32>
    %1238 = arith.addf %1230, %1237 : vector<8x8xf32>
    %cst_497 = arith.constant dense<0xFF800000> : vector<8xf32>
    %1239 = vector.multi_reduction <maximumf>, %1238, %cst_497 [1] : vector<8x8xf32> to vector<8xf32>
    %1240 = vector.shape_cast %1239 : vector<8xf32> to vector<8x1xf32>
    %1241 = vector.broadcast %1240 : vector<8x1xf32> to vector<8x8xf32>
    %1242 = arith.subf %1238, %1241 : vector<8x8xf32>
    %1243 = math.exp %1242 : vector<8x8xf32>
    %cst_498 = arith.constant dense<0.000000e+00> : vector<8xf32>
    %1244 = vector.multi_reduction <add>, %1243, %cst_498 [1] : vector<8x8xf32> to vector<8xf32>
    %1245 = vector.shape_cast %1244 : vector<8xf32> to vector<8x1xf32>
    %1246 = tpu.reciprocal %1245 {approx = true} : vector<8x1xf32> -> vector<8x1xf32>
    %1247 = vector.broadcast %1246 : vector<8x1xf32> to vector<8x8xf32>
    %1248 = arith.mulf %1243, %1247 : vector<8x8xf32>
    %c0_499 = arith.constant 0 : index
    %c0_500 = arith.constant 0 : index
    %c0_501 = arith.constant 0 : index
    %1249 = vector.load %arg29[%c0_499, %c0_500, %c0_501] : memref<2x8x8xf32, #tpu.memory_space<vmem>>, vector<1x8x8xf32>
    %1250 = vector.shape_cast %1249 : vector<1x8x8xf32> to vector<8x8xf32>
    %1251 = vector.shape_cast %1248 : vector<8x8xf32> to vector<1x8x8xf32>
    tpu.vector_store %arg29[%c0_499, %c0_500, %c0_501], %1251 {strides = array<i32>} : memref<2x8x8xf32, #tpu.memory_space<vmem>>, vector<1x8x8xf32>,
    %c0_502 = arith.constant 0 : index
    %c0_503 = arith.constant 0 : index
    %c0_504 = arith.constant 0 : index
    %1252 = vector.load %arg5[%c0_502, %c0_503, %c0_504] : memref<2x8x64xf32, #tpu.memory_space<vmem>>, vector<1x8x64xf32>
    %1253 = vector.shape_cast %1252 : vector<1x8x64xf32> to vector<8x64xf32>
    %cst_505 = arith.constant dense<0.000000e+00> : vector<8x64xf32>
    %1254 = tpu.matmul %1248, %1253, %cst_505 {dimension_numbers = #tpu.dot_dimension_numbers<[1], [0], [0], [1], [0, 0, 1, 1], [], []>} : vector<8x8xf32>, vector<8x64xf32>, vector<8x64xf32> -> vector<8x64xf32>
    %c0_506 = arith.constant 0 : index
    %c0_507 = arith.constant 0 : index
    %1255 = vector.load %arg35[%c0_506, %c0_507] : memref<16x64xf32, #tpu.memory_space<vmem>>, vector<8x64xf32>
    tpu.vector_store %arg35[%c0_506, %c0_507], %1254 {strides = array<i32>} : memref<16x64xf32, #tpu.memory_space<vmem>>, vector<8x64xf32>,
    %1256 = vector.extract_strided_slice %1217 {offsets = [0, 0], sizes = [8, 128], strides = [1, 1]} : vector<16x128xf32> to vector<8x128xf32>
    %cst_508 = arith.constant dense<0.000000e+00> : vector<8x128xf32>
    %1257 = tpu.matmul %1248, %1256, %cst_508 {dimension_numbers = #tpu.dot_dimension_numbers<[1], [0], [0], [1], [0, 0, 1, 1], [], []>} : vector<8x8xf32>, vector<8x128xf32>, vector<8x128xf32> -> vector<8x128xf32>
    %c0_509 = arith.constant 0 : index
    %c0_510 = arith.constant 0 : index
    %1258 = vector.load %arg36[%c0_509, %c0_510] : memref<16x128xf32, #tpu.memory_space<vmem>>, vector<8x128xf32>
    tpu.vector_store %arg36[%c0_509, %c0_510], %1257 {strides = array<i32>} : memref<16x128xf32, #tpu.memory_space<vmem>>, vector<8x128xf32>,
    %1259 = vector.extract_strided_slice %1211 {offsets = [8, 0], sizes = [8, 32], strides = [1, 1]} : vector<16x32xf32> to vector<8x32xf32>
    %1260 = vector.extract_strided_slice %1209 {offsets = [8, 0], sizes = [8, 32], strides = [1, 1]} : vector<16x32xf32> to vector<8x32xf32>
    %1261 = vector.shape_cast %1260 : vector<8x32xf32> to vector<1x8x32xf32>
    %1262 = vector.shape_cast %1259 : vector<8x32xf32> to vector<8x1x32xf32>
    %1263 = vector.broadcast %1261 : vector<1x8x32xf32> to vector<8x8x32xf32>
    %1264 = vector.broadcast %1262 : vector<8x1x32xf32> to vector<8x8x32xf32>
    %1265 = arith.addf %1263, %1264 : vector<8x8x32xf32>
    %1266 = math.tanh %1265 : vector<8x8x32xf32>
    %1267 = vector.shape_cast %1218 : vector<1x32xf32> to vector<1x1x32xf32>
    %1268 = vector.broadcast %1267 : vector<1x1x32xf32> to vector<8x8x32xf32>
    %1269 = arith.mulf %1266, %1268 : vector<8x8x32xf32>
    %cst_511 = arith.constant dense<0.000000e+00> : vector<8x8xf32>
    %1270 = vector.multi_reduction <add>, %1269, %cst_511 [2] : vector<8x8x32xf32> to vector<8x8xf32>
    %c1_512 = arith.constant 1 : index
    %c0_513 = arith.constant 0 : index
    %1271 = vector.load %arg0[%c1_512, %c0_513] : memref<2x8xi32, #tpu.memory_space<vmem>>, vector<1x8xi32>
    %c0_i32_514 = arith.constant 0 : i32
    %1272 = vector.broadcast %c0_i32_514 : i32 to vector<1x8xi32>
    %1273 = arith.cmpi eq, %1271, %1272 : vector<1x8xi32>
    %cst_515 = arith.constant -1.000000e+30 : f32
    %cst_516 = arith.constant 0.000000e+00 : f32
    %1274 = vector.broadcast %cst_515 : f32 to vector<1x8xf32>
    %1275 = vector.broadcast %cst_516 : f32 to vector<1x8xf32>
    %1276 = arith.select %1273, %1274, %1275 : vector<1x8xi1>, vector<1x8xf32>
    %1277 = vector.broadcast %1276 : vector<1x8xf32> to vector<8x8xf32>
    %1278 = arith.addf %1270, %1277 : vector<8x8xf32>
    %cst_517 = arith.constant dense<0xFF800000> : vector<8xf32>
    %1279 = vector.multi_reduction <maximumf>, %1278, %cst_517 [1] : vector<8x8xf32> to vector<8xf32>
    %1280 = vector.shape_cast %1279 : vector<8xf32> to vector<8x1xf32>
    %1281 = vector.broadcast %1280 : vector<8x1xf32> to vector<8x8xf32>
    %1282 = arith.subf %1278, %1281 : vector<8x8xf32>
    %1283 = math.exp %1282 : vector<8x8xf32>
    %cst_518 = arith.constant dense<0.000000e+00> : vector<8xf32>
    %1284 = vector.multi_reduction <add>, %1283, %cst_518 [1] : vector<8x8xf32> to vector<8xf32>
    %1285 = vector.shape_cast %1284 : vector<8xf32> to vector<8x1xf32>
    %1286 = tpu.reciprocal %1285 {approx = true} : vector<8x1xf32> -> vector<8x1xf32>
    %1287 = vector.broadcast %1286 : vector<8x1xf32> to vector<8x8xf32>
    %1288 = arith.mulf %1283, %1287 : vector<8x8xf32>
    %c1_519 = arith.constant 1 : index
    %c0_520 = arith.constant 0 : index
    %c0_521 = arith.constant 0 : index
    %1289 = vector.load %arg29[%c1_519, %c0_520, %c0_521] : memref<2x8x8xf32, #tpu.memory_space<vmem>>, vector<1x8x8xf32>
    %1290 = vector.shape_cast %1289 : vector<1x8x8xf32> to vector<8x8xf32>
    %1291 = vector.shape_cast %1288 : vector<8x8xf32> to vector<1x8x8xf32>
    tpu.vector_store %arg29[%c1_519, %c0_520, %c0_521], %1291 {strides = array<i32>} : memref<2x8x8xf32, #tpu.memory_space<vmem>>, vector<1x8x8xf32>,
    %c1_522 = arith.constant 1 : index
    %c0_523 = arith.constant 0 : index
    %c0_524 = arith.constant 0 : index
    %1292 = vector.load %arg5[%c1_522, %c0_523, %c0_524] : memref<2x8x64xf32, #tpu.memory_space<vmem>>, vector<1x8x64xf32>
    %1293 = vector.shape_cast %1292 : vector<1x8x64xf32> to vector<8x64xf32>
    %cst_525 = arith.constant dense<0.000000e+00> : vector<8x64xf32>
    %1294 = tpu.matmul %1288, %1293, %cst_525 {dimension_numbers = #tpu.dot_dimension_numbers<[1], [0], [0], [1], [0, 0, 1, 1], [], []>} : vector<8x8xf32>, vector<8x64xf32>, vector<8x64xf32> -> vector<8x64xf32>
    %c8 = arith.constant 8 : index
    %c0_526 = arith.constant 0 : index
    %1295 = vector.load %arg35[%c8, %c0_526] : memref<16x64xf32, #tpu.memory_space<vmem>>, vector<8x64xf32>
    tpu.vector_store %arg35[%c8, %c0_526], %1294 {strides = array<i32>} : memref<16x64xf32, #tpu.memory_space<vmem>>, vector<8x64xf32>,
    %1296 = vector.extract_strided_slice %1217 {offsets = [8, 0], sizes = [8, 128], strides = [1, 1]} : vector<16x128xf32> to vector<8x128xf32>
    %cst_527 = arith.constant dense<0.000000e+00> : vector<8x128xf32>
    %1297 = tpu.matmul %1288, %1296, %cst_527 {dimension_numbers = #tpu.dot_dimension_numbers<[1], [0], [0], [1], [0, 0, 1, 1], [], []>} : vector<8x8xf32>, vector<8x128xf32>, vector<8x128xf32> -> vector<8x128xf32>
    %c8_528 = arith.constant 8 : index
    %c0_529 = arith.constant 0 : index
    %1298 = vector.load %arg36[%c8_528, %c0_529] : memref<16x128xf32, #tpu.memory_space<vmem>>, vector<8x128xf32>
    tpu.vector_store %arg36[%c8_528, %c0_529], %1297 {strides = array<i32>} : memref<16x128xf32, #tpu.memory_space<vmem>>, vector<8x128xf32>,
    %c0_530 = arith.constant 0 : index
    %c0_531 = arith.constant 0 : index
    %1299 = vector.load %arg35[%c0_530, %c0_531] : memref<16x64xf32, #tpu.memory_space<vmem>>, vector<16x64xf32>
    %c0_532 = arith.constant 0 : index
    %c0_533 = arith.constant 0 : index
    %1300 = vector.load %arg36[%c0_532, %c0_533] : memref<16x128xf32, #tpu.memory_space<vmem>>, vector<16x128xf32>
    %c0_534 = arith.constant 0 : index
    %c0_535 = arith.constant 0 : index
    %1301 = vector.load %arg22[%c0_534, %c0_535] : memref<64x128xf32, #tpu.memory_space<vmem>>, vector<64x128xf32>
    %cst_536 = arith.constant dense<0.000000e+00> : vector<16x128xf32>
    %1302 = tpu.matmul %1299, %1301, %cst_536 {dimension_numbers = #tpu.dot_dimension_numbers<[1], [0], [0], [1], [0, 0, 1, 1], [], []>} : vector<16x64xf32>, vector<64x128xf32>, vector<16x128xf32> -> vector<16x128xf32>
    %c0_537 = arith.constant 0 : index
    %c0_538 = arith.constant 0 : index
    %1303 = vector.load %arg23[%c0_537, %c0_538] : memref<32x128xf32, #tpu.memory_space<vmem>>, vector<32x128xf32>
    %cst_539 = arith.constant dense<0.000000e+00> : vector<16x128xf32>
    %1304 = tpu.matmul %1205, %1303, %cst_539 {dimension_numbers = #tpu.dot_dimension_numbers<[1], [0], [0], [1], [0, 0, 1, 1], [], []>} : vector<16x32xf32>, vector<32x128xf32>, vector<16x128xf32> -> vector<16x128xf32>
    %1305 = arith.addf %1302, %1304 : vector<16x128xf32>
    %c0_540 = arith.constant 0 : index
    %c0_541 = arith.constant 0 : index
    %1306 = vector.load %arg24[%c0_540, %c0_541] : memref<1x128xf32, #tpu.memory_space<vmem>>, vector<1x128xf32>
    %1307 = vector.broadcast %1306 : vector<1x128xf32> to vector<16x128xf32>
    %1308 = arith.addf %1305, %1307 : vector<16x128xf32>
    %cst_542 = arith.constant dense<0xFF800000> : vector<16xf32>
    %1309 = vector.multi_reduction <maximumf>, %1308, %cst_542 [1] : vector<16x128xf32> to vector<16xf32>
    %1310 = vector.shape_cast %1309 : vector<16xf32> to vector<16x1xf32>
    %1311 = vector.broadcast %1310 : vector<16x1xf32> to vector<16x128xf32>
    %1312 = arith.subf %1308, %1311 : vector<16x128xf32>
    %1313 = math.exp %1312 : vector<16x128xf32>
    %cst_543 = arith.constant dense<0.000000e+00> : vector<16xf32>
    %1314 = vector.multi_reduction <add>, %1313, %cst_543 [1] : vector<16x128xf32> to vector<16xf32>
    %1315 = vector.shape_cast %1314 : vector<16xf32> to vector<16x1xf32>
    %1316 = tpu.reciprocal %1315 {approx = true} : vector<16x1xf32> -> vector<16x1xf32>
    %1317 = vector.broadcast %1316 : vector<16x1xf32> to vector<16x128xf32>
    %1318 = arith.mulf %1313, %1317 : vector<16x128xf32>
    %c0_544 = arith.constant 0 : index
    %c0_545 = arith.constant 0 : index
    %1319 = vector.load %arg25[%c0_544, %c0_545] : memref<64x1xf32, #tpu.memory_space<vmem>>, vector<64x1xf32>
    %cst_546 = arith.constant dense<0.000000e+00> : vector<16x1xf32>
    %1320 = tpu.matmul %1299, %1319, %cst_546 {dimension_numbers = #tpu.dot_dimension_numbers<[1], [0], [0], [1], [0, 0, 1, 1], [], []>} : vector<16x64xf32>, vector<64x1xf32>, vector<16x1xf32> -> vector<16x1xf32>
    %c0_547 = arith.constant 0 : index
    %c0_548 = arith.constant 0 : index
    %1321 = vector.load %arg26[%c0_547, %c0_548] : memref<32x1xf32, #tpu.memory_space<vmem>>, vector<32x1xf32>
    %cst_549 = arith.constant dense<0.000000e+00> : vector<16x1xf32>
    %1322 = tpu.matmul %1205, %1321, %cst_549 {dimension_numbers = #tpu.dot_dimension_numbers<[1], [0], [0], [1], [0, 0, 1, 1], [], []>} : vector<16x32xf32>, vector<32x1xf32>, vector<16x1xf32> -> vector<16x1xf32>
    %1323 = arith.addf %1320, %1322 : vector<16x1xf32>
    %c0_550 = arith.constant 0 : index
    %c0_551 = arith.constant 0 : index
    %1324 = vector.load %arg27[%c0_550, %c0_551] : memref<1x1xf32, #tpu.memory_space<vmem>>, vector<1x1xf32>
    %1325 = vector.broadcast %1324 : vector<1x1xf32> to vector<16x1xf32>
    %1326 = arith.addf %1323, %1325 : vector<16x1xf32>
    %1327 = arith.negf %1326 : vector<16x1xf32>
    %1328 = math.exp %1327 : vector<16x1xf32>
    %cst_552 = arith.constant 1.000000e+00 : f32
    %1329 = vector.broadcast %cst_552 : f32 to vector<16x1xf32>
    %1330 = arith.addf %1329, %1328 : vector<16x1xf32>
    %1331 = arith.divf %1329, %1330 : vector<16x1xf32>
    %cst_553 = arith.constant 1.000000e+00 : f32
    %1332 = vector.broadcast %cst_553 : f32 to vector<16x1xf32>
    %1333 = arith.subf %1332, %1331 : vector<16x1xf32>
    %1334 = vector.broadcast %1333 : vector<16x1xf32> to vector<16x128xf32>
    %1335 = arith.mulf %1334, %1318 : vector<16x128xf32>
    %1336 = vector.broadcast %1331 : vector<16x1xf32> to vector<16x128xf32>
    %1337 = arith.mulf %1336, %1300 : vector<16x128xf32>
    %1338 = arith.addf %1335, %1337 : vector<16x128xf32>
    %1339 = vector.extract_strided_slice %1338 {offsets = [0, 0], sizes = [8, 128], strides = [1, 1]} : vector<16x128xf32> to vector<8x128xf32>
    %c0_554 = arith.constant 0 : index
    %c0_555 = arith.constant 0 : index
    %c0_556 = arith.constant 0 : index
    %1340 = vector.load %arg28[%c0_554, %c0_555, %c0_556] : memref<2x8x128xf32, #tpu.memory_space<vmem>>, vector<1x8x128xf32>
    %1341 = vector.shape_cast %1340 : vector<1x8x128xf32> to vector<8x128xf32>
    %1342 = vector.shape_cast %1339 : vector<8x128xf32> to vector<1x8x128xf32>
    tpu.vector_store %arg28[%c0_554, %c0_555, %c0_556], %1342 {strides = array<i32>} : memref<2x8x128xf32, #tpu.memory_space<vmem>>, vector<1x8x128xf32>,
    %1343 = vector.extract_strided_slice %1338 {offsets = [8, 0], sizes = [8, 128], strides = [1, 1]} : vector<16x128xf32> to vector<8x128xf32>
    %c1_557 = arith.constant 1 : index
    %c0_558 = arith.constant 0 : index
    %c0_559 = arith.constant 0 : index
    %1344 = vector.load %arg28[%c1_557, %c0_558, %c0_559] : memref<2x8x128xf32, #tpu.memory_space<vmem>>, vector<1x8x128xf32>
    %1345 = vector.shape_cast %1344 : vector<1x8x128xf32> to vector<8x128xf32>
    %1346 = vector.shape_cast %1343 : vector<8x128xf32> to vector<1x8x128xf32>
    tpu.vector_store %arg28[%c1_557, %c0_558, %c0_559], %1346 {strides = array<i32>} : memref<2x8x128xf32, #tpu.memory_space<vmem>>, vector<1x8x128xf32>,
    return
  }
}

</mosaic_0001>

<bundles_post_ra>
// kernel: tpu_custom_call.1
= control target key start
LH: loop header
LB: loop body
LE: loop exit
PB: predicated region body
PF: predicated region fallthrough
CT: control target
= control target key end

     0   :  { %s12173_s6 = smov 1   ;;  %s12174_s10 = smov 2   ;;  %s13783_s0 = inlined_call_operand.smem [shape: u32[30], index: -1, kind: input, shape index: {}] }
   0x1   :  { %s12237_s5 = sld [smem:[%s13783_s0]]   ;;  %s12175_s14 = smov 3  }
   0x2   :  { %s12242_s9 = sld [smem:[%s13783_s0 + %s12173_s6]]   ;;  %s12176_s18 = smov 4  }
   0x3   :  { %s12247_s13 = sld [smem:[%s13783_s0 + %s12174_s10]]   ;;  %s12177_s22 = smov 5  }
   0x4   :  { %s12252_s17 = sld [smem:[%s13783_s0 + %s12175_s14]]   ;;  %s12178_s26 = smov 6  }
   0x5   :  { %s12257_s21 = sld [smem:[%s13783_s0 + %s12176_s18]]   ;;  %s12179_s30 = smov 7  }
   0x6   :  { %s12262_s25 = sld [smem:[%s13783_s0 + %s12177_s22]]   ;;  %s12180_s4 = smov 8  }
   0x7   :  { %s12267_s29 = sld [smem:[%s13783_s0 + %s12178_s26]]   ;;  %s12181_s10 = smov 9  }
   0x8   :  { %13795 = sst [smem:[#allocation43_spill]] %s12242_s9  ;;  %s12182_s15 = smov 10  }
   0x9   :  { %s12272_s3 = sld [smem:[%s13783_s0 + %s12179_s30]]   ;;  %s12183_s20 = smov 11  }
   0xa   :  { %s12277_s8 = sld [smem:[%s13783_s0 + %s12180_s4]]   ;;  %s12184_s26 = smov 12  }
   0xb   :  { %s12282_s14 = sld [smem:[%s13783_s0 + %s12181_s10]]   ;;  %s12185_s1 = smov 13  }
   0xc   :  { %s12287_s19 = sld [smem:[%s13783_s0 + %s12182_s15]]   ;;  %s12186_s7 = smov 14  }
   0xd   :  { %13796 = sst [smem:[#allocation44_spill]] %s12267_s29  ;;  %s12187_s15 = smov 15  }
   0xe   :  { %s12292_s24 = sld [smem:[%s13783_s0 + %s12183_s20]]   ;;  %s12188_s22 = smov 16  }
   0xf   :  { %s12297_s30 = sld [smem:[%s13783_s0 + %s12184_s26]]   ;;  %s12189_s28 = smov 17  }
  0x10   :  { %13797 = sst [smem:[#allocation45_spill]] %s12277_s8  ;;  %s12200_s23 = smov 28  }
  0x11   :  { %13798 = sst [smem:[#allocation46_spill]] %s12282_s14 }
  0x12   :  { %13799 = sst [smem:[#allocation47_spill]] %s12287_s19 }
  0x13   :  { %s12302_s6 = sld [smem:[%s13783_s0 + %s12185_s1]]   ;;  %s12201_s1 = smov 29  }
  0x14   :  { %13800 = sst [smem:[#allocation48_spill]] %s12292_s24 }
  0x15   :  { %13801 = sst [smem:[#allocation49_spill]] %s12297_s30 }
  0x16   :  { %s12307_s12 = sld [smem:[%s13783_s0 + %s12186_s7]]   ;;  %s12190_s7 = smov 18  }
  0x17   :  { %s12312_s20 = sld [smem:[%s13783_s0 + %s12187_s15]]   ;;  %s12191_s15 = smov 19  }
  0x18   :  { %s12317_s27 = sld [smem:[%s13783_s0 + %s12188_s22]]   ;;  %s12192_s22 = smov 20  }
  0x19   :  { %s12322_s4 = sld [smem:[%s13783_s0 + %s12189_s28]]   ;;  %s12193_s28 = smov 21  }
  0x1a   :  { %s12327_s9 = sld [smem:[%s13783_s0 + %s12190_s7]]   ;;  %s12194_s7 = smov 22  }
  0x1b   :  { %s12337_s30 = sld [smem:[%s13783_s0 + %s12192_s22]]   ;;  %s12196_s22 = smov 24  }
  0x1c   :  { %s12342_s24 = sld [smem:[%s13783_s0 + %s12193_s28]]   ;;  %s12197_s28 = smov 25  }
  0x1d   :  { %13802 = sst [smem:[#allocation50_spill]] %s12312_s20 }
  0x1e   :  { %s12332_s20 = sld [smem:[%s13783_s0 + %s12191_s15]]   ;;  %s12195_s15 = smov 23  }
  0x1f   :  { %s12347_s19 = sld [smem:[%s13783_s0 + %s12194_s7]]   ;;  %s12198_s7 = smov 26  }
  0x20   :  { %s12357_s14 = sld [smem:[%s13783_s0 + %s12196_s22]]  }
  0x21   :  { %s12362_s8 = sld [smem:[%s13783_s0 + %s12197_s28]]  }
  0x24   :  { %13803 = sst [smem:[#allocation51_spill]] %s12332_s20 }
  0x25   :  { %13804 = sst [smem:[#allocation52_spill]] %s12347_s19 }
  0x26   :  { %s12352_s20 = sld [smem:[%s13783_s0 + %s12195_s15]]   ;;  %s12199_s15 = smov 27  }
  0x27   :  { %13805 = sst [smem:[#allocation53_spill]] %s12357_s14 }
  0x28   :  { %13806 = sst [smem:[#allocation54_spill]] %s12362_s8 }
  0x29   :  { %s12367_s19 = sld [smem:[%s13783_s0 + %s12198_s7]]  }
  0x2a   :  { %s9102_s29 = sld [smem:[%s13783_s0 + %s12199_s15]]  }
  0x2b   :  { %s12375_s14 = sld [smem:[%s13783_s0 + %s12200_s23]]  }
  0x2c   :  { %s12380_s8 = sld [smem:[%s13783_s0 + %s12201_s1]]  }
  0x30   :  { %v65_v0 = vstv %s9102_s29 }
  0x31   :  { %66 = vst [vmem:[#allocation9] sm:$0x1] %v65_v0 }
  0x32   :  { %67 = vsyncpa [#allocation11], 0 }
  0x33   :  { %68 = vsyncpa [#allocation14], 0 }
  0x34   :  { %69 = vsyncpa [#allocation17], 0 }
  0x35   :  { %70 = vsyncpa [#allocation20], 0 }
  0x36   :  { %71 = vsyncpa [#allocation23], 0 }
  0x37   :  { %72 = vsyncpa [#allocation26], 0 }
  0x38   :  { %73 = vsyncpa [#allocation29], 0 }
  0x39   :  { %74 = vsyncpa [#allocation12], 0 }
  0x3a   :  { %75 = vsyncpa [#allocation33], 0  ;;  %s12202_s7 = smov [#allocation13]   ;;  %s12203_s11 = smov [#allocation16]  }
  0x3b   :  { %s94_s10 = sshll.u32 %s12202_s7, 4  ;;  %s117_s15 = sshll.u32 %s12203_s11, 4  ;;  %s95_s10 = int_to_ptr.vmem [resolvable:$true] %s94_s10  ;;  %s12382_s15 = int_to_ptr.vmem [resolvable:$true] %s117_s15 }
  0x3c   :  { %s11825_s0 = scalar_lea.hbm %s12247_s13, 32 }
  0x3d   :  { %p11826_p0 = scmp.ne.s32.totalorder %s12247_s13, %s11825_s0  ;;  %p11829_p1 = scmp.lt.u32.totalorder %s11825_s0, %s12247_s13 }
  0x3f   :  { %p11831_p2 = pnand %p11829_p1, %p11826_p0 }
  0x41   :  { %11834 = shalt.err (!%p11831_p2)
}
  0x42   :  { %s11835_s29 = scalar_lea.vmem %s95_s10, 32  ;;  %p11840_p4 = scmp.lt.s32.totalorder %s95_s10, %s95_s10 }
  0x43   :  { %p11836_p3 = scmp.ne.s32.totalorder %s95_s10, %s11835_s29  ;;  %p11841_p5 = scmp.lt.s32.totalorder %s11835_s29, %s11835_s29 }
  0x45   :  { %p11842_p6 = por %p11841_p5, %p11840_p4 }
  0x47   :  { %p11843_p7 = pnand %p11842_p6, %p11836_p3 }
  0x49   :  { %11846 = shalt.err (!%p11843_p7)
}
  0x4a   :  { %97 = dma.hbm_to_vmem [thread:$0]  %s12247_s13, 32, %s95_s10, [#allocation14]  }
  0x4b   :  { %s11847_s16 = scalar_lea.hbm %s12262_s25, 256 }
  0x4c   :  { %p11848_p8 = scmp.ne.s32.totalorder %s12262_s25, %s11847_s16  ;;  %p11851_p9 = scmp.lt.u32.totalorder %s11847_s16, %s12262_s25 }
  0x4e   :  { %p11853_p10 = pnand %p11851_p9, %p11848_p8 }
  0x50   :  { %11856 = shalt.err (!%p11853_p10)
}
  0x51   :  { %s11857_s18 = scalar_lea.vmem %s12382_s15, 256  ;;  %p11862_p12 = scmp.lt.s32.totalorder %s12382_s15, %s12382_s15 }
  0x52   :  { %p11858_p11 = scmp.ne.s32.totalorder %s12382_s15, %s11857_s18  ;;  %p11863_p13 = scmp.lt.s32.totalorder %s11857_s18, %s11857_s18 }
  0x54   :  { %p11864_p0 = por %p11863_p13, %p11862_p12 }
  0x56   :  { %p11865_p1 = pnand %p11864_p0, %p11858_p11 }
  0x58   :  { %11868 = shalt.err (!%p11865_p1)
}
  0x59   :  { %s12204_s23 = smov 128   ;;  %s12205_s13 = smov 8  }
  0x5a   :  { %123 = dma.hbm_to_vmem [thread:$0]  %s12262_s25, 256, %s12382_s15, [#allocation17], %s12204_s23, %s12204_s23, %s12205_s13  }
  0x5b   :  { %s12206_s22 = smov [#allocation19]   ;;  %s11869_s1 = scalar_lea.hbm %s12302_s6, 48 }
  0x5c   :  { %s153_s26 = sshll.u32 %s12206_s22, 4  ;;  %p11870_p2 = scmp.ne.s32.totalorder %s12302_s6, %s11869_s1  ;;  %s154_s26 = int_to_ptr.vmem [resolvable:$true] %s153_s26 }
  0x5d   :  { %p11873_p3 = scmp.lt.u32.totalorder %s11869_s1, %s12302_s6 }
  0x5f   :  { %p11875_p4 = pnand %p11873_p3, %p11870_p2 }
  0x61   :  { %11878 = shalt.err (!%p11875_p4)
}
  0x62   :  { %s11879_s28 = scalar_lea.vmem %s154_s26, 48  ;;  %s11883_s2 = scalar_lea.vmem %s154_s26, 64 }
  0x63   :  { %p11880_p5 = scmp.ne.s32.totalorder %s154_s26, %s11879_s28  ;;  %p11884_p6 = scmp.lt.s32.totalorder %s154_s26, %s154_s26 }
  0x64   :  { %p11885_p7 = scmp.lt.s32.totalorder %s11883_s2, %s11879_s28 }
  0x66   :  { %p11886_p8 = por %p11885_p7, %p11884_p6 }
  0x68   :  { %p11887_p9 = pnand %p11886_p8, %p11880_p5 }
  0x6a   :  { %11890 = shalt.err (!%p11887_p9)
}
  0x6b   :  { %s12207_s7 = smov 16   ;;  %s12208_s25 = smov 1  }
  0x6c   :  { %159 = dma.hbm_to_vmem [thread:$0]  %s12302_s6, 48, %s154_s26, [#allocation20], %s12207_s7, %s12207_s7, %s12208_s25  }
  0x6d   :  { %s12209_s10 = smov [#allocation22]   ;;  %s12210_s15 = smov [#allocation25]  }
  0x6e   :  { %s179_s11 = sshll.u32 %s12209_s10, 4  ;;  %s203_s0 = sshll.u32 %s12210_s15, 4  ;;  %s180_s11 = int_to_ptr.vmem [resolvable:$true] %s179_s11  ;;  %s204_s0 = int_to_ptr.vmem [resolvable:$true] %s203_s0 }
  0x6f   :  { %s11891_s29 = scalar_lea.hbm %s12317_s27, 1536 }
  0x70   :  { %p11892_p10 = scmp.ne.s32.totalorder %s12317_s27, %s11891_s29  ;;  %p11895_p11 = scmp.lt.u32.totalorder %s11891_s29, %s12317_s27 }
  0x72   :  { %p11897_p12 = pnand %p11895_p11, %p11892_p10 }
  0x74   :  { %11900 = shalt.err (!%p11897_p12)
}
  0x75   :  { %s11901_s16 = scalar_lea.vmem %s180_s11, 1536  ;;  %p11906_p0 = scmp.lt.s32.totalorder %s180_s11, %s180_s11 }
  0x76   :  { %p11902_p13 = scmp.ne.s32.totalorder %s180_s11, %s11901_s16  ;;  %p11907_p1 = scmp.lt.s32.totalorder %s11901_s16, %s11901_s16 }
  0x78   :  { %p11908_p2 = por %p11907_p1, %p11906_p0 }
  0x7a   :  { %p11909_p3 = pnand %p11908_p2, %p11902_p13 }
  0x7c   :  { %11912 = shalt.err (!%p11909_p3)
}
  0x7d   :  { %185 = dma.hbm_to_vmem [thread:$0]  %s12317_s27, 1536, %s180_s11, [#allocation23], %s12204_s23, %s12204_s23, %s12205_s13  }
  0x7e   :  { %s11913_s6 = scalar_lea.hbm %s12327_s9, 48 }
  0x7f   :  { %p11914_p4 = scmp.ne.s32.totalorder %s12327_s9, %s11913_s6  ;;  %p11917_p5 = scmp.lt.u32.totalorder %s11913_s6, %s12327_s9 }
  0x81   :  { %p11919_p6 = pnand %p11917_p5, %p11914_p4 }
  0x83   :  { %11922 = shalt.err (!%p11919_p6)
}
  0x84   :  { %s11923_s18 = scalar_lea.vmem %s204_s0, 48  ;;  %s11927_s22 = scalar_lea.vmem %s204_s0, 64 }
  0x85   :  { %p11924_p7 = scmp.ne.s32.totalorder %s204_s0, %s11923_s18  ;;  %p11928_p8 = scmp.lt.s32.totalorder %s204_s0, %s204_s0 }
  0x86   :  { %p11929_p9 = scmp.lt.s32.totalorder %s11927_s22, %s11923_s18 }
  0x88   :  { %p11930_p10 = por %p11929_p9, %p11928_p8 }
  0x8a   :  { %p11931_p11 = pnand %p11930_p10, %p11924_p7 }
  0x8c   :  { %11934 = shalt.err (!%p11931_p11)
}
  0x8d   :  { %209 = dma.hbm_to_vmem [thread:$0]  %s12327_s9, 48, %s204_s0, [#allocation26], %s12207_s7, %s12207_s7, %s12208_s25  }
  0x8e   :  { %s12211_s27 = smov [#allocation28]   ;;  %s12212_s1 = smov [#allocation10]  }
  0x8f   :  { %s230_s26 = sshll.u32 %s12211_s27, 4  ;;  %s82_s28 = sshll.u32 %s12212_s1, 4  ;;  %s231_s26 = int_to_ptr.vmem [resolvable:$true] %s230_s26  ;;  %s83_s28 = int_to_ptr.vmem [resolvable:$true] %s82_s28 }
  0x90   :  { %s11935_s2 = scalar_lea.hbm %s12342_s24, 16 }
  0x91   :  { %p11936_p12 = scmp.ne.s32.totalorder %s12342_s24, %s11935_s2  ;;  %p11939_p13 = scmp.lt.u32.totalorder %s11935_s2, %s12342_s24 }
  0x93   :  { %p11941_p0 = pnand %p11939_p13, %p11936_p12 }
  0x95   :  { %11944 = shalt.err (!%p11941_p0)
}
  0x96   :  { %s11945_s10 = scalar_lea.vmem %s231_s26, 16  ;;  %s11949_s11 = scalar_lea.vmem %s231_s26, 32 }
  0x97   :  { %p11946_p1 = scmp.ne.s32.totalorder %s231_s26, %s11945_s10  ;;  %p11950_p2 = scmp.lt.s32.totalorder %s231_s26, %s231_s26 }
  0x98   :  { %p11951_p3 = scmp.lt.s32.totalorder %s11949_s11, %s11945_s10 }
  0x9a   :  { %p11952_p4 = por %p11951_p3, %p11950_p2 }
  0x9c   :  { %p11953_p5 = pnand %p11952_p4, %p11946_p1 }
  0x9e   :  { %11956 = shalt.err (!%p11953_p5)
}
  0x9f   :  { %233 = dma.hbm_to_vmem [thread:$0]  %s12342_s24, 16, %s231_s26, [#allocation29]  }
  0xa0   :  { %s11957_s9 = scalar_lea.hbm %s12237_s5, 32 }
  0xa1   :  { %p11958_p6 = scmp.ne.s32.totalorder %s12237_s5, %s11957_s9  ;;  %p11961_p7 = scmp.lt.u32.totalorder %s11957_s9, %s12237_s5 }
  0xa3   :  { %p11963_p8 = pnand %p11961_p7, %p11958_p6 }
  0xa5   :  { %11966 = shalt.err (!%p11963_p8)
}
  0xa6   :  { %s11967_s15 = scalar_lea.vmem %s83_s28, 32  ;;  %p11972_p10 = scmp.lt.s32.totalorder %s83_s28, %s83_s28 }
  0xa7   :  { %p11968_p9 = scmp.ne.s32.totalorder %s83_s28, %s11967_s15  ;;  %p11973_p11 = scmp.lt.s32.totalorder %s11967_s15, %s11967_s15 }
  0xa9   :  { %p11974_p12 = por %p11973_p11, %p11972_p10 }
  0xab   :  { %p11975_p13 = pnand %p11974_p12, %p11968_p9 }
  0xad   :  { %11978 = shalt.err (!%p11975_p13)
}
  0xae   :  { %85 = dma.hbm_to_vmem [thread:$0]  %s12237_s5, 32, %s83_s28, [#allocation11]  }
  0xaf   :  { %s12213_s0 = smov [#allocation15]   ;;  %s11979_s29 = scalar_lea.hbm %s12257_s21, 96 }
  0xb0   :  { %s105_s24 = sshll.u32 %s12213_s0, 4  ;;  %p11980_p0 = scmp.ne.s32.totalorder %s12257_s21, %s11979_s29  ;;  %s106_s24 = int_to_ptr.vmem [resolvable:$true] %s105_s24 }
  0xb1   :  { %p11983_p1 = scmp.lt.u32.totalorder %s11979_s29, %s12257_s21 }
  0xb3   :  { %p11985_p2 = pnand %p11983_p1, %p11980_p0 }
  0xb5   :  { %11988 = shalt.err (!%p11985_p2)
}
  0xb6   :  { %s11989_s16 = scalar_lea.vmem %s106_s24, 96  ;;  %p11994_p4 = scmp.lt.s32.totalorder %s106_s24, %s106_s24 }
  0xb7   :  { %p11990_p3 = scmp.ne.s32.totalorder %s106_s24, %s11989_s16  ;;  %p11995_p5 = scmp.lt.s32.totalorder %s11989_s16, %s11989_s16 }
  0xb9   :  { %p11996_p6 = por %p11995_p5, %p11994_p4 }
  0xbb   :  { %p11997_p7 = pnand %p11996_p6, %p11990_p3 }
  0xbd   :  { %12000 = shalt.err (!%p11997_p7)
}
  0xbe   :  { %s12214_s6 = smov 32   ;;  %s12215_s5 = smov 2  }
  0xbf   :  { %111 = dma.hbm_to_vmem [thread:$0]  %s12257_s21, 96, %s106_s24, [#allocation14], %s12214_s6, %s12214_s6, %s12215_s5  }
  0xc0   :  { %s12216_s18 = smov [#allocation18]   ;;  %s12217_s27 = smov [#allocation21]  }
  0xc1   :  { %s131_s22 = sshll.u32 %s12216_s18, 4  ;;  %s165_s26 = sshll.u32 %s12217_s27, 4  ;;  %s132_s22 = int_to_ptr.vmem [resolvable:$true] %s131_s22  ;;  %s12433_s26 = int_to_ptr.vmem [resolvable:$true] %s165_s26 }
  0xc2   :  { %s12001_s1 = scalar_lea.hbm %s12272_s3, 768 }
  0xc3   :  { %p12002_p8 = scmp.ne.s32.totalorder %s12272_s3, %s12001_s1  ;;  %p12005_p9 = scmp.lt.u32.totalorder %s12001_s1, %s12272_s3 }
  0xc5   :  { %p12007_p10 = pnand %p12005_p9, %p12002_p8 }
  0xc7   :  { %12010 = shalt.err (!%p12007_p10)
}
  0xc8   :  { %s12011_s28 = scalar_lea.vmem %s132_s22, 768  ;;  %p12016_p12 = scmp.lt.s32.totalorder %s132_s22, %s132_s22 }
  0xc9   :  { %p12012_p11 = scmp.ne.s32.totalorder %s132_s22, %s12011_s28  ;;  %p12017_p13 = scmp.lt.s32.totalorder %s12011_s28, %s12011_s28 }
  0xcb   :  { %p12018_p0 = por %p12017_p13, %p12016_p12 }
  0xcd   :  { %p12019_p1 = pnand %p12018_p0, %p12012_p11 }
  0xcf   :  { %12022 = shalt.err (!%p12019_p1)
}
  0xd0   :  { %137 = dma.hbm_to_vmem [thread:$0]  %s12272_s3, 768, %s132_s22, [#allocation17], %s12204_s23, %s12204_s23, %s12205_s13  }
  0xd1   :  { %s12023_s21 = scalar_lea.hbm %s12307_s12, 48 }
  0xd2   :  { %p12024_p2 = scmp.ne.s32.totalorder %s12307_s12, %s12023_s21  ;;  %p12027_p3 = scmp.lt.u32.totalorder %s12023_s21, %s12307_s12 }
  0xd4   :  { %p12029_p4 = pnand %p12027_p3, %p12024_p2 }
  0xd6   :  { %12032 = shalt.err (!%p12029_p4)
}
  0xd7   :  { %s12033_s2 = scalar_lea.vmem %s12433_s26, 48  ;;  %s12037_s10 = scalar_lea.vmem %s12433_s26, 64 }
  0xd8   :  { %p12034_p5 = scmp.ne.s32.totalorder %s12433_s26, %s12033_s2  ;;  %p12038_p6 = scmp.lt.s32.totalorder %s12433_s26, %s12433_s26 }
  0xd9   :  { %p12039_p7 = scmp.lt.s32.totalorder %s12037_s10, %s12033_s2 }
  0xdb   :  { %p12040_p8 = por %p12039_p7, %p12038_p6 }
  0xdd   :  { %p12041_p9 = pnand %p12040_p8, %p12034_p5 }
  0xdf   :  { %12044 = shalt.err (!%p12041_p9)
}
  0xe0   :  { %171 = dma.hbm_to_vmem [thread:$0]  %s12307_s12, 48, %s12433_s26, [#allocation20], %s12207_s7, %s12207_s7, %s12208_s25  }
  0xe1   :  { %s12218_s3 = smov [#allocation24]   ;;  %s12219_s9 = smov [#allocation27]  }
  0xe2   :  { %s191_s11 = sshll.u32 %s12218_s3, 4  ;;  %s217_s15 = sshll.u32 %s12219_s9, 4  ;;  %s192_s11 = int_to_ptr.vmem [resolvable:$true] %s191_s11  ;;  %s12455_s15 = int_to_ptr.vmem [resolvable:$true] %s217_s15 }
  0xe3   :  { %s12045_s0 = scalar_lea.hbm %s12322_s4, 48 }
  0xe4   :  { %p12046_p10 = scmp.ne.s32.totalorder %s12322_s4, %s12045_s0  ;;  %p12049_p11 = scmp.lt.u32.totalorder %s12045_s0, %s12322_s4 }
  0xe6   :  { %p12051_p12 = pnand %p12049_p11, %p12046_p10 }
  0xe8   :  { %12054 = shalt.err (!%p12051_p12)
}
  0xe9   :  { %s12055_s24 = scalar_lea.vmem %s192_s11, 48  ;;  %s12059_s29 = scalar_lea.vmem %s192_s11, 64 }
  0xea   :  { %p12056_p13 = scmp.ne.s32.totalorder %s192_s11, %s12055_s24  ;;  %p12060_p0 = scmp.lt.s32.totalorder %s192_s11, %s192_s11 }
  0xeb   :  { %p12061_p1 = scmp.lt.s32.totalorder %s12059_s29, %s12055_s24 }
  0xed   :  { %p12062_p2 = por %p12061_p1, %p12060_p0 }
  0xef   :  { %p12063_p3 = pnand %p12062_p2, %p12056_p13 }
  0xf1   :  { %12066 = shalt.err (!%p12063_p3)
}
  0xf2   :  { %197 = dma.hbm_to_vmem [thread:$0]  %s12322_s4, 48, %s192_s11, [#allocation23], %s12207_s7, %s12207_s7, %s12208_s25  }
  0xf3   :  { %s12067_s12 = scalar_lea.hbm %s12337_s30, 512 }
  0xf4   :  { %p12068_p4 = scmp.ne.s32.totalorder %s12337_s30, %s12067_s12  ;;  %p12071_p5 = scmp.lt.u32.totalorder %s12067_s12, %s12337_s30 }
  0xf6   :  { %p12073_p6 = pnand %p12071_p5, %p12068_p4 }
  0xf8   :  { %12076 = shalt.err (!%p12073_p6)
}
  0xf9   :  { %s12077_s16 = scalar_lea.vmem %s12455_s15, 512  ;;  %p12082_p8 = scmp.lt.s32.totalorder %s12455_s15, %s12455_s15 }
  0xfa   :  { %p12078_p7 = scmp.ne.s32.totalorder %s12455_s15, %s12077_s16  ;;  %p12083_p9 = scmp.lt.s32.totalorder %s12077_s16, %s12077_s16 }
  0xfc   :  { %p12084_p10 = por %p12083_p9, %p12082_p8 }
  0xfe   :  { %p12085_p11 = pnand %p12084_p10, %p12078_p7 }
 0x100   :  { %12088 = shalt.err (!%p12085_p11)
}
 0x101   :  { %223 = dma.hbm_to_vmem [thread:$0]  %s12337_s30, 512, %s12455_s15, [#allocation26], %s12204_s23, %s12204_s23, %s12205_s13  }
 0x102   :  { %s12220_s4 = smov [#allocation30]   ;;  %s12089_s25 = scalar_lea.hbm %s12352_s20, 512 }
 0x103   :  { %s241_s7 = sshll.u32 %s12220_s4, 4  ;;  %p12090_p12 = scmp.ne.s32.totalorder %s12352_s20, %s12089_s25  ;;  %s242_s7 = int_to_ptr.vmem [resolvable:$true] %s241_s7 }
 0x104   :  { %p12093_p13 = scmp.lt.u32.totalorder %s12089_s25, %s12352_s20 }
 0x106   :  { %p12095_p0 = pnand %p12093_p13, %p12090_p12 }
 0x108   :  { %12098 = shalt.err (!%p12095_p0)
}
 0x109   :  { %s12099_s6 = scalar_lea.vmem %s242_s7, 512  ;;  %p12104_p2 = scmp.lt.s32.totalorder %s242_s7, %s242_s7 }
 0x10a   :  { %p12100_p1 = scmp.ne.s32.totalorder %s242_s7, %s12099_s6  ;;  %p12105_p3 = scmp.lt.s32.totalorder %s12099_s6, %s12099_s6 }
 0x10c   :  { %p12106_p4 = por %p12105_p3, %p12104_p2 }
 0x10e   :  { %p12107_p5 = pnand %p12106_p4, %p12100_p1 }
 0x110   :  { %12110 = shalt.err (!%p12107_p5)
}
 0x111   :  { %247 = dma.hbm_to_vmem [thread:$0]  %s12352_s20, 512, %s242_s7, [#allocation29], %s12204_s23, %s12204_s23, %s12205_s13  }
 0x112   :  { %12155 = dma.done.wait [#allocation11], 32  }
 0x113   :  { %12156 = vsyncadd [#allocation11], 4294967264 }
 0x114   :  { %12157 = dma.done.wait [#allocation14], 128  }
 0x115   :  { %12158 = vsyncadd [#allocation14], 4294967168 }
 0x116   :  { %12159 = dma.done.wait [#allocation17], 1024  }
 0x117   :  { %12160 = vsyncadd [#allocation17], 4294966272 }
 0x118   :  { %12161 = dma.done.wait [#allocation20], 96  }
 0x119   :  { %12162 = vsyncadd [#allocation20], 4294967200 }
 0x11a   :  { %12163 = dma.done.wait [#allocation23], 1584  }
 0x11b   :  { %12164 = vsyncadd [#allocation23], 4294965712 }
 0x11c   :  { %12165 = dma.done.wait [#allocation26], 560  }
 0x11d   :  { %12166 = vsyncadd [#allocation26], 4294966736 }
 0x11e   :  { %12167 = dma.done.wait [#allocation29], 528  }
 0x11f   :  { %12168 = vsyncadd [#allocation29], 4294966768  ;;  %s13807_s30 = sld [smem:[#allocation44_spill]]  ;;  %v12221_v1 = vmov 0   ;;  %v295_v2 = vld [vmem:[%s12252_s17] sm:$0xff]  ;;  %v296_v7 = vld [vmem:[%s12252_s17 + $0x8] sm:$0xff]  ;;  %v297_v31 = vlaneseq }
 0x120   :  { %11497 = vset.pattern.permute.xlu0 %v12221_v1  ;;  %11498 = vset.pattern.permute.xlu1 %v12221_v1  ;;  %v412_v13 = vld [vmem:[#allocation18] sm:$0xff]  ;;  %v413_v14 = vld [vmem:[#allocation18 + $0x8] sm:$0xff]  ;;  %s13808_s17 = sld [smem:[#allocation45_spill]]  ;;  %v12222_v34 = vmov 1.0   ;;  %v507_v36 = vld [vmem:[#allocation18 + $0x10] sm:$0xff]  ;;  %v12223_v41 = vmov 0.0|0.0  }
 0x121   :  { %300 = vperm.xlu0 %11497, %v295_v2   ;;  %v10873_v17 = vpack.c.bf16 %v413_v14, %v412_v13  ;;  %v12502_v32 = vand.u32 127, %v297_v31  ;;  %v508_v37 = vld [vmem:[#allocation18 + $0x18] sm:$0xff]  ;;  %vm12224_vm2 = vmmov 0   ;;  %v12225_v46 = vmov 0.0   ;;  %v595_v47 = vld [vmem:[#allocation18 + $0x20] sm:$0xff]  ;;  %v596_v48 = vld [vmem:[#allocation18 + $0x28] sm:$0xff] }
 0x122   :  { %v10877_v38 = vpack.c.bf16 %v508_v37, %v507_v36  ;;  %vm421_vm3 = vcmask 130048   ;;  %v10881_v51 = vpack.c.bf16 %v596_v48, %v595_v47  ;;  %v12531_v54 = vld [vmem:[#allocation15] sm:$0x3]  ;;  %vm503_vm4 = vcmask 261120   ;;  %s13809_s20 = sld [smem:[#allocation46_spill]]  ;;  %s13810_s5 = sld [smem:[#allocation47_spill]] }
 0x123   :  { %10874 = vmatprep.subr.bf16.mxu1 %v10873_v17  ;;  %vm956_vm5 = vcmask 254976   ;;  %s13811_s18 = sld [smem:[#allocation48_spill]]  ;;  %s13812_s22 = sld [smem:[#allocation49_spill]]  ;;  %vm406_vm6 = vcmask 58368   ;;  %vm5427_vm9 = vcmask 253952   ;;  %vm5429_vm10 = vcmask 254977  }
 0x124   :  { %10876 = vmatpush3.bf16.msra.mxu1 %v10873_v17  ;;  %s13813_s27 = sld [smem:[#allocation50_spill]]  ;;  %s13814_s26 = sld [smem:[#allocation51_spill]] }
 0x125   :  { %v311_v3 = vld [vmem:[%s13807_s30] sm:$0xff]  ;;  %v312_v4 = vld [vmem:[%s13807_s30 + $0x8] sm:$0xff]  ;;  %v313_v5 = vld [vmem:[%s13807_s30 + $0x10] sm:$0xff]  ;;  %303 = vperm.xlu0 %11497, %v296_v7   ;;  %10878 = vmatprep.subr.bf16.mxu1 %v10877_v38  ;;  %s13815_s1 = sld [smem:[#allocation43_spill]]  ;;  %s13816_s28 = sld [smem:[#allocation52_spill]] }
 0x126   :  { %v314_v6 = vld [vmem:[%s13807_s30 + $0x18] sm:$0xff]  ;;  %v10841_v8 = vpack.c.bf16 %v312_v4, %v311_v3  ;;  %v315_v10 = vld [vmem:[%s13807_s30 + $0x20] sm:$0xff]  ;;  %v316_v11 = vld [vmem:[%s13807_s30 + $0x28] sm:$0xff]  ;;  %s13817_s21 = sld [smem:[#allocation54_spill]]  ;;  %s12227_s2 = smov [#allocation32]  }
 0x127   :  { %v10845_v9 = vpack.c.bf16 %v314_v6, %v313_v5  ;;  %v10849_v12 = vpack.c.bf16 %v316_v11, %v315_v10  ;;  %v317_v15 = vld [vmem:[%s13807_s30 + $0x30] sm:$0xff]  ;;  %v318_v16 = vld [vmem:[%s13807_s30 + $0x38] sm:$0xff]  ;;  %v319_v19 = vld [vmem:[%s13807_s30 + $0x40] sm:$0xff]  ;;  %s9054_s10 = sshll.u32 %s12227_s2, 4  ;;  %s9055_s10 = int_to_ptr.vmem [resolvable:$true] %s9054_s10 }
 0x128   :  { %10842 = vmatprep.subr.bf16.mxu0 %v10841_v8  ;;  %v10853_v18 = vpack.c.bf16 %v318_v16, %v317_v15  ;;  %v320_v20 = vld [vmem:[%s13807_s30 + $0x48] sm:$0xff]  ;;  %v321_v22 = vld [vmem:[%s13807_s30 + $0x50] sm:$0xff]  ;;  %v322_v23 = vld [vmem:[%s13807_s30 + $0x58] sm:$0xff]  ;;  %s12111_s3 = scalar_lea.vmem %s9055_s10, 256  ;;  %p12116_p7 = scmp.lt.s32.totalorder %s9055_s10, %s9055_s10 }
 0x129   :  { %10844 = vmatpush3.bf16.msra.mxu0 %v10841_v8  ;;  %v10857_v21 = vpack.c.bf16 %v320_v20, %v319_v19  ;;  %v10861_v24 = vpack.c.bf16 %v322_v23, %v321_v22  ;;  %v323_v25 = vld [vmem:[%s13807_s30 + $0x60] sm:$0xff]  ;;  %v324_v26 = vld [vmem:[%s13807_s30 + $0x68] sm:$0xff]  ;;  %v325_v28 = vld [vmem:[%s13807_s30 + $0x70] sm:$0xff]  ;;  %p12112_p6 = scmp.ne.s32.totalorder %s9055_s10, %s12111_s3  ;;  %p12117_p8 = scmp.lt.s32.totalorder %s12111_s3, %s12111_s3 }
 0x12a   :  { %10846 = vmatprep.subr.bf16.mxu0 %v10845_v9  ;;  %v10865_v27 = vpack.c.bf16 %v324_v26, %v323_v25  ;;  %v326_v29 = vld [vmem:[%s13807_s30 + $0x78] sm:$0xff]  ;;  %v682_v39 = vld [vmem:[%s13808_s17] sm:$0xff]  ;;  %v683_v40 = vld [vmem:[%s13808_s17 + $0x8] sm:$0xff] }
 0x12b   :  { %v10869_v30 = vpack.c.bf16 %v326_v29, %v325_v28  ;;  %v12511_v42 = vpack.c.bf16 %v683_v40, %v682_v39  ;;  %v684_v43 = vld [vmem:[%s13808_s17 + $0x10] sm:$0xff]  ;;  %v685_v44 = vld [vmem:[%s13808_s17 + $0x18] sm:$0xff]  ;;  %v9121_v52 = vld [vmem:[%s13808_s17 + $0x20] sm:$0xff]  ;;  %p12118_p9 = por %p12117_p8, %p12116_p7 }
 0x12c   :  { %v12517_v45 = vpack.c.bf16 %v685_v44, %v684_v43  ;;  %v9122_v53 = vld [vmem:[%s13808_s17 + $0x28] sm:$0xff]  ;;  %v9123_v56 = vld [vmem:[%s13808_s17 + $0x30] sm:$0xff]  ;;  %v9124_v57 = vld [vmem:[%s13808_s17 + $0x38] sm:$0xff] }
 0x12d   :  { %10848 = vmatpush3.bf16.msra.mxu0 %v10845_v9  ;;  %v12533_v55 = vpack.c.bf16 %v9122_v53, %v9121_v52  ;;  %v12541_v58 = vpack.c.bf16 %v9124_v57, %v9123_v56  ;;  %v9125_v59 = vld [vmem:[%s13808_s17 + $0x40] sm:$0xff]  ;;  %v9126_v60 = vld [vmem:[%s13808_s17 + $0x48] sm:$0xff]  ;;  %v9127_v62 = vld [vmem:[%s13808_s17 + $0x50] sm:$0xff]  ;;  %p12119_p10 = pnand %p12118_p9, %p12112_p6 }
 0x12e   :  { %10850 = vmatprep.subr.bf16.mxu0 %v10849_v12  ;;  %v12549_v61 = vpack.c.bf16 %v9126_v60, %v9125_v59  ;;  %v9128_v63 = vld [vmem:[%s13808_s17 + $0x58] sm:$0xff]  ;;  %v9110_v1 = vld [vmem:[%s13809_s20] ss:$0 sm:$0xff]  ;;  %v9114_v6 = vld [vmem:[%s13809_s20 + $0x1] ss:$0 sm:$0xff] }
 0x12f   :  { %v12557_v0 = vpack.c.bf16 %v9128_v63, %v9127_v62  ;;  %v9118_v11 = vld [vmem:[%s13809_s20 + $0x2] ss:$0 sm:$0xff]  ;;  %v12582_v16 = vld [vmem:[%s13810_s5] ss:$0 sm:$0xff]  ;;  %v12586_v23 = vld [vmem:[%s13810_s5 + $0x1] ss:$0 sm:$0xff] }
 0x130   :  { %v12590_v37 = vld [vmem:[%s13810_s5 + $0x2] ss:$0 sm:$0xff] }
 0x131   :  { %10852 = vmatpush3.bf16.msra.mxu0 %v10849_v12 }
 0x132   :  { %10854 = vmatprep.subr.bf16.mxu0 %v10853_v18 }
 0x135   :  { %10856 = vmatpush3.bf16.msra.mxu0 %v10853_v18 }
 0x136   :  { %10858 = vmatprep.subr.bf16.mxu0 %v10857_v21 }
 0x139   :  { %10860 = vmatpush3.bf16.msra.mxu0 %v10857_v21 }
 0x13a   :  { %10862 = vmatprep.subr.bf16.mxu0 %v10861_v24 }
 0x13d   :  { %10864 = vmatpush3.bf16.msra.mxu0 %v10861_v24 }
 0x13e   :  { %10866 = vmatprep.subr.bf16.mxu0 %v10865_v27 }
 0x141   :  { %10868 = vmatpush3.bf16.msra.mxu0 %v10865_v27 }
 0x142   :  { %10870 = vmatprep.subr.bf16.mxu0 %v10869_v30 }
 0x145   :  { %10872 = vmatpush3.bf16.msra.mxu0 %v10869_v30 }
 0x146   :  { %10903 = vmatprep.subr.bf16.mxu0 %v12223_v41 }
 0x1a0   :  { %v301_v33 = vpop.permute.xlu0 %300 }
 0x1a1   :  { %vm305_vm0 = vcmp.eq.s32.totalorder %v12502_v32, %v301_v33 }
 0x1a2   :  { %9849 = vmatprep.mubr.msk.f32.mxu0 %vm305_vm0, %v12222_v34 }
 0x1a4   :  { %v304_v35 = vpop.permute.xlu0 %303 }
 0x1a5   :  { %vm306_vm1 = vcmp.eq.s32.totalorder %v12502_v32, %v304_v35 }
 0x1a6   :  { %9850 = vmatmul.mubr.msk.f32.vlgmr.msra.gmra.mrb[0].mxu0 %vm306_vm1, %v12222_v34  ;;  %vm7144_vm1 = vcmask 523264  }
 0x1a7   :  { %10905 = vmatpush3.bf16.msra.mxu0 %v12511_v42  ;;  %9914 = vmatprep.mubr.msk.f32.mxu0 %vm12224_vm2, %v12225_v46 }
 0x1a8   :  { %10906 = vmatprep.subr.bf16.mxu0 %v12223_v41 }
 0x1ab   :  { %10908 = vmatpush3.bf16.msra.mxu0 %v12517_v45 }
 0x1ac   :  { %10915 = vmatprep.subr.bf16.mxu0 %v12223_v41 }
 0x279   :  { %v9851_v49 = vpop.f32.mrb[0].mxu0 }
 0x27a   :  { %v393_v50 = vpop.f32.mrb[1].mxu0 }
 0x27b   :  { %9856 = vmatprep.mubr.msk.f32.mxu1 %vm421_vm3, %v393_v50 }
 0x27c   :  { %9857 = vmatmul.mubr.msk.f32.vlgmr.msra.gmra.mrb[0].mxu1 %vm421_vm3, %v9851_v49 }
 0x27d   :  { %10880 = vmatpush3.bf16.msra.mxu1 %v10877_v38  ;;  %9863 = vmatprep.mubr.msk.f32.mxu1 %vm421_vm3, %v393_v50 }
 0x27e   :  { %10882 = vmatprep.subr.bf16.mxu1 %v10881_v51 }
 0x280   :  { %9864 = vmatmul.mubr.msk.f32.vlgmr.msra.gmra.mrb[2].mxu1 %vm421_vm3, %v9851_v49 }
 0x281   :  { %10884 = vmatpush3.bf16.msra.mxu1 %v10881_v51  ;;  %9870 = vmatprep.mubr.msk.f32.mxu1 %vm421_vm3, %v393_v50 }
 0x282   :  { %10885 = vmatprep.subr.bf16.mxu1 %v12223_v41 }
 0x284   :  { %9871 = vmatmul.mubr.msk.f32.vlgmr.msra.gmra.mrb[4].mxu1 %vm421_vm3, %v9851_v49 }
 0x285   :  { %10887 = vmatpush3.bf16.msra.mxu1 %v12511_v42  ;;  %9881 = vmatprep.mubr.msk.f32.mxu1 %vm12224_vm2, %v12225_v46 }
 0x286   :  { %10888 = vmatprep.subr.bf16.mxu1 %v12223_v41 }
 0x289   :  { %10890 = vmatpush3.bf16.msra.mxu1 %v12517_v45 }
 0x28a   :  { %10891 = vmatprep.subr.bf16.mxu1 %v12223_v41 }
 0x28c   :  { %9882 = vmatmul.mubr.msk.f32.vlgmr.msra.gmra.mrb[6].mxu1 %vm503_vm4, %v12531_v54 }
 0x28d   :  { %10893 = vmatpush3.bf16.msra.mxu1 %v12533_v55  ;;  %9892 = vmatprep.mubr.msk.f32.mxu1 %vm12224_vm2, %v12225_v46 }
 0x28e   :  { %10894 = vmatprep.subr.bf16.mxu1 %v12223_v41 }
 0x291   :  { %10896 = vmatpush3.bf16.msra.mxu1 %v12541_v58 }
 0x292   :  { %10897 = vmatprep.subr.bf16.mxu1 %v12223_v41 }
 0x294   :  { %9893 = vmatmul.mubr.msk.f32.vlgmr.msra.gmra.mrb[8].mxu1 %vm503_vm4, %v12531_v54 }
 0x295   :  { %10899 = vmatpush3.bf16.msra.mxu1 %v12549_v61  ;;  %9903 = vmatprep.mubr.msk.f32.mxu1 %vm12224_vm2, %v12225_v46 }
 0x296   :  { %10900 = vmatprep.subr.bf16.mxu1 %v12223_v41 }
 0x299   :  { %10902 = vmatpush3.bf16.msra.mxu1 %v12557_v0 }
 0x29a   :  { %10909 = vmatprep.subr.bf16.mxu1 %v12223_v41 }
 0x29c   :  { %9904 = vmatmul.mubr.msk.f32.vlgmr.msra.gmra.mrb[10].mxu1 %vm503_vm4, %v12531_v54 }
 0x29d   :  { %10911 = vmatpush3.bf16.msra.mxu1 %v12533_v55  ;;  %9925 = vmatprep.mubr.msk.f32.mxu1 %vm12224_vm2, %v12225_v46 }
 0x29e   :  { %10912 = vmatprep.subr.bf16.mxu1 %v12223_v41 }
 0x2a1   :  { %10914 = vmatpush3.bf16.msra.mxu1 %v12541_v58 }
 0x2a2   :  { %10921 = vmatprep.subr.bf16.mxu1 %v12223_v41 }
 0x34f   :  { %v9858_v2 = vpop.f32.mrb[0].mxu1 }
 0x350   :  { %v500_v3 = vadd.f32 %v9858_v2, %v9110_v1  ;;  %v494_v4 = vpop.f32.mrb[1].mxu1 }
 0x351   :  { %v495_v5 = vadd.f32 %v9110_v1, %v494_v4 }
 0x352   :  { %505 = vst.msk [vmem:[#allocation2 + $0x8] sm:$0xff] %vm503_vm4, %v500_v3 }
 0x353   :  { %504 = vst.msk [vmem:[#allocation2] sm:$0xff] %vm503_vm4, %v495_v5  ;;  %v9865_v7 = vpop.f32.mrb[2].mxu1 }
 0x354   :  { %v589_v8 = vadd.f32 %v9865_v7, %v9114_v6  ;;  %v583_v9 = vpop.f32.mrb[3].mxu1 }
 0x355   :  { %v584_v10 = vadd.f32 %v9114_v6, %v583_v9 }
 0x356   :  { %593 = vst.msk [vmem:[#allocation3 + $0x8] sm:$0xff] %vm503_vm4, %v589_v8 }
 0x357   :  { %592 = vst.msk [vmem:[#allocation3] sm:$0xff] %vm503_vm4, %v584_v10  ;;  %v9872_v12 = vpop.f32.mrb[4].mxu1 }
 0x358   :  { %v677_v13 = vadd.f32 %v9872_v12, %v9118_v11  ;;  %v671_v14 = vpop.f32.mrb[5].mxu1 }
 0x359   :  { %v672_v15 = vadd.f32 %v9118_v11, %v671_v14 }
 0x35a   :  { %681 = vst.msk [vmem:[#allocation4 + $0x8] sm:$0xff] %vm503_vm4, %v677_v13  ;;  %v701_v20 = vld [vmem:[#allocation2] sm:$0x3]  ;;  %v959_v63 = vld [vmem:[#allocation2 + $0x2] sm:$0x3] }
 0x35b   :  { %680 = vst.msk [vmem:[#allocation4] sm:$0xff] %vm503_vm4, %v672_v15 }
 0x35e   :  { %v702_v27 = vld [vmem:[#allocation3] sm:$0x3]  ;;  %v961_v4 = vld [vmem:[#allocation3 + $0x2] sm:$0x3] }
 0x35f   :  { %v779_v17 = vpop.f32.mrb[6].mxu1 }
 0x360   :  { %v780_v18 = vadd.f32 %v12582_v16, %v779_v17  ;;  %v9883_v19 = vpop.f32.mrb[7].mxu1 }
 0x362   :  { %v935_v21 = vadd.f32 %v780_v18, %v701_v20  ;;  %v703_v47 = vld [vmem:[#allocation4] sm:$0x3]  ;;  %v963_v17 = vld [vmem:[#allocation4 + $0x2] sm:$0x3] }
 0x364   :  { %v9137_v22 = vmul.f32 -1.442695, %v935_v21 }
 0x366   :  { %11499 = vpow2.f32 %v9137_v22 }
 0x367   :  { %v855_v24 = vpop.f32.mrb[8].mxu1 }
 0x368   :  { %v856_v25 = vadd.f32 %v12586_v23, %v855_v24  ;;  %v9894_v26 = vpop.f32.mrb[9].mxu1 }
 0x36a   :  { %v942_v28 = vadd.f32 %v856_v25, %v702_v27 }
 0x36c   :  { %v9138_v29 = vmul.f32 -1.442695, %v942_v28 }
 0x36e   :  { %11501 = vpow2.f32 %v9138_v29 }
 0x36f   :  { %v931_v30 = vpop.f32.mrb[10].mxu1 }
 0x370   :  { %v11500_v33 = vpop.eup %11499  ;;  %v9905_v35 = vpop.f32.mrb[11].mxu1  ;;  %v932_v40 = vadd.f32 %v12590_v37, %v931_v30 }
 0x371   :  { %v939_v36 = vadd.f32 1.0, %v11500_v33  ;;  %v1201_v33 = vld [vmem:[#allocation2 + $0x4] sm:$0x3] }
 0x373   :  { %11503 = vrcp.f32 %v939_v36 }
 0x378   :  { %v11502_v38 = vpop.eup %11501 }
 0x379   :  { %v946_v39 = vadd.f32 1.0, %v11502_v38 }
 0x37b   :  { %11505 = vrcp.f32 %v946_v39  ;;  %v1203_v39 = vld [vmem:[#allocation3 + $0x4] sm:$0x3] }
 0x37d   :  { %v11504_v43 = vpop.eup %11503 }
 0x37e   :  { %v949_v44 = vmul.f32 %v11504_v43, %v932_v40 }
 0x380   :  { %v950_v48 = vadd.f32 %v949_v44, %v703_v47 }
 0x382   :  { %11507 = vtanh.f32 %v950_v48 }
 0x385   :  { %v11506_v49 = vpop.eup %11505 }
 0x386   :  { %v952_v50 = vsub.f32 1.0, %v11506_v49  ;;  %v954_v53 = vmul.f32 %v11506_v49, %v12531_v54 }
 0x38c   :  { %v11508_v51 = vpop.eup %11507 }
 0x38d   :  { %v953_v52 = vmul.f32 %v11508_v51, %v952_v50 }
 0x38f   :  { %v955_v56 = vadd.f32 %v954_v53, %v953_v52 }
 0x391   :  { %957 = vst.msk [vmem:[#allocation5] sm:$0x3] %vm956_vm5, %v955_v56  ;;  %9915 = vmatmul.mubr.msk.f32.vlgmr.msra.gmra.mrb[2].mxu0 %vm503_vm4, %v955_v56  ;;  %9926 = vmatmul.mubr.msk.f32.vlgmr.msra.gmra.mrb[12].mxu1 %vm503_vm4, %v955_v56 }
 0x392   :  { %10917 = vmatpush3.bf16.msra.mxu0 %v12549_v61  ;;  %9936 = vmatprep.mubr.msk.f32.mxu0 %vm12224_vm2, %v12225_v46 }
 0x393   :  { %10918 = vmatprep.subr.bf16.mxu0 %v12223_v41  ;;  %10923 = vmatpush3.bf16.msra.mxu1 %v12511_v42 }
 0x394   :  { %10924 = vmatprep.subr.bf16.mxu1 %v12223_v41  ;;  %9947 = vmatprep.mubr.msk.f32.mxu1 %vm12224_vm2, %v12225_v46 }
 0x396   :  { %10920 = vmatpush3.bf16.msra.mxu0 %v12557_v0 }
 0x397   :  { %10927 = vmatprep.subr.bf16.mxu0 %v12223_v41  ;;  %10926 = vmatpush3.bf16.msra.mxu1 %v12517_v45 }
 0x398   :  { %10933 = vmatprep.subr.bf16.mxu1 %v12223_v41 }
 0x399   :  { %9937 = vmatmul.mubr.msk.f32.vlgmr.msra.gmra.mrb[4].mxu0 %vm503_vm4, %v955_v56 }
 0x39a   :  { %10929 = vmatpush3.bf16.msra.mxu0 %v12533_v55  ;;  %9958 = vmatprep.mubr.msk.f32.mxu0 %vm12224_vm2, %v12225_v46 }
 0x39b   :  { %10930 = vmatprep.subr.bf16.mxu0 %v12223_v41 }
 0x39e   :  { %10932 = vmatpush3.bf16.msra.mxu0 %v12541_v58 }
 0x39f   :  { %10939 = vmatprep.subr.bf16.mxu0 %v12223_v41 }
 0x464   :  { %v1033_v54 = vpop.f32.mrb[2].mxu0  ;;  %v1103_v57 = vpop.f32.mrb[12].mxu1 }
 0x465   :  { %v1034_v59 = vadd.f32 %v12582_v16, %v1033_v54  ;;  %v9916_v60 = vpop.f32.mrb[3].mxu0  ;;  %v9927_v62 = vpop.f32.mrb[13].mxu1  ;;  %v1104_v1 = vadd.f32 %v12586_v23, %v1103_v57  ;;  %v1205_v54 = vld [vmem:[#allocation4 + $0x4] sm:$0x3] }
 0x467   :  { %v1177_v2 = vadd.f32 %v1034_v59, %v959_v63  ;;  %v1184_v5 = vadd.f32 %v1104_v1, %v961_v4 }
 0x469   :  { %v9142_v3 = vmul.f32 -1.442695, %v1177_v2  ;;  %v9143_v8 = vmul.f32 -1.442695, %v1184_v5 }
 0x46b   :  { %11509 = vpow2.f32 %v9142_v3 }
 0x46c   :  { %v1173_v6 = vpop.f32.mrb[4].mxu0  ;;  %11511 = vpow2.f32 %v9143_v8  ;;  %v1443_v8 = vld [vmem:[#allocation2 + $0x6] sm:$0x3] }
 0x46d   :  { %v9938_v7 = vpop.f32.mrb[5].mxu0  ;;  %v1174_v13 = vadd.f32 %v12590_v37, %v1173_v6 }
 0x475   :  { %v11510_v9 = vpop.eup %11509 }
 0x476   :  { %v1181_v10 = vadd.f32 1.0, %v11510_v9  ;;  %v11512_v11 = vpop.eup %11511 }
 0x477   :  { %v1188_v12 = vadd.f32 1.0, %v11512_v11 }
 0x478   :  { %11513 = vrcp.f32 %v1181_v10 }
 0x479   :  { %11515 = vrcp.f32 %v1188_v12  ;;  %v1445_v12 = vld [vmem:[#allocation3 + $0x6] sm:$0x3] }
 0x482   :  { %v11514_v14 = vpop.eup %11513 }
 0x483   :  { %v1191_v15 = vmul.f32 %v11514_v14, %v1174_v13  ;;  %v11516_v19 = vpop.eup %11515 }
 0x484   :  { %v1194_v20 = vsub.f32 1.0, %v11516_v19  ;;  %v1196_v24 = vmul.f32 %v11516_v19, %v955_v56 }
 0x485   :  { %v1192_v18 = vadd.f32 %v1191_v15, %v963_v17 }
 0x487   :  { %11517 = vtanh.f32 %v1192_v18 }
 0x491   :  { %v11518_v21 = vpop.eup %11517 }
 0x492   :  { %v1195_v22 = vmul.f32 %v11518_v21, %v1194_v20 }
 0x494   :  { %v1197_v25 = vadd.f32 %v1196_v24, %v1195_v22 }
 0x496   :  { %1199 = vst.msk [vmem:[#allocation5 + $0x2] sm:$0x3] %vm956_vm5, %v1197_v25  ;;  %9948 = vmatmul.mubr.msk.f32.vlgmr.msra.gmra.mrb[14].mxu1 %vm503_vm4, %v1197_v25  ;;  %9959 = vmatmul.mubr.msk.f32.vlgmr.msra.gmra.mrb[6].mxu0 %vm503_vm4, %v1197_v25 }
 0x497   :  { %10935 = vmatpush3.bf16.msra.mxu1 %v12549_v61  ;;  %9969 = vmatprep.mubr.msk.f32.mxu1 %vm12224_vm2, %v12225_v46 }
 0x498   :  { %10936 = vmatprep.subr.bf16.mxu1 %v12223_v41  ;;  %10941 = vmatpush3.bf16.msra.mxu0 %v12511_v42 }
 0x499   :  { %10942 = vmatprep.subr.bf16.mxu0 %v12223_v41  ;;  %9980 = vmatprep.mubr.msk.f32.mxu0 %vm12224_vm2, %v12225_v46 }
 0x49b   :  { %10938 = vmatpush3.bf16.msra.mxu1 %v12557_v0 }
 0x49c   :  { %10945 = vmatprep.subr.bf16.mxu1 %v12223_v41  ;;  %10944 = vmatpush3.bf16.msra.mxu0 %v12517_v45 }
 0x49d   :  { %10951 = vmatprep.subr.bf16.mxu0 %v12223_v41 }
 0x49e   :  { %9970 = vmatmul.mubr.msk.f32.vlgmr.msra.gmra.mrb[16].mxu1 %vm503_vm4, %v1197_v25 }
 0x49f   :  { %10947 = vmatpush3.bf16.msra.mxu1 %v12533_v55  ;;  %9991 = vmatprep.mubr.msk.f32.mxu1 %vm12224_vm2, %v12225_v46 }
 0x4a0   :  { %10948 = vmatprep.subr.bf16.mxu1 %v12223_v41 }
 0x4a3   :  { %10950 = vmatpush3.bf16.msra.mxu1 %v12541_v58 }
 0x4a4   :  { %10957 = vmatprep.subr.bf16.mxu1 %v12223_v41 }
 0x569   :  { %v1275_v26 = vpop.f32.mrb[14].mxu1  ;;  %v1345_v27 = vpop.f32.mrb[6].mxu0 }
 0x56a   :  { %v1276_v28 = vadd.f32 %v12582_v16, %v1275_v26  ;;  %v9949_v29 = vpop.f32.mrb[15].mxu1  ;;  %v9960_v30 = vpop.f32.mrb[7].mxu0  ;;  %v1346_v35 = vadd.f32 %v12586_v23, %v1345_v27  ;;  %v1447_v26 = vld [vmem:[#allocation4 + $0x6] sm:$0x3] }
 0x56c   :  { %v1419_v36 = vadd.f32 %v1276_v28, %v1201_v33  ;;  %v1426_v40 = vadd.f32 %v1346_v35, %v1203_v39 }
 0x56e   :  { %v9147_v38 = vmul.f32 -1.442695, %v1419_v36  ;;  %v9148_v47 = vmul.f32 -1.442695, %v1426_v40 }
 0x570   :  { %11519 = vpow2.f32 %v9147_v38 }
 0x571   :  { %v1415_v43 = vpop.f32.mrb[16].mxu1  ;;  %11521 = vpow2.f32 %v9148_v47  ;;  %v1685_v47 = vld [vmem:[#allocation2 + $0x8] sm:$0x3] }
 0x572   :  { %v9971_v44 = vpop.f32.mrb[17].mxu1  ;;  %v1416_v52 = vadd.f32 %v12590_v37, %v1415_v43 }
 0x57a   :  { %v11520_v48 = vpop.eup %11519 }
 0x57b   :  { %v1423_v49 = vadd.f32 1.0, %v11520_v48  ;;  %v11522_v50 = vpop.eup %11521 }
 0x57c   :  { %v1430_v51 = vadd.f32 1.0, %v11522_v50 }
 0x57d   :  { %11523 = vrcp.f32 %v1423_v49 }
 0x57e   :  { %11525 = vrcp.f32 %v1430_v51  ;;  %v1687_v51 = vld [vmem:[#allocation3 + $0x8] sm:$0x3] }
 0x587   :  { %v11524_v53 = vpop.eup %11523 }
 0x588   :  { %v1433_v56 = vmul.f32 %v11524_v53, %v1416_v52  ;;  %v11526_v59 = vpop.eup %11525 }
 0x589   :  { %v1436_v60 = vsub.f32 1.0, %v11526_v59  ;;  %v1438_v1 = vmul.f32 %v11526_v59, %v1197_v25 }
 0x58a   :  { %v1434_v57 = vadd.f32 %v1433_v56, %v1205_v54 }
 0x58c   :  { %11527 = vtanh.f32 %v1434_v57 }
 0x596   :  { %v11528_v62 = vpop.eup %11527 }
 0x597   :  { %v1437_v63 = vmul.f32 %v11528_v62, %v1436_v60 }
 0x599   :  { %v1439_v2 = vadd.f32 %v1438_v1, %v1437_v63 }
 0x59b   :  { %1441 = vst.msk [vmem:[#allocation5 + $0x4] sm:$0x3] %vm956_vm5, %v1439_v2  ;;  %9981 = vmatmul.mubr.msk.f32.vlgmr.msra.gmra.mrb[8].mxu0 %vm503_vm4, %v1439_v2  ;;  %9992 = vmatmul.mubr.msk.f32.vlgmr.msra.gmra.mrb[18].mxu1 %vm503_vm4, %v1439_v2 }
 0x59c   :  { %10953 = vmatpush3.bf16.msra.mxu0 %v12549_v61  ;;  %10002 = vmatprep.mubr.msk.f32.mxu0 %vm12224_vm2, %v12225_v46 }
 0x59d   :  { %10954 = vmatprep.subr.bf16.mxu0 %v12223_v41  ;;  %10959 = vmatpush3.bf16.msra.mxu1 %v12511_v42 }
 0x59e   :  { %10960 = vmatprep.subr.bf16.mxu1 %v12223_v41  ;;  %10013 = vmatprep.mubr.msk.f32.mxu1 %vm12224_vm2, %v12225_v46 }
 0x5a0   :  { %10956 = vmatpush3.bf16.msra.mxu0 %v12557_v0 }
 0x5a1   :  { %10963 = vmatprep.subr.bf16.mxu0 %v12223_v41  ;;  %10962 = vmatpush3.bf16.msra.mxu1 %v12517_v45 }
 0x5a2   :  { %10969 = vmatprep.subr.bf16.mxu1 %v12223_v41 }
 0x5a3   :  { %10003 = vmatmul.mubr.msk.f32.vlgmr.msra.gmra.mrb[10].mxu0 %vm503_vm4, %v1439_v2 }
 0x5a4   :  { %10965 = vmatpush3.bf16.msra.mxu0 %v12533_v55  ;;  %10024 = vmatprep.mubr.msk.f32.mxu0 %vm12224_vm2, %v12225_v46 }
 0x5a5   :  { %10966 = vmatprep.subr.bf16.mxu0 %v12223_v41 }
 0x5a8   :  { %10968 = vmatpush3.bf16.msra.mxu0 %v12541_v58 }
 0x5a9   :  { %10975 = vmatprep.subr.bf16.mxu0 %v12223_v41 }
 0x66e   :  { %v1517_v3 = vpop.f32.mrb[8].mxu0  ;;  %v1587_v4 = vpop.f32.mrb[18].mxu1 }
 0x66f   :  { %v1518_v5 = vadd.f32 %v12582_v16, %v1517_v3  ;;  %v9982_v6 = vpop.f32.mrb[9].mxu0  ;;  %v9993_v7 = vpop.f32.mrb[19].mxu1  ;;  %v1588_v9 = vadd.f32 %v12586_v23, %v1587_v4  ;;  %v1689_v3 = vld [vmem:[#allocation4 + $0x8] sm:$0x3] }
 0x671   :  { %v1661_v10 = vadd.f32 %v1518_v5, %v1443_v8  ;;  %v1668_v13 = vadd.f32 %v1588_v9, %v1445_v12 }
 0x673   :  { %v9152_v11 = vmul.f32 -1.442695, %v1661_v10  ;;  %v9153_v17 = vmul.f32 -1.442695, %v1668_v13 }
 0x675   :  { %11529 = vpow2.f32 %v9152_v11 }
 0x676   :  { %v1657_v14 = vpop.f32.mrb[10].mxu0  ;;  %11531 = vpow2.f32 %v9153_v17  ;;  %v1927_v17 = vld [vmem:[#allocation2 + $0xa] sm:$0x3] }
 0x677   :  { %v10004_v15 = vpop.f32.mrb[11].mxu0  ;;  %v1658_v22 = vadd.f32 %v12590_v37, %v1657_v14 }
 0x67f   :  { %v11530_v18 = vpop.eup %11529 }
 0x680   :  { %v1665_v19 = vadd.f32 1.0, %v11530_v18  ;;  %v11532_v20 = vpop.eup %11531 }
 0x681   :  { %v1672_v21 = vadd.f32 1.0, %v11532_v20 }
 0x682   :  { %11533 = vrcp.f32 %v1665_v19 }
 0x683   :  { %11535 = vrcp.f32 %v1672_v21  ;;  %v1929_v21 = vld [vmem:[#allocation3 + $0xa] sm:$0x3] }
 0x68c   :  { %v11534_v24 = vpop.eup %11533 }
 0x68d   :  { %v1675_v25 = vmul.f32 %v11534_v24, %v1658_v22  ;;  %v11536_v28 = vpop.eup %11535 }
 0x68e   :  { %v1678_v29 = vsub.f32 1.0, %v11536_v28  ;;  %v1680_v35 = vmul.f32 %v11536_v28, %v1439_v2 }
 0x68f   :  { %v1676_v27 = vadd.f32 %v1675_v25, %v1447_v26 }
 0x691   :  { %11537 = vtanh.f32 %v1676_v27 }
 0x69b   :  { %v11538_v30 = vpop.eup %11537 }
 0x69c   :  { %v1679_v33 = vmul.f32 %v11538_v30, %v1678_v29 }
 0x69e   :  { %v1681_v36 = vadd.f32 %v1680_v35, %v1679_v33 }
 0x6a0   :  { %1683 = vst.msk [vmem:[#allocation5 + $0x6] sm:$0x3] %vm956_vm5, %v1681_v36  ;;  %10014 = vmatmul.mubr.msk.f32.vlgmr.msra.gmra.mrb[20].mxu1 %vm503_vm4, %v1681_v36  ;;  %10025 = vmatmul.mubr.msk.f32.vlgmr.msra.gmra.mrb[12].mxu0 %vm503_vm4, %v1681_v36 }
 0x6a1   :  { %10971 = vmatpush3.bf16.msra.mxu1 %v12549_v61  ;;  %10035 = vmatprep.mubr.msk.f32.mxu1 %vm12224_vm2, %v12225_v46 }
 0x6a2   :  { %10972 = vmatprep.subr.bf16.mxu1 %v12223_v41  ;;  %10977 = vmatpush3.bf16.msra.mxu0 %v12511_v42 }
 0x6a3   :  { %10978 = vmatprep.subr.bf16.mxu0 %v12223_v41  ;;  %10046 = vmatprep.mubr.msk.f32.mxu0 %vm12224_vm2, %v12225_v46 }
 0x6a5   :  { %10974 = vmatpush3.bf16.msra.mxu1 %v12557_v0 }
 0x6a6   :  { %10981 = vmatprep.subr.bf16.mxu1 %v12223_v41  ;;  %10980 = vmatpush3.bf16.msra.mxu0 %v12517_v45 }
 0x6a7   :  { %10987 = vmatprep.subr.bf16.mxu0 %v12223_v41 }
 0x6a8   :  { %10036 = vmatmul.mubr.msk.f32.vlgmr.msra.gmra.mrb[22].mxu1 %vm503_vm4, %v1681_v36 }
 0x6a9   :  { %10983 = vmatpush3.bf16.msra.mxu1 %v12533_v55  ;;  %10057 = vmatprep.mubr.msk.f32.mxu1 %vm12224_vm2, %v12225_v46 }
 0x6aa   :  { %10984 = vmatprep.subr.bf16.mxu1 %v12223_v41 }
 0x6ad   :  { %10986 = vmatpush3.bf16.msra.mxu1 %v12541_v58 }
 0x6ae   :  { %10993 = vmatprep.subr.bf16.mxu1 %v12223_v41 }
 0x773   :  { %v1759_v38 = vpop.f32.mrb[20].mxu1  ;;  %v1829_v39 = vpop.f32.mrb[12].mxu0 }
 0x774   :  { %v1760_v40 = vadd.f32 %v12582_v16, %v1759_v38  ;;  %v10015_v43 = vpop.f32.mrb[21].mxu1  ;;  %v10026_v44 = vpop.f32.mrb[13].mxu0  ;;  %v1830_v48 = vadd.f32 %v12586_v23, %v1829_v39  ;;  %v1931_v38 = vld [vmem:[#allocation4 + $0xa] sm:$0x3] }
 0x776   :  { %v1903_v49 = vadd.f32 %v1760_v40, %v1685_v47  ;;  %v1910_v52 = vadd.f32 %v1830_v48, %v1687_v51 }
 0x778   :  { %v9157_v50 = vmul.f32 -1.442695, %v1903_v49  ;;  %v9158_v54 = vmul.f32 -1.442695, %v1910_v52 }
 0x77a   :  { %11539 = vpow2.f32 %v9157_v50 }
 0x77b   :  { %v1899_v53 = vpop.f32.mrb[22].mxu1  ;;  %11541 = vpow2.f32 %v9158_v54 }
 0x77c   :  { %v10037_v56 = vpop.f32.mrb[23].mxu1  ;;  %v1900_v63 = vadd.f32 %v12590_v37, %v1899_v53 }
 0x784   :  { %v11540_v57 = vpop.eup %11539 }
 0x785   :  { %v1907_v59 = vadd.f32 1.0, %v11540_v57  ;;  %v11542_v60 = vpop.eup %11541 }
 0x786   :  { %v1914_v62 = vadd.f32 1.0, %v11542_v60 }
 0x787   :  { %11543 = vrcp.f32 %v1907_v59  ;;  %v2171_v59 = vld [vmem:[#allocation3 + $0xc] sm:$0x3] }
 0x788   :  { %11545 = vrcp.f32 %v1914_v62 }
 0x791   :  { %v11544_v1 = vpop.eup %11543 }
 0x792   :  { %v1917_v2 = vmul.f32 %v11544_v1, %v1900_v63  ;;  %v11546_v5 = vpop.eup %11545 }
 0x793   :  { %v1920_v6 = vsub.f32 1.0, %v11546_v5  ;;  %v1922_v9 = vmul.f32 %v11546_v5, %v1681_v36 }
 0x794   :  { %v1918_v4 = vadd.f32 %v1917_v2, %v1689_v3 }
 0x796   :  { %11547 = vtanh.f32 %v1918_v4 }
 0x7a0   :  { %v11548_v7 = vpop.eup %11547 }
 0x7a1   :  { %v1921_v8 = vmul.f32 %v11548_v7, %v1920_v6  ;;  %v2173_v7 = vld [vmem:[#allocation4 + $0xc] sm:$0x3] }
 0x7a3   :  { %v1923_v10 = vadd.f32 %v1922_v9, %v1921_v8 }
 0x7a5   :  { %1925 = vst.msk [vmem:[#allocation5 + $0x8] sm:$0x3] %vm956_vm5, %v1923_v10  ;;  %10047 = vmatmul.mubr.msk.f32.vlgmr.msra.gmra.mrb[14].mxu0 %vm503_vm4, %v1923_v10  ;;  %10058 = vmatmul.mubr.msk.f32.vlgmr.msra.gmra.mrb[24].mxu1 %vm503_vm4, %v1923_v10 }
 0x7a6   :  { %10989 = vmatpush3.bf16.msra.mxu0 %v12549_v61  ;;  %10068 = vmatprep.mubr.msk.f32.mxu0 %vm12224_vm2, %v12225_v46 }
 0x7a7   :  { %10990 = vmatprep.subr.bf16.mxu0 %v12223_v41  ;;  %10995 = vmatpush3.bf16.msra.mxu1 %v12511_v42 }
 0x7a8   :  { %10996 = vmatprep.subr.bf16.mxu1 %v12223_v41  ;;  %10079 = vmatprep.mubr.msk.f32.mxu1 %vm12224_vm2, %v12225_v46 }
 0x7aa   :  { %10992 = vmatpush3.bf16.msra.mxu0 %v12557_v0 }
 0x7ab   :  { %10999 = vmatprep.subr.bf16.mxu0 %v12223_v41  ;;  %10998 = vmatpush3.bf16.msra.mxu1 %v12517_v45 }
 0x7ac   :  { %11005 = vmatprep.subr.bf16.mxu1 %v12223_v41 }
 0x7ad   :  { %10069 = vmatmul.mubr.msk.f32.vlgmr.msra.gmra.mrb[16].mxu0 %vm503_vm4, %v1923_v10 }
 0x7ae   :  { %11001 = vmatpush3.bf16.msra.mxu0 %v12533_v55  ;;  %10090 = vmatprep.mubr.msk.f32.mxu0 %vm12224_vm2, %v12225_v46 }
 0x7af   :  { %11002 = vmatprep.subr.bf16.mxu0 %v12223_v41 }
 0x7b2   :  { %11004 = vmatpush3.bf16.msra.mxu0 %v12541_v58 }
 0x7b3   :  { %11011 = vmatprep.subr.bf16.mxu0 %v12223_v41 }
 0x878   :  { %v2001_v11 = vpop.f32.mrb[14].mxu0  ;;  %v2071_v12 = vpop.f32.mrb[24].mxu1 }
 0x879   :  { %v2002_v13 = vadd.f32 %v12582_v16, %v2001_v11  ;;  %v10048_v14 = vpop.f32.mrb[15].mxu0  ;;  %v10059_v15 = vpop.f32.mrb[25].mxu1  ;;  %v2072_v18 = vadd.f32 %v12586_v23, %v2071_v12 }
 0x87a   :  { %v12751_v15 = vld [vmem:[#allocation5] sm:$0xff] }
 0x87b   :  { %v2145_v19 = vadd.f32 %v2002_v13, %v1927_v17  ;;  %v2152_v22 = vadd.f32 %v2072_v18, %v1929_v21  ;;  %v2657_v17 = vld [vmem:[%s13811_s18 + $0x8] sm:$0xff] }
 0x87d   :  { %v9162_v20 = vmul.f32 -1.442695, %v2145_v19  ;;  %v9163_v26 = vmul.f32 -1.442695, %v2152_v22  ;;  %v9177_v19 = vld [vmem:[%s13811_s18 + $0x20] sm:$0xff]  ;;  %v2658_v22 = vld [vmem:[%s13811_s18 + $0x10] sm:$0xff] }
 0x87f   :  { %11549 = vpow2.f32 %v9162_v20  ;;  %v9178_v20 = vld [vmem:[%s13811_s18 + $0x28] sm:$0xff] }
 0x880   :  { %v2141_v24 = vpop.f32.mrb[16].mxu0  ;;  %11551 = vpow2.f32 %v9163_v26  ;;  %v11037_v21 = vpack.c.bf16 %v9178_v20, %v9177_v19  ;;  %v9180_v26 = vld [vmem:[%s13811_s18 + $0x38] sm:$0xff]  ;;  %v9197_v20 = vld [vmem:[%s13812_s22 + $0x50] sm:$0xff] }
 0x881   :  { %v10070_v25 = vpop.f32.mrb[17].mxu0  ;;  %v2142_v33 = vadd.f32 %v12590_v37, %v2141_v24  ;;  %v2659_v24 = vld [vmem:[%s13811_s18 + $0x18] sm:$0xff] }
 0x882   :  { %v9179_v25 = vld [vmem:[%s13811_s18 + $0x30] sm:$0xff] }
 0x889   :  { %v11550_v27 = vpop.eup %11549 }
 0x88a   :  { %v2149_v28 = vadd.f32 1.0, %v11550_v27  ;;  %v11552_v29 = vpop.eup %11551  ;;  %v9184_v27 = vld [vmem:[%s13811_s18 + $0x40] sm:$0xff] }
 0x88b   :  { %v2156_v30 = vadd.f32 1.0, %v11552_v29  ;;  %v11041_v29 = vpack.c.bf16 %v9180_v26, %v9179_v25  ;;  %v9174_v25 = vld [vmem:[#allocation19] ss:$0 sm:$0xff] }
 0x88c   :  { %11553 = vrcp.f32 %v2149_v28  ;;  %v9185_v28 = vld [vmem:[%s13811_s18 + $0x48] sm:$0xff] }
 0x88d   :  { %11555 = vrcp.f32 %v2156_v30  ;;  %v11045_v30 = vpack.c.bf16 %v9185_v28, %v9184_v27 }
 0x896   :  { %v11554_v35 = vpop.eup %11553 }
 0x897   :  { %v2159_v36 = vmul.f32 %v11554_v35, %v2142_v33  ;;  %v11556_v40 = vpop.eup %11555 }
 0x898   :  { %v2162_v43 = vsub.f32 1.0, %v11556_v40  ;;  %v2164_v48 = vmul.f32 %v11556_v40, %v1923_v10  ;;  %v2411_v40 = vld [vmem:[#allocation2 + $0xe] sm:$0x3] }
 0x899   :  { %v2160_v39 = vadd.f32 %v2159_v36, %v1931_v38 }
 0x89b   :  { %11557 = vtanh.f32 %v2160_v39 }
 0x8a5   :  { %v11558_v44 = vpop.eup %11557 }
 0x8a6   :  { %v2163_v47 = vmul.f32 %v11558_v44, %v2162_v43 }
 0x8a8   :  { %v2165_v49 = vadd.f32 %v2164_v48, %v2163_v47  ;;  %v2413_v48 = vld [vmem:[#allocation3 + $0xe] sm:$0x3] }
 0x8aa   :  { %2167 = vst.msk [vmem:[#allocation5 + $0xa] sm:$0x3] %vm956_vm5, %v2165_v49  ;;  %10080 = vmatmul.mubr.msk.f32.vlgmr.msra.gmra.mrb[26].mxu1 %vm503_vm4, %v2165_v49  ;;  %10091 = vmatmul.mubr.msk.f32.vlgmr.msra.gmra.mrb[18].mxu0 %vm503_vm4, %v2165_v49 }
 0x8ab   :  { %11007 = vmatpush3.bf16.msra.mxu1 %v12549_v61  ;;  %10101 = vmatprep.mubr.msk.f32.mxu1 %vm12224_vm2, %v12225_v46 }
 0x8ac   :  { %11008 = vmatprep.subr.bf16.mxu1 %v12223_v41  ;;  %11013 = vmatpush3.bf16.msra.mxu0 %v12511_v42 }
 0x8ad   :  { %11014 = vmatprep.subr.bf16.mxu0 %v12223_v41  ;;  %10112 = vmatprep.mubr.msk.f32.mxu0 %vm12224_vm2, %v12225_v46 }
 0x8af   :  { %11010 = vmatpush3.bf16.msra.mxu1 %v12557_v0 }
 0x8b0   :  { %11017 = vmatprep.subr.bf16.mxu1 %v12223_v41  ;;  %11016 = vmatpush3.bf16.msra.mxu0 %v12517_v45  ;;  %v2169_v45 = vld [vmem:[#allocation2 + $0xc] sm:$0x3] }
 0x8b1   :  { %11023 = vmatprep.subr.bf16.mxu0 %v12223_v41 }
 0x8b2   :  { %10102 = vmatmul.mubr.msk.f32.vlgmr.msra.gmra.mrb[28].mxu1 %vm503_vm4, %v2165_v49 }
 0x8b3   :  { %11019 = vmatpush3.bf16.msra.mxu1 %v12533_v55  ;;  %10123 = vmatprep.mubr.msk.f32.mxu1 %vm12224_vm2, %v12225_v46 }
 0x8b4   :  { %11020 = vmatprep.subr.bf16.mxu1 %v12223_v41 }
 0x8b7   :  { %11022 = vmatpush3.bf16.msra.mxu1 %v12541_v58 }
 0x97d   :  { %v2243_v42 = vpop.f32.mrb[26].mxu1  ;;  %v2313_v50 = vpop.f32.mrb[18].mxu0 }
 0x97e   :  { %v2244_v51 = vadd.f32 %v12582_v16, %v2243_v42  ;;  %v10081_v52 = vpop.f32.mrb[27].mxu1  ;;  %v10092_v53 = vpop.f32.mrb[19].mxu0  ;;  %v2314_v56 = vadd.f32 %v12586_v23, %v2313_v50 }
 0x980   :  { %v2387_v54 = vadd.f32 %v2244_v51, %v2169_v45  ;;  %v2394_v55 = vadd.f32 %v2314_v56, %v2171_v59 }
 0x982   :  { %v9167_v57 = vmul.f32 -1.442695, %v2387_v54  ;;  %v9168_v63 = vmul.f32 -1.442695, %v2394_v55 }
 0x984   :  { %11559 = vpow2.f32 %v9167_v57  ;;  %v2415_v57 = vld [vmem:[#allocation4 + $0xe] sm:$0x3] }
 0x985   :  { %v2383_v60 = vpop.f32.mrb[28].mxu1  ;;  %11561 = vpow2.f32 %v9168_v63 }
 0x986   :  { %v10103_v62 = vpop.f32.mrb[29].mxu1  ;;  %v2384_v4 = vadd.f32 %v12590_v37, %v2383_v60 }
 0x98e   :  { %v11560_v1 = vpop.eup %11559 }
 0x98f   :  { %v2391_v58 = vadd.f32 1.0, %v11560_v1  ;;  %v11562_v2 = vpop.eup %11561 }
 0x990   :  { %v2398_v3 = vadd.f32 1.0, %v11562_v2  ;;  %v2931_v2 = vld [vmem:[%s13812_s22 + $0x8] sm:$0xff] }
 0x991   :  { %11563 = vrcp.f32 %v2391_v58 }
 0x992   :  { %11565 = vrcp.f32 %v2398_v3  ;;  %v9186_v3 = vld [vmem:[%s13811_s18 + $0x50] sm:$0xff] }
 0x99b   :  { %v11564_v5 = vpop.eup %11563 }
 0x99c   :  { %v2401_v6 = vmul.f32 %v11564_v5, %v2384_v4  ;;  %v11566_v9 = vpop.eup %11565  ;;  %v9187_v4 = vld [vmem:[%s13811_s18 + $0x58] sm:$0xff] }
 0x99d   :  { %v2404_v10 = vsub.f32 1.0, %v11566_v9  ;;  %v2406_v13 = vmul.f32 %v11566_v9, %v2165_v49  ;;  %v2933_v9 = vld [vmem:[%s13812_s22 + $0x18] sm:$0xff] }
 0x99e   :  { %v2402_v8 = vadd.f32 %v2401_v6, %v2173_v7  ;;  %v11049_v6 = vpack.c.bf16 %v9187_v4, %v9186_v3 }
 0x9a0   :  { %11567 = vtanh.f32 %v2402_v8  ;;  %v2932_v8 = vld [vmem:[%s13812_s22 + $0x10] sm:$0xff] }
 0x9aa   :  { %v11568_v11 = vpop.eup %11567 }
 0x9ab   :  { %v2405_v12 = vmul.f32 %v11568_v11, %v2404_v10  ;;  %v12793_v10 = vpack.c.bf16 %v2933_v9, %v2932_v8  ;;  %v9191_v11 = vld [vmem:[%s13812_s22 + $0x20] sm:$0xff] }
 0x9ad   :  { %v12743_v14 = vadd.f32 %v2406_v13, %v2405_v12  ;;  %v9192_v12 = vld [vmem:[%s13812_s22 + $0x28] sm:$0xff]  ;;  %v9195_v13 = vld [vmem:[%s13812_s22 + $0x40] sm:$0xff] }
 0x9af   :  { %2409 = vst.msk [vmem:[#allocation5 + $0xc] sm:$0x3] %vm956_vm5, %v12743_v14  ;;  %10113 = vmatmul.mubr.msk.f32.vlgmr.msra.gmra.mrb[20].mxu0 %vm503_vm4, %v12743_v14  ;;  %10124 = vmatmul.mubr.msk.f32.vlgmr.msra.gmra.mrb[30].mxu1 %vm503_vm4, %v12743_v14 }
 0x9b0   :  { %11025 = vmatpush3.bf16.msra.mxu0 %v12549_v61  ;;  %10145 = vmatprep.mubr.msk.f32.mxu1 %vm503_vm4, %v12751_v15  ;;  %v2656_v61 = vld [vmem:[%s13811_s18] sm:$0xff] }
 0x9b1   :  { %11026 = vmatprep.subr.bf16.mxu0 %v12223_v41  ;;  %10134 = vmatprep.mubr.msk.f32.mxu0 %vm12224_vm2, %v12225_v46  ;;  %v11029_v18 = vpack.c.bf16 %v2657_v17, %v2656_v61  ;;  %v12802_v61 = vpack.c.bf16 %v9192_v12, %v9191_v11  ;;  %v9193_v17 = vld [vmem:[%s13812_s22 + $0x30] sm:$0xff] }
 0x9b3   :  { %11030 = vmatprep.subr.bf16.mxu1 %v11029_v18 }
 0x9b4   :  { %11028 = vmatpush3.bf16.msra.mxu0 %v12557_v0  ;;  %11032 = vmatpush3.bf16.msra.mxu1 %v11029_v18  ;;  %v11033_v0 = vpack.c.bf16 %v2659_v24, %v2658_v22  ;;  %v9194_v18 = vld [vmem:[%s13812_s22 + $0x38] sm:$0xff] }
 0x9b5   :  { %11038 = vmatprep.subr.bf16.mxu0 %v11037_v21  ;;  %v12819_v22 = vpack.c.bf16 %v9194_v18, %v9193_v17 }
 0x9b6   :  { %11034 = vmatprep.subr.bf16.mxu1 %v11033_v0 }
 0x9b7   :  { %10135 = vmatmul.mubr.msk.f32.vlgmr.msra.gmra.mrb[22].mxu0 %vm503_vm4, %v12743_v14 }
 0x9b8   :  { %10156 = vmatprep.mubr.msk.f32.mxu0 %vm503_vm4, %v12751_v15  ;;  %11040 = vmatpush3.bf16.msra.mxu0 %v11037_v21  ;;  %v9198_v21 = vld [vmem:[%s13812_s22 + $0x58] sm:$0xff] }
 0x9b9   :  { %11042 = vmatprep.subr.bf16.mxu0 %v11041_v29  ;;  %11036 = vmatpush3.bf16.msra.mxu1 %v11033_v0  ;;  %v12825_v24 = vpack.c.bf16 %v9198_v21, %v9197_v20  ;;  %v9181_v0 = vld [vmem:[#allocation19 + $0x1] ss:$0 sm:$0xff] }
 0x9ba   :  { %11046 = vmatprep.subr.bf16.mxu1 %v11045_v30 }
 0x9bc   :  { %11044 = vmatpush3.bf16.msra.mxu0 %v11041_v29 }
 0x9bd   :  { %11053 = vmatprep.subr.bf16.mxu0 %v12223_v41 }
 0xa82   :  { %v2485_v33 = vpop.f32.mrb[20].mxu0  ;;  %v2555_v35 = vpop.f32.mrb[30].mxu1 }
 0xa83   :  { %v2486_v36 = vadd.f32 %v12582_v16, %v2485_v33  ;;  %v10114_v38 = vpop.f32.mrb[21].mxu0  ;;  %v10125_v39 = vpop.f32.mrb[31].mxu1  ;;  %v2556_v43 = vadd.f32 %v12586_v23, %v2555_v35 }
 0xa84   :  { %v9188_v38 = vld [vmem:[#allocation19 + $0x2] ss:$0 sm:$0xff]  ;;  %v12854_v39 = vld [vmem:[#allocation21] ss:$0 sm:$0xff] }
 0xa85   :  { %v2629_v44 = vadd.f32 %v2486_v36, %v2411_v40  ;;  %v2636_v49 = vadd.f32 %v2556_v43, %v2413_v48 }
 0xa87   :  { %v9172_v47 = vmul.f32 -1.442695, %v2629_v44  ;;  %v9173_v51 = vmul.f32 -1.442695, %v2636_v49 }
 0xa89   :  { %11569 = vpow2.f32 %v9172_v47 }
 0xa8a   :  { %v2625_v42 = vpop.f32.mrb[22].mxu0  ;;  %11571 = vpow2.f32 %v9173_v51 }
 0xa8b   :  { %v10136_v50 = vpop.f32.mrb[23].mxu0  ;;  %v2626_v56 = vadd.f32 %v12590_v37, %v2625_v42  ;;  %v2930_v37 = vld [vmem:[%s13812_s22] sm:$0xff] }
 0xa8c   :  { %v12784_v5 = vpack.c.bf16 %v2931_v2, %v2930_v37 }
 0xa93   :  { %v11570_v52 = vpop.eup %11569 }
 0xa94   :  { %v2633_v53 = vadd.f32 1.0, %v11570_v52  ;;  %v11572_v45 = vpop.eup %11571 }
 0xa95   :  { %v2640_v16 = vadd.f32 1.0, %v11572_v45 }
 0xa96   :  { %11573 = vrcp.f32 %v2633_v53  ;;  %v12859_v53 = vld [vmem:[#allocation21 + $0x1] ss:$0 sm:$0xff] }
 0xa97   :  { %11575 = vrcp.f32 %v2640_v16 }
 0xaa0   :  { %v11574_v23 = vpop.eup %11573 }
 0xaa1   :  { %v2643_v54 = vmul.f32 %v11574_v23, %v2626_v56  ;;  %v11576_v55 = vpop.eup %11575 }
 0xaa2   :  { %v2646_v60 = vsub.f32 1.0, %v11576_v55  ;;  %v2648_v63 = vmul.f32 %v11576_v55, %v12743_v14  ;;  %v9196_v14 = vld [vmem:[%s13812_s22 + $0x48] sm:$0xff] }
 0xaa3   :  { %v2644_v59 = vadd.f32 %v2643_v54, %v2415_v57  ;;  %v12811_v19 = vpack.c.bf16 %v9196_v14, %v9195_v13 }
 0xaa5   :  { %11577 = vtanh.f32 %v2644_v59 }
 0xaaf   :  { %v11578_v62 = vpop.eup %11577 }
 0xab0   :  { %v2647_v1 = vmul.f32 %v11578_v62, %v2646_v60 }
 0xab2   :  { %v2649_v58 = vadd.f32 %v2648_v63, %v2647_v1  ;;  %v12862_v1 = vld [vmem:[#allocation21 + $0x2] ss:$0 sm:$0xff] }
 0xab4   :  { %2651 = vst.msk [vmem:[#allocation5 + $0xe] sm:$0x3] %vm956_vm5, %v2649_v58 }
 0xabb   :  { %v2653_v7 = vld [vmem:[#allocation5 + $0x8] sm:$0xff] }
 0xabc   :  { %10146 = vmatmul.mubr.msk.f32.vlgmr.msra.gmra.mrb[32].mxu1 %vm503_vm4, %v2653_v7  ;;  %10157 = vmatmul.mubr.msk.f32.vlgmr.msra.gmra.mrb[24].mxu0 %vm503_vm4, %v2653_v7 }
 0xabd   :  { %11048 = vmatpush3.bf16.msra.mxu1 %v11045_v30  ;;  %10167 = vmatprep.mubr.msk.f32.mxu1 %vm503_vm4, %v12751_v15  ;;  %v12806_v15 = vld [vmem:[#allocation15 + $0x2] sm:$0x3] }
 0xabe   :  { %11055 = vmatpush3.bf16.msra.mxu0 %v12784_v5  ;;  %11050 = vmatprep.subr.bf16.mxu1 %v11049_v6 }
 0xabf   :  { %11056 = vmatprep.subr.bf16.mxu0 %v12223_v41  ;;  %10178 = vmatprep.mubr.msk.f32.mxu0 %vm12224_vm2, %v12225_v46 }
 0xac1   :  { %11052 = vmatpush3.bf16.msra.mxu1 %v11049_v6 }
 0xac2   :  { %11058 = vmatpush3.bf16.msra.mxu0 %v12793_v10  ;;  %11059 = vmatprep.subr.bf16.mxu1 %v12223_v41 }
 0xac3   :  { %11065 = vmatprep.subr.bf16.mxu0 %v12223_v41 }
 0xac4   :  { %10168 = vmatmul.mubr.msk.f32.vlgmr.msra.gmra.mrb[34].mxu1 %vm503_vm4, %v2653_v7 }
 0xac5   :  { %10179 = vmatmul.mubr.msk.f32.vlgmr.msra.gmra.mrb[26].mxu0 %vm503_vm4, %v12806_v15  ;;  %11061 = vmatpush3.bf16.msra.mxu1 %v12802_v61 }
 0xac6   :  { %11062 = vmatprep.subr.bf16.mxu1 %v12223_v41  ;;  %10189 = vmatprep.mubr.msk.f32.mxu1 %vm12224_vm2, %v12225_v46 }
 0xac7   :  { %11067 = vmatpush3.bf16.msra.mxu0 %v12811_v19  ;;  %10200 = vmatprep.mubr.msk.f32.mxu0 %vm12224_vm2, %v12225_v46 }
 0xac8   :  { %11068 = vmatprep.subr.bf16.mxu0 %v12223_v41 }
 0xac9   :  { %11064 = vmatpush3.bf16.msra.mxu1 %v12819_v22 }
 0xaca   :  { %11071 = vmatprep.subr.bf16.mxu1 %v12223_v41 }
 0xacb   :  { %11070 = vmatpush3.bf16.msra.mxu0 %v12825_v24 }
 0xacc   :  { %10190 = vmatmul.mubr.msk.f32.vlgmr.msra.gmra.mrb[36].mxu1 %vm503_vm4, %v12806_v15  ;;  %11077 = vmatprep.subr.bf16.mxu0 %v12223_v41 }
 0xacd   :  { %11073 = vmatpush3.bf16.msra.mxu1 %v12784_v5  ;;  %10211 = vmatprep.mubr.msk.f32.mxu1 %vm12224_vm2, %v12225_v46 }
 0xace   :  { %10201 = vmatmul.mubr.msk.f32.vlgmr.msra.gmra.mrb[28].mxu0 %vm503_vm4, %v12806_v15  ;;  %11074 = vmatprep.subr.bf16.mxu1 %v12223_v41 }
 0xacf   :  { %11079 = vmatpush3.bf16.msra.mxu0 %v12802_v61  ;;  %10222 = vmatprep.mubr.msk.f32.mxu0 %vm12224_vm2, %v12225_v46 }
 0xad0   :  { %11080 = vmatprep.subr.bf16.mxu0 %v12223_v41 }
 0xad1   :  { %11076 = vmatpush3.bf16.msra.mxu1 %v12793_v10 }
 0xad2   :  { %11083 = vmatprep.subr.bf16.mxu1 %v12223_v41 }
 0xad3   :  { %11082 = vmatpush3.bf16.msra.mxu0 %v12819_v22 }
 0xad4   :  { %11089 = vmatprep.subr.bf16.mxu0 %v12223_v41 }
 0xb8f   :  { %v10147_v26 = vpop.f32.mrb[32].mxu1  ;;  %v10158_v27 = vpop.f32.mrb[24].mxu0 }
 0xb90   :  { %v2745_v28 = vadd.f32 %v10147_v26, %v9174_v25  ;;  %v2835_v29 = vadd.f32 %v10158_v27, %v9181_v0  ;;  %v2739_v30 = vpop.f32.mrb[33].mxu1  ;;  %v2829_v33 = vpop.f32.mrb[25].mxu0 }
 0xb91   :  { %v2740_v35 = vadd.f32 %v9174_v25, %v2739_v30  ;;  %v2830_v36 = vadd.f32 %v9181_v0, %v2829_v33 }
 0xb92   :  { %2749 = vst.msk [vmem:[#allocation2 + $0x8] sm:$0xff] %vm503_vm4, %v2745_v28  ;;  %2839 = vst.msk [vmem:[#allocation3 + $0x8] sm:$0xff] %vm503_vm4, %v2835_v29 }
 0xb93   :  { %2748 = vst.msk [vmem:[#allocation2] sm:$0xff] %vm503_vm4, %v2740_v35  ;;  %2838 = vst.msk [vmem:[#allocation3] sm:$0xff] %vm503_vm4, %v2830_v36 }
 0xb97   :  { %v10169_v40 = vpop.f32.mrb[34].mxu1 }
 0xb98   :  { %v2925_v43 = vadd.f32 %v10169_v40, %v9188_v38  ;;  %v2919_v44 = vpop.f32.mrb[35].mxu1  ;;  %v3027_v47 = vpop.f32.mrb[26].mxu0 }
 0xb99   :  { %v2920_v48 = vadd.f32 %v9188_v38, %v2919_v44  ;;  %v3028_v49 = vadd.f32 %v12854_v39, %v3027_v47  ;;  %v10180_v42 = vpop.f32.mrb[27].mxu0 }
 0xb9a   :  { %2929 = vst.msk [vmem:[#allocation4 + $0x8] sm:$0xff] %vm503_vm4, %v2925_v43  ;;  %v2949_v50 = vld [vmem:[#allocation2] sm:$0x3]  ;;  %v2950_v23 = vld [vmem:[#allocation3] sm:$0x3] }
 0xb9b   :  { %2928 = vst.msk [vmem:[#allocation4] sm:$0xff] %vm503_vm4, %v2920_v48  ;;  %v3183_v51 = vadd.f32 %v3028_v49, %v2949_v50  ;;  %v3205_v21 = vld [vmem:[#allocation2 + $0x2] sm:$0x3]  ;;  %v3206_v27 = vld [vmem:[#allocation3 + $0x2] sm:$0x3] }
 0xb9d   :  { %v9205_v52 = vmul.f32 -1.442695, %v3183_v51 }
 0xb9f   :  { %11579 = vpow2.f32 %v9205_v52  ;;  %v3103_v45 = vpop.f32.mrb[36].mxu1 }
 0xba0   :  { %v3104_v16 = vadd.f32 %v12859_v53, %v3103_v45  ;;  %v10191_v56 = vpop.f32.mrb[37].mxu1 }
 0xba1   :  { %v3179_v54 = vpop.f32.mrb[28].mxu0 }
 0xba2   :  { %v3190_v57 = vadd.f32 %v3104_v16, %v2950_v23  ;;  %v10202_v59 = vpop.f32.mrb[29].mxu0  ;;  %v3180_v37 = vadd.f32 %v12862_v1, %v3179_v54  ;;  %v2951_v4 = vld [vmem:[#allocation4] sm:$0x3]  ;;  %v3207_v48 = vld [vmem:[#allocation4 + $0x2] sm:$0x3] }
 0xba4   :  { %v9206_v55 = vmul.f32 -1.442695, %v3190_v57 }
 0xba6   :  { %11581 = vpow2.f32 %v9206_v55  ;;  %v3443_v55 = vld [vmem:[#allocation2 + $0x4] sm:$0x3] }
 0xba9   :  { %v11580_v60 = vpop.eup %11579 }
 0xbaa   :  { %v3187_v62 = vadd.f32 1.0, %v11580_v60 }
 0xbac   :  { %11583 = vrcp.f32 %v3187_v62 }
 0xbb0   :  { %v11582_v63 = vpop.eup %11581 }
 0xbb1   :  { %v3194_v58 = vadd.f32 1.0, %v11582_v63 }
 0xbb3   :  { %11585 = vrcp.f32 %v3194_v58  ;;  %v3444_v58 = vld [vmem:[#allocation3 + $0x4] sm:$0x3] }
 0xbb6   :  { %v11584_v2 = vpop.eup %11583 }
 0xbb7   :  { %v3197_v3 = vmul.f32 %v11584_v2, %v3180_v37 }
 0xbb9   :  { %v3198_v6 = vadd.f32 %v3197_v3, %v2951_v4 }
 0xbbb   :  { %11587 = vtanh.f32 %v3198_v6 }
 0xbbd   :  { %v11586_v7 = vpop.eup %11585 }
 0xbbe   :  { %v3200_v8 = vsub.f32 1.0, %v11586_v7  ;;  %v3202_v12 = vmul.f32 %v11586_v7, %v12806_v15 }
 0xbc5   :  { %v11588_v9 = vpop.eup %11587 }
 0xbc6   :  { %v3201_v11 = vmul.f32 %v11588_v9, %v3200_v8 }
 0xbc8   :  { %v3203_v13 = vadd.f32 %v3202_v12, %v3201_v11 }
 0xbca   :  { %3204 = vst.msk [vmem:[#allocation5] sm:$0x3] %vm956_vm5, %v3203_v13  ;;  %10212 = vmatmul.mubr.msk.f32.vlgmr.msra.gmra.mrb[38].mxu1 %vm503_vm4, %v3203_v13  ;;  %10223 = vmatmul.mubr.msk.f32.vlgmr.msra.gmra.mrb[30].mxu0 %vm503_vm4, %v3203_v13 }
 0xbcb   :  { %11085 = vmatpush3.bf16.msra.mxu1 %v12811_v19  ;;  %10233 = vmatprep.mubr.msk.f32.mxu1 %vm12224_vm2, %v12225_v46 }
 0xbcc   :  { %11086 = vmatprep.subr.bf16.mxu1 %v12223_v41  ;;  %11091 = vmatpush3.bf16.msra.mxu0 %v12784_v5 }
 0xbcd   :  { %11092 = vmatprep.subr.bf16.mxu0 %v12223_v41  ;;  %10244 = vmatprep.mubr.msk.f32.mxu0 %vm12224_vm2, %v12225_v46 }
 0xbcf   :  { %11088 = vmatpush3.bf16.msra.mxu1 %v12825_v24 }
 0xbd0   :  { %11095 = vmatprep.subr.bf16.mxu1 %v12223_v41  ;;  %11094 = vmatpush3.bf16.msra.mxu0 %v12793_v10 }
 0xbd1   :  { %11101 = vmatprep.subr.bf16.mxu0 %v12223_v41 }
 0xbd2   :  { %10234 = vmatmul.mubr.msk.f32.vlgmr.msra.gmra.mrb[40].mxu1 %vm503_vm4, %v3203_v13 }
 0xbd3   :  { %11097 = vmatpush3.bf16.msra.mxu1 %v12802_v61  ;;  %10255 = vmatprep.mubr.msk.f32.mxu1 %vm12224_vm2, %v12225_v46 }
 0xbd4   :  { %11098 = vmatprep.subr.bf16.mxu1 %v12223_v41 }
 0xbd7   :  { %11100 = vmatpush3.bf16.msra.mxu1 %v12819_v22 }
 0xbd8   :  { %11107 = vmatprep.subr.bf16.mxu1 %v12223_v41 }
 0xc9d   :  { %v3277_v14 = vpop.f32.mrb[38].mxu1  ;;  %v3347_v15 = vpop.f32.mrb[30].mxu0 }
 0xc9e   :  { %v3278_v17 = vadd.f32 %v12854_v39, %v3277_v14  ;;  %v10213_v18 = vpop.f32.mrb[39].mxu1  ;;  %v10224_v20 = vpop.f32.mrb[31].mxu0  ;;  %v3348_v25 = vadd.f32 %v12859_v53, %v3347_v15  ;;  %v3445_v14 = vld [vmem:[#allocation4 + $0x4] sm:$0x3] }
 0xca0   :  { %v3421_v0 = vadd.f32 %v3278_v17, %v3205_v21  ;;  %v3428_v28 = vadd.f32 %v3348_v25, %v3206_v27 }
 0xca2   :  { %v9210_v26 = vmul.f32 -1.442695, %v3421_v0  ;;  %v9211_v33 = vmul.f32 -1.442695, %v3428_v28 }
 0xca4   :  { %11589 = vpow2.f32 %v9210_v26 }
 0xca5   :  { %v3417_v29 = vpop.f32.mrb[40].mxu1  ;;  %11591 = vpow2.f32 %v9211_v33  ;;  %v3681_v33 = vld [vmem:[#allocation2 + $0x6] sm:$0x3] }
 0xca6   :  { %v10235_v30 = vpop.f32.mrb[41].mxu1  ;;  %v3418_v43 = vadd.f32 %v12862_v1, %v3417_v29 }
 0xcae   :  { %v11590_v35 = vpop.eup %11589 }
 0xcaf   :  { %v3425_v36 = vadd.f32 1.0, %v11590_v35  ;;  %v11592_v38 = vpop.eup %11591 }
 0xcb0   :  { %v3432_v40 = vadd.f32 1.0, %v11592_v38 }
 0xcb1   :  { %11593 = vrcp.f32 %v3425_v36 }
 0xcb2   :  { %11595 = vrcp.f32 %v3432_v40  ;;  %v3682_v40 = vld [vmem:[#allocation3 + $0x6] sm:$0x3] }
 0xcbb   :  { %v11594_v44 = vpop.eup %11593 }
 0xcbc   :  { %v3435_v47 = vmul.f32 %v11594_v44, %v3418_v43  ;;  %v11596_v42 = vpop.eup %11595 }
 0xcbd   :  { %v3438_v50 = vsub.f32 1.0, %v11596_v42  ;;  %v3440_v45 = vmul.f32 %v11596_v42, %v3203_v13 }
 0xcbe   :  { %v3436_v49 = vadd.f32 %v3435_v47, %v3207_v48 }
 0xcc0   :  { %11597 = vtanh.f32 %v3436_v49 }
 0xcca   :  { %v11598_v51 = vpop.eup %11597 }
 0xccb   :  { %v3439_v52 = vmul.f32 %v11598_v51, %v3438_v50 }
 0xccd   :  { %v3441_v16 = vadd.f32 %v3440_v45, %v3439_v52 }
 0xccf   :  { %3442 = vst.msk [vmem:[#allocation5 + $0x2] sm:$0x3] %vm956_vm5, %v3441_v16  ;;  %10245 = vmatmul.mubr.msk.f32.vlgmr.msra.gmra.mrb[32].mxu0 %vm503_vm4, %v3441_v16  ;;  %10256 = vmatmul.mubr.msk.f32.vlgmr.msra.gmra.mrb[42].mxu1 %vm503_vm4, %v3441_v16 }
 0xcd0   :  { %11103 = vmatpush3.bf16.msra.mxu0 %v12811_v19  ;;  %10266 = vmatprep.mubr.msk.f32.mxu0 %vm12224_vm2, %v12225_v46 }
 0xcd1   :  { %11104 = vmatprep.subr.bf16.mxu0 %v12223_v41  ;;  %11109 = vmatpush3.bf16.msra.mxu1 %v12784_v5 }
 0xcd2   :  { %11110 = vmatprep.subr.bf16.mxu1 %v12223_v41  ;;  %10277 = vmatprep.mubr.msk.f32.mxu1 %vm12224_vm2, %v12225_v46 }
 0xcd4   :  { %11106 = vmatpush3.bf16.msra.mxu0 %v12825_v24 }
 0xcd5   :  { %11113 = vmatprep.subr.bf16.mxu0 %v12223_v41  ;;  %11112 = vmatpush3.bf16.msra.mxu1 %v12793_v10 }
 0xcd6   :  { %11119 = vmatprep.subr.bf16.mxu1 %v12223_v41 }
 0xcd7   :  { %10267 = vmatmul.mubr.msk.f32.vlgmr.msra.gmra.mrb[34].mxu0 %vm503_vm4, %v3441_v16 }
 0xcd8   :  { %11115 = vmatpush3.bf16.msra.mxu0 %v12802_v61  ;;  %10288 = vmatprep.mubr.msk.f32.mxu0 %vm12224_vm2, %v12225_v46 }
 0xcd9   :  { %11116 = vmatprep.subr.bf16.mxu0 %v12223_v41 }
 0xcdc   :  { %11118 = vmatpush3.bf16.msra.mxu0 %v12819_v22 }
 0xcdd   :  { %11125 = vmatprep.subr.bf16.mxu0 %v12223_v41 }
 0xda2   :  { %v3515_v56 = vpop.f32.mrb[32].mxu0  ;;  %v3585_v23 = vpop.f32.mrb[42].mxu1 }
 0xda3   :  { %v3516_v54 = vadd.f32 %v12854_v39, %v3515_v56  ;;  %v10246_v57 = vpop.f32.mrb[33].mxu0  ;;  %v10257_v59 = vpop.f32.mrb[43].mxu1  ;;  %v3586_v60 = vadd.f32 %v12859_v53, %v3585_v23  ;;  %v3683_v56 = vld [vmem:[#allocation4 + $0x6] sm:$0x3] }
 0xda5   :  { %v3659_v62 = vadd.f32 %v3516_v54, %v3443_v55  ;;  %v3666_v37 = vadd.f32 %v3586_v60, %v3444_v58 }
 0xda7   :  { %v9215_v63 = vmul.f32 -1.442695, %v3659_v62  ;;  %v9216_v4 = vmul.f32 -1.442695, %v3666_v37 }
 0xda9   :  { %11599 = vpow2.f32 %v9215_v63 }
 0xdaa   :  { %v3655_v2 = vpop.f32.mrb[34].mxu0  ;;  %11601 = vpow2.f32 %v9216_v4  ;;  %v3919_v4 = vld [vmem:[#allocation2 + $0x8] sm:$0x3] }
 0xdab   :  { %v10268_v3 = vpop.f32.mrb[35].mxu0  ;;  %v3656_v11 = vadd.f32 %v12862_v1, %v3655_v2 }
 0xdb3   :  { %v11600_v6 = vpop.eup %11599 }
 0xdb4   :  { %v3663_v7 = vadd.f32 1.0, %v11600_v6  ;;  %v11602_v8 = vpop.eup %11601 }
 0xdb5   :  { %v3670_v9 = vadd.f32 1.0, %v11602_v8 }
 0xdb6   :  { %11603 = vrcp.f32 %v3663_v7 }
 0xdb7   :  { %11605 = vrcp.f32 %v3670_v9  ;;  %v3920_v9 = vld [vmem:[#allocation3 + $0x8] sm:$0x3] }
 0xdc0   :  { %v11604_v12 = vpop.eup %11603 }
 0xdc1   :  { %v3673_v13 = vmul.f32 %v11604_v12, %v3656_v11  ;;  %v11606_v17 = vpop.eup %11605 }
 0xdc2   :  { %v3676_v18 = vsub.f32 1.0, %v11606_v17  ;;  %v3678_v25 = vmul.f32 %v11606_v17, %v3441_v16 }
 0xdc3   :  { %v3674_v15 = vadd.f32 %v3673_v13, %v3445_v14 }
 0xdc5   :  { %11607 = vtanh.f32 %v3674_v15 }
 0xdcf   :  { %v11608_v20 = vpop.eup %11607 }
 0xdd0   :  { %v3677_v21 = vmul.f32 %v11608_v20, %v3676_v18 }
 0xdd2   :  { %v3679_v0 = vadd.f32 %v3678_v25, %v3677_v21 }
 0xdd4   :  { %3680 = vst.msk [vmem:[#allocation5 + $0x4] sm:$0x3] %vm956_vm5, %v3679_v0  ;;  %10278 = vmatmul.mubr.msk.f32.vlgmr.msra.gmra.mrb[44].mxu1 %vm503_vm4, %v3679_v0  ;;  %10289 = vmatmul.mubr.msk.f32.vlgmr.msra.gmra.mrb[36].mxu0 %vm503_vm4, %v3679_v0 }
 0xdd5   :  { %11121 = vmatpush3.bf16.msra.mxu1 %v12811_v19  ;;  %10299 = vmatprep.mubr.msk.f32.mxu1 %vm12224_vm2, %v12225_v46 }
 0xdd6   :  { %11122 = vmatprep.subr.bf16.mxu1 %v12223_v41  ;;  %11127 = vmatpush3.bf16.msra.mxu0 %v12784_v5 }
 0xdd7   :  { %11128 = vmatprep.subr.bf16.mxu0 %v12223_v41  ;;  %10310 = vmatprep.mubr.msk.f32.mxu0 %vm12224_vm2, %v12225_v46 }
 0xdd9   :  { %11124 = vmatpush3.bf16.msra.mxu1 %v12825_v24 }
 0xdda   :  { %11131 = vmatprep.subr.bf16.mxu1 %v12223_v41  ;;  %11130 = vmatpush3.bf16.msra.mxu0 %v12793_v10 }
 0xddb   :  { %11137 = vmatprep.subr.bf16.mxu0 %v12223_v41 }
 0xddc   :  { %10300 = vmatmul.mubr.msk.f32.vlgmr.msra.gmra.mrb[46].mxu1 %vm503_vm4, %v3679_v0 }
 0xddd   :  { %11133 = vmatpush3.bf16.msra.mxu1 %v12802_v61  ;;  %10321 = vmatprep.mubr.msk.f32.mxu1 %vm12224_vm2, %v12225_v46 }
 0xdde   :  { %11134 = vmatprep.subr.bf16.mxu1 %v12223_v41 }
 0xde1   :  { %11136 = vmatpush3.bf16.msra.mxu1 %v12819_v22 }
 0xde2   :  { %11143 = vmatprep.subr.bf16.mxu1 %v12223_v41 }
 0xea7   :  { %v3753_v26 = vpop.f32.mrb[44].mxu1  ;;  %v3823_v27 = vpop.f32.mrb[36].mxu0 }
 0xea8   :  { %v3754_v28 = vadd.f32 %v12854_v39, %v3753_v26  ;;  %v10279_v29 = vpop.f32.mrb[45].mxu1  ;;  %v10290_v30 = vpop.f32.mrb[37].mxu0  ;;  %v3824_v35 = vadd.f32 %v12859_v53, %v3823_v27  ;;  %v3921_v26 = vld [vmem:[#allocation4 + $0x8] sm:$0x3] }
 0xeaa   :  { %v3897_v36 = vadd.f32 %v3754_v28, %v3681_v33  ;;  %v3904_v43 = vadd.f32 %v3824_v35, %v3682_v40 }
 0xeac   :  { %v9220_v38 = vmul.f32 -1.442695, %v3897_v36  ;;  %v9221_v48 = vmul.f32 -1.442695, %v3904_v43 }
 0xeae   :  { %11609 = vpow2.f32 %v9220_v38 }
 0xeaf   :  { %v3893_v44 = vpop.f32.mrb[46].mxu1  ;;  %11611 = vpow2.f32 %v9221_v48  ;;  %v4157_v48 = vld [vmem:[#allocation2 + $0xa] sm:$0x3] }
 0xeb0   :  { %v10301_v47 = vpop.f32.mrb[47].mxu1  ;;  %v3894_v52 = vadd.f32 %v12862_v1, %v3893_v44 }
 0xeb8   :  { %v11610_v49 = vpop.eup %11609 }
 0xeb9   :  { %v3901_v42 = vadd.f32 1.0, %v11610_v49  ;;  %v11612_v50 = vpop.eup %11611 }
 0xeba   :  { %v3908_v51 = vadd.f32 1.0, %v11612_v50 }
 0xebb   :  { %11613 = vrcp.f32 %v3901_v42 }
 0xebc   :  { %11615 = vrcp.f32 %v3908_v51  ;;  %v4158_v51 = vld [vmem:[#allocation3 + $0xa] sm:$0x3] }
 0xec5   :  { %v11614_v45 = vpop.eup %11613 }
 0xec6   :  { %v3911_v16 = vmul.f32 %v11614_v45, %v3894_v52  ;;  %v11616_v54 = vpop.eup %11615 }
 0xec7   :  { %v3914_v57 = vsub.f32 1.0, %v11616_v54  ;;  %v3916_v60 = vmul.f32 %v11616_v54, %v3679_v0 }
 0xec8   :  { %v3912_v23 = vadd.f32 %v3911_v16, %v3683_v56 }
 0xeca   :  { %11617 = vtanh.f32 %v3912_v23 }
 0xed4   :  { %v11618_v59 = vpop.eup %11617 }
 0xed5   :  { %v3915_v55 = vmul.f32 %v11618_v59, %v3914_v57 }
 0xed7   :  { %v3917_v62 = vadd.f32 %v3916_v60, %v3915_v55 }
 0xed9   :  { %3918 = vst.msk [vmem:[#allocation5 + $0x6] sm:$0x3] %vm956_vm5, %v3917_v62  ;;  %10311 = vmatmul.mubr.msk.f32.vlgmr.msra.gmra.mrb[38].mxu0 %vm503_vm4, %v3917_v62  ;;  %10322 = vmatmul.mubr.msk.f32.vlgmr.msra.gmra.mrb[48].mxu1 %vm503_vm4, %v3917_v62 }
 0xeda   :  { %11139 = vmatpush3.bf16.msra.mxu0 %v12811_v19  ;;  %10332 = vmatprep.mubr.msk.f32.mxu0 %vm12224_vm2, %v12225_v46 }
 0xedb   :  { %11140 = vmatprep.subr.bf16.mxu0 %v12223_v41  ;;  %11145 = vmatpush3.bf16.msra.mxu1 %v12784_v5 }
 0xedc   :  { %11146 = vmatprep.subr.bf16.mxu1 %v12223_v41  ;;  %10343 = vmatprep.mubr.msk.f32.mxu1 %vm12224_vm2, %v12225_v46 }
 0xede   :  { %11142 = vmatpush3.bf16.msra.mxu0 %v12825_v24 }
 0xedf   :  { %11149 = vmatprep.subr.bf16.mxu0 %v12223_v41  ;;  %11148 = vmatpush3.bf16.msra.mxu1 %v12793_v10 }
 0xee0   :  { %11155 = vmatprep.subr.bf16.mxu1 %v12223_v41 }
 0xee1   :  { %10333 = vmatmul.mubr.msk.f32.vlgmr.msra.gmra.mrb[40].mxu0 %vm503_vm4, %v3917_v62 }
 0xee2   :  { %11151 = vmatpush3.bf16.msra.mxu0 %v12802_v61  ;;  %10354 = vmatprep.mubr.msk.f32.mxu0 %vm12224_vm2, %v12225_v46 }
 0xee3   :  { %11152 = vmatprep.subr.bf16.mxu0 %v12223_v41 }
 0xee6   :  { %11154 = vmatpush3.bf16.msra.mxu0 %v12819_v22 }
 0xee7   :  { %11161 = vmatprep.subr.bf16.mxu0 %v12223_v41 }
 0xfac   :  { %v3991_v63 = vpop.f32.mrb[38].mxu0  ;;  %v4061_v58 = vpop.f32.mrb[48].mxu1 }
 0xfad   :  { %v3992_v37 = vadd.f32 %v12854_v39, %v3991_v63  ;;  %v10312_v2 = vpop.f32.mrb[39].mxu0  ;;  %v10323_v3 = vpop.f32.mrb[49].mxu1  ;;  %v4062_v6 = vadd.f32 %v12859_v53, %v4061_v58  ;;  %v4159_v63 = vld [vmem:[#allocation4 + $0xa] sm:$0x3] }
 0xfaf   :  { %v4135_v7 = vadd.f32 %v3992_v37, %v3919_v4  ;;  %v4142_v11 = vadd.f32 %v4062_v6, %v3920_v9 }
 0xfb1   :  { %v9225_v8 = vmul.f32 -1.442695, %v4135_v7  ;;  %v9226_v14 = vmul.f32 -1.442695, %v4142_v11 }
 0xfb3   :  { %11619 = vpow2.f32 %v9225_v8 }
 0xfb4   :  { %v4131_v12 = vpop.f32.mrb[40].mxu0  ;;  %11621 = vpow2.f32 %v9226_v14 }
 0xfb5   :  { %v10334_v13 = vpop.f32.mrb[41].mxu0  ;;  %v4132_v21 = vadd.f32 %v12862_v1, %v4131_v12 }
 0xfbd   :  { %v11620_v15 = vpop.eup %11619 }
 0xfbe   :  { %v4139_v17 = vadd.f32 1.0, %v11620_v15  ;;  %v11622_v18 = vpop.eup %11621 }
 0xfbf   :  { %v4146_v20 = vadd.f32 1.0, %v11622_v18 }
 0xfc0   :  { %11623 = vrcp.f32 %v4139_v17  ;;  %v4396_v17 = vld [vmem:[#allocation3 + $0xc] sm:$0x3] }
 0xfc1   :  { %11625 = vrcp.f32 %v4146_v20 }
 0xfca   :  { %v11624_v25 = vpop.eup %11623 }
 0xfcb   :  { %v4149_v0 = vmul.f32 %v11624_v25, %v4132_v21  ;;  %v11626_v28 = vpop.eup %11625 }
 0xfcc   :  { %v4152_v29 = vsub.f32 1.0, %v11626_v28  ;;  %v4154_v35 = vmul.f32 %v11626_v28, %v3917_v62 }
 0xfcd   :  { %v4150_v27 = vadd.f32 %v4149_v0, %v3921_v26 }
 0xfcf   :  { %11627 = vtanh.f32 %v4150_v27 }
 0xfd9   :  { %v11628_v30 = vpop.eup %11627 }
 0xfda   :  { %v4153_v33 = vmul.f32 %v11628_v30, %v4152_v29  ;;  %v4397_v30 = vld [vmem:[#allocation4 + $0xc] sm:$0x3] }
 0xfdc   :  { %v4155_v36 = vadd.f32 %v4154_v35, %v4153_v33 }
 0xfde   :  { %4156 = vst.msk [vmem:[#allocation5 + $0x8] sm:$0x3] %vm956_vm5, %v4155_v36  ;;  %10344 = vmatmul.mubr.msk.f32.vlgmr.msra.gmra.mrb[50].mxu1 %vm503_vm4, %v4155_v36  ;;  %10355 = vmatmul.mubr.msk.f32.vlgmr.msra.gmra.mrb[42].mxu0 %vm503_vm4, %v4155_v36 }
 0xfdf   :  { %11157 = vmatpush3.bf16.msra.mxu1 %v12811_v19  ;;  %10365 = vmatprep.mubr.msk.f32.mxu1 %vm12224_vm2, %v12225_v46 }
 0xfe0   :  { %11158 = vmatprep.subr.bf16.mxu1 %v12223_v41  ;;  %11163 = vmatpush3.bf16.msra.mxu0 %v12784_v5 }
 0xfe1   :  { %11164 = vmatprep.subr.bf16.mxu0 %v12223_v41  ;;  %10376 = vmatprep.mubr.msk.f32.mxu0 %vm12224_vm2, %v12225_v46 }
 0xfe3   :  { %11160 = vmatpush3.bf16.msra.mxu1 %v12825_v24 }
 0xfe4   :  { %11167 = vmatprep.subr.bf16.mxu1 %v12223_v41  ;;  %11166 = vmatpush3.bf16.msra.mxu0 %v12793_v10 }
 0xfe5   :  { %11173 = vmatprep.subr.bf16.mxu0 %v12223_v41 }
 0xfe6   :  { %10366 = vmatmul.mubr.msk.f32.vlgmr.msra.gmra.mrb[52].mxu1 %vm503_vm4, %v4155_v36 }
 0xfe7   :  { %11169 = vmatpush3.bf16.msra.mxu1 %v12802_v61  ;;  %10387 = vmatprep.mubr.msk.f32.mxu1 %vm12224_vm2, %v12225_v46 }
 0xfe8   :  { %11170 = vmatprep.subr.bf16.mxu1 %v12223_v41 }
 0xfeb   :  { %11172 = vmatpush3.bf16.msra.mxu1 %v12819_v22 }
 0xfec   :  { %11179 = vmatprep.subr.bf16.mxu1 %v12223_v41 }
0x10b1   :  { %v4229_v38 = vpop.f32.mrb[50].mxu1  ;;  %v4299_v40 = vpop.f32.mrb[42].mxu0 }
0x10b2   :  { %v4230_v43 = vadd.f32 %v12854_v39, %v4229_v38  ;;  %v10345_v44 = vpop.f32.mrb[51].mxu1  ;;  %v10356_v47 = vpop.f32.mrb[43].mxu0  ;;  %v4300_v49 = vadd.f32 %v12859_v53, %v4299_v40 }
0x10b3   :  { %v13023_v47 = vld [vmem:[#allocation5] sm:$0xff] }
0x10b4   :  { %v4373_v42 = vadd.f32 %v4230_v43, %v4157_v48  ;;  %v4380_v52 = vadd.f32 %v4300_v49, %v4158_v51  ;;  %v4876_v48 = vld [vmem:[%s13813_s27 + $0x8] sm:$0xff]  ;;  %v9245_v49 = vld [vmem:[%s13813_s27 + $0x20] sm:$0xff]  ;;  %v4877_v51 = vld [vmem:[%s13813_s27 + $0x10] sm:$0xff] }
0x10b6   :  { %v9230_v50 = vmul.f32 -1.442695, %v4373_v42  ;;  %v9231_v56 = vmul.f32 -1.442695, %v4380_v52  ;;  %v4878_v52 = vld [vmem:[%s13813_s27 + $0x18] sm:$0xff] }
0x10b8   :  { %11629 = vpow2.f32 %v9230_v50  ;;  %v9246_v50 = vld [vmem:[%s13813_s27 + $0x28] sm:$0xff] }
0x10b9   :  { %v4369_v45 = vpop.f32.mrb[52].mxu1  ;;  %11631 = vpow2.f32 %v9231_v56  ;;  %v9247_v56 = vld [vmem:[%s13813_s27 + $0x30] sm:$0xff] }
0x10ba   :  { %v10367_v16 = vpop.f32.mrb[53].mxu1  ;;  %v4370_v55 = vadd.f32 %v12862_v1, %v4369_v45  ;;  %v11205_v45 = vpack.c.bf16 %v9246_v50, %v9245_v49  ;;  %v5160_v49 = vld [vmem:[#allocation22 + $0x48] sm:$0xff]  ;;  %v5156_v50 = vld [vmem:[#allocation22 + $0x30] sm:$0xff] }
0x10bb   :  { %v11201_v16 = vpack.c.bf16 %v4878_v52, %v4877_v51  ;;  %v5157_v51 = vld [vmem:[#allocation22 + $0x38] sm:$0xff] }
0x10c2   :  { %v11630_v23 = vpop.eup %11629 }
0x10c3   :  { %v4377_v54 = vadd.f32 1.0, %v11630_v23  ;;  %v11632_v57 = vpop.eup %11631  ;;  %v9248_v23 = vld [vmem:[%s13813_s27 + $0x38] sm:$0xff] }
0x10c4   :  { %v4384_v59 = vadd.f32 1.0, %v11632_v57  ;;  %v9253_v57 = vld [vmem:[%s13813_s27 + $0x48] sm:$0xff] }
0x10c5   :  { %11633 = vrcp.f32 %v4377_v54  ;;  %v9252_v54 = vld [vmem:[%s13813_s27 + $0x40] sm:$0xff] }
0x10c6   :  { %11635 = vrcp.f32 %v4384_v59  ;;  %v11213_v59 = vpack.c.bf16 %v9253_v57, %v9252_v54  ;;  %v9242_v54 = vld [vmem:[#allocation24] ss:$0 sm:$0xff] }
0x10cf   :  { %v11634_v60 = vpop.eup %11633 }
0x10d0   :  { %v4387_v62 = vmul.f32 %v11634_v60, %v4370_v55  ;;  %v11636_v37 = vpop.eup %11635  ;;  %v402_v55 = vld [vmem:[#allocation13] sm:$0x3] }
0x10d1   :  { %v4390_v2 = vsub.f32 1.0, %v11636_v37  ;;  %v4392_v6 = vmul.f32 %v11636_v37, %v4155_v36  ;;  %vm403_vm7 = vcmp.gt.s32.totalorder %v402_v55, 0 }
0x10d2   :  { %v4388_v58 = vadd.f32 %v4387_v62, %v4159_v63  ;;  %v9109_v60 = vsel %vm403_vm7, 1.0, %v12225_v46  ;;  %vm7554_vm7 = vcmask 1041409  }
0x10d3   :  { %v407_v62 = vsel %vm406_vm6, %v9109_v60, 0.0 }
0x10d4   :  { %11637 = vtanh.f32 %v4388_v58  ;;  %408 = vadd.xlane.f32.xlu1 %v407_v62 }
0x10de   :  { %v11638_v3 = vpop.eup %11637 }
0x10df   :  { %v4391_v4 = vmul.f32 %v11638_v3, %v4390_v2 }
0x10e1   :  { %v4393_v7 = vadd.f32 %v4392_v6, %v4391_v4  ;;  %v4633_v4 = vld [vmem:[#allocation2 + $0xe] sm:$0x3] }
0x10e3   :  { %4394 = vst.msk [vmem:[#allocation5 + $0xa] sm:$0x3] %vm956_vm5, %v4393_v7  ;;  %10377 = vmatmul.mubr.msk.f32.vlgmr.msra.gmra.mrb[44].mxu0 %vm503_vm4, %v4393_v7  ;;  %10388 = vmatmul.mubr.msk.f32.vlgmr.msra.gmra.mrb[54].mxu1 %vm503_vm4, %v4393_v7 }
0x10e4   :  { %11175 = vmatpush3.bf16.msra.mxu0 %v12811_v19  ;;  %10398 = vmatprep.mubr.msk.f32.mxu0 %vm12224_vm2, %v12225_v46 }
0x10e5   :  { %11176 = vmatprep.subr.bf16.mxu0 %v12223_v41  ;;  %11181 = vmatpush3.bf16.msra.mxu1 %v12784_v5 }
0x10e6   :  { %11182 = vmatprep.subr.bf16.mxu1 %v12223_v41  ;;  %10409 = vmatprep.mubr.msk.f32.mxu1 %vm12224_vm2, %v12225_v46 }
0x10e8   :  { %11178 = vmatpush3.bf16.msra.mxu0 %v12825_v24 }
0x10e9   :  { %11185 = vmatprep.subr.bf16.mxu0 %v12223_v41  ;;  %11184 = vmatpush3.bf16.msra.mxu1 %v12793_v10  ;;  %v4395_v10 = vld [vmem:[#allocation2 + $0xc] sm:$0x3] }
0x10ea   :  { %11191 = vmatprep.subr.bf16.mxu1 %v12223_v41 }
0x10eb   :  { %10399 = vmatmul.mubr.msk.f32.vlgmr.msra.gmra.mrb[46].mxu0 %vm503_vm4, %v4393_v7 }
0x10ec   :  { %11187 = vmatpush3.bf16.msra.mxu0 %v12802_v61  ;;  %10420 = vmatprep.mubr.msk.f32.mxu0 %vm12224_vm2, %v12225_v46 }
0x10ed   :  { %11188 = vmatprep.subr.bf16.mxu0 %v12223_v41 }
0x10f0   :  { %11190 = vmatpush3.bf16.msra.mxu0 %v12819_v22 }
0x11b6   :  { %v4467_v5 = vpop.f32.mrb[44].mxu0  ;;  %v4537_v8 = vpop.f32.mrb[54].mxu1 }
0x11b7   :  { %v4468_v9 = vadd.f32 %v12854_v39, %v4467_v5  ;;  %v10378_v11 = vpop.f32.mrb[45].mxu0  ;;  %v10389_v12 = vpop.f32.mrb[55].mxu1  ;;  %v4538_v13 = vadd.f32 %v12859_v53, %v4537_v8  ;;  %v4634_v8 = vld [vmem:[#allocation3 + $0xe] sm:$0x3] }
0x11b9   :  { %v4611_v14 = vadd.f32 %v4468_v9, %v4395_v10  ;;  %v4618_v61 = vadd.f32 %v4538_v13, %v4396_v17 }
0x11bb   :  { %v9235_v15 = vmul.f32 -1.442695, %v4611_v14  ;;  %v9236_v21 = vmul.f32 -1.442695, %v4618_v61 }
0x11bd   :  { %11639 = vpow2.f32 %v9235_v15 }
0x11be   :  { %v4607_v18 = vpop.f32.mrb[46].mxu0  ;;  %11641 = vpow2.f32 %v9236_v21 }
0x11bf   :  { %v10400_v20 = vpop.f32.mrb[47].mxu0  ;;  %v4608_v27 = vadd.f32 %v12862_v1, %v4607_v18  ;;  %v4635_v18 = vld [vmem:[#allocation4 + $0xe] sm:$0x3] }
0x11c7   :  { %v11640_v25 = vpop.eup %11639 }
0x11c8   :  { %v4615_v22 = vadd.f32 1.0, %v11640_v25  ;;  %v11642_v0 = vpop.eup %11641 }
0x11c9   :  { %v4622_v26 = vadd.f32 1.0, %v11642_v0 }
0x11ca   :  { %11643 = vrcp.f32 %v4615_v22 }
0x11cb   :  { %11645 = vrcp.f32 %v4622_v26 }
0x11d4   :  { %v11644_v28 = vpop.eup %11643 }
0x11d5   :  { %v4625_v29 = vmul.f32 %v11644_v28, %v4608_v27  ;;  %v11646_v35 = vpop.eup %11645  ;;  %v5149_v28 = vld [vmem:[#allocation22] sm:$0xff] }
0x11d6   :  { %v4628_v36 = vsub.f32 1.0, %v11646_v35  ;;  %v4630_v43 = vmul.f32 %v11646_v35, %v4393_v7 }
0x11d7   :  { %v4626_v33 = vadd.f32 %v4625_v29, %v4397_v30  ;;  %v5150_v29 = vld [vmem:[#allocation22 + $0x8] sm:$0xff] }
0x11d8   :  { %v9255_v30 = vld [vmem:[%s13813_s27 + $0x58] sm:$0xff] }
0x11d9   :  { %11647 = vtanh.f32 %v4626_v33  ;;  %v13055_v33 = vpack.c.bf16 %v5150_v29, %v5149_v28 }
0x11e3   :  { %v11648_v38 = vpop.eup %11647 }
0x11e4   :  { %v4629_v40 = vmul.f32 %v11648_v38, %v4628_v36  ;;  %v5151_v38 = vld [vmem:[#allocation22 + $0x10] sm:$0xff] }
0x11e6   :  { %v13015_v44 = vadd.f32 %v4630_v43, %v4629_v40  ;;  %v5152_v40 = vld [vmem:[#allocation22 + $0x18] sm:$0xff] }
0x11e7   :  { %v13062_v43 = vpack.c.bf16 %v5152_v40, %v5151_v38 }
0x11e8   :  { %4632 = vst.msk [vmem:[#allocation5 + $0xc] sm:$0x3] %vm956_vm5, %v13015_v44  ;;  %10410 = vmatmul.mubr.msk.f32.vlgmr.msra.gmra.mrb[56].mxu1 %vm503_vm4, %v13015_v44  ;;  %10421 = vmatmul.mubr.msk.f32.vlgmr.msra.gmra.mrb[48].mxu0 %vm503_vm4, %v13015_v44 }
0x11e9   :  { %11193 = vmatpush3.bf16.msra.mxu1 %v12811_v19  ;;  %10442 = vmatprep.mubr.msk.f32.mxu0 %vm503_vm4, %v13023_v47  ;;  %v4875_v19 = vld [vmem:[%s13813_s27] sm:$0xff] }
0x11ea   :  { %11194 = vmatprep.subr.bf16.mxu1 %v12223_v41  ;;  %10431 = vmatprep.mubr.msk.f32.mxu1 %vm12224_vm2, %v12225_v46  ;;  %v11197_v42 = vpack.c.bf16 %v4876_v48, %v4875_v19  ;;  %v5155_v19 = vld [vmem:[#allocation22 + $0x28] sm:$0xff]  ;;  %v5159_v48 = vld [vmem:[#allocation22 + $0x40] sm:$0xff] }
0x11eb   :  { %v13074_v52 = vpack.c.bf16 %v5160_v49, %v5159_v48 }
0x11ec   :  { %11198 = vmatprep.subr.bf16.mxu0 %v11197_v42 }
0x11ed   :  { %11196 = vmatpush3.bf16.msra.mxu1 %v12825_v24  ;;  %v11209_v24 = vpack.c.bf16 %v9248_v23, %v9247_v56  ;;  %11200 = vmatpush3.bf16.msra.mxu0 %v11197_v42  ;;  %v13080_v56 = vpack.c.bf16 %v5157_v51, %v5156_v50 }
0x11ee   :  { %11206 = vmatprep.subr.bf16.mxu1 %v11205_v45  ;;  %11202 = vmatprep.subr.bf16.mxu0 %v11201_v16 }
0x11f0   :  { %10432 = vmatmul.mubr.msk.f32.vlgmr.msra.gmra.mrb[58].mxu1 %vm503_vm4, %v13015_v44 }
0x11f1   :  { %10453 = vmatprep.mubr.msk.f32.mxu1 %vm503_vm4, %v13023_v47  ;;  %11208 = vmatpush3.bf16.msra.mxu1 %v11205_v45  ;;  %v5161_v45 = vld [vmem:[#allocation22 + $0x50] sm:$0xff] }
0x11f2   :  { %11210 = vmatprep.subr.bf16.mxu1 %v11209_v24  ;;  %11204 = vmatpush3.bf16.msra.mxu0 %v11201_v16  ;;  %v5162_v16 = vld [vmem:[#allocation22 + $0x58] sm:$0xff] }
0x11f3   :  { %11214 = vmatprep.subr.bf16.mxu0 %v11213_v59  ;;  %v13086_v23 = vpack.c.bf16 %v5162_v16, %v5161_v45 }
0x11f5   :  { %11212 = vmatpush3.bf16.msra.mxu1 %v11209_v24  ;;  %v9249_v24 = vld [vmem:[#allocation24 + $0x1] ss:$0 sm:$0xff] }
0x11f6   :  { %11221 = vmatprep.subr.bf16.mxu1 %v12223_v41 }
0x12bb   :  { %v4705_v63 = vpop.f32.mrb[56].mxu1  ;;  %v4775_v58 = vpop.f32.mrb[48].mxu0 }
0x12bc   :  { %v4706_v37 = vadd.f32 %v12854_v39, %v4705_v63  ;;  %v10411_v2 = vpop.f32.mrb[57].mxu1  ;;  %v10422_v3 = vpop.f32.mrb[49].mxu0  ;;  %v4776_v6 = vadd.f32 %v12859_v53, %v4775_v58 }
0x12bd   :  { %v9256_v2 = vld [vmem:[#allocation24 + $0x2] ss:$0 sm:$0xff]  ;;  %v13115_v3 = vld [vmem:[#allocation25] ss:$0 sm:$0xff] }
0x12be   :  { %v4849_v7 = vadd.f32 %v4706_v37, %v4633_v4  ;;  %v4856_v9 = vadd.f32 %v4776_v6, %v4634_v8 }
0x12c0   :  { %v9240_v5 = vmul.f32 -1.442695, %v4849_v7  ;;  %v9241_v10 = vmul.f32 -1.442695, %v4856_v9 }
0x12c2   :  { %11649 = vpow2.f32 %v9240_v5 }
0x12c3   :  { %v4845_v11 = vpop.f32.mrb[58].mxu1  ;;  %11651 = vpow2.f32 %v9241_v10 }
0x12c4   :  { %v10433_v12 = vpop.f32.mrb[59].mxu1  ;;  %v4846_v39 = vadd.f32 %v12862_v1, %v4845_v11  ;;  %v9254_v1 = vld [vmem:[%s13813_s27 + $0x50] sm:$0xff] }
0x12c5   :  { %v11217_v35 = vpack.c.bf16 %v9255_v30, %v9254_v1 }
0x12cc   :  { %v11650_v13 = vpop.eup %11649 }
0x12cd   :  { %v4853_v14 = vadd.f32 1.0, %v11650_v13  ;;  %v11652_v15 = vpop.eup %11651 }
0x12ce   :  { %v4860_v17 = vadd.f32 1.0, %v11652_v15 }
0x12cf   :  { %11653 = vrcp.f32 %v4853_v14  ;;  %v13120_v14 = vld [vmem:[#allocation25 + $0x1] ss:$0 sm:$0xff] }
0x12d0   :  { %11655 = vrcp.f32 %v4860_v17 }
0x12d9   :  { %v11654_v61 = vpop.eup %11653 }
0x12da   :  { %v4863_v53 = vmul.f32 %v11654_v61, %v4846_v39  ;;  %v11656_v21 = vpop.eup %11655 }
0x12db   :  { %v4866_v25 = vsub.f32 1.0, %v11656_v21  ;;  %v4868_v0 = vmul.f32 %v11656_v21, %v13015_v44  ;;  %v5154_v44 = vld [vmem:[#allocation22 + $0x20] sm:$0xff] }
0x12dc   :  { %v4864_v20 = vadd.f32 %v4863_v53, %v4635_v18  ;;  %v13067_v42 = vpack.c.bf16 %v5155_v19, %v5154_v44 }
0x12de   :  { %11657 = vtanh.f32 %v4864_v20 }
0x12e8   :  { %v11658_v22 = vpop.eup %11657 }
0x12e9   :  { %v4867_v26 = vmul.f32 %v11658_v22, %v4866_v25 }
0x12eb   :  { %v4869_v27 = vadd.f32 %v4868_v0, %v4867_v26  ;;  %v13123_v26 = vld [vmem:[#allocation25 + $0x2] ss:$0 sm:$0xff] }
0x12ed   :  { %4870 = vst.msk [vmem:[#allocation5 + $0xe] sm:$0x3] %vm956_vm5, %v4869_v27 }
0x12f4   :  { %v4872_v36 = vld [vmem:[#allocation5 + $0x8] sm:$0xff] }
0x12f5   :  { %10443 = vmatmul.mubr.msk.f32.vlgmr.msra.gmra.mrb[50].mxu0 %vm503_vm4, %v4872_v36  ;;  %10454 = vmatmul.mubr.msk.f32.vlgmr.msra.gmra.mrb[60].mxu1 %vm503_vm4, %v4872_v36 }
0x12f6   :  { %11216 = vmatpush3.bf16.msra.mxu0 %v11213_v59  ;;  %10464 = vmatprep.mubr.msk.f32.mxu0 %vm503_vm4, %v13023_v47  ;;  %v13071_v47 = vld [vmem:[#allocation15 + $0x4] sm:$0x3] }
0x12f7   :  { %11223 = vmatpush3.bf16.msra.mxu1 %v13055_v33  ;;  %11218 = vmatprep.subr.bf16.mxu0 %v11217_v35 }
0x12f8   :  { %11224 = vmatprep.subr.bf16.mxu1 %v12223_v41  ;;  %10475 = vmatprep.mubr.msk.f32.mxu1 %vm12224_vm2, %v12225_v46 }
0x12fa   :  { %11220 = vmatpush3.bf16.msra.mxu0 %v11217_v35 }
0x12fb   :  { %11226 = vmatpush3.bf16.msra.mxu1 %v13062_v43  ;;  %11227 = vmatprep.subr.bf16.mxu0 %v12223_v41 }
0x12fc   :  { %11233 = vmatprep.subr.bf16.mxu1 %v12223_v41 }
0x12fd   :  { %10465 = vmatmul.mubr.msk.f32.vlgmr.msra.gmra.mrb[52].mxu0 %vm503_vm4, %v4872_v36  ;;  %v409_v36 = vpop.xlane.xlu1 %408 }
0x12fe   :  { %10476 = vmatmul.mubr.msk.f32.vlgmr.msra.gmra.mrb[62].mxu1 %vm503_vm4, %v13071_v47  ;;  %11229 = vmatpush3.bf16.msra.mxu0 %v13067_v42  ;;  %v13126_v38 = vmax.f32 %v409_v36, 1.0 }
0x12ff   :  { %11230 = vmatprep.subr.bf16.mxu0 %v12223_v41  ;;  %10486 = vmatprep.mubr.msk.f32.mxu0 %vm12224_vm2, %v12225_v46 }
0x1300   :  { %11235 = vmatpush3.bf16.msra.mxu1 %v13074_v52  ;;  %10497 = vmatprep.mubr.msk.f32.mxu1 %vm12224_vm2, %v12225_v46  ;;  %vm5423_vm8 = vcmp.gt.f32.partialorder %v13126_v38, 0.0  ;;  %vm5668_vm11 = vcmp.gt.f32.partialorder %v13126_v38, 1.0  ;;  %vm5911_vm12 = vcmp.gt.f32.partialorder %v13126_v38, 2.0  ;;  %vm6154_vm13 = vcmp.gt.f32.partialorder %v13126_v38, 3.0 }
0x1301   :  { %11236 = vmatprep.subr.bf16.mxu1 %v12223_v41  ;;  %v9267_v50 = vsel %vm5423_vm8, 1.0, %v12225_v46  ;;  %vm6397_vm14 = vcmp.gt.f32.partialorder %v13126_v38, 4.0  ;;  %vm6640_vm15 = vcmp.gt.f32.partialorder %v13126_v38, 5.0  ;;  %vm6883_vm0 = vcmp.gt.f32.partialorder %v13126_v38, 6.0 }
0x1302   :  { %11232 = vmatpush3.bf16.msra.mxu0 %v13080_v56  ;;  %vm7126_vm3 = vcmp.gt.f32.partialorder %v13126_v38, 7.0  ;;  %vm7556_vm8 = vcmask 1042434  }
0x1303   :  { %11239 = vmatprep.subr.bf16.mxu0 %v12223_v41 }
0x1304   :  { %11238 = vmatpush3.bf16.msra.mxu1 %v13086_v23 }
0x1305   :  { %10487 = vmatmul.mubr.msk.f32.vlgmr.msra.gmra.mrb[54].mxu0 %vm503_vm4, %v13071_v47  ;;  %11245 = vmatprep.subr.bf16.mxu1 %v12223_v41 }
0x1306   :  { %11241 = vmatpush3.bf16.msra.mxu0 %v13055_v33  ;;  %10508 = vmatprep.mubr.msk.f32.mxu0 %vm12224_vm2, %v12225_v46 }
0x1307   :  { %10498 = vmatmul.mubr.msk.f32.vlgmr.msra.gmra.mrb[64].mxu1 %vm503_vm4, %v13071_v47  ;;  %11242 = vmatprep.subr.bf16.mxu0 %v12223_v41 }
0x1308   :  { %11247 = vmatpush3.bf16.msra.mxu1 %v13067_v42  ;;  %10519 = vmatprep.mubr.msk.f32.mxu1 %vm12224_vm2, %v12225_v46 }
0x1309   :  { %11248 = vmatprep.subr.bf16.mxu1 %v12223_v41 }
0x130a   :  { %11244 = vmatpush3.bf16.msra.mxu0 %v13062_v43 }
0x130b   :  { %11251 = vmatprep.subr.bf16.mxu0 %v12223_v41 }
0x130c   :  { %11250 = vmatpush3.bf16.msra.mxu1 %v13080_v56 }
0x130d   :  { %11257 = vmatprep.subr.bf16.mxu1 %v12223_v41 }
0x13c8   :  { %v10444_v57 = vpop.f32.mrb[50].mxu0  ;;  %v10455_v59 = vpop.f32.mrb[60].mxu1 }
0x13c9   :  { %v4964_v55 = vadd.f32 %v10444_v57, %v9242_v54  ;;  %v5054_v60 = vadd.f32 %v10455_v59, %v9249_v24  ;;  %v4958_v62 = vpop.f32.mrb[51].mxu0  ;;  %v5048_v63 = vpop.f32.mrb[61].mxu1 }
0x13ca   :  { %v4959_v58 = vadd.f32 %v9242_v54, %v4958_v62  ;;  %v5049_v37 = vadd.f32 %v9249_v24, %v5048_v63 }
0x13cb   :  { %4968 = vst.msk [vmem:[#allocation2 + $0x8] sm:$0xff] %vm503_vm4, %v4964_v55  ;;  %5058 = vst.msk [vmem:[#allocation3 + $0x8] sm:$0xff] %vm503_vm4, %v5054_v60 }
0x13cc   :  { %4967 = vst.msk [vmem:[#allocation2] sm:$0xff] %vm503_vm4, %v4959_v58  ;;  %5057 = vst.msk [vmem:[#allocation3] sm:$0xff] %vm503_vm4, %v5049_v37 }
0x13d0   :  { %v10466_v4 = vpop.f32.mrb[52].mxu0 }
0x13d1   :  { %v5144_v6 = vadd.f32 %v10466_v4, %v9256_v2  ;;  %v5138_v7 = vpop.f32.mrb[53].mxu0  ;;  %v5246_v5 = vpop.f32.mrb[62].mxu1 }
0x13d2   :  { %v5139_v8 = vadd.f32 %v9256_v2, %v5138_v7  ;;  %v5247_v9 = vadd.f32 %v13115_v3, %v5246_v5  ;;  %v10477_v11 = vpop.f32.mrb[63].mxu1 }
0x13d3   :  { %5148 = vst.msk [vmem:[#allocation4 + $0x8] sm:$0xff] %vm503_vm4, %v5144_v6  ;;  %v5168_v12 = vld [vmem:[#allocation2] sm:$0x3]  ;;  %v5169_v61 = vld [vmem:[#allocation3] sm:$0x3] }
0x13d4   :  { %5147 = vst.msk [vmem:[#allocation4] sm:$0xff] %vm503_vm4, %v5139_v8  ;;  %v5402_v10 = vadd.f32 %v5247_v9, %v5168_v12  ;;  %v5431_v59 = vld [vmem:[#allocation2 + $0x2] sm:$0x3]  ;;  %v5432_v63 = vld [vmem:[#allocation3 + $0x2] sm:$0x3] }
0x13d5   :  { %v5675_v36 = vld [vmem:[#allocation3 + $0x4] sm:$0x3] }
0x13d6   :  { %v9265_v13 = vmul.f32 -1.442695, %v5402_v10 }
0x13d8   :  { %11659 = vpow2.f32 %v9265_v13  ;;  %v5322_v15 = vpop.f32.mrb[54].mxu0 }
0x13d9   :  { %v5323_v17 = vadd.f32 %v13120_v14, %v5322_v15  ;;  %v10488_v39 = vpop.f32.mrb[55].mxu0 }
0x13da   :  { %v5398_v53 = vpop.f32.mrb[64].mxu1 }
0x13db   :  { %v5409_v18 = vadd.f32 %v5323_v17, %v5169_v61  ;;  %v10499_v20 = vpop.f32.mrb[65].mxu1  ;;  %v5399_v28 = vadd.f32 %v13123_v26, %v5398_v53  ;;  %v5170_v30 = vld [vmem:[#allocation4] sm:$0x3]  ;;  %v5433_v10 = vld [vmem:[#allocation4 + $0x2] sm:$0x3] }
0x13dd   :  { %v9266_v21 = vmul.f32 -1.442695, %v5409_v18  ;;  %v9273_v18 = vsel %vm5668_vm11, 1.0, %v12225_v46  ;;  %vm7562_vm11 = vcmask 1045509  }
0x13df   :  { %11661 = vpow2.f32 %v9266_v21 }
0x13e2   :  { %v11660_v25 = vpop.eup %11659 }
0x13e3   :  { %v5406_v22 = vadd.f32 1.0, %v11660_v25 }
0x13e5   :  { %11663 = vrcp.f32 %v5406_v22 }
0x13e9   :  { %v11662_v0 = vpop.eup %11661 }
0x13ea   :  { %v5413_v27 = vadd.f32 1.0, %v11662_v0 }
0x13ec   :  { %11665 = vrcp.f32 %v5413_v27 }
0x13ef   :  { %v11664_v29 = vpop.eup %11663 }
0x13f0   :  { %v5416_v1 = vmul.f32 %v11664_v29, %v5399_v28  ;;  %v5674_v29 = vld [vmem:[#allocation2 + $0x4] sm:$0x3] }
0x13f2   :  { %v5417_v35 = vadd.f32 %v5416_v1, %v5170_v30 }
0x13f4   :  { %11667 = vtanh.f32 %v5417_v35 }
0x13f6   :  { %v11666_v40 = vpop.eup %11665 }
0x13f7   :  { %v5419_v44 = vsub.f32 1.0, %v11666_v40  ;;  %v5421_v49 = vmul.f32 %v11666_v40, %v13071_v47 }
0x13fe   :  { %v11668_v19 = vpop.eup %11667 }
0x13ff   :  { %v5420_v48 = vmul.f32 %v11668_v19, %v5419_v44 }
0x1401   :  { %v5422_v51 = vadd.f32 %v5421_v49, %v5420_v48 }
0x1403   :  { %v5426_v45 = vmul.f32 %v9267_v50, %v5422_v51  ;;  %10509 = vmatmul.mubr.msk.f32.vlgmr.msra.gmra.mrb[56].mxu0 %vm503_vm4, %v5422_v51  ;;  %10520 = vmatmul.mubr.msk.f32.vlgmr.msra.gmra.mrb[66].mxu1 %vm503_vm4, %v5422_v51 }
0x1404   :  { %11253 = vmatpush3.bf16.msra.mxu0 %v13074_v52  ;;  %10530 = vmatprep.mubr.msk.f32.mxu0 %vm12224_vm2, %v12225_v46 }
0x1405   :  { %5428 = vst.msk [vmem:[#allocation6] sm:$0x1] %vm5427_vm9, %v5426_v45  ;;  %11254 = vmatprep.subr.bf16.mxu0 %v12223_v41  ;;  %11259 = vmatpush3.bf16.msra.mxu1 %v13055_v33 }
0x1406   :  { %5430 = vst.msk [vmem:[#allocation6 + $0x7] sm:$0x2] %vm5429_vm10, %v5426_v45  ;;  %11260 = vmatprep.subr.bf16.mxu1 %v12223_v41  ;;  %10541 = vmatprep.mubr.msk.f32.mxu1 %vm12224_vm2, %v12225_v46 }
0x1408   :  { %11256 = vmatpush3.bf16.msra.mxu0 %v13086_v23 }
0x1409   :  { %11263 = vmatprep.subr.bf16.mxu0 %v12223_v41  ;;  %11262 = vmatpush3.bf16.msra.mxu1 %v13062_v43 }
0x140a   :  { %11269 = vmatprep.subr.bf16.mxu1 %v12223_v41 }
0x140b   :  { %10531 = vmatmul.mubr.msk.f32.vlgmr.msra.gmra.mrb[58].mxu0 %vm503_vm4, %v5422_v51 }
0x140c   :  { %11265 = vmatpush3.bf16.msra.mxu0 %v13067_v42  ;;  %10552 = vmatprep.mubr.msk.f32.mxu0 %vm12224_vm2, %v12225_v46 }
0x140d   :  { %11266 = vmatprep.subr.bf16.mxu0 %v12223_v41 }
0x1410   :  { %11268 = vmatpush3.bf16.msra.mxu0 %v13080_v56 }
0x1411   :  { %11275 = vmatprep.subr.bf16.mxu0 %v12223_v41 }
0x14d6   :  { %v5503_v47 = vpop.f32.mrb[56].mxu0  ;;  %v5573_v16 = vpop.f32.mrb[66].mxu1 }
0x14d7   :  { %v5504_v54 = vadd.f32 %v13115_v3, %v5503_v47  ;;  %v10510_v24 = vpop.f32.mrb[57].mxu0  ;;  %v10521_v57 = vpop.f32.mrb[67].mxu1  ;;  %v5574_v55 = vadd.f32 %v13120_v14, %v5573_v16 }
0x14d8   :  { %v5676_v24 = vld [vmem:[#allocation4 + $0x4] sm:$0x3] }
0x14d9   :  { %v5647_v60 = vadd.f32 %v5504_v54, %v5431_v59  ;;  %v5654_v58 = vadd.f32 %v5574_v55, %v5432_v63 }
0x14db   :  { %v9271_v62 = vmul.f32 -1.442695, %v5647_v60  ;;  %v9272_v4 = vmul.f32 -1.442695, %v5654_v58  ;;  %v9279_v58 = vsel %vm5911_vm12, 1.0, %v12225_v46  ;;  %vm7564_vm12 = vcmask 1046534  }
0x14dd   :  { %11669 = vpow2.f32 %v9271_v62 }
0x14de   :  { %v5643_v37 = vpop.f32.mrb[58].mxu0  ;;  %11671 = vpow2.f32 %v9272_v4 }
0x14df   :  { %v10532_v2 = vpop.f32.mrb[59].mxu0  ;;  %v5644_v9 = vadd.f32 %v13123_v26, %v5643_v37 }
0x14e7   :  { %v11670_v6 = vpop.eup %11669 }
0x14e8   :  { %v5651_v7 = vadd.f32 1.0, %v11670_v6  ;;  %v11672_v5 = vpop.eup %11671 }
0x14e9   :  { %v5658_v8 = vadd.f32 1.0, %v11672_v5 }
0x14ea   :  { %11673 = vrcp.f32 %v5651_v7 }
0x14eb   :  { %11675 = vrcp.f32 %v5658_v8 }
0x14f4   :  { %v11674_v11 = vpop.eup %11673 }
0x14f5   :  { %v5661_v12 = vmul.f32 %v11674_v11, %v5644_v9  ;;  %v11676_v15 = vpop.eup %11675  ;;  %v5917_v9 = vld [vmem:[#allocation2 + $0x6] sm:$0x3] }
0x14f6   :  { %v5664_v17 = vsub.f32 1.0, %v11676_v15  ;;  %v5666_v53 = vmul.f32 %v11676_v15, %v5422_v51 }
0x14f7   :  { %v5662_v13 = vadd.f32 %v5661_v12, %v5433_v10 }
0x14f9   :  { %11677 = vtanh.f32 %v5662_v13  ;;  %v5918_v13 = vld [vmem:[#allocation3 + $0x6] sm:$0x3] }
0x1503   :  { %v11678_v39 = vpop.eup %11677 }
0x1504   :  { %v5665_v61 = vmul.f32 %v11678_v39, %v5664_v17 }
0x1506   :  { %v5667_v20 = vadd.f32 %v5666_v53, %v5665_v61 }
0x1508   :  { %v5671_v21 = vmul.f32 %v9273_v18, %v5667_v20  ;;  %10542 = vmatmul.mubr.msk.f32.vlgmr.msra.gmra.mrb[68].mxu1 %vm503_vm4, %v5667_v20  ;;  %10553 = vmatmul.mubr.msk.f32.vlgmr.msra.gmra.mrb[60].mxu0 %vm503_vm4, %v5667_v20 }
0x1509   :  { %11271 = vmatpush3.bf16.msra.mxu1 %v13074_v52  ;;  %10563 = vmatprep.mubr.msk.f32.mxu1 %vm12224_vm2, %v12225_v46 }
0x150a   :  { %5672 = vst.msk [vmem:[#allocation6 + $0x1] sm:$0x1] %vm5427_vm9, %v5671_v21  ;;  %11272 = vmatprep.subr.bf16.mxu1 %v12223_v41  ;;  %11277 = vmatpush3.bf16.msra.mxu0 %v13055_v33 }
0x150b   :  { %5673 = vst.msk [vmem:[#allocation6 + $0x8] sm:$0x2] %vm5429_vm10, %v5671_v21  ;;  %11278 = vmatprep.subr.bf16.mxu0 %v12223_v41  ;;  %10574 = vmatprep.mubr.msk.f32.mxu0 %vm12224_vm2, %v12225_v46 }
0x150d   :  { %11274 = vmatpush3.bf16.msra.mxu1 %v13086_v23 }
0x150e   :  { %11281 = vmatprep.subr.bf16.mxu1 %v12223_v41  ;;  %11280 = vmatpush3.bf16.msra.mxu0 %v13062_v43 }
0x150f   :  { %11287 = vmatprep.subr.bf16.mxu0 %v12223_v41 }
0x1510   :  { %10564 = vmatmul.mubr.msk.f32.vlgmr.msra.gmra.mrb[70].mxu1 %vm503_vm4, %v5667_v20 }
0x1511   :  { %11283 = vmatpush3.bf16.msra.mxu1 %v13067_v42  ;;  %10585 = vmatprep.mubr.msk.f32.mxu1 %vm12224_vm2, %v12225_v46 }
0x1512   :  { %11284 = vmatprep.subr.bf16.mxu1 %v12223_v41 }
0x1515   :  { %11286 = vmatpush3.bf16.msra.mxu1 %v13080_v56 }
0x1516   :  { %11293 = vmatprep.subr.bf16.mxu1 %v12223_v41 }
0x15db   :  { %v5746_v25 = vpop.f32.mrb[68].mxu1  ;;  %v5816_v22 = vpop.f32.mrb[60].mxu0 }
0x15dc   :  { %v5747_v0 = vadd.f32 %v13115_v3, %v5746_v25  ;;  %v10543_v27 = vpop.f32.mrb[69].mxu1  ;;  %v10554_v28 = vpop.f32.mrb[61].mxu0  ;;  %v5817_v1 = vadd.f32 %v13120_v14, %v5816_v22 }
0x15dd   :  { %v5919_v27 = vld [vmem:[#allocation4 + $0x6] sm:$0x3] }
0x15de   :  { %v5890_v30 = vadd.f32 %v5747_v0, %v5674_v29  ;;  %v5897_v40 = vadd.f32 %v5817_v1, %v5675_v36 }
0x15e0   :  { %v9277_v35 = vmul.f32 -1.442695, %v5890_v30  ;;  %v9278_v48 = vmul.f32 -1.442695, %v5897_v40  ;;  %v9285_v40 = vsel %vm6154_vm13, 1.0, %v12225_v46  ;;  %vm7566_vm13 = vcmask 1047559  }
0x15e2   :  { %11679 = vpow2.f32 %v9277_v35 }
0x15e3   :  { %v5886_v44 = vpop.f32.mrb[70].mxu1  ;;  %11681 = vpow2.f32 %v9278_v48 }
0x15e4   :  { %v10565_v19 = vpop.f32.mrb[71].mxu1  ;;  %v5887_v47 = vadd.f32 %v13123_v26, %v5886_v44 }
0x15ec   :  { %v11680_v49 = vpop.eup %11679 }
0x15ed   :  { %v5894_v50 = vadd.f32 1.0, %v11680_v49  ;;  %v11682_v51 = vpop.eup %11681 }
0x15ee   :  { %v5901_v45 = vadd.f32 1.0, %v11682_v51 }
0x15ef   :  { %11683 = vrcp.f32 %v5894_v50 }
0x15f0   :  { %11685 = vrcp.f32 %v5901_v45 }
0x15f9   :  { %v11684_v16 = vpop.eup %11683 }
0x15fa   :  { %v5904_v54 = vmul.f32 %v11684_v16, %v5887_v47  ;;  %v11686_v59 = vpop.eup %11685  ;;  %v6160_v47 = vld [vmem:[#allocation2 + $0x8] sm:$0x3] }
0x15fb   :  { %v5907_v55 = vsub.f32 1.0, %v11686_v59  ;;  %v5909_v63 = vmul.f32 %v11686_v59, %v5667_v20 }
0x15fc   :  { %v5905_v57 = vadd.f32 %v5904_v54, %v5676_v24 }
0x15fe   :  { %11687 = vtanh.f32 %v5905_v57  ;;  %v6161_v57 = vld [vmem:[#allocation3 + $0x8] sm:$0x3] }
0x1608   :  { %v11688_v60 = vpop.eup %11687 }
0x1609   :  { %v5908_v62 = vmul.f32 %v11688_v60, %v5907_v55 }
0x160b   :  { %v5910_v37 = vadd.f32 %v5909_v63, %v5908_v62 }
0x160d   :  { %v5914_v2 = vmul.f32 %v9279_v58, %v5910_v37  ;;  %10575 = vmatmul.mubr.msk.f32.vlgmr.msra.gmra.mrb[62].mxu0 %vm503_vm4, %v5910_v37  ;;  %10586 = vmatmul.mubr.msk.f32.vlgmr.msra.gmra.mrb[72].mxu1 %vm503_vm4, %v5910_v37 }
0x160e   :  { %11289 = vmatpush3.bf16.msra.mxu0 %v13074_v52  ;;  %10596 = vmatprep.mubr.msk.f32.mxu0 %vm12224_vm2, %v12225_v46 }
0x160f   :  { %5915 = vst.msk [vmem:[#allocation6 + $0x2] sm:$0x1] %vm5427_vm9, %v5914_v2  ;;  %11290 = vmatprep.subr.bf16.mxu0 %v12223_v41  ;;  %11295 = vmatpush3.bf16.msra.mxu1 %v13055_v33 }
0x1610   :  { %5916 = vst.msk [vmem:[#allocation6 + $0x9] sm:$0x2] %vm5429_vm10, %v5914_v2  ;;  %11296 = vmatprep.subr.bf16.mxu1 %v12223_v41  ;;  %10607 = vmatprep.mubr.msk.f32.mxu1 %vm12224_vm2, %v12225_v46 }
0x1612   :  { %11292 = vmatpush3.bf16.msra.mxu0 %v13086_v23 }
0x1613   :  { %11299 = vmatprep.subr.bf16.mxu0 %v12223_v41  ;;  %11298 = vmatpush3.bf16.msra.mxu1 %v13062_v43 }
0x1614   :  { %11305 = vmatprep.subr.bf16.mxu1 %v12223_v41 }
0x1615   :  { %10597 = vmatmul.mubr.msk.f32.vlgmr.msra.gmra.mrb[64].mxu0 %vm503_vm4, %v5910_v37 }
0x1616   :  { %11301 = vmatpush3.bf16.msra.mxu0 %v13067_v42  ;;  %10618 = vmatprep.mubr.msk.f32.mxu0 %vm12224_vm2, %v12225_v46 }
0x1617   :  { %11302 = vmatprep.subr.bf16.mxu0 %v12223_v41 }
0x161a   :  { %11304 = vmatpush3.bf16.msra.mxu0 %v13080_v56 }
0x161b   :  { %11311 = vmatprep.subr.bf16.mxu0 %v12223_v41 }
0x16e0   :  { %v5989_v4 = vpop.f32.mrb[62].mxu0  ;;  %v6059_v6 = vpop.f32.mrb[72].mxu1 }
0x16e1   :  { %v5990_v7 = vadd.f32 %v13115_v3, %v5989_v4  ;;  %v10576_v5 = vpop.f32.mrb[63].mxu0  ;;  %v10587_v8 = vpop.f32.mrb[73].mxu1  ;;  %v6060_v11 = vadd.f32 %v13120_v14, %v6059_v6 }
0x16e2   :  { %v6162_v5 = vld [vmem:[#allocation4 + $0x8] sm:$0x3] }
0x16e3   :  { %v6133_v12 = vadd.f32 %v5990_v7, %v5917_v9  ;;  %v6140_v15 = vadd.f32 %v6060_v11, %v5918_v13 }
0x16e5   :  { %v9283_v10 = vmul.f32 -1.442695, %v6133_v12  ;;  %v9284_v61 = vmul.f32 -1.442695, %v6140_v15  ;;  %v9291_v15 = vsel %vm6397_vm14, 1.0, %v12225_v46  ;;  %vm7569_vm14 = vcmask 64512  }
0x16e7   :  { %11689 = vpow2.f32 %v9283_v10 }
0x16e8   :  { %v6129_v17 = vpop.f32.mrb[64].mxu0  ;;  %11691 = vpow2.f32 %v9284_v61 }
0x16e9   :  { %v10598_v39 = vpop.f32.mrb[65].mxu0  ;;  %v6130_v25 = vadd.f32 %v13123_v26, %v6129_v17 }
0x16f1   :  { %v11690_v53 = vpop.eup %11689 }
0x16f2   :  { %v6137_v18 = vadd.f32 1.0, %v11690_v53  ;;  %v11692_v20 = vpop.eup %11691 }
0x16f3   :  { %v6144_v21 = vadd.f32 1.0, %v11692_v20 }
0x16f4   :  { %11693 = vrcp.f32 %v6137_v18 }
0x16f5   :  { %11695 = vrcp.f32 %v6144_v21 }
0x16fe   :  { %v11694_v22 = vpop.eup %11693 }
0x16ff   :  { %v6147_v0 = vmul.f32 %v11694_v22, %v6130_v25  ;;  %v11696_v29 = vpop.eup %11695  ;;  %v6403_v25 = vld [vmem:[#allocation2 + $0xa] sm:$0x3] }
0x1700   :  { %v6150_v1 = vsub.f32 1.0, %v11696_v29  ;;  %v6152_v36 = vmul.f32 %v11696_v29, %v5910_v37 }
0x1701   :  { %v6148_v28 = vadd.f32 %v6147_v0, %v5919_v27 }
0x1703   :  { %11697 = vtanh.f32 %v6148_v28  ;;  %v6404_v28 = vld [vmem:[#allocation3 + $0xa] sm:$0x3] }
0x170d   :  { %v11698_v30 = vpop.eup %11697 }
0x170e   :  { %v6151_v35 = vmul.f32 %v11698_v30, %v6150_v1 }
0x1710   :  { %v6153_v44 = vadd.f32 %v6152_v36, %v6151_v35 }
0x1712   :  { %v6157_v19 = vmul.f32 %v9285_v40, %v6153_v44  ;;  %10608 = vmatmul.mubr.msk.f32.vlgmr.msra.gmra.mrb[74].mxu1 %vm503_vm4, %v6153_v44  ;;  %10619 = vmatmul.mubr.msk.f32.vlgmr.msra.gmra.mrb[66].mxu0 %vm503_vm4, %v6153_v44 }
0x1713   :  { %11307 = vmatpush3.bf16.msra.mxu1 %v13074_v52  ;;  %10629 = vmatprep.mubr.msk.f32.mxu1 %vm12224_vm2, %v12225_v46 }
0x1714   :  { %6158 = vst.msk [vmem:[#allocation6 + $0x3] sm:$0x1] %vm5427_vm9, %v6157_v19  ;;  %11308 = vmatprep.subr.bf16.mxu1 %v12223_v41  ;;  %11313 = vmatpush3.bf16.msra.mxu0 %v13055_v33 }
0x1715   :  { %6159 = vst.msk [vmem:[#allocation6 + $0xa] sm:$0x2] %vm5429_vm10, %v6157_v19  ;;  %11314 = vmatprep.subr.bf16.mxu0 %v12223_v41  ;;  %10640 = vmatprep.mubr.msk.f32.mxu0 %vm12224_vm2, %v12225_v46 }
0x1717   :  { %11310 = vmatpush3.bf16.msra.mxu1 %v13086_v23 }
0x1718   :  { %11317 = vmatprep.subr.bf16.mxu1 %v12223_v41  ;;  %11316 = vmatpush3.bf16.msra.mxu0 %v13062_v43 }
0x1719   :  { %11323 = vmatprep.subr.bf16.mxu0 %v12223_v41 }
0x171a   :  { %10630 = vmatmul.mubr.msk.f32.vlgmr.msra.gmra.mrb[76].mxu1 %vm503_vm4, %v6153_v44 }
0x171b   :  { %11319 = vmatpush3.bf16.msra.mxu1 %v13067_v42  ;;  %10651 = vmatprep.mubr.msk.f32.mxu1 %vm12224_vm2, %v12225_v46 }
0x171c   :  { %11320 = vmatprep.subr.bf16.mxu1 %v12223_v41 }
0x171f   :  { %11322 = vmatpush3.bf16.msra.mxu1 %v13080_v56 }
0x1720   :  { %11329 = vmatprep.subr.bf16.mxu1 %v12223_v41 }
0x17e5   :  { %v6232_v48 = vpop.f32.mrb[74].mxu1  ;;  %v6302_v49 = vpop.f32.mrb[66].mxu0 }
0x17e6   :  { %v6233_v50 = vadd.f32 %v13115_v3, %v6232_v48  ;;  %v10609_v51 = vpop.f32.mrb[75].mxu1  ;;  %v10620_v45 = vpop.f32.mrb[67].mxu0  ;;  %v6303_v16 = vadd.f32 %v13120_v14, %v6302_v49 }
0x17e7   :  { %v6405_v51 = vld [vmem:[#allocation4 + $0xa] sm:$0x3] }
0x17e8   :  { %v6376_v54 = vadd.f32 %v6233_v50, %v6160_v47  ;;  %v6383_v59 = vadd.f32 %v6303_v16, %v6161_v57 }
0x17ea   :  { %v9289_v24 = vmul.f32 -1.442695, %v6376_v54  ;;  %v9290_v62 = vmul.f32 -1.442695, %v6383_v59  ;;  %v9297_v59 = vsel %vm6640_vm15, 1.0, %v12225_v46 }
0x17ec   :  { %11699 = vpow2.f32 %v9289_v24 }
0x17ed   :  { %v6372_v55 = vpop.f32.mrb[76].mxu1  ;;  %11701 = vpow2.f32 %v9290_v62 }
0x17ee   :  { %v10631_v60 = vpop.f32.mrb[77].mxu1  ;;  %v6373_v4 = vadd.f32 %v13123_v26, %v6372_v55 }
0x17f6   :  { %v11700_v63 = vpop.eup %11699 }
0x17f7   :  { %v6380_v58 = vadd.f32 1.0, %v11700_v63  ;;  %v11702_v37 = vpop.eup %11701 }
0x17f8   :  { %v6387_v2 = vadd.f32 1.0, %v11702_v37 }
0x17f9   :  { %11703 = vrcp.f32 %v6380_v58 }
0x17fa   :  { %11705 = vrcp.f32 %v6387_v2 }
0x1803   :  { %v11704_v6 = vpop.eup %11703 }
0x1804   :  { %v6390_v7 = vmul.f32 %v11704_v6, %v6373_v4  ;;  %v11706_v9 = vpop.eup %11705 }
0x1805   :  { %v6393_v11 = vsub.f32 1.0, %v11706_v9  ;;  %v6395_v13 = vmul.f32 %v11706_v9, %v6153_v44 }
0x1806   :  { %v6391_v8 = vadd.f32 %v6390_v7, %v6162_v5  ;;  %v6647_v7 = vld [vmem:[#allocation3 + $0xc] sm:$0x3] }
0x1808   :  { %11707 = vtanh.f32 %v6391_v8 }
0x1812   :  { %v11708_v12 = vpop.eup %11707 }
0x1813   :  { %v6394_v10 = vmul.f32 %v11708_v12, %v6393_v11 }
0x1815   :  { %v6396_v17 = vadd.f32 %v6395_v13, %v6394_v10 }
0x1817   :  { %v6400_v39 = vmul.f32 %v9291_v15, %v6396_v17  ;;  %10641 = vmatmul.mubr.msk.f32.vlgmr.msra.gmra.mrb[68].mxu0 %vm503_vm4, %v6396_v17  ;;  %10652 = vmatmul.mubr.msk.f32.vlgmr.msra.gmra.mrb[78].mxu1 %vm503_vm4, %v6396_v17 }
0x1818   :  { %11325 = vmatpush3.bf16.msra.mxu0 %v13074_v52  ;;  %10662 = vmatprep.mubr.msk.f32.mxu0 %vm12224_vm2, %v12225_v46 }
0x1819   :  { %6401 = vst.msk [vmem:[#allocation6 + $0x4] sm:$0x1] %vm5427_vm9, %v6400_v39  ;;  %11326 = vmatprep.subr.bf16.mxu0 %v12223_v41  ;;  %11331 = vmatpush3.bf16.msra.mxu1 %v13055_v33 }
0x181a   :  { %6402 = vst.msk [vmem:[#allocation6 + $0xb] sm:$0x2] %vm5429_vm10, %v6400_v39  ;;  %11332 = vmatprep.subr.bf16.mxu1 %v12223_v41  ;;  %10673 = vmatprep.mubr.msk.f32.mxu1 %vm12224_vm2, %v12225_v46  ;;  %v6648_v39 = vld [vmem:[#allocation4 + $0xc] sm:$0x3] }
0x181c   :  { %11328 = vmatpush3.bf16.msra.mxu0 %v13086_v23 }
0x181d   :  { %11335 = vmatprep.subr.bf16.mxu0 %v12223_v41  ;;  %11334 = vmatpush3.bf16.msra.mxu1 %v13062_v43 }
0x181e   :  { %11341 = vmatprep.subr.bf16.mxu1 %v12223_v41 }
0x181f   :  { %10663 = vmatmul.mubr.msk.f32.vlgmr.msra.gmra.mrb[70].mxu0 %vm503_vm4, %v6396_v17 }
0x1820   :  { %11337 = vmatpush3.bf16.msra.mxu0 %v13067_v42  ;;  %10684 = vmatprep.mubr.msk.f32.mxu0 %vm12224_vm2, %v12225_v46 }
0x1821   :  { %11338 = vmatprep.subr.bf16.mxu0 %v12223_v41 }
0x1824   :  { %11340 = vmatpush3.bf16.msra.mxu0 %v13080_v56 }
0x1825   :  { %11347 = vmatprep.subr.bf16.mxu0 %v12223_v41 }
0x18ea   :  { %v6475_v61 = vpop.f32.mrb[68].mxu0  ;;  %v6545_v53 = vpop.f32.mrb[78].mxu1 }
0x18eb   :  { %v6476_v18 = vadd.f32 %v13115_v3, %v6475_v61  ;;  %v10642_v20 = vpop.f32.mrb[69].mxu0  ;;  %v10653_v21 = vpop.f32.mrb[79].mxu1  ;;  %v6546_v22 = vadd.f32 %v13120_v14, %v6545_v53 }
0x18ed   :  { %v6619_v0 = vadd.f32 %v6476_v18, %v6403_v25  ;;  %v6626_v29 = vadd.f32 %v6546_v22, %v6404_v28  ;;  %v9303_v22 = vsel %vm6883_vm0, 1.0, %v12225_v46  ;;  %v7136_v28 = vld [vmem:[%s13814_s26] sm:$0xff] }
0x18ef   :  { %v9295_v27 = vmul.f32 -1.442695, %v6619_v0  ;;  %v9296_v35 = vmul.f32 -1.442695, %v6626_v29  ;;  %v7137_v29 = vld [vmem:[%s13814_s26 + $0x8] sm:$0xff] }
0x18f1   :  { %11709 = vpow2.f32 %v9295_v27 }
0x18f2   :  { %v6615_v1 = vpop.f32.mrb[70].mxu0  ;;  %11711 = vpow2.f32 %v9296_v35  ;;  %v7138_v35 = vld [vmem:[%s13814_s26 + $0x10] sm:$0xff] }
0x18f3   :  { %v10664_v30 = vpop.f32.mrb[71].mxu0  ;;  %v6616_v48 = vadd.f32 %v13123_v26, %v6615_v1  ;;  %v7226_v1 = vld [vmem:[#allocation27] sm:$0xff] }
0x18f4   :  { %v7227_v30 = vld [vmem:[#allocation27 + $0x8] sm:$0xff] }
0x18fb   :  { %v11710_v36 = vpop.eup %11709 }
0x18fc   :  { %v6623_v40 = vadd.f32 1.0, %v11710_v36  ;;  %v11712_v44 = vpop.eup %11711  ;;  %v7139_v36 = vld [vmem:[%s13814_s26 + $0x18] sm:$0xff] }
0x18fd   :  { %v6630_v19 = vadd.f32 1.0, %v11712_v44  ;;  %v11369_v44 = vpack.c.bf16 %v7139_v36, %v7138_v35 }
0x18fe   :  { %11713 = vrcp.f32 %v6623_v40  ;;  %v11381_v40 = vpack.c.bf16 %v7227_v30, %v7226_v1 }
0x18ff   :  { %11715 = vrcp.f32 %v6630_v19  ;;  %v7228_v19 = vld [vmem:[#allocation27 + $0x10] sm:$0xff] }
0x1908   :  { %v11714_v49 = vpop.eup %11713 }
0x1909   :  { %v6633_v50 = vmul.f32 %v11714_v49, %v6616_v48  ;;  %v11716_v47 = vpop.eup %11715  ;;  %v7229_v48 = vld [vmem:[#allocation27 + $0x18] sm:$0xff]  ;;  %v7141_v49 = vld [vmem:[%s13814_s26 + $0x28] sm:$0xff] }
0x190a   :  { %v6636_v16 = vsub.f32 1.0, %v11716_v47  ;;  %v6638_v57 = vmul.f32 %v11716_v47, %v6396_v17  ;;  %v7134_v47 = vld [vmem:[#allocation16] sm:$0xff] }
0x190b   :  { %v6634_v45 = vadd.f32 %v6633_v50, %v6405_v51  ;;  %v7142_v51 = vld [vmem:[%s13814_s26 + $0x30] sm:$0xff] }
0x190d   :  { %11717 = vtanh.f32 %v6634_v45  ;;  %v7143_v45 = vld [vmem:[%s13814_s26 + $0x38] sm:$0xff] }
0x1917   :  { %v11718_v54 = vpop.eup %11717 }
0x1918   :  { %v6637_v24 = vmul.f32 %v11718_v54, %v6636_v16  ;;  %v11377_v16 = vpack.c.bf16 %v7143_v45, %v7142_v51  ;;  %v7135_v54 = vld [vmem:[#allocation16 + $0x8] sm:$0xff] }
0x191a   :  { %v6639_v55 = vadd.f32 %v6638_v57, %v6637_v24 }
0x191c   :  { %v6643_v60 = vmul.f32 %v9297_v59, %v6639_v55  ;;  %10674 = vmatmul.mubr.msk.f32.vlgmr.msra.gmra.mrb[80].mxu1 %vm503_vm4, %v6639_v55  ;;  %10685 = vmatmul.mubr.msk.f32.vlgmr.msra.gmra.mrb[72].mxu0 %vm503_vm4, %v6639_v55 }
0x191d   :  { %11343 = vmatpush3.bf16.msra.mxu1 %v13074_v52  ;;  %10695 = vmatprep.mubr.msk.f32.mxu1 %vm12224_vm2, %v12225_v46 }
0x191e   :  { %6644 = vst.msk [vmem:[#allocation6 + $0x5] sm:$0x1] %vm5427_vm9, %v6643_v60  ;;  %11344 = vmatprep.subr.bf16.mxu1 %v12223_v41  ;;  %11349 = vmatpush3.bf16.msra.mxu0 %v13055_v33 }
0x191f   :  { %6645 = vst.msk [vmem:[#allocation6 + $0xc] sm:$0x2] %vm5429_vm10, %v6643_v60  ;;  %11350 = vmatprep.subr.bf16.mxu0 %v12223_v41  ;;  %10706 = vmatprep.mubr.msk.f32.mxu0 %vm12224_vm2, %v12225_v46 }
0x1921   :  { %11346 = vmatpush3.bf16.msra.mxu1 %v13086_v23 }
0x1922   :  { %11353 = vmatprep.subr.bf16.mxu1 %v12223_v41  ;;  %11352 = vmatpush3.bf16.msra.mxu0 %v13062_v43  ;;  %v6646_v43 = vld [vmem:[#allocation2 + $0xc] sm:$0x3] }
0x1923   :  { %11359 = vmatprep.subr.bf16.mxu0 %v12223_v41 }
0x1924   :  { %10696 = vmatmul.mubr.msk.f32.vlgmr.msra.gmra.mrb[82].mxu1 %vm503_vm4, %v6639_v55 }
0x1925   :  { %11355 = vmatpush3.bf16.msra.mxu1 %v13067_v42  ;;  %10717 = vmatprep.mubr.msk.f32.mxu1 %vm12224_vm2, %v12225_v46 }
0x1926   :  { %11356 = vmatprep.subr.bf16.mxu1 %v12223_v41 }
0x1929   :  { %11358 = vmatpush3.bf16.msra.mxu1 %v13080_v56 }
0x19ef   :  { %v6718_v33 = vpop.f32.mrb[80].mxu1  ;;  %v6788_v62 = vpop.f32.mrb[72].mxu0 }
0x19f0   :  { %v6719_v63 = vadd.f32 %v13115_v3, %v6718_v33  ;;  %v10675_v58 = vpop.f32.mrb[81].mxu1  ;;  %v10686_v37 = vpop.f32.mrb[73].mxu0  ;;  %v6789_v2 = vadd.f32 %v13120_v14, %v6788_v62  ;;  %v6889_v33 = vld [vmem:[#allocation2 + $0xe] sm:$0x3] }
0x19f1   :  { %v6890_v37 = vld [vmem:[#allocation3 + $0xe] sm:$0x3] }
0x19f2   :  { %v6862_v4 = vadd.f32 %v6719_v63, %v6646_v43  ;;  %v6869_v42 = vadd.f32 %v6789_v2, %v6647_v7 }
0x19f4   :  { %v9301_v6 = vmul.f32 -1.442695, %v6862_v4  ;;  %v9302_v9 = vmul.f32 -1.442695, %v6869_v42 }
0x19f6   :  { %11719 = vpow2.f32 %v9301_v6 }
0x19f7   :  { %v6858_v5 = vpop.f32.mrb[82].mxu1  ;;  %11721 = vpow2.f32 %v9302_v9 }
0x19f8   :  { %v10697_v8 = vpop.f32.mrb[83].mxu1  ;;  %v6859_v13 = vadd.f32 %v13123_v26, %v6858_v5 }
0x1a00   :  { %v11720_v11 = vpop.eup %11719 }
0x1a01   :  { %v6866_v56 = vadd.f32 1.0, %v11720_v11  ;;  %v11722_v12 = vpop.eup %11721 }
0x1a02   :  { %v6873_v10 = vadd.f32 1.0, %v11722_v12 }
0x1a03   :  { %11723 = vrcp.f32 %v6866_v56 }
0x1a04   :  { %11725 = vrcp.f32 %v6873_v10 }
0x1a0d   :  { %v11724_v15 = vpop.eup %11723 }
0x1a0e   :  { %v6876_v17 = vmul.f32 %v11724_v15, %v6859_v13  ;;  %v11726_v53 = vpop.eup %11725 }
0x1a0f   :  { %v6879_v18 = vsub.f32 1.0, %v11726_v53  ;;  %v6881_v25 = vmul.f32 %v11726_v53, %v6639_v55 }
0x1a10   :  { %v6877_v61 = vadd.f32 %v6876_v17, %v6648_v39  ;;  %v9309_v39 = vsel %vm7126_vm3, 1.0, %v12225_v46 }
0x1a12   :  { %11727 = vtanh.f32 %v6877_v61 }
0x1a1c   :  { %v11728_v20 = vpop.eup %11727 }
0x1a1d   :  { %v6880_v21 = vmul.f32 %v11728_v20, %v6879_v18 }
0x1a1f   :  { %v13298_v0 = vadd.f32 %v6881_v25, %v6880_v21  ;;  %v12226_v21 = vmov 1966171168  }
0x1a20   :  { %v7329_v25 = vunpack.c.l.s4 %v12226_v21 }
0x1a21   :  { %v6886_v27 = vmul.f32 %v9303_v22, %v13298_v0  ;;  %10707 = vmatmul.mubr.msk.f32.vlgmr.msra.gmra.mrb[74].mxu0 %vm503_vm4, %v13298_v0  ;;  %10718 = vmatmul.mubr.msk.f32.vlgmr.msra.gmra.mrb[84].mxu1 %vm503_vm4, %v13298_v0 }
0x1a22   :  { %11361 = vmatpush3.bf16.msra.mxu0 %v13074_v52  ;;  %10728 = vmatprep.mubr.msk.f32.mxu0 %vm12224_vm2, %v12225_v46  ;;  %v11365_v52 = vpack.c.bf16 %v7137_v29, %v7136_v28  ;;  %v7330_v22 = vunpack.c.0.s8 %v7329_v25 }
0x1a23   :  { %6887 = vst.msk [vmem:[#allocation6 + $0x6] sm:$0x1] %vm5427_vm9, %v6886_v27  ;;  %11362 = vmatprep.subr.bf16.mxu0 %v12223_v41  ;;  %v7140_v41 = vld [vmem:[%s13814_s26 + $0x20] sm:$0xff]  ;;  %10747 = vmatprep.mubr.msk.f32.mxu1 %vm7144_vm1, %v7134_v47 }
0x1a24   :  { %6888 = vst.msk [vmem:[#allocation6 + $0xd] sm:$0x2] %vm5429_vm10, %v6886_v27  ;;  %11366 = vmatprep.subr.bf16.mxu1 %v11365_v52  ;;  %v11373_v50 = vpack.c.bf16 %v7141_v49, %v7140_v41 }
0x1a25   :  { %11368 = vmatpush3.bf16.msra.mxu1 %v11365_v52 }
0x1a26   :  { %11364 = vmatpush3.bf16.msra.mxu0 %v13086_v23  ;;  %v11385_v23 = vpack.c.bf16 %v7229_v48, %v7228_v19  ;;  %11370 = vmatprep.subr.bf16.mxu1 %v11369_v44 }
0x1a27   :  { %11382 = vmatprep.subr.bf16.mxu0 %v11381_v40 }
0x1a29   :  { %10729 = vmatmul.mubr.msk.f32.vlgmr.msra.gmra.mrb[76].mxu0 %vm503_vm4, %v13298_v0  ;;  %11372 = vmatpush3.bf16.msra.mxu1 %v11369_v44 }
0x1a2a   :  { %11384 = vmatpush3.bf16.msra.mxu0 %v11381_v40  ;;  %11374 = vmatprep.subr.bf16.mxu1 %v11373_v50 }
0x1a2b   :  { %11386 = vmatprep.subr.bf16.mxu0 %v11385_v23 }
0x1a2d   :  { %11376 = vmatpush3.bf16.msra.mxu1 %v11373_v50 }
0x1a2e   :  { %11388 = vmatpush3.bf16.msra.mxu0 %v11385_v23  ;;  %11378 = vmatprep.subr.bf16.mxu1 %v11377_v16 }
0x1a2f   :  { %10761 = vmatprep.subr.mxu0 %v12225_v46 }
0x1a31   :  { %11380 = vmatpush3.bf16.msra.mxu1 %v11377_v16 }
0x1a32   :  { %10771 = vmatprep.subr.mxu1 %v12225_v46 }
0x1a34   :  { %10748 = vmatmul.mubr.msk.f32.vlgmr.msra.gmra.mrb[86].mxu1 %vm7144_vm1, %v7135_v54 }
0x1a35   :  { %10772 = vmatpush3.msra.mxu1 %v7135_v54  ;;  %10773 = vmatprep.mubr.msk.f32.mxu1 %vm12224_vm2, %v12225_v46 }
0x1af4   :  { %v6961_v24 = vpop.f32.mrb[74].mxu0  ;;  %v7031_v57 = vpop.f32.mrb[84].mxu1 }
0x1af5   :  { %v6962_v59 = vadd.f32 %v13115_v3, %v6961_v24  ;;  %v10708_v55 = vpop.f32.mrb[75].mxu0  ;;  %v10719_v60 = vpop.f32.mrb[85].mxu1  ;;  %v7032_v62 = vadd.f32 %v13120_v14, %v7031_v57  ;;  %v6891_v14 = vld [vmem:[#allocation4 + $0xe] sm:$0x3] }
0x1af7   :  { %v7105_v63 = vadd.f32 %v6962_v59, %v6889_v33  ;;  %v7112_v43 = vadd.f32 %v7032_v62, %v6890_v37 }
0x1af9   :  { %v9307_v58 = vmul.f32 -1.442695, %v7105_v63  ;;  %v9308_v6 = vmul.f32 -1.442695, %v7112_v43 }
0x1afb   :  { %11729 = vpow2.f32 %v9307_v58 }
0x1afc   :  { %v7101_v2 = vpop.f32.mrb[76].mxu0  ;;  %11731 = vpow2.f32 %v9308_v6 }
0x1afd   :  { %v10730_v4 = vpop.f32.mrb[77].mxu0  ;;  %v7102_v3 = vadd.f32 %v13123_v26, %v7101_v2 }
0x1b05   :  { %v11730_v7 = vpop.eup %11729 }
0x1b06   :  { %v7109_v42 = vadd.f32 1.0, %v11730_v7  ;;  %v11732_v5 = vpop.eup %11731 }
0x1b07   :  { %v7116_v8 = vadd.f32 1.0, %v11732_v5  ;;  %v13341_v38 = vpop.f32.mrb[86].mxu1 }
0x1b08   :  { %11733 = vrcp.f32 %v7109_v42  ;;  %v13343_v20 = vpop.f32.mrb[87].mxu1 }
0x1b09   :  { %11735 = vrcp.f32 %v7116_v8 }
0x1b12   :  { %v11734_v9 = vpop.eup %11733 }
0x1b13   :  { %v7119_v11 = vmul.f32 %v11734_v9, %v7102_v3  ;;  %v11736_v12 = vpop.eup %11735 }
0x1b14   :  { %v7122_v10 = vsub.f32 1.0, %v11736_v12  ;;  %v7124_v15 = vmul.f32 %v11736_v12, %v13298_v0  ;;  %v13346_v0 = vshrl.u32 %v297_v31, 7 }
0x1b15   :  { %v7120_v56 = vadd.f32 %v7119_v11, %v6891_v14 }
0x1b16   :  { %v7333_v27 = vsub.s32 %v7330_v22, %v13346_v0  ;;  %v13350_v30 = vsub.s32 0, %v13346_v0 }
0x1b17   :  { %11737 = vtanh.f32 %v7120_v56 }
0x1b21   :  { %v11738_v13 = vpop.eup %11737 }
0x1b22   :  { %v7123_v17 = vmul.f32 %v11738_v13, %v7122_v10 }
0x1b24   :  { %v7125_v61 = vadd.f32 %v7124_v15, %v7123_v17 }
0x1b26   :  { %v7129_v53 = vmul.f32 %v9309_v39, %v7125_v61 }
0x1b28   :  { %7130 = vst.msk [vmem:[#allocation6 + $0x7] sm:$0x1] %vm5427_vm9, %v7129_v53  ;;  %vm7558_vm9 = vcmask 1043459  }
0x1b29   :  { %7131 = vst.msk [vmem:[#allocation6 + $0xe] sm:$0x2] %vm5429_vm10, %v7129_v53  ;;  %vm7560_vm10 = vcmask 1044484  }
0x1b2f   :  { %v7132_v26 = vld [vmem:[#allocation6] sm:$0xff] }
0x1b30   :  { %v7133_v18 = vld [vmem:[#allocation6 + $0x8] sm:$0xff]  ;;  %10758 = vmatprep.mubr.msk.f32.mxu0 %vm503_vm4, %v7132_v26 }
0x1b31   :  { %10759 = vmatmul.mubr.msk.f32.vlgmr.msra.gmra.mrb[78].mxu0 %vm503_vm4, %v7133_v18 }
0x1b32   :  { %10762 = vmatpush3.msra.mxu0 %v7134_v47  ;;  %10763 = vmatprep.mubr.msk.f32.mxu0 %vm12224_vm2, %v12225_v46 }
0x1b33   :  { %10766 = vmatprep.subr.mxu0 %v12225_v46 }
0x1c04   :  { %v10760_v28 = vpop.f32.mrb[78].mxu0 }
0x1c05   :  { %v7982_v29 = vcombine.high %v10760_v28, %v10760_v28  ;;  %v7989_v1 = vrot.slane %v10760_v28, %v7333_v27  ;;  %v7302_v52 = vpop.f32.mrb[79].mxu0 }
0x1c06   :  { %v7327_v35 = vcombine.high %v7302_v52, %v7302_v52  ;;  %v7334_v36 = vrot.slane %v7302_v52, %v7333_v27  ;;  %v13384_v52 = vld [vmem:[#allocation28] ss:$0 sm:$0xff] }
0x1c07   :  { %v7996_v40 = vrot.slane %v7982_v29, %v7333_v27  ;;  %v7997_v44 = vcombine.high %v7989_v1, %v7989_v1  ;;  %v8005_v19 = vrot.slane %v7989_v1, %v7333_v27 }
0x1c08   :  { %v7341_v48 = vrot.slane %v7327_v35, %v7333_v27  ;;  %v7342_v41 = vcombine.high %v7334_v36, %v7334_v36  ;;  %v7350_v23 = vrot.slane %v7334_v36, %v7333_v27 }
0x1c09   :  { %v7998_v49 = vcombine.high %v7996_v40, %v7996_v40  ;;  %v8012_v31 = vrot.slane %v7996_v40, %v7333_v27  ;;  %v8019_v50 = vrot.slane %v7997_v44, %v7333_v27  ;;  %v8027_v51 = vcombine.high %v8005_v19, %v8005_v19 }
0x1c0a   :  { %v8034_v45 = vrot.slane %v8005_v19, %v13350_v30  ;;  %v7343_v47 = vcombine.high %v7341_v48, %v7341_v48  ;;  %v7357_v16 = vrot.slane %v7341_v48, %v7333_v27  ;;  %v7364_v54 = vrot.slane %v7342_v41, %v7333_v27 }
0x1c0b   :  { %v8026_v24 = vrot.slane %v7998_v49, %v7333_v27  ;;  %v8028_v57 = vcombine.high %v8012_v31, %v8012_v31  ;;  %v8029_v59 = vcombine.high %v8019_v50, %v8019_v50  ;;  %v8038_v55 = vrot.slane %v8019_v50, %v13350_v30 }
0x1c0c   :  { %v8042_v60 = vrot.slane %v8027_v51, %v13350_v30  ;;  %v8050_v33 = vrot.slane %v8012_v31, %v13350_v30  ;;  %v7371_v62 = vrot.slane %v7343_v47, %v7333_v27  ;;  %v7372_v63 = vcombine.high %v7350_v23, %v7350_v23 }
0x1c0d   :  { %v8030_v58 = vcombine.high %v8026_v24, %v8026_v24  ;;  %v8046_v37 = vrot.slane %v8029_v59, %v13350_v30  ;;  %v8054_v43 = vrot.slane %v8026_v24, %v13350_v30  ;;  %v8058_v2 = vrot.slane %v8028_v57, %v13350_v30 }
0x1c0e   :  { %v7373_v4 = vcombine.high %v7357_v16, %v7357_v16  ;;  %v7374_v6 = vcombine.high %v7364_v54, %v7364_v54  ;;  %v7375_v7 = vcombine.high %v7371_v62, %v7371_v62  ;;  %v7379_v42 = vrot.slane %v7350_v23, %v13350_v30 }
0x1c0f   :  { %v8062_v5 = vrot.slane %v8030_v58, %v13350_v30  ;;  %v7383_v8 = vrot.slane %v7364_v54, %v13350_v30  ;;  %v7387_v3 = vrot.slane %v7372_v63, %v13350_v30  ;;  %v7395_v9 = vrot.slane %v7357_v16, %v13350_v30 }
0x1c10   :  { %v7391_v11 = vrot.slane %v7374_v6, %v13350_v30  ;;  %v7399_v14 = vrot.slane %v7371_v62, %v13350_v30  ;;  %v7403_v56 = vrot.slane %v7373_v4, %v13350_v30  ;;  %v7407_v12 = vrot.slane %v7375_v7, %v13350_v30 }
0x1c11   :  { %v8071_v10 = vadd.f32 %v13341_v38, %v8034_v45  ;;  %v8075_v13 = vadd.f32 %v13341_v38, %v8050_v33  ;;  %v7416_v15 = vadd.f32 %v7379_v42, %v13343_v20  ;;  %v7417_v17 = vadd.f32 %v7383_v8, %v13343_v20  ;;  %v7470_v42 = vld [vmem:[#allocation10] sm:$0x1] }
0x1c12   :  { %v8072_v39 = vadd.f32 %v13341_v38, %v8038_v55  ;;  %v8076_v61 = vadd.f32 %v13341_v38, %v8054_v43  ;;  %v8073_v53 = vadd.f32 %v13341_v38, %v8042_v60  ;;  %v8077_v26 = vadd.f32 %v13341_v38, %v8058_v2 }
0x1c13   :  { %11739 = vtanh.f32 %v8071_v10  ;;  %v7418_v18 = vadd.f32 %v7387_v3, %v13343_v20  ;;  %v7420_v21 = vadd.f32 %v7395_v9, %v13343_v20  ;;  %v8074_v25 = vadd.f32 %v13341_v38, %v8046_v37 }
0x1c14   :  { %11741 = vtanh.f32 %v8075_v13  ;;  %v7419_v22 = vadd.f32 %v7391_v11, %v13343_v20  ;;  %v7421_v27 = vadd.f32 %v7399_v14, %v13343_v20  ;;  %v7422_v28 = vadd.f32 %v7403_v56, %v13343_v20 }
0x1c15   :  { %11743 = vtanh.f32 %v7416_v15  ;;  %v8078_v29 = vadd.f32 %v13341_v38, %v8062_v5  ;;  %v7423_v1 = vadd.f32 %v7407_v12, %v13343_v20  ;;  %vm7471_vm5 = vcmp.eq.s32.totalorder %v7470_v42, 0 }
0x1c16   :  { %11745 = vtanh.f32 %v7417_v17  ;;  %v7472_v56 = vsel %vm7471_vm5, -1e+30, %v12225_v46 }
0x1c17   :  { %11747 = vtanh.f32 %v8072_v39  ;;  %v7476_v13 = vrot.slane %v7472_v56, %v13350_v30 }
0x1c18   :  { %11749 = vtanh.f32 %v8076_v61 }
0x1c19   :  { %11751 = vtanh.f32 %v8073_v53 }
0x1c1a   :  { %11753 = vtanh.f32 %v8077_v26 }
0x1c1b   :  { %11755 = vtanh.f32 %v7418_v18 }
0x1c1c   :  { %11757 = vtanh.f32 %v7420_v21  ;;  %v8119_v21 = vld [vmem:[#allocation10 + $0x1] sm:$0x1] }
0x1c1d   :  { %v11740_v35 = vpop.eup %11739  ;;  %11759 = vtanh.f32 %v8074_v25  ;;  %vm8120_vm6 = vcmp.eq.s32.totalorder %v8119_v21, 0 }
0x1c1e   :  { %v11742_v36 = vpop.eup %11741  ;;  %v8087_v40 = vmul.f32 %v11740_v35, %v13384_v52  ;;  %11761 = vtanh.f32 %v7419_v22  ;;  %v8121_v25 = vsel %vm8120_vm6, -1e+30, %v12225_v46 }
0x1c1f   :  { %v11744_v44 = vpop.eup %11743  ;;  %v8091_v19 = vmul.f32 %v11742_v36, %v13384_v52  ;;  %11763 = vtanh.f32 %v7421_v27  ;;  %v8125_v22 = vrot.slane %v8121_v25, %v13350_v30 }
0x1c20   :  { %v11746_v48 = vpop.eup %11745  ;;  %v8095_v38 = vsel %vm503_vm4, %v8087_v40, 0.0  ;;  %v7438_v20 = vmul.f32 %v11744_v44, %v13384_v52  ;;  %11765 = vtanh.f32 %v7422_v28 }
0x1c21   :  { %v11748_v41 = vpop.eup %11747  ;;  %8096 = vadd.xlane.f32.xlu1 %v8095_v38  ;;  %v8107_v23 = vsel %vm503_vm4, %v8091_v19, 0.0  ;;  %v7439_v49 = vmul.f32 %v11746_v48, %v13384_v52  ;;  %11767 = vtanh.f32 %v8078_v29 }
0x1c22   :  { %v11750_v31 = vpop.eup %11749  ;;  %8108 = vadd.xlane.f32.xlu0 %v8107_v23  ;;  %v7446_v50 = vsel %vm503_vm4, %v7438_v20, 0.0  ;;  %v8088_v51 = vmul.f32 %v11748_v41, %v13384_v52  ;;  %11769 = vtanh.f32 %v7423_v1 }
0x1c23   :  { %v11752_v45 = vpop.eup %11751  ;;  %v7449_v47 = vsel %vm503_vm4, %v7439_v49, 0.0  ;;  %v8092_v16 = vmul.f32 %v11750_v31, %v13384_v52 }
0x1c24   :  { %v11754_v54 = vpop.eup %11753  ;;  %v8098_v24 = vsel %vm503_vm4, %v8088_v51, 0.0  ;;  %v8089_v57 = vmul.f32 %v11752_v45, %v13384_v52 }
0x1c25   :  { %7447 = vadd.xlane.f32.xlu1 %v7446_v50  ;;  %v11756_v59 = vpop.eup %11755  ;;  %v8110_v55 = vsel %vm503_vm4, %v8092_v16, 0.0  ;;  %v8093_v60 = vmul.f32 %v11754_v54, %v13384_v52 }
0x1c26   :  { %7450 = vadd.xlane.f32.xlu0 %v7449_v47  ;;  %v8101_v33 = vsel %vm503_vm4, %v8089_v57, 0.0  ;;  %v7440_v62 = vmul.f32 %v11756_v59, %v13384_v52  ;;  %v11758_v63 = vpop.eup %11757 }
0x1c27   :  { %v8113_v58 = vsel %vm503_vm4, %v8093_v60, 0.0  ;;  %v7442_v43 = vmul.f32 %v11758_v63, %v13384_v52  ;;  %v11760_v2 = vpop.eup %11759 }
0x1c28   :  { %v7452_v37 = vsel %vm503_vm4, %v7440_v62, 0.0  ;;  %v8090_v6 = vmul.f32 %v11760_v2, %v13384_v52  ;;  %v11762_v7 = vpop.eup %11761 }
0x1c29   :  { %8099 = vadd.xlane.f32.xlu1 %v8098_v24  ;;  %v7458_v4 = vsel %vm503_vm4, %v7442_v43, 0.0  ;;  %v7441_v8 = vmul.f32 %v11762_v7, %v13384_v52  ;;  %v11764_v3 = vpop.eup %11763 }
0x1c2a   :  { %8111 = vadd.xlane.f32.xlu0 %v8110_v55  ;;  %v8104_v5 = vsel %vm503_vm4, %v8090_v6, 0.0  ;;  %v7443_v11 = vmul.f32 %v11764_v3, %v13384_v52  ;;  %v11766_v14 = vpop.eup %11765  ;;  %v13472_v3 = vsub.s32 %v12502_v32, %v13346_v0 }
0x1c2b   :  { %v7455_v9 = vsel %vm503_vm4, %v7441_v8, 0.0  ;;  %v7444_v10 = vmul.f32 %v11766_v14, %v13384_v52  ;;  %v11768_v15 = vpop.eup %11767 }
0x1c2c   :  { %v7461_v12 = vsel %vm503_vm4, %v7443_v11, 0.0  ;;  %v8094_v39 = vmul.f32 %v11768_v15, %v13384_v52  ;;  %v11770_v61 = vpop.eup %11769 }
0x1c2d   :  { %8102 = vadd.xlane.f32.xlu1 %v8101_v33  ;;  %v7464_v17 = vsel %vm503_vm4, %v7444_v10, 0.0  ;;  %v7445_v26 = vmul.f32 %v11770_v61, %v13384_v52 }
0x1c2e   :  { %8114 = vadd.xlane.f32.xlu0 %v8113_v58  ;;  %v8116_v53 = vsel %vm503_vm4, %v8094_v39, 0.0 }
0x1c2f   :  { %v7467_v18 = vsel %vm503_vm4, %v7445_v26, 0.0 }
0x1c31   :  { %7453 = vadd.xlane.f32.xlu1 %v7452_v37 }
0x1c35   :  { %7459 = vadd.xlane.f32.xlu1 %v7458_v4 }
0x1c39   :  { %8105 = vadd.xlane.f32.xlu1 %v8104_v5 }
0x1c3d   :  { %7456 = vadd.xlane.f32.xlu1 %v7455_v9 }
0x1c41   :  { %7462 = vadd.xlane.f32.xlu1 %v7461_v12 }
0x1c44   :  { %7479 = vbcast.lane.b32.xlu0 %v7476_v13, 256 }
0x1c45   :  { %7465 = vadd.xlane.f32.xlu1 %v7464_v17 }
0x1c49   :  { %8117 = vadd.xlane.f32.xlu1 %v8116_v53 }
0x1c4d   :  { %7468 = vadd.xlane.f32.xlu1 %v7467_v18 }
0x1c5e   :  { %8128 = vbcast.lane.b32.xlu1 %v8125_v22, 256 }
0x1cae   :  { %v8097_v27 = vpop.xlane.xlu1 %8096 }
0x1caf   :  { %v8109_v28 = vpop.xlane.xlu0 %8108 }
0x1cb2   :  { %v7448_v29 = vpop.xlane.xlu1 %7447 }
0x1cb3   :  { %v7451_v1 = vpop.xlane.xlu0 %7450 }
0x1cb6   :  { %v8100_v35 = vpop.xlane.xlu1 %8099 }
0x1cb7   :  { %v8112_v36 = vpop.xlane.xlu0 %8111 }
0x1cba   :  { %v8103_v40 = vpop.xlane.xlu1 %8102 }
0x1cbb   :  { %v8115_v44 = vpop.xlane.xlu0 %8114 }
0x1cbe   :  { %v7454_v52 = vpop.xlane.xlu1 %7453 }
0x1cbf   :  { %v7480_v19 = vpop.permute.xlu0 %7479 }
0x1cc0   :  { %v13422_v48 = vadd.f32 %v7480_v19, %v7448_v29  ;;  %v13433_v54 = vadd.f32 %v7480_v19, %v7451_v1  ;;  %v13445_v55 = vadd.f32 %v7480_v19, %v7454_v52 }
0x1cc2   :  { %v7460_v38 = vpop.xlane.xlu1 %7459  ;;  %7499 = vperm.xlu1 %11498, %v13422_v48  }
0x1cc3   :  { %v13437_v24 = vadd.f32 %v7480_v19, %v7460_v38 }
0x1cc6   :  { %v8106_v20 = vpop.xlane.xlu1 %8105 }
0x1cca   :  { %v7457_v41 = vpop.xlane.xlu1 %7456 }
0x1ccb   :  { %v13443_v59 = vadd.f32 %v7480_v19, %v7457_v41 }
0x1cce   :  { %v7463_v23 = vpop.xlane.xlu1 %7462 }
0x1ccf   :  { %v13449_v60 = vadd.f32 %v7480_v19, %v7463_v23 }
0x1cd2   :  { %v7466_v49 = vpop.xlane.xlu1 %7465 }
0x1cd3   :  { %v13455_v62 = vadd.f32 %v7480_v19, %v7466_v49 }
0x1cd6   :  { %v8118_v31 = vpop.xlane.xlu1 %8117 }
0x1cda   :  { %v7469_v50 = vpop.xlane.xlu1 %7468 }
0x1cdb   :  { %v13461_v58 = vadd.f32 %v7480_v19, %v7469_v50 }
0x1cde   :  { %v8129_v51 = vpop.permute.xlu1 %8128 }
0x1cdf   :  { %v13425_v45 = vadd.f32 %v8129_v51, %v8100_v35  ;;  %v13427_v47 = vadd.f32 %v8129_v51, %v8097_v27  ;;  %v13431_v16 = vadd.f32 %v8129_v51, %v8103_v40  ;;  %v13439_v57 = vadd.f32 %v8129_v51, %v8109_v28 }
0x1ce0   :  { %v13451_v33 = vadd.f32 %v8129_v51, %v8106_v20  ;;  %v13457_v63 = vadd.f32 %v8129_v51, %v8112_v36  ;;  %v13463_v37 = vadd.f32 %v8129_v51, %v8115_v44  ;;  %v13467_v43 = vadd.f32 %v8129_v51, %v8118_v31 }
0x1ce1   :  { %8151 = vperm.xlu1 %11498, %v13425_v45   ;;  %8148 = vperm.xlu0 %11497, %v13427_v47  }
0x1ce5   :  { %8154 = vperm.xlu1 %11498, %v13431_v16   ;;  %7502 = vperm.xlu0 %11497, %v13433_v54  }
0x1ce9   :  { %8160 = vperm.xlu1 %11498, %v13439_v57   ;;  %7511 = vperm.xlu0 %11497, %v13437_v24  }
0x1ced   :  { %7505 = vperm.xlu1 %11498, %v13445_v55   ;;  %7508 = vperm.xlu0 %11497, %v13443_v59  }
0x1cf1   :  { %8157 = vperm.xlu1 %11498, %v13451_v33   ;;  %7514 = vperm.xlu0 %11497, %v13449_v60  }
0x1cf5   :  { %8163 = vperm.xlu1 %11498, %v13457_v63   ;;  %7517 = vperm.xlu0 %11497, %v13455_v62  }
0x1cf9   :  { %8166 = vperm.xlu1 %11498, %v13463_v37   ;;  %7520 = vperm.xlu0 %11497, %v13461_v58  }
0x1cfd   :  { %8169 = vperm.xlu0 %11497, %v13467_v43  }
0x1d41   :  { %v7500_v2 = vpop.permute.xlu1 %7499 }
0x1d42   :  { %v7525_v56 = vrot.slane %v7500_v2, %v13472_v3 }
0x1d60   :  { %v8149_v4 = vpop.permute.xlu0 %8148  ;;  %v8152_v6 = vpop.permute.xlu1 %8151 }
0x1d61   :  { %v8174_v61 = vrot.slane %v8149_v4, %v13472_v3  ;;  %v8178_v53 = vrot.slane %v8152_v6, %v13472_v3 }
0x1d63   :  { %v8203_v35 = vsel %vm7554_vm7, %v8178_v53, %v8174_v61  ;;  %v13527_v61 = vsub.s32 4, %v13346_v0 }
0x1d64   :  { %v7503_v7 = vpop.permute.xlu0 %7502  ;;  %v8155_v42 = vpop.permute.xlu1 %8154 }
0x1d65   :  { %v7529_v9 = vrot.slane %v7503_v7, %v13472_v3  ;;  %v8182_v18 = vrot.slane %v8155_v42, %v13472_v3 }
0x1d67   :  { %v7555_v10 = vsel %vm7554_vm7, %v7529_v9, %v7525_v56  ;;  %v8204_v36 = vsel %vm7556_vm8, %v8182_v18, %v8203_v35  ;;  %v13514_v56 = vsub.s32 2, %v13346_v0 }
0x1d68   :  { %v7512_v5 = vpop.permute.xlu0 %7511  ;;  %v8161_v8 = vpop.permute.xlu1 %8160 }
0x1d69   :  { %v7541_v21 = vrot.slane %v7512_v5, %v13472_v3  ;;  %v8190_v41 = vrot.slane %v8161_v8, %v13472_v3  ;;  %v13507_v8 = vsub.s32 1, %v13346_v0 }
0x1d6c   :  { %v7509_v11 = vpop.permute.xlu0 %7508  ;;  %v7506_v14 = vpop.permute.xlu1 %7505 }
0x1d6d   :  { %v7533_v12 = vrot.slane %v7506_v14, %v13472_v3  ;;  %v7537_v13 = vrot.slane %v7509_v11, %v13472_v3 }
0x1d6f   :  { %v7557_v15 = vsel %vm7556_vm8, %v7533_v12, %v7555_v10  ;;  %v13519_v10 = vsub.s32 3, %v13346_v0 }
0x1d70   :  { %v7515_v17 = vpop.permute.xlu0 %7514  ;;  %v8158_v39 = vpop.permute.xlu1 %8157  ;;  %v7559_v26 = vsel %vm7558_vm9, %v7537_v13, %v7557_v15 }
0x1d71   :  { %v7545_v27 = vrot.slane %v7515_v17, %v13472_v3  ;;  %v8186_v28 = vrot.slane %v8158_v39, %v13472_v3  ;;  %v7561_v29 = vsel %vm7560_vm10, %v7541_v21, %v7559_v26 }
0x1d73   :  { %v7563_v52 = vsel %vm7562_vm11, %v7545_v27, %v7561_v29  ;;  %v8205_v19 = vsel %vm7558_vm9, %v8186_v28, %v8204_v36  ;;  %v13535_v27 = vsub.s32 5, %v13346_v0 }
0x1d74   :  { %v7518_v25 = vpop.permute.xlu0 %7517  ;;  %v8164_v22 = vpop.permute.xlu1 %8163  ;;  %v8206_v50 = vsel %vm7560_vm10, %v8190_v41, %v8205_v19  ;;  %v13550_v19 = vsub.s32 7, %v13346_v0 }
0x1d75   :  { %v7549_v1 = vrot.slane %v7518_v25, %v13472_v3  ;;  %v8194_v38 = vrot.slane %v8164_v22, %v13472_v3 }
0x1d77   :  { %v7565_v49 = vsel %vm7564_vm12, %v7549_v1, %v7563_v52  ;;  %v8207_v4 = vsel %vm7562_vm11, %v8194_v38, %v8206_v50 }
0x1d78   :  { %v7521_v40 = vpop.permute.xlu0 %7520  ;;  %v8167_v44 = vpop.permute.xlu1 %8166 }
0x1d79   :  { %v7553_v20 = vrot.slane %v7521_v40, %v13472_v3  ;;  %v8198_v23 = vrot.slane %v8167_v44, %v13472_v3 }
0x1d7b   :  { %v7567_v31 = vsel %vm7566_vm13, %v7553_v20, %v7565_v49  ;;  %v8208_v7 = vsel %vm7564_vm12, %v8198_v23, %v8207_v4 }
0x1d7c   :  { %v8170_v51 = vpop.permute.xlu0 %8169  ;;  %v7570_v2 = vsel %vm7569_vm14, %v7567_v31, -inf }
0x1d7d   :  { %v8202_v6 = vrot.slane %v8170_v51, %v13472_v3  ;;  %7571 = vmax.xlane.f32.xlu1 %v7570_v2 }
0x1d7f   :  { %v8209_v42 = vsel %vm7566_vm13, %v8202_v6, %v8208_v7 }
0x1d80   :  { %v8211_v5 = vsel %vm7569_vm14, %v8209_v42, -inf }
0x1d81   :  { %8212 = vmax.xlane.f32.xlu0 %v8211_v5 }
0x1e0a   :  { %v7572_v9 = vpop.xlane.xlu1 %7571 }
0x1e0b   :  { %v7577_v13 = vrot.slane %v7572_v9, %v13350_v30  ;;  %v7589_v53 = vrot.slane %v7572_v9, %v13519_v10  ;;  %v7597_v35 = vrot.slane %v7572_v9, %v13535_v27  ;;  %v7585_v41 = vrot.slane %v7572_v9, %v13514_v56 }
0x1e0d   :  { %v7614_v26 = vsub.f32 %v13422_v48, %v7577_v13  ;;  %v7619_v38 = vsub.f32 %v13449_v60, %v7597_v35  ;;  %v7616_v50 = vsub.f32 %v13445_v55, %v7585_v41 }
0x1e0e   :  { %v13509_v11 = vpop.xlane.xlu0 %8212 }
0x1e0f   :  { %v8218_v14 = vrot.slane %v13509_v11, %v13350_v30  ;;  %v8222_v12 = vrot.slane %v13509_v11, %v13507_v8  ;;  %v8226_v15 = vrot.slane %v13509_v11, %v13514_v56  ;;  %v8230_v18 = vrot.slane %v13509_v11, %v13519_v10 }
0x1e10   :  { %v7622_v28 = vmul.f32 1.442695, %v7614_v26  ;;  %v8234_v29 = vrot.slane %v13509_v11, %v13527_v61  ;;  %v7632_v60 = vmul.f32 1.442695, %v7619_v38  ;;  %v8246_v7 = vrot.slane %v13509_v11, %v13550_v19 }
0x1e11   :  { %v8255_v17 = vsub.f32 %v13427_v47, %v8218_v14  ;;  %v8256_v39 = vsub.f32 %v13425_v45, %v8222_v12  ;;  %v8257_v21 = vsub.f32 %v13431_v16, %v8226_v15  ;;  %v7593_v47 = vrot.slane %v7572_v9, %v13527_v61 }
0x1e12   :  { %v7617_v45 = vsub.f32 %v13443_v59, %v7589_v53  ;;  %v8258_v48 = vsub.f32 %v13451_v33, %v8230_v18  ;;  %v13543_v16 = vsub.s32 6, %v13346_v0  ;;  %v7581_v59 = vrot.slane %v7572_v9, %v13507_v8 }
0x1e13   :  { %v8263_v25 = vmul.f32 1.442695, %v8255_v17  ;;  %v8265_v22 = vmul.f32 1.442695, %v8256_v39  ;;  %v8267_v1 = vmul.f32 1.442695, %v8257_v21  ;;  %v7618_v36 = vsub.f32 %v13437_v24, %v7593_v47 }
0x1e14   :  { %v7628_v40 = vmul.f32 1.442695, %v7617_v45  ;;  %v8259_v44 = vsub.f32 %v13439_v57, %v8234_v29  ;;  %v8269_v52 = vmul.f32 1.442695, %v8258_v48  ;;  %v7601_v33 = vrot.slane %v7572_v9, %v13543_v16 }
0x1e15   :  { %11771 = vpow2.f32 %v8263_v25  ;;  %v7630_v20 = vmul.f32 1.442695, %v7618_v36  ;;  %v7615_v24 = vsub.f32 %v13433_v54, %v7581_v59  ;;  %v7605_v0 = vrot.slane %v7572_v9, %v13550_v19 }
0x1e16   :  { %11773 = vpow2.f32 %v8265_v22  ;;  %v8271_v23 = vmul.f32 1.442695, %v8259_v44  ;;  %v7620_v31 = vsub.f32 %v13455_v62, %v7601_v33  ;;  %v8238_v54 = vrot.slane %v13509_v11, %v13535_v27 }
0x1e17   :  { %11775 = vpow2.f32 %v7622_v28  ;;  %v7624_v51 = vmul.f32 1.442695, %v7615_v24  ;;  %v7621_v6 = vsub.f32 %v13461_v58, %v7605_v0  ;;  %v7626_v55 = vmul.f32 1.442695, %v7616_v50 }
0x1e18   :  { %11777 = vpow2.f32 %v8267_v1  ;;  %v7634_v62 = vmul.f32 1.442695, %v7620_v31  ;;  %v8242_v42 = vrot.slane %v13509_v11, %v13543_v16  ;;  %v8260_v5 = vsub.f32 %v13457_v63, %v8238_v54 }
0x1e19   :  { %11779 = vpow2.f32 %v7628_v40  ;;  %v7636_v58 = vmul.f32 1.442695, %v7621_v6  ;;  %v8262_v12 = vsub.f32 %v13467_v43, %v8246_v7 }
0x1e1a   :  { %11781 = vpow2.f32 %v8269_v52  ;;  %v8261_v13 = vsub.f32 %v13463_v37, %v8242_v42  ;;  %v8273_v15 = vmul.f32 1.442695, %v8260_v5 }
0x1e1b   :  { %11783 = vpow2.f32 %v7630_v20  ;;  %v8277_v63 = vmul.f32 1.442695, %v8262_v12 }
0x1e1c   :  { %11785 = vpow2.f32 %v8271_v23  ;;  %v8275_v39 = vmul.f32 1.442695, %v8261_v13 }
0x1e1d   :  { %11787 = vpow2.f32 %v7632_v60 }
0x1e1e   :  { %11789 = vpow2.f32 %v7624_v51 }
0x1e1f   :  { %v13556_v49 = vpop.eup %11771  ;;  %11791 = vpow2.f32 %v7634_v62 }
0x1e20   :  { %v13558_v57 = vpop.eup %11773  ;;  %8288 = vperm.xlu0 %11497, %v13556_v49   ;;  %11793 = vpow2.f32 %v7626_v55 }
0x1e21   :  { %8291 = vperm.xlu1 %11498, %v13558_v57   ;;  %v13567_v2 = vpop.eup %11775  ;;  %11795 = vpow2.f32 %v7636_v58 }
0x1e22   :  { %v13569_v4 = vpop.eup %11777  ;;  %11797 = vpow2.f32 %v8273_v15 }
0x1e23   :  { %v13579_v9 = vpop.eup %11779  ;;  %11799 = vpow2.f32 %v8277_v63 }
0x1e24   :  { %7647 = vperm.xlu0 %11497, %v13567_v2   ;;  %v13581_v14 = vpop.eup %11781  ;;  %11801 = vpow2.f32 %v8275_v39 }
0x1e25   :  { %8294 = vperm.xlu1 %11498, %v13569_v4   ;;  %v13587_v17 = vpop.eup %11783 }
0x1e26   :  { %v13589_v11 = vpop.eup %11785 }
0x1e27   :  { %v13593_v53 = vpop.eup %11787 }
0x1e28   :  { %7656 = vperm.xlu0 %11497, %v13579_v9   ;;  %v13595_v43 = vpop.eup %11789 }
0x1e29   :  { %8297 = vperm.xlu1 %11498, %v13581_v14   ;;  %v13599_v37 = vpop.eup %11791 }
0x1e2a   :  { %v13601_v26 = vpop.eup %11793 }
0x1e2b   :  { %v13605_v18 = vpop.eup %11795 }
0x1e2c   :  { %7659 = vperm.xlu0 %11497, %v13587_v17   ;;  %v13607_v21 = vpop.eup %11797 }
0x1e2d   :  { %8300 = vperm.xlu1 %11498, %v13589_v11   ;;  %v13611_v25 = vpop.eup %11799 }
0x1e2e   :  { %v13613_v22 = vpop.eup %11801 }
0x1e30   :  { %7662 = vperm.xlu0 %11497, %v13593_v53  }
0x1e31   :  { %7650 = vperm.xlu1 %11498, %v13595_v43  }
0x1e34   :  { %7665 = vperm.xlu0 %11497, %v13599_v37  }
0x1e35   :  { %7653 = vperm.xlu1 %11498, %v13601_v26  }
0x1e38   :  { %7668 = vperm.xlu0 %11497, %v13605_v18  }
0x1e39   :  { %8303 = vperm.xlu1 %11498, %v13607_v21  }
0x1e3c   :  { %8309 = vperm.xlu0 %11497, %v13611_v25  }
0x1e3d   :  { %8306 = vperm.xlu1 %11498, %v13613_v22  }
0x1e9f   :  { %v8289_v47 = vpop.permute.xlu0 %8288 }
0x1ea0   :  { %v8292_v45 = vpop.permute.xlu1 %8291  ;;  %v8314_v41 = vrot.slane %v8289_v47, %v13472_v3 }
0x1ea1   :  { %v8318_v24 = vrot.slane %v8292_v45, %v13472_v3 }
0x1ea3   :  { %v7648_v28 = vpop.permute.xlu0 %7647  ;;  %v8343_v12 = vsel %vm7554_vm7, %v8318_v24, %v8314_v41 }
0x1ea4   :  { %v8295_v29 = vpop.permute.xlu1 %8294  ;;  %v7673_v33 = vrot.slane %v7648_v28, %v13472_v3 }
0x1ea5   :  { %v8322_v31 = vrot.slane %v8295_v29, %v13472_v3 }
0x1ea7   :  { %v7657_v48 = vpop.permute.xlu0 %7656  ;;  %v8344_v63 = vsel %vm7556_vm8, %v8322_v31, %v8343_v12  ;;  %v7312_v12 = vld [vmem:[%s13815_s1 + $0x8] sm:$0xff] }
0x1ea8   :  { %v8298_v1 = vpop.permute.xlu1 %8297  ;;  %v7685_v23 = vrot.slane %v7657_v48, %v13472_v3 }
0x1ea9   :  { %v8326_v54 = vrot.slane %v8298_v1, %v13472_v3 }
0x1eab   :  { %v7660_v35 = vpop.permute.xlu0 %7659  ;;  %v8345_v45 = vsel %vm7558_vm9, %v8326_v54, %v8344_v63 }
0x1eac   :  { %v8301_v36 = vpop.permute.xlu1 %8300  ;;  %v7689_v60 = vrot.slane %v7660_v35, %v13472_v3 }
0x1ead   :  { %v8330_v42 = vrot.slane %v8301_v36, %v13472_v3 }
0x1eaf   :  { %v7663_v40 = vpop.permute.xlu0 %7662  ;;  %v8346_v1 = vsel %vm7560_vm10, %v8330_v42, %v8345_v45 }
0x1eb0   :  { %v7651_v59 = vpop.permute.xlu1 %7650  ;;  %v7693_v6 = vrot.slane %v7663_v40, %v13472_v3 }
0x1eb1   :  { %v7677_v44 = vrot.slane %v7651_v59, %v13472_v3 }
0x1eb3   :  { %v7666_v52 = vpop.permute.xlu0 %7665  ;;  %v7702_v0 = vsel %vm7554_vm7, %v7677_v44, %v7673_v33 }
0x1eb4   :  { %v7654_v38 = vpop.permute.xlu1 %7653  ;;  %v7697_v5 = vrot.slane %v7666_v52, %v13472_v3 }
0x1eb5   :  { %v7681_v20 = vrot.slane %v7654_v38, %v13472_v3 }
0x1eb7   :  { %v7703_v50 = vsel %vm7556_vm8, %v7681_v20, %v7702_v0  ;;  %v7669_v51 = vpop.permute.xlu0 %7668 }
0x1eb8   :  { %v7704_v62 = vsel %vm7558_vm9, %v7685_v23, %v7703_v50  ;;  %v7701_v7 = vrot.slane %v7669_v51, %v13472_v3  ;;  %v8304_v55 = vpop.permute.xlu1 %8303 }
0x1eb9   :  { %v7705_v58 = vsel %vm7560_vm10, %v7689_v60, %v7704_v62  ;;  %v8334_v13 = vrot.slane %v8304_v55, %v13472_v3 }
0x1eba   :  { %v7706_v15 = vsel %vm7562_vm11, %v7693_v6, %v7705_v58 }
0x1ebb   :  { %v8310_v39 = vpop.permute.xlu0 %8309  ;;  %v7707_v47 = vsel %vm7564_vm12, %v7697_v5, %v7706_v15  ;;  %v8347_v40 = vsel %vm7562_vm11, %v8334_v13, %v8346_v1  ;;  %v8636_v13 = vld [vmem:[#allocation30] sm:$0xff]  ;;  %v8637_v15 = vld [vmem:[#allocation30 + $0x8] sm:$0xff] }
0x1ebc   :  { %v8342_v28 = vrot.slane %v8310_v39, %v13472_v3  ;;  %v8307_v29 = vpop.permute.xlu1 %8306  ;;  %v7708_v48 = vsel %vm7566_vm13, %v7701_v7, %v7707_v47  ;;  %v13683_v63 = vpack.c.bf16 %v8637_v15, %v8636_v13  ;;  %v11823_v13 = vld [vmem:[#allocation6] sm:$0xff] }
0x1ebd   :  { %v8338_v35 = vrot.slane %v8307_v29, %v13472_v3  ;;  %v7710_v36 = vsel %vm7569_vm14, %v7708_v48, 0.0 }
0x1ebe   :  { %7711 = vadd.xlane.f32.xlu1 %v7710_v36  ;;  %11390 = vmatprep.subr.bf16.mxu1 %v13683_v63 }
0x1ebf   :  { %v8348_v59 = vsel %vm7564_vm12, %v8338_v35, %v8347_v40 }
0x1ec0   :  { %v8349_v44 = vsel %vm7566_vm13, %v8342_v28, %v8348_v59 }
0x1ec1   :  { %v8351_v52 = vsel %vm7569_vm14, %v8349_v44, 0.0 }
0x1ec2   :  { %8352 = vadd.xlane.f32.xlu0 %v8351_v52 }
0x1f4b   :  { %v7712_v33 = vpop.xlane.xlu1 %7711 }
0x1f4c   :  { %11803 = vrcp.f32 %v7712_v33 }
0x1f4f   :  { %v8353_v38 = vpop.xlane.xlu0 %8352 }
0x1f50   :  { %11805 = vrcp.f32 %v8353_v38 }
0x1f56   :  { %v11804_v20 = vpop.eup %11803 }
0x1f57   :  { %v7718_v50 = vrot.slane %v11804_v20, %v13350_v30  ;;  %v7730_v62 = vrot.slane %v11804_v20, %v13519_v10  ;;  %v7722_v55 = vrot.slane %v11804_v20, %v13507_v8  ;;  %v7726_v42 = vrot.slane %v11804_v20, %v13514_v56 }
0x1f58   :  { %v7746_v5 = vrot.slane %v11804_v20, %v13550_v19 }
0x1f59   :  { %v7755_v54 = vmul.f32 %v13567_v2, %v7718_v50 }
0x1f5a   :  { %v11806_v41 = vpop.eup %11805 }
0x1f5b   :  { %v8363_v24 = vrot.slane %v11806_v41, %v13507_v8  ;;  %v8359_v23 = vrot.slane %v11806_v41, %v13350_v30  ;;  %v8367_v60 = vrot.slane %v11806_v41, %v13514_v56  ;;  %v8371_v6 = vrot.slane %v11806_v41, %v13519_v10 }
0x1f5c   :  { %v8375_v7 = vrot.slane %v11806_v41, %v13527_v61  ;;  %v7734_v30 = vrot.slane %v11804_v20, %v13527_v61  ;;  %v7738_v10 = vrot.slane %v11804_v20, %v13535_v27  ;;  %v7742_v61 = vrot.slane %v11804_v20, %v13543_v16 }
0x1f5d   :  { %v8397_v0 = vmul.f32 %v13558_v57, %v8363_v24  ;;  %v8396_v31 = vmul.f32 %v13556_v49, %v8359_v23  ;;  %v8398_v51 = vmul.f32 %v13569_v4, %v8367_v60  ;;  %v8399_v57 = vmul.f32 %v13581_v14, %v8371_v6 }
0x1f5e   :  { %v7758_v49 = vmul.f32 %v13579_v9, %v7730_v62  ;;  %v8400_v4 = vmul.f32 %v13589_v11, %v8375_v7  ;;  %v7759_v2 = vmul.f32 %v13587_v17, %v7734_v30  ;;  %v7756_v14 = vmul.f32 %v13595_v43, %v7722_v55 }
0x1f5f   :  { %8416 = vperm.xlu1 %11498, %v8397_v0   ;;  %8413 = vperm.xlu0 %11497, %v8396_v31   ;;  %v7760_v9 = vmul.f32 %v13593_v53, %v7738_v10  ;;  %v7757_v11 = vmul.f32 %v13601_v26, %v7726_v42  ;;  %v7761_v17 = vmul.f32 %v13599_v37, %v7742_v61  ;;  %v8638_v42 = vld [vmem:[#allocation30 + $0x10] sm:$0xff]  ;;  %v8639_v61 = vld [vmem:[#allocation30 + $0x18] sm:$0xff] }
0x1f60   :  { %v8379_v8 = vrot.slane %v11806_v41, %v13535_v27  ;;  %v7762_v56 = vmul.f32 %v13605_v18, %v7746_v5  ;;  %v8383_v43 = vrot.slane %v11806_v41, %v13543_v16  ;;  %v8387_v58 = vrot.slane %v11806_v41, %v13550_v19  ;;  %v7311_v27 = vld [vmem:[%s13815_s1] sm:$0xff]  ;;  %v8832_v5 = vld [vmem:[%s12367_s19 + $0x8] sm:$0xff] }
0x1f62   :  { %v8401_v53 = vmul.f32 %v13607_v21, %v8379_v8  ;;  %v8402_v26 = vmul.f32 %v13613_v22, %v8383_v43  ;;  %v8403_v37 = vmul.f32 %v13611_v25, %v8387_v58  ;;  %v8831_v8 = vld [vmem:[%s12367_s19] sm:$0xff]  ;;  %v11393_v43 = vpack.c.bf16 %v8639_v61, %v8638_v42  ;;  %v8629_v58 = vld [vmem:[%s13816_s28 + $0x8] sm:$0xff] }
0x1f63   :  { %8419 = vperm.xlu1 %11498, %v8398_v51   ;;  %7772 = vperm.xlu0 %11497, %v7755_v54  }
0x1f67   :  { %8422 = vperm.xlu1 %11498, %v8399_v57   ;;  %7781 = vperm.xlu0 %11497, %v7758_v49  }
0x1f6b   :  { %8425 = vperm.xlu1 %11498, %v8400_v4   ;;  %7784 = vperm.xlu0 %11497, %v7759_v2  }
0x1f6f   :  { %7775 = vperm.xlu1 %11498, %v7756_v14   ;;  %7787 = vperm.xlu0 %11497, %v7760_v9  }
0x1f73   :  { %7778 = vperm.xlu1 %11498, %v7757_v11   ;;  %7790 = vperm.xlu0 %11497, %v7761_v17  }
0x1f77   :  { %8428 = vperm.xlu1 %11498, %v8401_v53   ;;  %7793 = vperm.xlu0 %11497, %v7762_v56  }
0x1f7b   :  { %8431 = vperm.xlu1 %11498, %v8402_v26   ;;  %8434 = vperm.xlu0 %11497, %v8403_v37   ;;  %v11413_v37 = vpack.c.bf16 %v8832_v5, %v8831_v8 }
0x1f7f   :  { %7314 = vperm.xlu1 %11498, %v7311_v27   ;;  %7317 = vperm.xlu0 %11497, %v7312_v12   ;;  %v8833_v27 = vld [vmem:[%s12367_s19 + $0x10] sm:$0xff]  ;;  %v8834_v12 = vld [vmem:[%s12367_s19 + $0x18] sm:$0xff]  ;;  %s13818_s19 = sld [smem:[#allocation53_spill]] }
0x1fde   :  { %v8414_v16 = vpop.permute.xlu0 %8413  ;;  %v8417_v19 = vpop.permute.xlu1 %8416 }
0x1fdf   :  { %v8439_v40 = vrot.slane %v8414_v16, %v13472_v3  ;;  %v8443_v59 = vrot.slane %v8417_v19, %v13472_v3  ;;  %v8823_v16 = vld [vmem:[%s13817_s21] sm:$0xff]  ;;  %v8824_v19 = vld [vmem:[%s13817_s21 + $0x8] sm:$0xff] }
0x1fe1   :  { %v8468_v6 = vsel %vm7554_vm7, %v8443_v59, %v8439_v40  ;;  %v8829_v59 = vld [vmem:[%s13817_s21 + $0x30] sm:$0xff] }
0x1fe2   :  { %v7773_v18 = vpop.permute.xlu0 %7772  ;;  %v8420_v21 = vpop.permute.xlu1 %8419 }
0x1fe3   :  { %v7798_v48 = vrot.slane %v7773_v18, %v13472_v3  ;;  %v8447_v33 = vrot.slane %v8420_v21, %v13472_v3  ;;  %v8631_v18 = vld [vmem:[%s13816_s28 + $0x18] sm:$0xff]  ;;  %v8825_v21 = vld [vmem:[%s13817_s21 + $0x10] sm:$0xff] }
0x1fe5   :  { %v8469_v49 = vsel %vm7556_vm8, %v8447_v33, %v8468_v6 }
0x1fe6   :  { %v7782_v39 = vpop.permute.xlu0 %7781  ;;  %v8423_v22 = vpop.permute.xlu1 %8422 }
0x1fe7   :  { %v7810_v44 = vrot.slane %v7782_v39, %v13472_v3  ;;  %v8451_v41 = vrot.slane %v8423_v22, %v13472_v3  ;;  %v8826_v22 = vld [vmem:[%s13817_s21 + $0x18] sm:$0xff] }
0x1fe9   :  { %v8470_v30 = vsel %vm7558_vm9, %v8451_v41, %v8469_v49 }
0x1fea   :  { %v7785_v47 = vpop.permute.xlu0 %7784  ;;  %v8426_v25 = vpop.permute.xlu1 %8425 }
0x1feb   :  { %v7814_v38 = vrot.slane %v7785_v47, %v13472_v3  ;;  %v8455_v60 = vrot.slane %v8426_v25, %v13472_v3  ;;  %v11425_v47 = vpack.c.bf16 %v8826_v22, %v8825_v21  ;;  %v8632_v25 = vld [vmem:[%s13816_s28 + $0x20] sm:$0xff] }
0x1fed   :  { %v8471_v10 = vsel %vm7560_vm10, %v8455_v60, %v8470_v30 }
0x1fee   :  { %v7788_v45 = vpop.permute.xlu0 %7787  ;;  %v7776_v28 = vpop.permute.xlu1 %7775 }
0x1fef   :  { %v7802_v29 = vrot.slane %v7776_v28, %v13472_v3  ;;  %v7818_v24 = vrot.slane %v7788_v45, %v13472_v3  ;;  %v8633_v45 = vld [vmem:[%s13816_s28 + $0x28] sm:$0xff]  ;;  %v8827_v28 = vld [vmem:[%s13817_s21 + $0x20] sm:$0xff] }
0x1ff1   :  { %v7827_v52 = vsel %vm7554_vm7, %v7802_v29, %v7798_v48  ;;  %v11405_v29 = vpack.c.bf16 %v8633_v45, %v8632_v25  ;;  %v8828_v48 = vld [vmem:[%s13817_s21 + $0x28] sm:$0xff] }
0x1ff2   :  { %v7791_v1 = vpop.permute.xlu0 %7790  ;;  %v7779_v35 = vpop.permute.xlu1 %7778 }
0x1ff3   :  { %v7806_v36 = vrot.slane %v7779_v35, %v13472_v3  ;;  %v7822_v50 = vrot.slane %v7791_v1, %v13472_v3  ;;  %v11429_v1 = vpack.c.bf16 %v8828_v48, %v8827_v28  ;;  %v8634_v35 = vld [vmem:[%s13816_s28 + $0x30] sm:$0xff] }
0x1ff5   :  { %v7828_v20 = vsel %vm7556_vm8, %v7806_v36, %v7827_v52  ;;  %v8635_v36 = vld [vmem:[%s13816_s28 + $0x38] sm:$0xff] }
0x1ff6   :  { %v7829_v23 = vsel %vm7558_vm9, %v7810_v44, %v7828_v20  ;;  %v7794_v0 = vpop.permute.xlu0 %7793  ;;  %v8429_v31 = vpop.permute.xlu1 %8428  ;;  %v11409_v40 = vpack.c.bf16 %v8635_v36, %v8634_v35  ;;  %v8830_v44 = vld [vmem:[%s13817_s21 + $0x38] sm:$0xff] }
0x1ff7   :  { %v7830_v51 = vsel %vm7560_vm10, %v7814_v38, %v7829_v23  ;;  %v7826_v54 = vrot.slane %v7794_v0, %v13472_v3  ;;  %v8459_v57 = vrot.slane %v8429_v31, %v13472_v3  ;;  %v11433_v52 = vpack.c.bf16 %v8830_v44, %v8829_v59 }
0x1ff8   :  { %v7831_v62 = vsel %vm7562_vm11, %v7818_v24, %v7830_v51  ;;  %v9327_v51 = vld [vmem:[%s13818_s19] ss:$0 sm:$0xff] }
0x1ff9   :  { %v7832_v7 = vsel %vm7564_vm12, %v7822_v50, %v7831_v62  ;;  %v8472_v11 = vsel %vm7562_vm11, %v8459_v57, %v8471_v10 }
0x1ffa   :  { %v7833_v4 = vsel %vm7566_vm13, %v7826_v54, %v7832_v7  ;;  %v8435_v2 = vpop.permute.xlu0 %8434  ;;  %v8432_v55 = vpop.permute.xlu1 %8431  ;;  %v9332_v54 = vld [vmem:[#allocation9] ss:$0 sm:$0xff] }
0x1ffb   :  { %7835 = vst.msk [vmem:[#allocation32] sm:$0xff] %vm7569_vm14, %v7833_v4  ;;  %v8467_v14 = vrot.slane %v8435_v2, %v13472_v3  ;;  %v8463_v9 = vrot.slane %v8432_v55, %v13472_v3  ;;  %10764 = vmatmul.mubr.msk.f32.vlgmr.msra.gmra.mrb[80].mxu0 %vm7569_vm14, %v7833_v4  ;;  %v8628_v3 = vld [vmem:[%s13816_s28] sm:$0xff] }
0x1ffc   :  { %10768 = vmatprep.mubr.msk.f32.mxu0 %vm12224_vm2, %v12225_v46  ;;  %v11397_v15 = vpack.c.bf16 %v8629_v58, %v8628_v3 }
0x1ffd   :  { %v8473_v17 = vsel %vm7564_vm12, %v8463_v9, %v8472_v11 }
0x1ffe   :  { %v7315_v53 = vpop.permute.xlu1 %7314  ;;  %v8474_v56 = vsel %vm7566_vm13, %v8467_v14, %v8473_v17  ;;  %v7318_v26 = vpop.permute.xlu0 %7317 }
0x1fff   :  { %vm7319_vm15 = vcmp.eq.s32.totalorder %v12502_v32, %v7315_v53  ;;  %10774 = vmatmul.mubr.msk.f32.vlgmr.msra.gmra.mrb[88].mxu1 %vm7569_vm14, %v8474_v56  ;;  %8477 = vst.msk [vmem:[#allocation32 + $0x8] sm:$0xff] %vm7569_vm14, %v8474_v56  ;;  %vm7320_vm0 = vcmp.eq.s32.totalorder %v12502_v32, %v7318_v26  ;;  %v11824_v32 = vld [vmem:[#allocation6 + $0x8] sm:$0xff] }
0x2000   :  { %11392 = vmatpush3.bf16.msra.mxu1 %v13683_v63  ;;  %10767 = vmatpush3.msk.msra.mxu0 %vm7319_vm15, %v12222_v34  ;;  %v11417_v63 = vpack.c.bf16 %v8834_v12, %v8833_v27 }
0x2001   :  { %10789 = vmatprep.mubr.msk.f32.mxu1 %vm503_vm4, %v11823_v13  ;;  %10769 = vmatmul.mubr.msk.f32.vlgmr.msra.gmra.mrb[82].mxu0 %vm7569_vm14, %v7833_v4 }
0x2002   :  { %10776 = vmatprep.subr.mxu0 %v12225_v46  ;;  %11394 = vmatprep.subr.bf16.mxu1 %v11393_v43 }
0x2003   :  { %10777 = vmatpush3.msk.msra.mxu0 %vm7320_vm0, %v12222_v34  ;;  %10778 = vmatprep.mubr.msk.f32.mxu0 %vm12224_vm2, %v12225_v46  ;;  %v11421_v34 = vpack.c.bf16 %v8824_v19, %v8823_v16  ;;  %v8630_v46 = vld [vmem:[%s13816_s28 + $0x10] sm:$0xff] }
0x2004   :  { %11396 = vmatpush3.bf16.msra.mxu1 %v11393_v43  ;;  %11414 = vmatprep.subr.bf16.mxu0 %v11413_v37  ;;  %v11401_v39 = vpack.c.bf16 %v8631_v18, %v8630_v46 }
0x2005   :  { %10779 = vmatmul.mubr.msk.f32.vlgmr.msra.gmra.mrb[84].mxu0 %vm7569_vm14, %v8474_v56  ;;  %11398 = vmatprep.subr.bf16.mxu1 %v11397_v15 }
0x2006   :  { %11416 = vmatpush3.bf16.msra.mxu0 %v11413_v37  ;;  %10819 = vmatprep.mubr.msk.f32.mxu0 %vm503_vm4, %v11823_v13 }
0x2007   :  { %10790 = vmatmul.mubr.msk.f32.vlgmr.msra.gmra.mrb[90].mxu1 %vm503_vm4, %v11824_v32  ;;  %11418 = vmatprep.subr.bf16.mxu0 %v11417_v63 }
0x2008   :  { %11400 = vmatpush3.bf16.msra.mxu1 %v11397_v15 }
0x2009   :  { %11402 = vmatprep.subr.bf16.mxu1 %v11401_v39 }
0x200a   :  { %11420 = vmatpush3.bf16.msra.mxu0 %v11417_v63 }
0x200b   :  { %11422 = vmatprep.subr.bf16.mxu0 %v11421_v34 }
0x200c   :  { %11404 = vmatpush3.bf16.msra.mxu1 %v11401_v39 }
0x200d   :  { %10820 = vmatmul.mubr.msk.f32.vlgmr.msra.gmra.mrb[86].mxu0 %vm503_vm4, %v11824_v32  ;;  %11406 = vmatprep.subr.bf16.mxu1 %v11405_v29 }
0x200e   :  { %11424 = vmatpush3.bf16.msra.mxu0 %v11421_v34 }
0x200f   :  { %11426 = vmatprep.subr.bf16.mxu0 %v11425_v47 }
0x2010   :  { %11408 = vmatpush3.bf16.msra.mxu1 %v11405_v29 }
0x2011   :  { %11410 = vmatprep.subr.bf16.mxu1 %v11409_v40 }
0x2012   :  { %11428 = vmatpush3.bf16.msra.mxu0 %v11425_v47 }
0x2013   :  { %11430 = vmatprep.subr.bf16.mxu0 %v11429_v1 }
0x2014   :  { %11412 = vmatpush3.bf16.msra.mxu1 %v11409_v40 }
0x2016   :  { %11432 = vmatpush3.bf16.msra.mxu0 %v11429_v1 }
0x2017   :  { %11434 = vmatprep.subr.bf16.mxu0 %v11433_v52 }
0x201a   :  { %11436 = vmatpush3.bf16.msra.mxu0 %v11433_v52 }
0x20ce   :  { %v7905_v33 = vpop.f32.mrb[80].mxu0 }
0x20cf   :  { %7909 = vst.msk [vmem:[#allocation7] sm:$0xff] %vm7144_vm1, %v7905_v33  ;;  %v10765_v38 = vpop.f32.mrb[81].mxu0 }
0x20d2   :  { %v8548_v20 = vpop.f32.mrb[88].mxu1 }
0x20d3   :  { %8552 = vst.msk [vmem:[#allocation7 + $0x8] sm:$0xff] %vm7144_vm1, %v8548_v20  ;;  %v10775_v41 = vpop.f32.mrb[89].mxu1 }
0x20d4   :  { %v13758_v24 = vpop.f32.mrb[82].mxu0 }
0x20d5   :  { %v10770_v23 = vpop.f32.mrb[83].mxu0 }
0x20d6   :  { %v8624_v0 = vld [vmem:[#allocation7] sm:$0xff] }
0x20d7   :  { %10808 = vmatprep.mubr.msk.f32.mxu1 %vm7144_vm1, %v8624_v0  ;;  %10838 = vmatprep.mubr.msk.f32.mxu0 %vm7144_vm1, %v8624_v0 }
0x20d8   :  { %v13762_v31 = vpop.f32.mrb[84].mxu0 }
0x20d9   :  { %v10780_v60 = vpop.f32.mrb[85].mxu0 }
0x20da   :  { %v8625_v50 = vld [vmem:[#allocation7 + $0x8] sm:$0xff] }
0x20db   :  { %10809 = vmatmul.mubr.msk.f32.vlgmr.msra.gmra.mrb[90].mxu1 %vm7144_vm1, %v8625_v50  ;;  %10839 = vmatmul.mubr.msk.f32.vlgmr.msra.gmra.mrb[86].mxu0 %vm7144_vm1, %v8625_v50 }
0x21ae   :  { %v10810_v6 = vpop.f32.mrb[90].mxu1  ;;  %v10840_v62 = vpop.f32.mrb[86].mxu0 }
0x21af   :  { %v8804_v57 = vadd.f32 %v10810_v6, %v9327_v51  ;;  %v8993_v49 = vadd.f32 %v10840_v62, %v9332_v54  ;;  %v8787_v7 = vpop.f32.mrb[91].mxu1  ;;  %v8976_v30 = vpop.f32.mrb[87].mxu0 }
0x21b0   :  { %v8803_v4 = vadd.f32 %v9327_v51, %v8787_v7  ;;  %v8992_v2 = vadd.f32 %v9332_v54, %v8976_v30 }
0x21b1   :  { %v9334_v55 = vmul.f32 -1.442695, %v8993_v49  ;;  %8807 = vmax.xlane.f32.xlu0 %v8804_v57 }
0x21b2   :  { %v9333_v10 = vmul.f32 -1.442695, %v8992_v2  ;;  %8805 = vmax.xlane.f32.xlu1 %v8803_v4 }
0x21b3   :  { %11807 = vpow2.f32 %v9334_v55 }
0x21b4   :  { %11809 = vpow2.f32 %v9333_v10 }
0x21bd   :  { %v11808_v14 = vpop.eup %11807 }
0x21be   :  { %v11810_v9 = vpop.eup %11809  ;;  %v9001_v42 = vadd.f32 1.0, %v11808_v14 }
0x21bf   :  { %v9000_v61 = vadd.f32 1.0, %v11810_v9 }
0x21c0   :  { %11811 = vrcp.f32 %v9001_v42 }
0x21c1   :  { %11813 = vrcp.f32 %v9000_v61 }
0x21ca   :  { %v11812_v11 = vpop.eup %11811 }
0x21cb   :  { %v11814_v17 = vpop.eup %11813  ;;  %v9007_v8 = vsub.f32 1.0, %v11812_v11 }
0x21cc   :  { %v9006_v5 = vsub.f32 1.0, %v11814_v17 }
0x21cd   :  { %9015 = vperm.xlu1 %11498, %v9007_v8  }
0x21ce   :  { %9010 = vperm.xlu0 %11497, %v9006_v5  }
0x223e   :  { %v8808_v53 = vpop.xlane.xlu0 %8807 }
0x223f   :  { %v8810_v56 = vsub.f32 %v8804_v57, %v8808_v53  ;;  %v8806_v43 = vpop.xlane.xlu1 %8805 }
0x2240   :  { %v8809_v3 = vsub.f32 %v8803_v4, %v8806_v43 }
0x2241   :  { %v8813_v58 = vmul.f32 1.442695, %v8810_v56 }
0x2242   :  { %v8811_v26 = vmul.f32 1.442695, %v8809_v3 }
0x2243   :  { %11815 = vpow2.f32 %v8813_v58 }
0x2244   :  { %11817 = vpow2.f32 %v8811_v26 }
0x224d   :  { %v11816_v37 = vpop.eup %11815 }
0x224e   :  { %v11818_v27 = vpop.eup %11817  ;;  %8817 = vadd.xlane.f32.xlu1 %v11816_v37 }
0x224f   :  { %8815 = vadd.xlane.f32.xlu0 %v11818_v27 }
0x225f   :  { %9022 = vperm.xlu1 %11498, %v11814_v17  }
0x2265   :  { %9027 = vperm.xlu0 %11497, %v11812_v11  }
0x2266   :  { %12122 = shalt.err (!%p12119_p10)
}
0x2267   :  { %s12123_s11 = scalar_lea.hbm %s12380_s8, 256 }
0x2268   :  { %p12124_p11 = scmp.ne.s32.totalorder %s12380_s8, %s12123_s11  ;;  %p12127_p12 = scmp.lt.u32.totalorder %s12123_s11, %s12380_s8 }
0x226a   :  { %p12129_p13 = pnand %p12127_p12, %p12124_p11 }
0x226c   :  { %12132 = shalt.err (!%p12129_p13)
}
0x226d   :  { %9060 = dma.vmem_to_hbm [thread:$0]  %s9055_s10, 256, %s12380_s8, [#allocation33], %s12204_s23, %s12204_s23, %s12205_s13   ;;  %v9016_v12 = vpop.permute.xlu1 %9015  ;;  %v9011_v13 = vpop.permute.xlu0 %9010 }
0x226e   :  { %s12228_s9 = smov [#allocation31]  }
0x226f   :  { %s9042_s15 = sshll.u32 %s12228_s9, 4  ;;  %s9043_s15 = int_to_ptr.vmem [resolvable:$true] %s9042_s15 }
0x2270   :  { %s12133_s8 = scalar_lea.vmem %s9043_s15, 256  ;;  %p12138_p1 = scmp.lt.s32.totalorder %s9043_s15, %s9043_s15 }
0x2271   :  { %p12134_p0 = scmp.ne.s32.totalorder %s9043_s15, %s12133_s8  ;;  %p12139_p2 = scmp.lt.s32.totalorder %s12133_s8, %s12133_s8 }
0x2273   :  { %p12140_p3 = por %p12139_p2, %p12138_p1 }
0x2275   :  { %p12141_p4 = pnand %p12140_p3, %p12134_p0 }
0x22db   :  { %v8818_v15 = vpop.xlane.xlu1 %8817 }
0x22dc   :  { %11819 = vrcp.f32 %v8818_v15  ;;  %v8816_v63 = vpop.xlane.xlu0 %8815 }
0x22dd   :  { %11821 = vrcp.f32 %v8816_v63 }
0x22df   :  { %v9023_v34 = vpop.permute.xlu1 %9022 }
0x22e0   :  { %v9030_v47 = vmul.f32 %v9023_v34, %v13758_v24 }
0x22e4   :  { %v9028_v19 = vpop.permute.xlu0 %9027 }
0x22e5   :  { %v9031_v39 = vmul.f32 %v9028_v19, %v13762_v31 }
0x22e6   :  { %v11820_v16 = vpop.eup %11819 }
0x22e7   :  { %v11822_v32 = vpop.eup %11821  ;;  %v8822_v46 = vmul.f32 %v11820_v16, %v11816_v37 }
0x22e8   :  { %v8821_v18 = vmul.f32 %v11822_v32, %v11818_v27 }
0x22e9   :  { %v9019_v21 = vmul.f32 %v9016_v12, %v8822_v46 }
0x22ea   :  { %v9018_v22 = vmul.f32 %v9011_v13, %v8821_v18 }
0x22eb   :  { %v9033_v25 = vadd.f32 %v9031_v39, %v9019_v21 }
0x22ec   :  { %v9032_v45 = vadd.f32 %v9030_v47, %v9018_v22 }
0x22ed   :  { %9036 = vst [vmem:[#allocation31 + $0x8] sm:$0xff] %v9033_v25 }
0x22ee   :  { %9034 = vst [vmem:[#allocation31] sm:$0xff] %v9032_v45 }
0x22ef   :  { %12144 = shalt.err (!%p12141_p4)
}
0x22f0   :  { %s12145_s0 = scalar_lea.hbm %s12375_s14, 256 }
0x22f1   :  { %p12146_p5 = scmp.ne.s32.totalorder %s12375_s14, %s12145_s0  ;;  %p12149_p6 = scmp.lt.u32.totalorder %s12145_s0, %s12375_s14 }
0x22f3   :  { %p12151_p7 = pnand %p12149_p6, %p12146_p5 }
0x22f5   :  { %12154 = shalt.err (!%p12151_p7)
}
0x22f6   :  { %9048 = dma.vmem_to_hbm [thread:$0]  %s9043_s15, 256, %s12375_s14, [#allocation12], %s12204_s23, %s12204_s23, %s12205_s13  }
0x22f7   :  { %12169 = dma.done.wait [#allocation12], 256  }
0x22f8   :  { %12170 = vsyncadd [#allocation12], 4294967040 }
0x22f9   :  { %12171 = dma.done.wait [#allocation33], 256  }
0x22fa   :  { %12172 = vsyncadd [#allocation33], 4294967040 }
0x22fb   :  { %9067 = vsyncpa [#allocation11], 1 }
0x22fc   :  { %9068 = vsyncpa [#allocation14], 1 }
0x22fd   :  { %9069 = vsyncpa [#allocation17], 1 }
0x22fe   :  { %9070 = vsyncpa [#allocation20], 1 }
0x22ff   :  { %9071 = vsyncpa [#allocation23], 1 }
0x2300   :  { %9072 = vsyncpa [#allocation26], 1 }
0x2301   :  { %9073 = vsyncpa [#allocation29], 1 }
0x2302   :  { %9074 = vsyncpa [#allocation12], 1 }
0x2303   :  { %9075 = vsyncpa [#allocation33], 1 }

</bundles_post_ra>
